<compile_context>
chip_gen: v7x
topology: tpu7x:2x2x1
jax: 0.10.0
libtpu: 0.0.40
codegen_flags: <defaults>
</compile_context>

<pallas_src>
import jax
import jax.numpy as jnp
from jax.experimental import pallas as pl
from jax.experimental.pallas import tpu as pltpu


# ------------------- Kernel A: attention + single-step GRU ------------------ #
def attn_gru_kernel(
    emb_ref, hid_ref, enc_ref,                 # activations
    wa_h_ref, wa_e_ref, ba_ref, v_ref,         # attention params
    wih_e_ref, wih_c_ref, whh_ref,             # fused GRU weights (row-split)
    b_ih_ref, b_hh_ref,                        # GRU biases (whole, [1, 3*Hd])
    hnew_ref, attn_ref, ctx_ref,               # outputs
):
    f32 = jnp.float32
    bf16 = jnp.bfloat16
    emb = emb_ref[...]                         # [B, E]
    h = hid_ref[...]                           # [B, Hd]
    enc = enc_ref[...]                         # [B, S, He]
    B, S, He = enc.shape
    Hd = h.shape[1]

    # --- Bahdanau attention: tanh([h | enc] @ Wa^T + b) @ v, softmax over S ---
    h_proj = jnp.dot(h, wa_h_ref[...], preferred_element_type=f32)           # [B, Hd]
    # Largest matmul in kernel A (M=B*S) -> bf16 operands, f32 accumulate.
    e_proj = jnp.dot(enc.reshape(B * S, He).astype(bf16),
                     wa_e_ref[...].astype(bf16),
                     preferred_element_type=f32).reshape(B, S, Hd)           # [B, S, Hd]
    energy = jnp.tanh(h_proj[:, None, :] + e_proj + ba_ref[...])             # [B, S, Hd]
    scores = jnp.sum(energy * v_ref[...], axis=-1)                           # [B, S]
    m = jnp.max(scores, axis=1, keepdims=True)
    ex = jnp.exp(scores - m)
    attn = ex / jnp.sum(ex, axis=1, keepdims=True)                           # [B, S]

    # --- context vector on the MXU: bmm(attn[B,1,S], enc[B,S,He]) -> [B, He] ---
    context = jnp.einsum("bqs,bse->bqe", attn[:, None, :], enc,
                         preferred_element_type=f32)[:, 0, :]                # [B, He]

    # --- single-step GRU, fused gate matmuls (PyTorch gate ordering r, z, n) ---
    # gi = [emb | ctx] @ W_ih + b_ih, concat eliminated via row-split weights
    gi = (jnp.dot(emb, wih_e_ref[...], preferred_element_type=f32)
          + jnp.dot(context, wih_c_ref[...], preferred_element_type=f32)
          + b_ih_ref[...])                                                   # [B, 3*Hd]
    gh = jnp.dot(h, whh_ref[...], preferred_element_type=f32) + b_hh_ref[...]
    r = jax.nn.sigmoid(gi[:, :Hd] + gh[:, :Hd])
    z = jax.nn.sigmoid(gi[:, Hd:2 * Hd] + gh[:, Hd:2 * Hd])
    n = jnp.tanh(gi[:, 2 * Hd:] + r * gh[:, 2 * Hd:])
    h_new = (1.0 - z) * n + z * h                                            # [B, Hd]

    hnew_ref[...] = h_new
    attn_ref[...] = attn
    ctx_ref[...] = context


# ------------- Kernel B: fc_out, vocab-tiled, bf16 weight streaming ---------- #
def fc_out_kernel(x_ref, wo_ref, bo_ref, pred_ref):
    # x = [h_new | ctx | emb] (bf16, concat done once in wrapper)
    # wo = fused [K, tile_v] bf16 weight slab -> one MXU push with full K.
    acc = jnp.dot(x_ref[...], wo_ref[...], preferred_element_type=jnp.float32)
    pred_ref[...] = acc + bo_ref[...]


# ----------------------- one-time parameter preparation ---------------------- #
def _pick_tile_v(V, hint=512):
    """128-aligned vocab tile; keep >=2 (preferably even #) grid steps for v7x dual-TC."""
    hint = max(128, (hint // 128) * 128)
    best = None
    for cand in range(hint, 127, -128):
        g = (V + cand - 1) // cand
        if g < 2:
            continue
        if g % 2 == 0:
            return cand
        if best is None:
            best = cand
    return best if best is not None else 128


def prepare_decoder_params(params, E, He, Hd, tile_v_hint=512):
    """Hoist all per-step weight reshaping/casting out of the decode loop."""
    K, V = params["wo"].shape
    tile_v = _pick_tile_v(V, tile_v_hint)
    v_pad = pl.cdiv(V, tile_v) * tile_v
    pad = v_pad - V
    wo = params["wo"]
    bo = params["bo"]
    if pad:
        wo = jnp.pad(wo, ((0, 0), (0, pad)))
        bo = jnp.pad(bo, ((0, 0), (0, pad)))
    # TODO(synk): on v5e (int8) / v7x (fp8) the fc_out weight could be further
    # quantized with per-channel scales; bf16 is the portable choice here.
    return dict(
        embedding=params["embedding"],
        wa_h=params["wa"][:Hd],            # [Hd, Hd]
        wa_e=params["wa"][Hd:],            # [He, Hd]
        ba=params["ba"], v=params["v"],
        wih_e=params["w_ih"][:E],          # [E,  3*Hd]
        wih_c=params["w_ih"][E:],          # [He, 3*Hd]
        w_hh=params["w_hh"], b_ih=params["b_ih"], b_hh=params["b_hh"],
        wo_bf16=wo.astype(jnp.bfloat16),   # persistent padded bf16 fused weight
        bo_pad=bo,                         # f32 padded bias
        tile_v=tile_v, v_pad=v_pad, V=V, K=K,
    )


# --------------------------------- wrapper ---------------------------------- #
def attention_decoder_forward(prep, tokens, hidden, encoder_outputs):
    """tokens [B,1] int32, hidden [1,B,Hd] f32, encoder_outputs [B,S,He] f32."""
    B, S, He = encoder_outputs.shape
    Hd = hidden.shape[-1]
    E = prep["embedding"].shape[1]

    # glue: embedding lookup (dropout p=0.0 is identity)
    emb = jnp.take(prep["embedding"], tokens[:, 0], axis=0)                  # [B, E]
    h = hidden[-1]                                                           # [B, Hd]

    vmem = pl.BlockSpec(memory_space=pltpu.MemorySpace.VMEM)

    # VMEM guard for the gridless all-VMEM kernel A (v7x: 64 MiB part).
    vmem_bytes_a = 4 * (B * E + B * Hd + B * S * He
                        + (He + Hd) * Hd + 2 * Hd
                        + (E + He + Hd) * 3 * Hd + 6 * Hd
                        + B * Hd + B * S + B * He
                        + 2 * B * S * Hd)          # e_proj / energy temporaries
    # TODO(synk): for long S / large B, switch kernel A to an S-tiled grid with
    # online softmax (flash-style) instead of the gridless all-VMEM form.
    assert vmem_bytes_a < 24 * 1024 * 1024, "kernel A exceeds conservative VMEM budget"

    flops_a = (2 * B * Hd * Hd + 2 * B * S * He * Hd
               + 2 * B * (E + He + Hd) * 3 * Hd + 2 * B * S * He)
    trans_a = B * S * Hd + B * S + 3 * B * Hd
    bytes_a = vmem_bytes_a

    h_new, attn, context = pl.pallas_call(
        attn_gru_kernel,
        out_shape=(
            jax.ShapeDtypeStruct((B, Hd), jnp.float32),
            jax.ShapeDtypeStruct((B, S), jnp.float32),
            jax.ShapeDtypeStruct((B, He), jnp.float32),
        ),
        in_specs=[vmem] * 12,
        out_specs=(vmem, vmem, vmem),
        cost_estimate=pl.CostEstimate(flops=flops_a, transcendentals=trans_a,
                                      bytes_accessed=bytes_a),
    )(emb, h, encoder_outputs,
      prep["wa_h"], prep["wa_e"], prep["ba"], prep["v"],
      prep["wih_e"], prep["wih_c"], prep["w_hh"], prep["b_ih"], prep["b_hh"])

    # --- fc_out: vocab-tiled, single fused K matmul, bf16 weight streaming ---
    tile_v, v_pad, V, K = prep["tile_v"], prep["v_pad"], prep["V"], prep["K"]
    grid_v = v_pad // tile_v

    # one-time (tiny) activation concat + bf16 cast; removes 3 short-K dots
    x = jnp.concatenate([h_new, context, emb], axis=1).astype(jnp.bfloat16)  # [B, K]

    flops_b = 2 * B * K * v_pad
    bytes_b = 2 * K * v_pad + 2 * B * K + 4 * (v_pad + B * v_pad)

    pred = pl.pallas_call(
        fc_out_kernel,
        out_shape=jax.ShapeDtypeStruct((B, v_pad), jnp.float32),
        grid=(grid_v,),
        in_specs=[
            pl.BlockSpec((B, K), lambda j: (0, 0)),
            # NOTE: if weight DMA is still exposed, pipeline_mode=pl.Buffered(3)
            # on this spec is the next lever (VMEM headroom exists on all gens).
            pl.BlockSpec((K, tile_v), lambda j: (0, j)),
            pl.BlockSpec((1, tile_v), lambda j: (0, j)),
        ],
        out_specs=pl.BlockSpec((B, tile_v), lambda j: (0, j)),
        compiler_params=pltpu.CompilerParams(
            dimension_semantics=("parallel",),        # v7x: shard vocab tiles over 2 TCs
            vmem_limit_bytes=32 * 1024 * 1024,
        ),
        cost_estimate=pl.CostEstimate(flops=flops_b, transcendentals=0,
                                      bytes_accessed=bytes_b),
    )(x, prep["wo_bf16"], prep["bo_pad"])

    if v_pad != V:
        pred = pred[:, :V]

    hidden_out = h_new[None]            # [1, B, Hd]   (num_layers=1)
    attn_out = attn[:, None, :]         # [B, 1, S]
    return pred, hidden_out, attn_out


# ------------------------------ parameter init ------------------------------ #
def init_params(key, V, E, He, Hd):
    ks = jax.random.split(key, 10)

    def u(k, shape, fan_in):
        bound = 1.0 / jnp.sqrt(jnp.float32(fan_in))
        return jax.random.uniform(k, shape, jnp.float32, -bound, bound)

    return dict(
        embedding=u(ks[0], (V, E), E),               # nn.Embedding(V, E)
        wa=u(ks[1], (He + Hd, Hd), He + Hd),         # attn.weight^T
        ba=u(ks[2], (1, Hd), He + Hd),               # attn.bias
        v=u(ks[3], (1, Hd), Hd),                     # v.weight (no bias)
        w_ih=u(ks[4], (E + He, 3 * Hd), Hd),         # GRU weight_ih_l0^T (r|z|n)
        w_hh=u(ks[5], (Hd, 3 * Hd), Hd),             # GRU weight_hh_l0^T
        b_ih=u(ks[6], (1, 3 * Hd), Hd),
        b_hh=u(ks[7], (1, 3 * Hd), Hd),
        wo=u(ks[8], (Hd + He + E, V), Hd + He + E),  # fc_out.weight^T
        bo=u(ks[9], (1, V), Hd + He + E),
    )


# ---------------------------- pure-JAX reference ---------------------------- #
def reference_forward(params, tokens, hidden, encoder_outputs):
    B, S, He = encoder_outputs.shape
    Hd = hidden.shape[-1]
    emb = jnp.take(params["embedding"], tokens[:, 0], axis=0)
    h = hidden[-1]
    wa_h, wa_e = params["wa"][:Hd], params["wa"][Hd:]
    energy = jnp.tanh((h @ wa_h)[:, None, :]
                      + jnp.einsum("bse,ed->bsd", encoder_outputs, wa_e)
                      + params["ba"])
    scores = jnp.einsum("bsd,d->bs", energy, params["v"][0])
    attn = jax.nn.softmax(scores, axis=1)
    context = jnp.einsum("bs,bse->be", attn, encoder_outputs)
    x = jnp.concatenate([emb, context], axis=1)
    gi = x @ params["w_ih"] + params["b_ih"]
    gh = h @ params["w_hh"] + params["b_hh"]
    r = jax.nn.sigmoid(gi[:, :Hd] + gh[:, :Hd])
    z = jax.nn.sigmoid(gi[:, Hd:2 * Hd] + gh[:, Hd:2 * Hd])
    n = jnp.tanh(gi[:, 2 * Hd:] + r * gh[:, 2 * Hd:])
    h_new = (1.0 - z) * n + z * h
    pred_in = jnp.concatenate([h_new, context, emb], axis=1)
    pred = pred_in @ params["wo"] + params["bo"]
    return pred, h_new[None], attn[:, None, :]


# ----------------------------------- main ------------------------------------ #
if __name__ == "__main__":
    # (8,128)-friendly small shapes: B mult of 8, S/E/Hd/He mult of 128;
    # V intentionally NOT 128-aligned to exercise the vocab-padding path.
    B, S = 8, 128
    V, E, He, Hd = 500, 128, 256, 128   # vocab, embed, encoder_hidden(=2*enc), decoder_hidden

    key = jax.random.PRNGKey(0)
    kp, kt, kh, ke = jax.random.split(key, 4)
    params = init_params(kp, V, E, He, Hd)
    tokens = jax.random.randint(kt, (B, 1), 0, V, dtype=jnp.int32)
    hidden = jax.random.normal(kh, (1, B, Hd), jnp.float32)
    enc_out = jax.random.normal(ke, (B, S, He), jnp.float32)

    # one-time weight prep (pad + bf16 cast + row splits) -- NOT per decode step
    prep = prepare_decoder_params(params, E, He, Hd, tile_v_hint=512)
    jax.block_until_ready(prep["wo_bf16"])

    pred, h_out, attn = attention_decoder_forward(prep, tokens, hidden, enc_out)
    jax.block_until_ready((pred, h_out, attn))

    pred_r, h_r, attn_r = reference_forward(params, tokens, hidden, enc_out)
    assert pred.shape == (B, V) and h_out.shape == (1, B, Hd) and attn.shape == (B, 1, S)
    # attention-energy matmul runs in bf16 (f32 accumulate) -> mildly relaxed tolerance
    assert jnp.allclose(attn, attn_r, atol=2e-3, rtol=1e-2)
    assert jnp.allclose(h_out, h_r, atol=1e-2, rtol=1e-2)
    # fc_out streams persistent bf16 weights (weight-streaming-bound step)
    assert jnp.allclose(pred, pred_r, atol=2e-2, rtol=2e-2)

    print("KERNEL_OK")
</pallas_src>

<mosaic_0001>
module attributes {stable_mosaic.version = 11 : i64} {
  func.func @attn_gru_kernel(%arg0: memref<8x128xf32, #tpu.memory_space<vmem>>, %arg1: memref<8x128xf32, #tpu.memory_space<vmem>>, %arg2: memref<8x128x256xf32, #tpu.memory_space<vmem>>, %arg3: memref<128x128xf32, #tpu.memory_space<vmem>>, %arg4: memref<256x128xf32, #tpu.memory_space<vmem>>, %arg5: memref<1x128xf32, #tpu.memory_space<vmem>>, %arg6: memref<1x128xf32, #tpu.memory_space<vmem>>, %arg7: memref<128x384xf32, #tpu.memory_space<vmem>>, %arg8: memref<256x384xf32, #tpu.memory_space<vmem>>, %arg9: memref<128x384xf32, #tpu.memory_space<vmem>>, %arg10: memref<1x384xf32, #tpu.memory_space<vmem>>, %arg11: memref<1x384xf32, #tpu.memory_space<vmem>>, %arg12: memref<8x128xf32, #tpu.memory_space<vmem>>, %arg13: memref<8x128xf32, #tpu.memory_space<vmem>>, %arg14: memref<8x256xf32, #tpu.memory_space<vmem>>) attributes {dimension_semantics = [], scalar_prefetch = 0 : i64, scratch_operands = 0 : i64, tpu.core_type = #tpu.core_type<tc>} {
    %c0 = arith.constant 0 : index
    %c0_0 = arith.constant 0 : index
    %0 = vector.load %arg0[%c0, %c0_0] : memref<8x128xf32, #tpu.memory_space<vmem>>, vector<8x128xf32>
    %c0_1 = arith.constant 0 : index
    %c0_2 = arith.constant 0 : index
    %1 = vector.load %arg1[%c0_1, %c0_2] : memref<8x128xf32, #tpu.memory_space<vmem>>, vector<8x128xf32>
    %c0_3 = arith.constant 0 : index
    %c0_4 = arith.constant 0 : index
    %c0_5 = arith.constant 0 : index
    %2 = vector.load %arg2[%c0_3, %c0_4, %c0_5] : memref<8x128x256xf32, #tpu.memory_space<vmem>>, vector<8x128x256xf32>
    %c0_6 = arith.constant 0 : index
    %c0_7 = arith.constant 0 : index
    %3 = vector.load %arg3[%c0_6, %c0_7] : memref<128x128xf32, #tpu.memory_space<vmem>>, vector<128x128xf32>
    %cst = arith.constant dense<0.000000e+00> : vector<8x128xf32>
    %4 = tpu.matmul %1, %3, %cst {dimension_numbers = #tpu.dot_dimension_numbers<[1], [0], [0], [1], [0, 0, 1, 1], [], []>} : vector<8x128xf32>, vector<128x128xf32>, vector<8x128xf32> -> vector<8x128xf32>
    %5 = vector.shape_cast %2 : vector<8x128x256xf32> to vector<1024x256xf32>
    %6 = arith.truncf %5 : vector<1024x256xf32> to vector<1024x256xbf16>
    %c0_8 = arith.constant 0 : index
    %c0_9 = arith.constant 0 : index
    %7 = vector.load %arg4[%c0_8, %c0_9] : memref<256x128xf32, #tpu.memory_space<vmem>>, vector<256x128xf32>
    %8 = arith.truncf %7 : vector<256x128xf32> to vector<256x128xbf16>
    %cst_10 = arith.constant dense<0.000000e+00> : vector<1024x128xf32>
    %9 = tpu.matmul %6, %8, %cst_10 {dimension_numbers = #tpu.dot_dimension_numbers<[1], [0], [0], [1], [0, 0, 1, 1], [], []>} : vector<1024x256xbf16>, vector<256x128xbf16>, vector<1024x128xf32> -> vector<1024x128xf32>
    %10 = vector.shape_cast %9 : vector<1024x128xf32> to vector<8x128x128xf32>
    %11 = vector.shape_cast %4 : vector<8x128xf32> to vector<8x1x128xf32>
    %12 = vector.broadcast %11 : vector<8x1x128xf32> to vector<8x128x128xf32>
    %13 = arith.addf %12, %10 : vector<8x128x128xf32>
    %c0_11 = arith.constant 0 : index
    %c0_12 = arith.constant 0 : index
    %14 = vector.load %arg5[%c0_11, %c0_12] : memref<1x128xf32, #tpu.memory_space<vmem>>, vector<1x128xf32>
    %15 = vector.shape_cast %14 : vector<1x128xf32> to vector<1x1x128xf32>
    %16 = vector.broadcast %15 : vector<1x1x128xf32> to vector<8x128x128xf32>
    %17 = arith.addf %13, %16 : vector<8x128x128xf32>
    %18 = math.tanh %17 : vector<8x128x128xf32>
    %c0_13 = arith.constant 0 : index
    %c0_14 = arith.constant 0 : index
    %19 = vector.load %arg6[%c0_13, %c0_14] : memref<1x128xf32, #tpu.memory_space<vmem>>, vector<1x128xf32>
    %20 = vector.shape_cast %19 : vector<1x128xf32> to vector<1x1x128xf32>
    %21 = vector.broadcast %20 : vector<1x1x128xf32> to vector<8x128x128xf32>
    %22 = arith.mulf %18, %21 : vector<8x128x128xf32>
    %cst_15 = arith.constant dense<0.000000e+00> : vector<8x128xf32>
    %23 = vector.multi_reduction <add>, %22, %cst_15 [2] : vector<8x128x128xf32> to vector<8x128xf32>
    %cst_16 = arith.constant dense<0xFF800000> : vector<8xf32>
    %24 = vector.multi_reduction <maximumf>, %23, %cst_16 [1] : vector<8x128xf32> to vector<8xf32>
    %25 = vector.shape_cast %24 : vector<8xf32> to vector<8x1xf32>
    %26 = vector.broadcast %25 : vector<8x1xf32> to vector<8x128xf32>
    %27 = arith.subf %23, %26 : vector<8x128xf32>
    %28 = math.exp %27 : vector<8x128xf32>
    %cst_17 = arith.constant dense<0.000000e+00> : vector<8xf32>
    %29 = vector.multi_reduction <add>, %28, %cst_17 [1] : vector<8x128xf32> to vector<8xf32>
    %30 = vector.shape_cast %29 : vector<8xf32> to vector<8x1xf32>
    %31 = vector.broadcast %30 : vector<8x1xf32> to vector<8x128xf32>
    %32 = arith.divf %28, %31 : vector<8x128xf32>
    %33 = vector.shape_cast %32 : vector<8x128xf32> to vector<8x1x128xf32>
    "tpu.trace_start"() <{level = 10 : i32, message = "bqs,bse->bqe"}> : () -> ()
    %cst_18 = arith.constant dense<0.000000e+00> : vector<8x1x256xf32>
    %34 = tpu.matmul %33, %2, %cst_18 {dimension_numbers = #tpu.dot_dimension_numbers<[2], [1], [1], [2], [0, 0, 0, 1, 1, 2], [0], [0]>} : vector<8x1x128xf32>, vector<8x128x256xf32>, vector<8x1x256xf32> -> vector<8x1x256xf32>
    "tpu.trace_stop"() : () -> ()
    %35 = vector.shape_cast %34 : vector<8x1x256xf32> to vector<8x256xf32>
    %c0_19 = arith.constant 0 : index
    %c0_20 = arith.constant 0 : index
    %36 = vector.load %arg7[%c0_19, %c0_20] : memref<128x384xf32, #tpu.memory_space<vmem>>, vector<128x384xf32>
    %cst_21 = arith.constant dense<0.000000e+00> : vector<8x384xf32>
    %37 = tpu.matmul %0, %36, %cst_21 {dimension_numbers = #tpu.dot_dimension_numbers<[1], [0], [0], [1], [0, 0, 1, 1], [], []>} : vector<8x128xf32>, vector<128x384xf32>, vector<8x384xf32> -> vector<8x384xf32>
    %c0_22 = arith.constant 0 : index
    %c0_23 = arith.constant 0 : index
    %38 = vector.load %arg8[%c0_22, %c0_23] : memref<256x384xf32, #tpu.memory_space<vmem>>, vector<256x384xf32>
    %cst_24 = arith.constant dense<0.000000e+00> : vector<8x384xf32>
    %39 = tpu.matmul %35, %38, %cst_24 {dimension_numbers = #tpu.dot_dimension_numbers<[1], [0], [0], [1], [0, 0, 1, 1], [], []>} : vector<8x256xf32>, vector<256x384xf32>, vector<8x384xf32> -> vector<8x384xf32>
    %40 = arith.addf %37, %39 : vector<8x384xf32>
    %c0_25 = arith.constant 0 : index
    %c0_26 = arith.constant 0 : index
    %41 = vector.load %arg10[%c0_25, %c0_26] : memref<1x384xf32, #tpu.memory_space<vmem>>, vector<1x384xf32>
    %42 = vector.broadcast %41 : vector<1x384xf32> to vector<8x384xf32>
    %43 = arith.addf %40, %42 : vector<8x384xf32>
    %c0_27 = arith.constant 0 : index
    %c0_28 = arith.constant 0 : index
    %44 = vector.load %arg9[%c0_27, %c0_28] : memref<128x384xf32, #tpu.memory_space<vmem>>, vector<128x384xf32>
    %cst_29 = arith.constant dense<0.000000e+00> : vector<8x384xf32>
    %45 = tpu.matmul %1, %44, %cst_29 {dimension_numbers = #tpu.dot_dimension_numbers<[1], [0], [0], [1], [0, 0, 1, 1], [], []>} : vector<8x128xf32>, vector<128x384xf32>, vector<8x384xf32> -> vector<8x384xf32>
    %c0_30 = arith.constant 0 : index
    %c0_31 = arith.constant 0 : index
    %46 = vector.load %arg11[%c0_30, %c0_31] : memref<1x384xf32, #tpu.memory_space<vmem>>, vector<1x384xf32>
    %47 = vector.broadcast %46 : vector<1x384xf32> to vector<8x384xf32>
    %48 = arith.addf %45, %47 : vector<8x384xf32>
    %49 = vector.extract_strided_slice %43 {offsets = [0, 0], sizes = [8, 128], strides = [1, 1]} : vector<8x384xf32> to vector<8x128xf32>
    %50 = vector.extract_strided_slice %48 {offsets = [0, 0], sizes = [8, 128], strides = [1, 1]} : vector<8x384xf32> to vector<8x128xf32>
    %51 = arith.addf %49, %50 : vector<8x128xf32>
    %52 = arith.negf %51 : vector<8x128xf32>
    %53 = math.exp %52 : vector<8x128xf32>
    %cst_32 = arith.constant 1.000000e+00 : f32
    %54 = vector.broadcast %cst_32 : f32 to vector<8x128xf32>
    %55 = arith.addf %54, %53 : vector<8x128xf32>
    %56 = arith.divf %54, %55 : vector<8x128xf32>
    %57 = vector.extract_strided_slice %43 {offsets = [0, 128], sizes = [8, 128], strides = [1, 1]} : vector<8x384xf32> to vector<8x128xf32>
    %58 = vector.extract_strided_slice %48 {offsets = [0, 128], sizes = [8, 128], strides = [1, 1]} : vector<8x384xf32> to vector<8x128xf32>
    %59 = arith.addf %57, %58 : vector<8x128xf32>
    %60 = arith.negf %59 : vector<8x128xf32>
    %61 = math.exp %60 : vector<8x128xf32>
    %cst_33 = arith.constant 1.000000e+00 : f32
    %62 = vector.broadcast %cst_33 : f32 to vector<8x128xf32>
    %63 = arith.addf %62, %61 : vector<8x128xf32>
    %64 = arith.divf %62, %63 : vector<8x128xf32>
    %65 = vector.extract_strided_slice %43 {offsets = [0, 256], sizes = [8, 128], strides = [1, 1]} : vector<8x384xf32> to vector<8x128xf32>
    %66 = vector.extract_strided_slice %48 {offsets = [0, 256], sizes = [8, 128], strides = [1, 1]} : vector<8x384xf32> to vector<8x128xf32>
    %67 = arith.mulf %56, %66 : vector<8x128xf32>
    %68 = arith.addf %65, %67 : vector<8x128xf32>
    %69 = math.tanh %68 : vector<8x128xf32>
    %cst_34 = arith.constant 1.000000e+00 : f32
    %70 = vector.broadcast %cst_34 : f32 to vector<8x128xf32>
    %71 = arith.subf %70, %64 : vector<8x128xf32>
    %72 = arith.mulf %71, %69 : vector<8x128xf32>
    %73 = arith.mulf %64, %1 : vector<8x128xf32>
    %74 = arith.addf %72, %73 : vector<8x128xf32>
    %c0_35 = arith.constant 0 : index
    %c0_36 = arith.constant 0 : index
    %75 = vector.load %arg12[%c0_35, %c0_36] : memref<8x128xf32, #tpu.memory_space<vmem>>, vector<8x128xf32>
    tpu.vector_store %arg12[%c0_35, %c0_36], %74 {strides = array<i32>} : memref<8x128xf32, #tpu.memory_space<vmem>>, vector<8x128xf32>,
    %c0_37 = arith.constant 0 : index
    %c0_38 = arith.constant 0 : index
    %76 = vector.load %arg13[%c0_37, %c0_38] : memref<8x128xf32, #tpu.memory_space<vmem>>, vector<8x128xf32>
    tpu.vector_store %arg13[%c0_37, %c0_38], %32 {strides = array<i32>} : memref<8x128xf32, #tpu.memory_space<vmem>>, vector<8x128xf32>,
    %c0_39 = arith.constant 0 : index
    %c0_40 = arith.constant 0 : index
    %77 = vector.load %arg14[%c0_39, %c0_40] : memref<8x256xf32, #tpu.memory_space<vmem>>, vector<8x256xf32>
    tpu.vector_store %arg14[%c0_39, %c0_40], %35 {strides = array<i32>} : memref<8x256xf32, #tpu.memory_space<vmem>>, vector<8x256xf32>,
    return
  }
}

</mosaic_0001>

<bundles_post_ra>
// kernel: tpu_custom_call.1
= control target key start
LH: loop header
LB: loop body
LE: loop exit
PB: predicated region body
PF: predicated region fallthrough
CT: control target
= control target key end

     0   :  { %20 = vsyncpa [#allocation3], 0  ;;  %s12669_s0 = inlined_call_operand.hbm [shape: f32[8,128], index: 0, kind: input, shape index: {}]   ;;  %s12670_s1 = inlined_call_operand.hbm [shape: f32[8,128], index: 1, kind: input, shape index: {}]   ;;  %s12671_s2 = inlined_call_operand.hbm [shape: f32[8,128,256], index: 2, kind: input, shape index: {}]   ;;  %s12672_s3 = inlined_call_operand.hbm [shape: f32[128,128], index: 3, kind: input, shape index: {}]   ;;  %s12673_s4 = inlined_call_operand.hbm [shape: f32[256,128], index: 4, kind: input, shape index: {}]   ;;  %s12674_s5 = inlined_call_operand.vmem [shape: f32[1,128], index: 5, kind: input, shape index: {}]   ;;  %s12675_s6 = inlined_call_operand.vmem [shape: f32[1,128], index: 6, kind: input, shape index: {}]   ;;  %s12676_s7 = inlined_call_operand.hbm [shape: f32[128,384], index: 7, kind: input, shape index: {}]   ;;  %s12677_s8 = inlined_call_operand.hbm [shape: f32[256,384], index: 8, kind: input, shape index: {}]   ;;  %s12678_s9 = inlined_call_operand.hbm [shape: f32[128,384], index: 9, kind: input, shape index: {}]   ;;  %s12679_s10 = inlined_call_operand.vmem [shape: f32[1,384], index: 10, kind: input, shape index: {}]   ;;  %s12680_s11 = inlined_call_operand.vmem [shape: f32[1,384], index: 11, kind: input, shape index: {}]   ;;  %s12681_s12 = inlined_call_operand.hbm [shape: f32[8,128], index: 12, kind: output, shape index: {0}]   ;;  %s12682_s13 = inlined_call_operand.hbm [shape: f32[8,128], index: 13, kind: output, shape index: {1}]   ;;  %s12683_s14 = inlined_call_operand.hbm [shape: f32[8,256], index: 14, kind: output, shape index: {2}]  }
   0x1   :  { %21 = vsyncpa [#allocation6], 0 }
   0x2   :  { %22 = vsyncpa [#allocation9], 0 }
   0x3   :  { %23 = vsyncpa [#allocation12], 0 }
   0x4   :  { %24 = vsyncpa [#allocation15], 0 }
   0x5   :  { %25 = vsyncpa [#allocation4], 0 }
   0x6   :  { %26 = vsyncpa [#allocation18], 0  ;;  %s8665_s29 = smov [#allocation5]   ;;  %s8666_s15 = smov [#allocation8]  }
   0x7   :  { %s43_s30 = sshll.u32 %s8665_s29, 4  ;;  %s64_s16 = sshll.u32 %s8666_s15, 4  ;;  %s44_s30 = int_to_ptr.vmem [resolvable:$true] %s43_s30  ;;  %s8762_s16 = int_to_ptr.vmem [resolvable:$true] %s64_s16 }
   0x8   :  { %s8409_s19 = scalar_lea.hbm %s12670_s1, 128 }
   0x9   :  { %p8410_p0 = scmp.ne.s32.totalorder %s12670_s1, %s8409_s19  ;;  %p8413_p1 = scmp.lt.u32.totalorder %s8409_s19, %s12670_s1 }
   0xb   :  { %p8415_p2 = pnand %p8413_p1, %p8410_p0 }
   0xd   :  { %8418 = shalt.err (!%p8415_p2)
}
   0xe   :  { %s8419_s24 = scalar_lea.vmem %s44_s30, 128  ;;  %p8424_p4 = scmp.lt.s32.totalorder %s44_s30, %s44_s30 }
   0xf   :  { %p8420_p3 = scmp.ne.s32.totalorder %s44_s30, %s8419_s24  ;;  %p8425_p5 = scmp.lt.s32.totalorder %s8419_s24, %s8419_s24 }
  0x11   :  { %p8426_p6 = por %p8425_p5, %p8424_p4 }
  0x13   :  { %p8427_p7 = pnand %p8426_p6, %p8420_p3 }
  0x15   :  { %8430 = shalt.err (!%p8427_p7)
}
  0x16   :  { %46 = dma.hbm_to_vmem [thread:$0]  %s12670_s1, 128, %s44_s30, [#allocation6]  }
  0x17   :  { %s8431_s29 = scalar_lea.hbm %s12672_s3, 2048 }
  0x18   :  { %p8432_p8 = scmp.ne.s32.totalorder %s12672_s3, %s8431_s29  ;;  %p8435_p9 = scmp.lt.u32.totalorder %s8431_s29, %s12672_s3 }
  0x1a   :  { %p8437_p10 = pnand %p8435_p9, %p8432_p8 }
  0x1c   :  { %8440 = shalt.err (!%p8437_p10)
}
  0x1d   :  { %s8441_s20 = scalar_lea.vmem %s8762_s16, 2048  ;;  %p8446_p12 = scmp.lt.s32.totalorder %s8762_s16, %s8762_s16 }
  0x1e   :  { %p8442_p11 = scmp.ne.s32.totalorder %s8762_s16, %s8441_s20  ;;  %p8447_p13 = scmp.lt.s32.totalorder %s8441_s20, %s8441_s20 }
  0x20   :  { %p8448_p0 = por %p8447_p13, %p8446_p12 }
  0x22   :  { %p8449_p1 = pnand %p8448_p0, %p8442_p11 }
  0x24   :  { %8452 = shalt.err (!%p8449_p1)
}
  0x25   :  { %s8667_s1 = smov 128   ;;  %s8668_s30 = smov 8  }
  0x26   :  { %70 = dma.hbm_to_vmem [thread:$0]  %s12672_s3, 2048, %s8762_s16, [#allocation9], %s8667_s1, %s8667_s1, %s8668_s30  }
  0x27   :  { %s8669_s23 = smov [#allocation11]   ;;  %s8453_s27 = scalar_lea.hbm %s12676_s7, 6144 }
  0x28   :  { %s92_s24 = sshll.u32 %s8669_s23, 4  ;;  %p8454_p2 = scmp.ne.s32.totalorder %s12676_s7, %s8453_s27  ;;  %s93_s24 = int_to_ptr.vmem [resolvable:$true] %s92_s24 }
  0x29   :  { %p8457_p3 = scmp.lt.u32.totalorder %s8453_s27, %s12676_s7 }
  0x2b   :  { %p8459_p4 = pnand %p8457_p3, %p8454_p2 }
  0x2d   :  { %8462 = shalt.err (!%p8459_p4)
}
  0x2e   :  { %s8463_s18 = scalar_lea.vmem %s93_s24, 6144  ;;  %p8468_p6 = scmp.lt.s32.totalorder %s93_s24, %s93_s24 }
  0x2f   :  { %p8464_p5 = scmp.ne.s32.totalorder %s93_s24, %s8463_s18  ;;  %p8469_p7 = scmp.lt.s32.totalorder %s8463_s18, %s8463_s18 }
  0x31   :  { %p8470_p8 = por %p8469_p7, %p8468_p6 }
  0x33   :  { %p8471_p9 = pnand %p8470_p8, %p8464_p5 }
  0x35   :  { %8474 = shalt.err (!%p8471_p9)
}
  0x36   :  { %s8670_s3 = smov 384   ;;  %s8671_s16 = smov 24  }
  0x37   :  { %98 = dma.hbm_to_vmem [thread:$0]  %s12676_s7, 6144, %s93_s24, [#allocation12], %s8670_s3, %s8670_s3, %s8671_s16  }
  0x38   :  { %s8672_s21 = smov [#allocation2]   ;;  %s8673_s23 = smov [#allocation7]  }
  0x39   :  { %s33_s22 = sshll.u32 %s8672_s21, 4  ;;  %s52_s25 = sshll.u32 %s8673_s23, 4  ;;  %s34_s22 = int_to_ptr.vmem [resolvable:$true] %s33_s22  ;;  %s53_s25 = int_to_ptr.vmem [resolvable:$true] %s52_s25 }
  0x3a   :  { %s8475_s28 = scalar_lea.hbm %s12669_s0, 128 }
  0x3b   :  { %p8476_p10 = scmp.ne.s32.totalorder %s12669_s0, %s8475_s28  ;;  %p8479_p11 = scmp.lt.u32.totalorder %s8475_s28, %s12669_s0 }
  0x3d   :  { %p8481_p12 = pnand %p8479_p11, %p8476_p10 }
  0x3f   :  { %8484 = shalt.err (!%p8481_p12)
}
  0x40   :  { %s8485_s7 = scalar_lea.vmem %s34_s22, 128  ;;  %p8490_p0 = scmp.lt.s32.totalorder %s34_s22, %s34_s22 }
  0x41   :  { %p8486_p13 = scmp.ne.s32.totalorder %s34_s22, %s8485_s7  ;;  %p8491_p1 = scmp.lt.s32.totalorder %s8485_s7, %s8485_s7 }
  0x43   :  { %p8492_p2 = por %p8491_p1, %p8490_p0 }
  0x45   :  { %p8493_p3 = pnand %p8492_p2, %p8486_p13 }
  0x47   :  { %8496 = shalt.err (!%p8493_p3)
}
  0x48   :  { %36 = dma.hbm_to_vmem [thread:$0]  %s12669_s0, 128, %s34_s22, [#allocation3]  }
  0x49   :  { %s8497_s23 = scalar_lea.hbm %s12671_s2, 32768 }
  0x4a   :  { %p8498_p4 = scmp.ne.s32.totalorder %s12671_s2, %s8497_s23  ;;  %p8501_p5 = scmp.lt.u32.totalorder %s8497_s23, %s12671_s2 }
  0x4c   :  { %p8503_p6 = pnand %p8501_p5, %p8498_p4 }
  0x4e   :  { %8506 = shalt.err (!%p8503_p6)
}
  0x4f   :  { %s8507_s15 = scalar_lea.vmem %s53_s25, 32768  ;;  %p8512_p8 = scmp.lt.s32.totalorder %s53_s25, %s53_s25 }
  0x50   :  { %p8508_p7 = scmp.ne.s32.totalorder %s53_s25, %s8507_s15  ;;  %p8513_p9 = scmp.lt.s32.totalorder %s8507_s15, %s8507_s15 }
  0x52   :  { %p8514_p10 = por %p8513_p9, %p8512_p8 }
  0x54   :  { %p8515_p11 = pnand %p8514_p10, %p8508_p7 }
  0x56   :  { %8518 = shalt.err (!%p8515_p11)
}
  0x57   :  { %s8674_s0 = smov 256   ;;  %s8675_s22 = smov 16  }
  0x58   :  { %58 = dma.hbm_to_vmem [thread:$0]  %s12671_s2, 32768, %s53_s25, [#allocation6], %s8674_s0, %s8674_s0, %s8675_s22  }
  0x59   :  { %s8676_s7 = smov [#allocation10]   ;;  %s8677_s19 = smov [#allocation13]  }
  0x5a   :  { %s76_s24 = sshll.u32 %s8676_s7, 4  ;;  %s104_s20 = sshll.u32 %s8677_s19, 4  ;;  %s77_s24 = int_to_ptr.vmem [resolvable:$true] %s76_s24  ;;  %s105_s20 = int_to_ptr.vmem [resolvable:$true] %s104_s20 }
  0x5b   :  { %s8519_s26 = scalar_lea.hbm %s12673_s4, 4096 }
  0x5c   :  { %p8520_p12 = scmp.ne.s32.totalorder %s12673_s4, %s8519_s26  ;;  %p8523_p13 = scmp.lt.u32.totalorder %s8519_s26, %s12673_s4 }
  0x5e   :  { %p8525_p0 = pnand %p8523_p13, %p8520_p12 }
  0x60   :  { %8528 = shalt.err (!%p8525_p0)
}
  0x61   :  { %s8529_s2 = scalar_lea.vmem %s77_s24, 4096  ;;  %p8534_p2 = scmp.lt.s32.totalorder %s77_s24, %s77_s24 }
  0x62   :  { %p8530_p1 = scmp.ne.s32.totalorder %s77_s24, %s8529_s2  ;;  %p8535_p3 = scmp.lt.s32.totalorder %s8529_s2, %s8529_s2 }
  0x64   :  { %p8536_p4 = por %p8535_p3, %p8534_p2 }
  0x66   :  { %p8537_p5 = pnand %p8536_p4, %p8530_p1 }
  0x68   :  { %8540 = shalt.err (!%p8537_p5)
}
  0x69   :  { %82 = dma.hbm_to_vmem [thread:$0]  %s12673_s4, 4096, %s77_s24, [#allocation9], %s8667_s1, %s8667_s1, %s8668_s30  }
  0x6a   :  { %s8541_s18 = scalar_lea.hbm %s12677_s8, 12288 }
  0x6b   :  { %p8542_p6 = scmp.ne.s32.totalorder %s12677_s8, %s8541_s18  ;;  %p8545_p7 = scmp.lt.u32.totalorder %s8541_s18, %s12677_s8 }
  0x6d   :  { %p8547_p8 = pnand %p8545_p7, %p8542_p6 }
  0x6f   :  { %8550 = shalt.err (!%p8547_p8)
}
  0x70   :  { %s8551_s26 = scalar_lea.vmem %s105_s20, 12288  ;;  %p8556_p10 = scmp.lt.s32.totalorder %s105_s20, %s105_s20 }
  0x71   :  { %p8552_p9 = scmp.ne.s32.totalorder %s105_s20, %s8551_s26  ;;  %p8557_p11 = scmp.lt.s32.totalorder %s8551_s26, %s8551_s26 }
  0x73   :  { %p8558_p12 = por %p8557_p11, %p8556_p10 }
  0x75   :  { %p8559_p13 = pnand %p8558_p12, %p8552_p9 }
  0x77   :  { %8562 = shalt.err (!%p8559_p13)
}
  0x78   :  { %110 = dma.hbm_to_vmem [thread:$0]  %s12677_s8, 12288, %s105_s20, [#allocation12], %s8670_s3, %s8670_s3, %s8671_s16  }
  0x79   :  { %s8678_s30 = smov [#allocation14]   ;;  %s8563_s29 = scalar_lea.hbm %s12678_s9, 6144 }
  0x7a   :  { %s116_s24 = sshll.u32 %s8678_s30, 4  ;;  %p8564_p0 = scmp.ne.s32.totalorder %s12678_s9, %s8563_s29  ;;  %s117_s24 = int_to_ptr.vmem [resolvable:$true] %s116_s24 }
  0x7b   :  { %p8567_p1 = scmp.lt.u32.totalorder %s8563_s29, %s12678_s9 }
  0x7d   :  { %p8569_p2 = pnand %p8567_p1, %p8564_p0 }
  0x7f   :  { %8572 = shalt.err (!%p8569_p2)
}
  0x80   :  { %s8573_s22 = scalar_lea.vmem %s117_s24, 6144  ;;  %p8578_p4 = scmp.lt.s32.totalorder %s117_s24, %s117_s24 }
  0x81   :  { %p8574_p3 = scmp.ne.s32.totalorder %s117_s24, %s8573_s22  ;;  %p8579_p5 = scmp.lt.s32.totalorder %s8573_s22, %s8573_s22 }
  0x83   :  { %p8580_p6 = por %p8579_p5, %p8578_p4 }
  0x85   :  { %p8581_p7 = pnand %p8580_p6, %p8574_p3 }
  0x87   :  { %8584 = shalt.err (!%p8581_p7)
}
  0x88   :  { %122 = dma.hbm_to_vmem [thread:$0]  %s12678_s9, 6144, %s117_s24, [#allocation15], %s8670_s3, %s8670_s3, %s8671_s16  }
  0x89   :  { %8651 = dma.done.wait [#allocation3], 128  }
  0x8a   :  { %8652 = vsyncadd [#allocation3], 4294967168 }
  0x8b   :  { %8653 = dma.done.wait [#allocation6], 32896  }
  0x8c   :  { %8654 = vsyncadd [#allocation6], 4294934400 }
  0x8d   :  { %8655 = dma.done.wait [#allocation9], 6144  }
  0x8e   :  { %8656 = vsyncadd [#allocation9], 4294961152 }
  0x8f   :  { %8657 = dma.done.wait [#allocation12], 18432  }
  0x90   :  { %8658 = vsyncadd [#allocation12], 4294948864 }
  0x91   :  { %8659 = dma.done.wait [#allocation15], 6144  }
  0x92   :  { %8660 = vsyncadd [#allocation15], 4294961152  ;;  %v8679_v0 = vmov 0   ;;  %v12684_v1 = vmov 0.0|0.0   ;;  %vm12883_vm0 = vmmov 0   ;;  %v12686_v2 = vmov 0.0  }
  0x93   :  { %672 = vmatprep.subr.bf16.mxu1 %v8679_v0  ;;  %7346 = vmatprep.subr.bf16.mxu0 %v12684_v1  ;;  %v624_v3 = vld [vmem:[#allocation10] sm:$0xff]  ;;  %v625_v4 = vld [vmem:[#allocation10 + $0x8] sm:$0xff]  ;;  %v626_v5 = vld [vmem:[#allocation10 + $0x10] sm:$0xff]  ;;  %vm2228_vm1 = vcmask 130112   ;;  %vm13086_vm2 = vcmask 195712   ;;  %vm12923_vm3 = vcmask 261312  }
  0x94   :  { %7273 = vmatprep.mubr.msk.f32.mxu0 %vm12883_vm0, %v12686_v2  ;;  %7865 = vset.pattern.permute.xlu0 %v8679_v0  ;;  %v656_v6 = vpack.c.bf16 %v625_v4, %v624_v3  ;;  %v627_v7 = vld [vmem:[#allocation10 + $0x18] sm:$0xff]  ;;  %v628_v9 = vld [vmem:[#allocation10 + $0x20] sm:$0xff]  ;;  %v629_v10 = vld [vmem:[#allocation10 + $0x28] sm:$0xff]  ;;  %vm2249_vm4 = vcmask 326912   ;;  %vm2256_vm5 = vcmask 392512   ;;  %vm2263_vm6 = vcmask 458112  }
  0x95   :  { %7864 = vset.pattern.permute.xlu1 %v8679_v0  ;;  %v657_v8 = vpack.c.bf16 %v627_v7, %v626_v5  ;;  %v410_v11 = vld [vmem:[#allocation8] sm:$0xff]  ;;  %v411_v12 = vld [vmem:[#allocation8 + $0x8] sm:$0xff]  ;;  %v412_v14 = vld [vmem:[#allocation8 + $0x10] sm:$0xff]  ;;  %v658_v16 = vpack.c.bf16 %v629_v10, %v628_v9  ;;  %vm2270_vm7 = vcmask 523712   ;;  %vm2277_vm8 = vcmask 589312  }
  0x96   :  { %673 = vmatpush1.bf16.msra.mxu1 %v656_v6  ;;  %v7347_v13 = vpack.c.bf16 %v411_v12, %v410_v11  ;;  %v413_v15 = vld [vmem:[#allocation8 + $0x18] sm:$0xff]  ;;  %v630_v17 = vld [vmem:[#allocation10 + $0x30] sm:$0xff]  ;;  %v414_v20 = vld [vmem:[#allocation8 + $0x20] sm:$0xff]  ;;  %vm13087_vm9 = vcmask 654912   ;;  %vm12938_vm10 = vcmask 720512   ;;  %vm12935_vm11 = vcmask 786112  }
  0x97   :  { %674 = vmatprep.subr.bf16.mxu1 %v8679_v0  ;;  %v631_v18 = vld [vmem:[#allocation10 + $0x38] sm:$0xff]  ;;  %v7350_v19 = vpack.c.bf16 %v413_v15, %v412_v14  ;;  %v415_v21 = vld [vmem:[#allocation8 + $0x28] sm:$0xff]  ;;  %v632_v23 = vld [vmem:[#allocation10 + $0x40] sm:$0xff]  ;;  %vm12940_vm12 = vcmask 851712   ;;  %vm2312_vm13 = vcmask 917312   ;;  %vm2319_vm14 = vcmask 982912  }
  0x98   :  { %7348 = vmatpush3.bf16.msra.mxu0 %v7347_v13  ;;  %v659_v22 = vpack.c.bf16 %v631_v18, %v630_v17  ;;  %v633_v24 = vld [vmem:[#allocation10 + $0x48] sm:$0xff]  ;;  %v7353_v25 = vpack.c.bf16 %v415_v21, %v414_v20  ;;  %v416_v26 = vld [vmem:[#allocation8 + $0x30] sm:$0xff]  ;;  %v417_v27 = vld [vmem:[#allocation8 + $0x38] sm:$0xff]  ;;  %vm2326_vm15 = vcmask 1048512   ;;  %vm12918_vm0 = vcmask 1041409  }
  0x99   :  { %7349 = vmatprep.subr.bf16.mxu0 %v12684_v1  ;;  %v660_v28 = vpack.c.bf16 %v633_v24, %v632_v23  ;;  %v634_v29 = vld [vmem:[#allocation10 + $0x50] sm:$0xff]  ;;  %v635_v30 = vld [vmem:[#allocation10 + $0x58] sm:$0xff]  ;;  %v7356_v31 = vpack.c.bf16 %v417_v27, %v416_v26  ;;  %v155_v32 = vld [vmem:[#allocation7 + $0x8] sm:$0xff] }
  0x9a   :  { %675 = vmatpush1.bf16.msra.mxu1 %v657_v8  ;;  %v157_v33 = vld [vmem:[#allocation7 + $0x18] sm:$0xff]  ;;  %v418_v34 = vld [vmem:[#allocation8 + $0x40] sm:$0xff]  ;;  %v419_v35 = vld [vmem:[#allocation8 + $0x48] sm:$0xff]  ;;  %v661_v37 = vpack.c.bf16 %v635_v30, %v634_v29 }
  0x9b   :  { %676 = vmatprep.subr.bf16.mxu1 %v8679_v0  ;;  %v497_v36 = vpack.c.bf16 %v157_v33, %v155_v32  ;;  %v636_v38 = vld [vmem:[#allocation10 + $0x60] sm:$0xff]  ;;  %v637_v39 = vld [vmem:[#allocation10 + $0x68] sm:$0xff]  ;;  %v7359_v40 = vpack.c.bf16 %v419_v35, %v418_v34  ;;  %v420_v41 = vld [vmem:[#allocation8 + $0x50] sm:$0xff] }
  0x9c   :  { %7351 = vmatpush3.bf16.msra.mxu0 %v7350_v19  ;;  %v421_v42 = vld [vmem:[#allocation8 + $0x58] sm:$0xff]  ;;  %v662_v43 = vpack.c.bf16 %v637_v39, %v636_v38  ;;  %v638_v44 = vld [vmem:[#allocation10 + $0x70] sm:$0xff]  ;;  %v422_v47 = vld [vmem:[#allocation8 + $0x60] sm:$0xff] }
  0x9d   :  { %7352 = vmatprep.subr.bf16.mxu0 %v12684_v1  ;;  %704 = vmatprep.mubr.bf16.mxu1 %v497_v36  ;;  %v639_v45 = vld [vmem:[#allocation10 + $0x78] sm:$0xff]  ;;  %v7362_v46 = vpack.c.bf16 %v421_v42, %v420_v41  ;;  %v423_v48 = vld [vmem:[#allocation8 + $0x68] sm:$0xff]  ;;  %v640_v50 = vld [vmem:[#allocation10 + $0x80] sm:$0xff] }
  0x9e   :  { %677 = vmatpush1.bf16.msra.mxu1 %v658_v16  ;;  %v663_v49 = vpack.c.bf16 %v639_v45, %v638_v44  ;;  %v641_v51 = vld [vmem:[#allocation10 + $0x88] sm:$0xff]  ;;  %v7365_v52 = vpack.c.bf16 %v423_v48, %v422_v47  ;;  %v424_v53 = vld [vmem:[#allocation8 + $0x70] sm:$0xff]  ;;  %v425_v54 = vld [vmem:[#allocation8 + $0x78] sm:$0xff] }
  0x9f   :  { %678 = vmatprep.subr.bf16.mxu1 %v8679_v0  ;;  %v664_v55 = vpack.c.bf16 %v641_v51, %v640_v50  ;;  %v642_v56 = vld [vmem:[#allocation10 + $0x90] sm:$0xff]  ;;  %v643_v57 = vld [vmem:[#allocation10 + $0x98] sm:$0xff]  ;;  %v7368_v58 = vpack.c.bf16 %v425_v54, %v424_v53  ;;  %v644_v59 = vld [vmem:[#allocation10 + $0xa0] sm:$0xff] }
  0xa0   :  { %7354 = vmatpush3.bf16.msra.mxu0 %v7353_v25  ;;  %v665_v60 = vpack.c.bf16 %v643_v57, %v642_v56  ;;  %v645_v61 = vld [vmem:[#allocation10 + $0xa8] sm:$0xff]  ;;  %v154_v62 = vld [vmem:[#allocation7] sm:$0xff]  ;;  %v156_v63 = vld [vmem:[#allocation7 + $0x10] sm:$0xff] }
  0xa1   :  { %7355 = vmatprep.subr.bf16.mxu0 %v12684_v1  ;;  %v153_v3 = vld [vmem:[#allocation5] sm:$0xff]  ;;  %v159_v4 = vld [vmem:[#allocation7 + $0x28] sm:$0xff]  ;;  %v8902_v6 = vpack.c.bf16 %v156_v63, %v154_v62  ;;  %v666_v7 = vpack.c.bf16 %v645_v61, %v644_v59  ;;  %v646_v8 = vld [vmem:[#allocation10 + $0xb0] sm:$0xff] }
  0xa2   :  { %679 = vmatpush1.bf16.msra.mxu1 %v659_v22  ;;  %v161_v5 = vld [vmem:[#allocation7 + $0x38] sm:$0xff]  ;;  %v158_v10 = vld [vmem:[#allocation7 + $0x20] sm:$0xff]  ;;  %v160_v11 = vld [vmem:[#allocation7 + $0x30] sm:$0xff] }
  0xa3   :  { %680 = vmatprep.subr.bf16.mxu1 %v8679_v0  ;;  %v8904_v9 = vpack.c.bf16 %v161_v5, %v159_v4  ;;  %v647_v12 = vld [vmem:[#allocation10 + $0xb8] sm:$0xff]  ;;  %v163_v13 = vld [vmem:[#allocation7 + $0x48] sm:$0xff]  ;;  %v8910_v15 = vpack.c.bf16 %v160_v11, %v158_v10  ;;  %v648_v17 = vld [vmem:[#allocation10 + $0xc0] sm:$0xff] }
  0xa4   :  { %7357 = vmatpush3.bf16.msra.mxu0 %v7356_v31  ;;  %v165_v14 = vld [vmem:[#allocation7 + $0x58] sm:$0xff]  ;;  %v667_v16 = vpack.c.bf16 %v647_v12, %v646_v8  ;;  %v162_v19 = vld [vmem:[#allocation7 + $0x40] sm:$0xff]  ;;  %v164_v20 = vld [vmem:[#allocation7 + $0x50] sm:$0xff] }
  0xa5   :  { %7358 = vmatprep.subr.bf16.mxu0 %v12684_v1  ;;  %v8912_v18 = vpack.c.bf16 %v165_v14, %v163_v13  ;;  %v649_v21 = vld [vmem:[#allocation10 + $0xc8] sm:$0xff]  ;;  %v169_v23 = vld [vmem:[#allocation7 + $0x78] sm:$0xff]  ;;  %v8917_v24 = vpack.c.bf16 %v164_v20, %v162_v19  ;;  %v650_v26 = vld [vmem:[#allocation10 + $0xd0] sm:$0xff] }
  0xa6   :  { %681 = vmatpush1.bf16.msra.mxu1 %v660_v28  ;;  %v167_v22 = vld [vmem:[#allocation7 + $0x68] sm:$0xff]  ;;  %v668_v25 = vpack.c.bf16 %v649_v21, %v648_v17  ;;  %v166_v28 = vld [vmem:[#allocation7 + $0x60] sm:$0xff]  ;;  %v168_v29 = vld [vmem:[#allocation7 + $0x70] sm:$0xff] }
  0xa7   :  { %682 = vmatprep.subr.bf16.mxu1 %v8679_v0  ;;  %v8919_v27 = vpack.c.bf16 %v169_v23, %v167_v22  ;;  %v651_v30 = vld [vmem:[#allocation10 + $0xd8] sm:$0xff]  ;;  %v171_v31 = vld [vmem:[#allocation7 + $0x88] sm:$0xff]  ;;  %v502_v33 = vpack.c.bf16 %v168_v29, %v166_v28  ;;  %v652_v35 = vld [vmem:[#allocation10 + $0xe0] sm:$0xff] }
  0xa8   :  { %7360 = vmatpush3.bf16.msra.mxu0 %v7359_v40  ;;  %v173_v32 = vld [vmem:[#allocation7 + $0x98] sm:$0xff]  ;;  %v669_v34 = vpack.c.bf16 %v651_v30, %v650_v26  ;;  %v172_v38 = vld [vmem:[#allocation7 + $0x90] sm:$0xff]  ;;  %v653_v39 = vld [vmem:[#allocation10 + $0xe8] sm:$0xff] }
  0xa9   :  { %7361 = vmatprep.subr.bf16.mxu0 %v12684_v1  ;;  %v175_v40 = vld [vmem:[#allocation7 + $0xa8] sm:$0xff]  ;;  %v177_v41 = vld [vmem:[#allocation7 + $0xb8] sm:$0xff]  ;;  %v654_v44 = vld [vmem:[#allocation10 + $0xf0] sm:$0xff] }
  0xaa   :  { %683 = vmatpush1.bf16.msra.mxu1 %v661_v37  ;;  %v170_v37 = vld [vmem:[#allocation7 + $0x80] sm:$0xff]  ;;  %v507_v45 = vpack.c.bf16 %v177_v41, %v175_v40  ;;  %v176_v47 = vld [vmem:[#allocation7 + $0xb0] sm:$0xff]  ;;  %v655_v48 = vld [vmem:[#allocation10 + $0xf8] sm:$0xff] }
  0xab   :  { %684 = vmatprep.subr.bf16.mxu1 %v8679_v0  ;;  %v504_v42 = vpack.c.bf16 %v172_v38, %v170_v37  ;;  %v181_v50 = vld [vmem:[#allocation7 + $0xd8] sm:$0xff]  ;;  %v178_v54 = vld [vmem:[#allocation7 + $0xc0] sm:$0xff]  ;;  %v183_v56 = vld [vmem:[#allocation7 + $0xe8] sm:$0xff] }
  0xac   :  { %7363 = vmatpush3.bf16.msra.mxu0 %v7362_v46  ;;  %v174_v46 = vld [vmem:[#allocation7 + $0xa0] sm:$0xff]  ;;  %v185_v57 = vld [vmem:[#allocation7 + $0xf8] sm:$0xff]  ;;  %v184_v61 = vld [vmem:[#allocation7 + $0xf0] sm:$0xff] }
  0xad   :  { %7364 = vmatprep.subr.bf16.mxu0 %v12684_v1  ;;  %v506_v51 = vpack.c.bf16 %v176_v47, %v174_v46  ;;  %v511_v59 = vpack.c.bf16 %v185_v57, %v183_v56  ;;  %v187_v62 = vld [vmem:[#allocation7 + $0x108] sm:$0xff]  ;;  %v189_v63 = vld [vmem:[#allocation7 + $0x118] sm:$0xff]  ;;  %v188_v5 = vld [vmem:[#allocation7 + $0x110] sm:$0xff] }
  0xae   :  { %685 = vmatpush1.bf16.msra.mxu1 %v662_v43  ;;  %v670_v43 = vpack.c.bf16 %v653_v39, %v652_v35  ;;  %v513_v4 = vpack.c.bf16 %v189_v63, %v187_v62  ;;  %v190_v10 = vld [vmem:[#allocation7 + $0x120] sm:$0xff]  ;;  %v192_v11 = vld [vmem:[#allocation7 + $0x130] sm:$0xff]  ;;  %v195_v12 = vld [vmem:[#allocation7 + $0x148] sm:$0xff] }
  0xaf   :  { %686 = vmatprep.subr.bf16.mxu1 %v8679_v0  ;;  %v197_v13 = vld [vmem:[#allocation7 + $0x158] sm:$0xff]  ;;  %v8939_v14 = vpack.c.bf16 %v192_v11, %v190_v10  ;;  %v196_v17 = vld [vmem:[#allocation7 + $0x150] sm:$0xff]  ;;  %v198_v22 = vld [vmem:[#allocation7 + $0x160] sm:$0xff] }
  0xb0   :  { %7366 = vmatpush3.bf16.msra.mxu0 %v7365_v52  ;;  %v671_v52 = vpack.c.bf16 %v655_v48, %v654_v44  ;;  %v201_v19 = vld [vmem:[#allocation7 + $0x178] sm:$0xff]  ;;  %v200_v23 = vld [vmem:[#allocation7 + $0x170] sm:$0xff]  ;;  %v202_v28 = vld [vmem:[#allocation7 + $0x180] sm:$0xff] }
  0xb1   :  { %7367 = vmatprep.subr.bf16.mxu0 %v12684_v1  ;;  %13090 = vst [vmem:[#allocation29_spill] sm:$0xff] %v8939_v14  ;;  %v8951_v26 = vpack.c.bf16 %v200_v23, %v198_v22  ;;  %v204_v29 = vld [vmem:[#allocation7 + $0x190] sm:$0xff]  ;;  %v207_v30 = vld [vmem:[#allocation7 + $0x1a8] sm:$0xff]  ;;  %v213_v37 = vld [vmem:[#allocation7 + $0x1d8] sm:$0xff] }
  0xb2   :  { %687 = vmatpush1.bf16.msra.mxu1 %v663_v49  ;;  %v179_v49 = vld [vmem:[#allocation7 + $0xc8] sm:$0xff]  ;;  %v208_v35 = vld [vmem:[#allocation7 + $0x1b0] sm:$0xff]  ;;  %v210_v40 = vld [vmem:[#allocation7 + $0x1c0] sm:$0xff] }
  0xb3   :  { %688 = vmatprep.subr.bf16.mxu1 %v8679_v0  ;;  %v509_v53 = vpack.c.bf16 %v181_v50, %v179_v49  ;;  %13094 = vst [vmem:[#allocation33_spill] sm:$0xff] %v8951_v26  ;;  %v212_v41 = vld [vmem:[#allocation7 + $0x1d0] sm:$0xff]  ;;  %v214_v46 = vld [vmem:[#allocation7 + $0x1e0] sm:$0xff]  ;;  %v219_v48 = vld [vmem:[#allocation7 + $0x208] sm:$0xff] }
  0xb4   :  { %7369 = vmatpush3.bf16.msra.mxu0 %v7368_v58  ;;  %v8969_v44 = vpack.c.bf16 %v212_v41, %v210_v40  ;;  %v216_v47 = vld [vmem:[#allocation7 + $0x1f0] sm:$0xff]  ;;  %v221_v49 = vld [vmem:[#allocation7 + $0x218] sm:$0xff]  ;;  %v230_v10 = vld [vmem:[#allocation7 + $0x260] sm:$0xff] }
  0xb5   :  { %7371 = vmatprep.subr.bf16.mxu0 %v497_v36  ;;  %v505_v36 = vpack.c.bf16 %v173_v32, %v171_v31  ;;  %v209_v31 = vld [vmem:[#allocation7 + $0x1b8] sm:$0xff]  ;;  %v8957_v32 = vpack.c.bf16 %v204_v29, %v202_v28  ;;  %v8975_v50 = vpack.c.bf16 %v216_v47, %v214_v46  ;;  %v232_v11 = vld [vmem:[#allocation7 + $0x270] sm:$0xff]  ;;  %v239_v22 = vld [vmem:[#allocation7 + $0x2a8] sm:$0xff]  ;;  %v8683_v46 = vmov 1966171168  }
  0xb6   :  { %689 = vmatpush1.bf16.msra.mxu1 %v664_v55  ;;  %v180_v55 = vld [vmem:[#allocation7 + $0xd0] sm:$0xff]  ;;  %13100 = vst [vmem:[#allocation39_spill] sm:$0xff] %v8969_v44  ;;  %v241_v23 = vld [vmem:[#allocation7 + $0x2b8] sm:$0xff]  ;;  %v238_v28 = vld [vmem:[#allocation7 + $0x2a0] sm:$0xff]  ;;  %v1220_v47 = vunpack.c.l.s4 %v8683_v46 }
  0xb7   :  { %690 = vmatprep.subr.bf16.mxu1 %v8679_v0  ;;  %7274 = vmatmul.mubr.f32.vlgmr.msra.gmra.mrb[0].mxu0 %v153_v3  ;;  %v508_v58 = vpack.c.bf16 %v180_v55, %v178_v54  ;;  %13096 = vst [vmem:[#allocation35_spill] sm:$0xff] %v8957_v32  ;;  %13102 = vst [vmem:[#allocation41_spill] sm:$0xff] %v8975_v50  ;;  %v223_v54 = vld [vmem:[#allocation7 + $0x228] sm:$0xff]  ;;  %v225_v55 = vld [vmem:[#allocation7 + $0x238] sm:$0xff] }
  0xb8   :  { %7373 = vmatpush1.bf16.msra.mxu0 %v8902_v6  ;;  %4862 = vmatprep.mubr.f32.mxu0 %v12686_v2  ;;  %v8983_v57 = vpack.c.bf16 %v225_v55, %v223_v54  ;;  %v240_v29 = vld [vmem:[#allocation7 + $0x2b0] sm:$0xff]  ;;  %v247_v40 = vld [vmem:[#allocation7 + $0x2e8] sm:$0xff]  ;;  %v249_v41 = vld [vmem:[#allocation7 + $0x2f8] sm:$0xff] }
  0xb9   :  { %7375 = vmatprep.subr.bf16.mxu0 %v8904_v9  ;;  %v251_v55 = vld [vmem:[#allocation7 + $0x308] sm:$0xff] }
  0xba   :  { %691 = vmatpush1.bf16.msra.mxu1 %v665_v60  ;;  %v182_v60 = vld [vmem:[#allocation7 + $0xe0] sm:$0xff]  ;;  %13105 = vst [vmem:[#allocation44_spill] sm:$0xff] %v8983_v57 }
  0xbb   :  { %692 = vmatprep.subr.bf16.mxu1 %v8679_v0  ;;  %v510_v3 = vpack.c.bf16 %v184_v61, %v182_v60  ;;  %v227_v60 = vld [vmem:[#allocation7 + $0x248] sm:$0xff]  ;;  %v229_v61 = vld [vmem:[#allocation7 + $0x258] sm:$0xff] }
  0xbc   :  { %7377 = vmatpush1.bf16.msra.mxu0 %v8910_v15  ;;  %v8989_v63 = vpack.c.bf16 %v229_v61, %v227_v60 }
  0xbd   :  { %7379 = vmatprep.subr.bf16.mxu0 %v8912_v18 }
  0xbe   :  { %693 = vmatpush1.bf16.msra.mxu1 %v666_v7  ;;  %v193_v7 = vld [vmem:[#allocation7 + $0x138] sm:$0xff]  ;;  %13107 = vst [vmem:[#allocation46_spill] sm:$0xff] %v8989_v63 }
  0xbf   :  { %694 = vmatprep.subr.bf16.mxu1 %v8679_v0 }
  0xc0   :  { %7381 = vmatpush1.bf16.msra.mxu0 %v8917_v24 }
  0xc1   :  { %7383 = vmatprep.subr.bf16.mxu0 %v8919_v27 }
  0xc2   :  { %695 = vmatpush1.bf16.msra.mxu1 %v667_v16  ;;  %v194_v16 = vld [vmem:[#allocation7 + $0x140] sm:$0xff] }
  0xc3   :  { %696 = vmatprep.subr.bf16.mxu1 %v8679_v0  ;;  %v8945_v20 = vpack.c.bf16 %v196_v17, %v194_v16  ;;  %v8999_v16 = vpack.c.bf16 %v232_v11, %v230_v10 }
  0xc4   :  { %7385 = vmatpush1.bf16.msra.mxu0 %v502_v33 }
  0xc5   :  { %7387 = vmatprep.subr.bf16.mxu0 %v505_v36  ;;  %13092 = vst [vmem:[#allocation31_spill] sm:$0xff] %v8945_v20  ;;  %13110 = vst [vmem:[#allocation49_spill] sm:$0xff] %v8999_v16 }
  0xc6   :  { %697 = vmatpush1.bf16.msra.mxu1 %v668_v25  ;;  %v205_v25 = vld [vmem:[#allocation7 + $0x198] sm:$0xff] }
  0xc7   :  { %698 = vmatprep.subr.bf16.mxu1 %v8679_v0 }
  0xc8   :  { %7389 = vmatpush1.bf16.msra.mxu0 %v504_v42 }
  0xc9   :  { %7391 = vmatprep.subr.bf16.mxu0 %v507_v45 }
  0xca   :  { %699 = vmatpush1.bf16.msra.mxu1 %v669_v34  ;;  %v206_v34 = vld [vmem:[#allocation7 + $0x1a0] sm:$0xff] }
  0xcb   :  { %700 = vmatprep.subr.bf16.mxu1 %v8679_v0  ;;  %v8963_v38 = vpack.c.bf16 %v208_v35, %v206_v34  ;;  %v9011_v34 = vpack.c.bf16 %v240_v29, %v238_v28 }
  0xcc   :  { %7393 = vmatpush1.bf16.msra.mxu0 %v506_v51 }
  0xcd   :  { %7395 = vmatprep.subr.bf16.mxu0 %v509_v53  ;;  %13098 = vst [vmem:[#allocation37_spill] sm:$0xff] %v8963_v38  ;;  %13114 = vst [vmem:[#allocation53_spill] sm:$0xff] %v9011_v34 }
  0xce   :  { %701 = vmatpush1.bf16.msra.mxu1 %v670_v43  ;;  %v217_v43 = vld [vmem:[#allocation7 + $0x1f8] sm:$0xff] }
  0xcf   :  { %702 = vmatprep.subr.bf16.mxu1 %v8679_v0  ;;  %v186_v0 = vld [vmem:[#allocation7 + $0x100] sm:$0xff] }
  0xd0   :  { %7397 = vmatpush1.bf16.msra.mxu0 %v508_v58  ;;  %v8933_v8 = vpack.c.bf16 %v188_v5, %v186_v0  ;;  %v231_v0 = vld [vmem:[#allocation7 + $0x268] sm:$0xff]  ;;  %v233_v5 = vld [vmem:[#allocation7 + $0x278] sm:$0xff] }
  0xd1   :  { %7399 = vmatprep.subr.bf16.mxu0 %v511_v59 }
  0xd2   :  { %703 = vmatpush1.bf16.msra.mxu1 %v671_v52  ;;  %13088 = vst [vmem:[#allocation27_spill] sm:$0xff] %v8933_v8  ;;  %v218_v52 = vld [vmem:[#allocation7 + $0x200] sm:$0xff] }
  0xd4   :  { %7401 = vmatpush1.bf16.msra.mxu0 %v510_v3 }
  0xd5   :  { %705 = vmatmul.mubr.bf16.vlgmr.msra.gmra.mrb[0].mxu1 %v8902_v6  ;;  %7403 = vmatprep.subr.bf16.mxu0 %v513_v4  ;;  %v191_v6 = vld [vmem:[#allocation7 + $0x128] sm:$0xff] }
  0xd6   :  { %712 = vmatprep.mubr.bf16.mxu1 %v8904_v9  ;;  %v8935_v9 = vpack.c.bf16 %v193_v7, %v191_v6  ;;  %v8995_v7 = vpack.c.bf16 %v233_v5, %v231_v0  ;;  %v252_v0 = vld [vmem:[#allocation7 + $0x310] sm:$0xff] }
  0xd8   :  { %13089 = vst [vmem:[#allocation28_spill] sm:$0xff] %v8935_v9  ;;  %13109 = vst [vmem:[#allocation48_spill] sm:$0xff] %v8995_v7 }
  0xdd   :  { %713 = vmatmul.mubr.bf16.gmra.mrb[4].mxu1 %v8910_v15  ;;  %v8941_v15 = vpack.c.bf16 %v197_v13, %v195_v12  ;;  %v235_v12 = vld [vmem:[#allocation7 + $0x288] sm:$0xff]  ;;  %v237_v13 = vld [vmem:[#allocation7 + $0x298] sm:$0xff] }
  0xde   :  { %720 = vmatprep.mubr.bf16.mxu1 %v8912_v18  ;;  %v199_v18 = vld [vmem:[#allocation7 + $0x168] sm:$0xff]  ;;  %v9001_v17 = vpack.c.bf16 %v237_v13, %v235_v12  ;;  %v257_v13 = vld [vmem:[#allocation7 + $0x338] sm:$0xff] }
  0xdf   :  { %13091 = vst [vmem:[#allocation30_spill] sm:$0xff] %v8941_v15  ;;  %v8947_v21 = vpack.c.bf16 %v201_v19, %v199_v18  ;;  %v234_v18 = vld [vmem:[#allocation7 + $0x280] sm:$0xff]  ;;  %v236_v19 = vld [vmem:[#allocation7 + $0x290] sm:$0xff]  ;;  %v255_v12 = vld [vmem:[#allocation7 + $0x328] sm:$0xff] }
  0xe0   :  { %13111 = vst [vmem:[#allocation50_spill] sm:$0xff] %v9001_v17 }
  0xe1   :  { %13093 = vst [vmem:[#allocation32_spill] sm:$0xff] %v8947_v21 }
  0xe5   :  { %721 = vmatmul.mubr.bf16.gmra.mrb[8].mxu1 %v8917_v24  ;;  %v203_v24 = vld [vmem:[#allocation7 + $0x188] sm:$0xff] }
  0xe6   :  { %728 = vmatprep.mubr.bf16.mxu1 %v8919_v27  ;;  %v8953_v27 = vpack.c.bf16 %v205_v25, %v203_v24  ;;  %v9005_v24 = vpack.c.bf16 %v236_v19, %v234_v18  ;;  %v9007_v25 = vpack.c.bf16 %v241_v23, %v239_v22  ;;  %v9035_v23 = vpack.c.bf16 %v257_v13, %v255_v12  ;;  %v264_v12 = vld [vmem:[#allocation7 + $0x370] sm:$0xff]  ;;  %v267_v13 = vld [vmem:[#allocation7 + $0x388] sm:$0xff] }
  0xe8   :  { %13095 = vst [vmem:[#allocation34_spill] sm:$0xff] %v8953_v27  ;;  %13112 = vst [vmem:[#allocation51_spill] sm:$0xff] %v9005_v24 }
  0xe9   :  { %13113 = vst [vmem:[#allocation52_spill] sm:$0xff] %v9007_v25  ;;  %13122 = vst [vmem:[#allocation61_spill] sm:$0xff] %v9035_v23 }
  0xed   :  { %729 = vmatmul.mubr.bf16.gmra.mrb[12].mxu1 %v502_v33  ;;  %v8959_v33 = vpack.c.bf16 %v209_v31, %v207_v30  ;;  %v243_v30 = vld [vmem:[#allocation7 + $0x2c8] sm:$0xff]  ;;  %v245_v31 = vld [vmem:[#allocation7 + $0x2d8] sm:$0xff] }
  0xee   :  { %736 = vmatprep.mubr.bf16.mxu1 %v505_v36  ;;  %v211_v36 = vld [vmem:[#allocation7 + $0x1c8] sm:$0xff]  ;;  %v9013_v35 = vpack.c.bf16 %v245_v31, %v243_v30 }
  0xef   :  { %13097 = vst [vmem:[#allocation36_spill] sm:$0xff] %v8959_v33  ;;  %v8965_v39 = vpack.c.bf16 %v213_v37, %v211_v36  ;;  %v242_v36 = vld [vmem:[#allocation7 + $0x2c0] sm:$0xff]  ;;  %v244_v37 = vld [vmem:[#allocation7 + $0x2d0] sm:$0xff] }
  0xf0   :  { %13115 = vst [vmem:[#allocation54_spill] sm:$0xff] %v9013_v35 }
  0xf1   :  { %13099 = vst [vmem:[#allocation38_spill] sm:$0xff] %v8965_v39 }
  0xf5   :  { %737 = vmatmul.mubr.bf16.gmra.mrb[16].mxu1 %v504_v42  ;;  %v215_v42 = vld [vmem:[#allocation7 + $0x1e8] sm:$0xff] }
  0xf6   :  { %744 = vmatprep.mubr.bf16.mxu1 %v507_v45  ;;  %v8971_v45 = vpack.c.bf16 %v217_v43, %v215_v42  ;;  %v9017_v42 = vpack.c.bf16 %v244_v37, %v242_v36  ;;  %v9019_v43 = vpack.c.bf16 %v249_v41, %v247_v40  ;;  %v254_v36 = vld [vmem:[#allocation7 + $0x320] sm:$0xff]  ;;  %v256_v37 = vld [vmem:[#allocation7 + $0x330] sm:$0xff]  ;;  %v259_v40 = vld [vmem:[#allocation7 + $0x348] sm:$0xff] }
  0xf7   :  { %v261_v41 = vld [vmem:[#allocation7 + $0x358] sm:$0xff]  ;;  %v9045_v46 = vpack.c.bf16 %v256_v37, %v254_v36 }
  0xf8   :  { %13101 = vst [vmem:[#allocation40_spill] sm:$0xff] %v8971_v45  ;;  %13116 = vst [vmem:[#allocation55_spill] sm:$0xff] %v9017_v42 }
  0xf9   :  { %13117 = vst [vmem:[#allocation56_spill] sm:$0xff] %v9019_v43  ;;  %13123 = vst [vmem:[#allocation62_spill] sm:$0xff] %v9045_v46 }
  0xfd   :  { %745 = vmatmul.mubr.bf16.gmra.mrb[20].mxu1 %v506_v51  ;;  %v8977_v51 = vpack.c.bf16 %v221_v49, %v219_v48  ;;  %v12688_v48 = vlaneseq  ;;  %v246_v49 = vld [vmem:[#allocation7 + $0x2e0] sm:$0xff] }
  0xfe   :  { %752 = vmatprep.mubr.bf16.mxu1 %v509_v53  ;;  %v220_v53 = vld [vmem:[#allocation7 + $0x210] sm:$0xff] }
  0xff   :  { %13103 = vst [vmem:[#allocation42_spill] sm:$0xff] %v8977_v51  ;;  %v8981_v56 = vpack.c.bf16 %v220_v53, %v218_v52  ;;  %v248_v52 = vld [vmem:[#allocation7 + $0x2f0] sm:$0xff]  ;;  %v1221_v53 = vunpack.c.0.s8 %v1220_v47  ;;  %v9024_v54 = vshrl.u32 %v12688_v48, 7  ;;  %v9047_v47 = vpack.c.bf16 %v261_v41, %v259_v40 }
 0x101   :  { %13104 = vst [vmem:[#allocation43_spill] sm:$0xff] %v8981_v56  ;;  %13118 = vst [vmem:[#allocation57_spill] sm:$0xff] %v9024_v54  ;;  %v1224_v61 = vsub.s32 %v1221_v53, %v9024_v54  ;;  %v263_v53 = vld [vmem:[#allocation7 + $0x368] sm:$0xff] }
 0x102   :  { %13124 = vst [vmem:[#allocation63_spill] sm:$0xff] %v9047_v47 }
 0x105   :  { %753 = vmatmul.mubr.bf16.gmra.mrb[24].mxu1 %v508_v58  ;;  %v222_v58 = vld [vmem:[#allocation7 + $0x220] sm:$0xff] }
 0x106   :  { %760 = vmatprep.mubr.bf16.mxu1 %v511_v59  ;;  %v224_v59 = vld [vmem:[#allocation7 + $0x230] sm:$0xff] }
 0x107   :  { %v8987_v62 = vpack.c.bf16 %v224_v59, %v222_v58  ;;  %v253_v58 = vld [vmem:[#allocation7 + $0x318] sm:$0xff]  ;;  %v9026_v59 = vpack.c.bf16 %v248_v52, %v246_v49  ;;  %v258_v49 = vld [vmem:[#allocation7 + $0x340] sm:$0xff]  ;;  %v260_v52 = vld [vmem:[#allocation7 + $0x350] sm:$0xff] }
 0x108   :  { %v9028_v60 = vpack.c.bf16 %v253_v58, %v251_v55  ;;  %v265_v55 = vld [vmem:[#allocation7 + $0x378] sm:$0xff] }
 0x109   :  { %13106 = vst [vmem:[#allocation45_spill] sm:$0xff] %v8987_v62  ;;  %13119 = vst [vmem:[#allocation58_spill] sm:$0xff] %v9026_v59 }
 0x10a   :  { %13120 = vst [vmem:[#allocation59_spill] sm:$0xff] %v9028_v60 }
 0x10d   :  { %761 = vmatmul.mubr.bf16.gmra.mrb[28].mxu1 %v510_v3  ;;  %v226_v3 = vld [vmem:[#allocation7 + $0x240] sm:$0xff] }
 0x10e   :  { %768 = vmatprep.mubr.bf16.mxu1 %v513_v4  ;;  %v228_v4 = vld [vmem:[#allocation7 + $0x250] sm:$0xff] }
 0x10f   :  { %v8993_v6 = vpack.c.bf16 %v228_v4, %v226_v3  ;;  %v250_v4 = vld [vmem:[#allocation7 + $0x300] sm:$0xff] }
 0x110   :  { %v9033_v22 = vpack.c.bf16 %v252_v0, %v250_v4  ;;  %v9056_v4 = vpack.c.bf16 %v260_v52, %v258_v49  ;;  %v9058_v0 = vpack.c.bf16 %v265_v55, %v263_v53  ;;  %v266_v55 = vld [vmem:[#allocation7 + $0x380] sm:$0xff] }
 0x111   :  { %13108 = vst [vmem:[#allocation47_spill] sm:$0xff] %v8993_v6 }
 0x112   :  { %13121 = vst [vmem:[#allocation60_spill] sm:$0xff] %v9033_v22  ;;  %13126 = vst [vmem:[#allocation65_spill] sm:$0xff] %v9056_v4 }
 0x113   :  { %13127 = vst [vmem:[#allocation66_spill] sm:$0xff] %v9058_v0 }
 0x115   :  { %769 = vmatmul.mubr.bf16.gmra.mrb[32].mxu1 %v8933_v8 }
 0x116   :  { %776 = vmatprep.mubr.bf16.mxu1 %v8935_v9 }
 0x11d   :  { %777 = vmatmul.mubr.bf16.gmra.mrb[36].mxu1 %v8939_v14 }
 0x11e   :  { %784 = vmatprep.mubr.bf16.mxu1 %v8941_v15 }
 0x125   :  { %785 = vmatmul.mubr.bf16.gmra.mrb[40].mxu1 %v8945_v20 }
 0x126   :  { %792 = vmatprep.mubr.bf16.mxu1 %v8947_v21 }
 0x12d   :  { %793 = vmatmul.mubr.bf16.gmra.mrb[44].mxu1 %v8951_v26 }
 0x12e   :  { %800 = vmatprep.mubr.bf16.mxu1 %v8953_v27 }
 0x135   :  { %801 = vmatmul.mubr.bf16.gmra.mrb[48].mxu1 %v8957_v32 }
 0x136   :  { %808 = vmatprep.mubr.bf16.mxu1 %v8959_v33 }
 0x13d   :  { %809 = vmatmul.mubr.bf16.gmra.mrb[52].mxu1 %v8963_v38 }
 0x13e   :  { %816 = vmatprep.mubr.bf16.mxu1 %v8965_v39 }
 0x145   :  { %817 = vmatmul.mubr.bf16.gmra.mrb[56].mxu1 %v8969_v44 }
 0x146   :  { %824 = vmatprep.mubr.bf16.mxu1 %v8971_v45 }
 0x14d   :  { %825 = vmatmul.mubr.bf16.gmra.mrb[60].mxu1 %v8975_v50 }
 0x14e   :  { %832 = vmatprep.mubr.bf16.mxu1 %v8977_v51 }
 0x155   :  { %833 = vmatmul.mubr.bf16.gmra.mrb[64].mxu1 %v8981_v56 }
 0x156   :  { %840 = vmatprep.mubr.bf16.mxu1 %v8983_v57 }
 0x15d   :  { %841 = vmatmul.mubr.bf16.gmra.mrb[68].mxu1 %v8987_v62 }
 0x15e   :  { %848 = vmatprep.mubr.bf16.mxu1 %v8989_v63 }
 0x165   :  { %849 = vmatmul.mubr.bf16.gmra.mrb[72].mxu1 %v8993_v6 }
 0x166   :  { %856 = vmatprep.mubr.bf16.mxu1 %v8995_v7 }
 0x16d   :  { %857 = vmatmul.mubr.bf16.gmra.mrb[76].mxu1 %v8999_v16 }
 0x16e   :  { %864 = vmatprep.mubr.bf16.mxu1 %v9001_v17 }
 0x175   :  { %865 = vmatmul.mubr.bf16.gmra.mrb[80].mxu1 %v9005_v24 }
 0x176   :  { %872 = vmatprep.mubr.bf16.mxu1 %v9007_v25 }
 0x17d   :  { %873 = vmatmul.mubr.bf16.gmra.mrb[84].mxu1 %v9011_v34 }
 0x17e   :  { %880 = vmatprep.mubr.bf16.mxu1 %v9013_v35 }
 0x185   :  { %881 = vmatmul.mubr.bf16.gmra.mrb[88].mxu1 %v9017_v42 }
 0x186   :  { %888 = vmatprep.mubr.bf16.mxu1 %v9019_v43 }
 0x18a   :  { %v492_v3 = vpop.f32.mrb[0].mxu0 }
 0x18b   :  { %v1218_v5 = vcombine.high %v492_v3, %v492_v3  ;;  %v1225_v10 = vrot.slane %v492_v3, %v1224_v61  ;;  %v7275_v11 = vpop.f32.mrb[1].mxu0  ;;  %v9054_v3 = vsub.s32 0, %v9024_v54 }
 0x18c   :  { %v262_v11 = vld [vmem:[#allocation7 + $0x360] sm:$0xff] }
 0x18d   :  { %889 = vmatmul.mubr.bf16.gmra.mrb[92].mxu1 %v9026_v59  ;;  %v1232_v18 = vrot.slane %v1218_v5, %v1224_v61  ;;  %v1233_v19 = vcombine.high %v1225_v10, %v1225_v10  ;;  %v9051_v58 = vrot.slane %v1225_v10, %v1224_v61  ;;  %13125 = vst [vmem:[#allocation64_spill] sm:$0xff] %v9054_v3 }
 0x18e   :  { %896 = vmatprep.mubr.bf16.mxu1 %v9028_v60  ;;  %v9072_v36 = vpack.c.bf16 %v264_v12, %v262_v11  ;;  %v271_v11 = vld [vmem:[#allocation7 + $0x3a8] sm:$0xff]  ;;  %v273_v12 = vld [vmem:[#allocation7 + $0x3b8] sm:$0xff] }
 0x18f   :  { %v1234_v28 = vcombine.high %v1232_v18, %v1232_v18  ;;  %v9037_v29 = vrot.slane %v1232_v18, %v1224_v61  ;;  %v9039_v30 = vrot.slane %v1233_v19, %v1224_v61  ;;  %v9062_v5 = vrot.slane %v9051_v58, %v9054_v3  ;;  %v9069_v18 = vld [vmem:[%s12674_s5] ss:$0 sm:$0xff] }
 0x190   :  { %13128 = vst [vmem:[#allocation67_spill] sm:$0xff] %v9072_v36 }
 0x191   :  { %v9041_v31 = vrot.slane %v1234_v28, %v1224_v61  ;;  %v269_v61 = vld [vmem:[#allocation7 + $0x398] sm:$0xff] }
 0x192   :  { %v9074_v40 = vpack.c.bf16 %v269_v61, %v267_v13 }
 0x194   :  { %13129 = vst [vmem:[#allocation68_spill] sm:$0xff] %v9074_v40 }
 0x195   :  { %897 = vmatmul.mubr.bf16.gmra.mrb[96].mxu1 %v9033_v22 }
 0x196   :  { %904 = vmatprep.mubr.bf16.mxu1 %v9035_v23 }
 0x19d   :  { %905 = vmatmul.mubr.bf16.gmra.mrb[100].mxu1 %v9045_v46 }
 0x19e   :  { %912 = vmatprep.mubr.bf16.mxu1 %v9047_v47 }
 0x1a5   :  { %913 = vmatmul.mubr.bf16.gmra.mrb[104].mxu1 %v9056_v4 }
 0x1a6   :  { %920 = vmatprep.mubr.bf16.mxu1 %v9058_v0 }
 0x1a8   :  { %v706_v10 = vpop.f32.mrb[0].mxu1 }
 0x1a9   :  { %v1307_v19 = vadd.f32 %v9062_v5, %v706_v10  ;;  %v708_v28 = vpop.f32.mrb[1].mxu1  ;;  %v268_v10 = vld [vmem:[#allocation7 + $0x390] sm:$0xff] }
 0x1aa   :  { %v709_v37 = vpop.f32.mrb[2].mxu1 }
 0x1ab   :  { %v1442_v41 = vadd.f32 %v9069_v18, %v1307_v19  ;;  %v1308_v49 = vadd.f32 %v9062_v5, %v709_v37  ;;  %v711_v52 = vpop.f32.mrb[3].mxu1  ;;  %v9082_v19 = vpack.c.bf16 %v268_v10, %v266_v55  ;;  %v270_v55 = vld [vmem:[#allocation7 + $0x3a0] sm:$0xff]  ;;  %v272_v10 = vld [vmem:[#allocation7 + $0x3b0] sm:$0xff] }
 0x1ac   :  { %v9084_v52 = vpack.c.bf16 %v273_v12, %v271_v11  ;;  %v275_v12 = vld [vmem:[#allocation7 + $0x3c8] sm:$0xff] }
 0x1ad   :  { %7866 = vtanh.f32 %v1442_v41  ;;  %v1443_v53 = vadd.f32 %v9069_v18, %v1308_v49  ;;  %921 = vmatmul.mubr.bf16.gmra.mrb[108].mxu1 %v9072_v36  ;;  %13130 = vst [vmem:[#allocation69_spill] sm:$0xff] %v9082_v19 }
 0x1ae   :  { %928 = vmatprep.mubr.bf16.mxu1 %v9074_v40  ;;  %13131 = vst [vmem:[#allocation70_spill] sm:$0xff] %v9084_v52 }
 0x1af   :  { %7868 = vtanh.f32 %v1443_v53  ;;  %v9093_v53 = vld [vmem:[%s12675_s6] ss:$0 sm:$0xff] }
 0x1b0   :  { %v714_v28 = vpop.f32.mrb[4].mxu1 }
 0x1b1   :  { %v1309_v13 = vadd.f32 %v9062_v5, %v714_v28  ;;  %v716_v61 = vpop.f32.mrb[5].mxu1  ;;  %v277_v28 = vld [vmem:[#allocation7 + $0x3d8] sm:$0xff] }
 0x1b2   :  { %v717_v37 = vpop.f32.mrb[6].mxu1 }
 0x1b3   :  { %v1444_v41 = vadd.f32 %v9069_v18, %v1309_v13  ;;  %v1310_v49 = vadd.f32 %v9062_v5, %v717_v37  ;;  %v719_v1 = vpop.f32.mrb[7].mxu1 }
 0x1b5   :  { %7870 = vtanh.f32 %v1444_v41  ;;  %v1445_v2 = vadd.f32 %v9069_v18, %v1310_v49  ;;  %929 = vmatmul.mubr.bf16.gmra.mrb[112].mxu1 %v9082_v19  ;;  %v9098_v49 = vpack.c.bf16 %v272_v10, %v270_v55  ;;  %v9100_v19 = vpack.c.bf16 %v277_v28, %v275_v12  ;;  %v274_v55 = vld [vmem:[#allocation7 + $0x3c0] sm:$0xff]  ;;  %v276_v10 = vld [vmem:[#allocation7 + $0x3d0] sm:$0xff]  ;;  %v279_v12 = vld [vmem:[#allocation7 + $0x3e8] sm:$0xff] }
 0x1b6   :  { %936 = vmatprep.mubr.bf16.mxu1 %v9084_v52  ;;  %v281_v28 = vld [vmem:[#allocation7 + $0x3f8] sm:$0xff] }
 0x1b7   :  { %v7867_v11 = vpop.eup %7866  ;;  %7872 = vtanh.f32 %v1445_v2  ;;  %13132 = vst [vmem:[#allocation71_spill] sm:$0xff] %v9098_v49  ;;  %13133 = vst [vmem:[#allocation72_spill] sm:$0xff] %v9100_v19 }
 0x1b8   :  { %v722_v13 = vpop.f32.mrb[8].mxu1  ;;  %v1705_v1 = vmul.f32 %v7867_v11, %v9093_v53 }
 0x1b9   :  { %v7869_v61 = vpop.eup %7868  ;;  %v1311_v37 = vadd.f32 %v9062_v5, %v722_v13  ;;  %v724_v41 = vpop.f32.mrb[9].mxu1 }
 0x1ba   :  { %v725_v48 = vpop.f32.mrb[10].mxu1  ;;  %1833 = vadd.xlane.f32.xlu0 %v1705_v1  ;;  %v1706_v36 = vmul.f32 %v7869_v61, %v9093_v53  ;;  %v9110_v41 = vpack.c.bf16 %v276_v10, %v274_v55  ;;  %v278_v55 = vld [vmem:[#allocation7 + $0x3e0] sm:$0xff]  ;;  %v280_v10 = vld [vmem:[#allocation7 + $0x3f0] sm:$0xff] }
 0x1bb   :  { %v1446_v52 = vadd.f32 %v9069_v18, %v1311_v37  ;;  %v1312_v40 = vadd.f32 %v9062_v5, %v725_v48  ;;  %v727_v2 = vpop.f32.mrb[11].mxu1 }
 0x1bc   :  { %13134 = vst [vmem:[#allocation73_spill] sm:$0xff] %v9110_v41 }
 0x1bd   :  { %7874 = vtanh.f32 %v1446_v52  ;;  %v1447_v11 = vadd.f32 %v9069_v18, %v1312_v40  ;;  %937 = vmatmul.mubr.bf16.gmra.mrb[116].mxu1 %v9098_v49 }
 0x1be   :  { %1835 = vadd.xlane.f32.xlu0 %v1706_v36  ;;  %944 = vmatprep.mubr.bf16.mxu1 %v9100_v19  ;;  %v9112_v36 = vpack.c.bf16 %v281_v28, %v279_v12  ;;  %v283_v12 = vld [vmem:[#allocation7 + $0x408] sm:$0xff]  ;;  %v285_v28 = vld [vmem:[#allocation7 + $0x418] sm:$0xff] }
 0x1bf   :  { %v7871_v13 = vpop.eup %7870  ;;  %7876 = vtanh.f32 %v1447_v11 }
 0x1c0   :  { %v730_v1 = vpop.f32.mrb[12].mxu1  ;;  %v1707_v48 = vmul.f32 %v7871_v13, %v9093_v53  ;;  %13135 = vst [vmem:[#allocation74_spill] sm:$0xff] %v9112_v36 }
 0x1c1   :  { %v7873_v37 = vpop.eup %7872  ;;  %v1313_v61 = vadd.f32 %v9062_v5, %v730_v1  ;;  %v732_v52 = vpop.f32.mrb[13].mxu1 }
 0x1c2   :  { %v733_v40 = vpop.f32.mrb[14].mxu1  ;;  %1837 = vadd.xlane.f32.xlu1 %v1707_v48  ;;  %v1708_v49 = vmul.f32 %v7873_v37, %v9093_v53 }
 0x1c3   :  { %v1448_v2 = vadd.f32 %v9069_v18, %v1313_v61  ;;  %v1314_v19 = vadd.f32 %v9062_v5, %v733_v40  ;;  %v735_v11 = vpop.f32.mrb[15].mxu1 }
 0x1c4   :  { %v9125_v11 = vpack.c.bf16 %v285_v28, %v283_v12  ;;  %v289_v12 = vld [vmem:[#allocation7 + $0x438] sm:$0xff] }
 0x1c5   :  { %7878 = vtanh.f32 %v1448_v2  ;;  %v1449_v13 = vadd.f32 %v9069_v18, %v1314_v19  ;;  %945 = vmatmul.mubr.bf16.gmra.mrb[120].mxu1 %v9110_v41  ;;  %v9122_v2 = vpack.c.bf16 %v280_v10, %v278_v55  ;;  %v282_v55 = vld [vmem:[#allocation7 + $0x400] sm:$0xff]  ;;  %v284_v10 = vld [vmem:[#allocation7 + $0x410] sm:$0xff] }
 0x1c6   :  { %1839 = vadd.xlane.f32.xlu1 %v1708_v49  ;;  %952 = vmatprep.mubr.bf16.mxu1 %v9112_v36  ;;  %13137 = vst [vmem:[#allocation76_spill] sm:$0xff] %v9125_v11 }
 0x1c7   :  { %v7875_v1 = vpop.eup %7874  ;;  %7880 = vtanh.f32 %v1449_v13  ;;  %13136 = vst [vmem:[#allocation75_spill] sm:$0xff] %v9122_v2 }
 0x1c8   :  { %v738_v48 = vpop.f32.mrb[16].mxu1  ;;  %v1709_v61 = vmul.f32 %v7875_v1, %v9093_v53 }
 0x1c9   :  { %v7877_v52 = vpop.eup %7876  ;;  %v1315_v37 = vadd.f32 %v9062_v5, %v738_v48  ;;  %v740_v40 = vpop.f32.mrb[17].mxu1 }
 0x1ca   :  { %v741_v19 = vpop.f32.mrb[18].mxu1  ;;  %1841 = vadd.xlane.f32.xlu0 %v1709_v61  ;;  %v1710_v49 = vmul.f32 %v7877_v52, %v9093_v53  ;;  %v287_v61 = vld [vmem:[#allocation7 + $0x428] sm:$0xff] }
 0x1cb   :  { %v1450_v36 = vadd.f32 %v9069_v18, %v1315_v37  ;;  %v1316_v13 = vadd.f32 %v9062_v5, %v741_v19  ;;  %v743_v41 = vpop.f32.mrb[19].mxu1 }
 0x1cc   :  { %1843 = vadd.xlane.f32.xlu1 %v1710_v49 }
 0x1cd   :  { %7882 = vtanh.f32 %v1450_v36  ;;  %v1451_v1 = vadd.f32 %v9069_v18, %v1316_v13  ;;  %953 = vmatmul.mubr.bf16.gmra.mrb[124].mxu1 %v9122_v2  ;;  %v9134_v36 = vpack.c.bf16 %v284_v10, %v282_v55  ;;  %v9137_v13 = vpack.c.bf16 %v289_v12, %v287_v61  ;;  %v286_v55 = vld [vmem:[#allocation7 + $0x420] sm:$0xff]  ;;  %v288_v10 = vld [vmem:[#allocation7 + $0x430] sm:$0xff]  ;;  %v293_v61 = vld [vmem:[#allocation7 + $0x458] sm:$0xff] }
 0x1ce   :  { %960 = vmatprep.mubr.bf16.mxu1 %v9125_v11 }
 0x1cf   :  { %v7879_v48 = vpop.eup %7878  ;;  %7884 = vtanh.f32 %v1451_v1  ;;  %13138 = vst [vmem:[#allocation77_spill] sm:$0xff] %v9134_v36  ;;  %13139 = vst [vmem:[#allocation78_spill] sm:$0xff] %v9137_v13 }
 0x1d0   :  { %v746_v28 = vpop.f32.mrb[20].mxu1  ;;  %v1711_v52 = vmul.f32 %v7879_v48, %v9093_v53 }
 0x1d1   :  { %v7881_v37 = vpop.eup %7880  ;;  %v1317_v41 = vadd.f32 %v9062_v5, %v746_v28  ;;  %v748_v40 = vpop.f32.mrb[21].mxu1 }
 0x1d2   :  { %v749_v19 = vpop.f32.mrb[22].mxu1  ;;  %1845 = vadd.xlane.f32.xlu0 %v1711_v52  ;;  %v1712_v49 = vmul.f32 %v7881_v37, %v9093_v53  ;;  %v291_v52 = vld [vmem:[#allocation7 + $0x448] sm:$0xff] }
 0x1d3   :  { %v1452_v11 = vadd.f32 %v9069_v18, %v1317_v41  ;;  %v1318_v1 = vadd.f32 %v9062_v5, %v749_v19  ;;  %v751_v2 = vpop.f32.mrb[23].mxu1 }
 0x1d4   :  { %1847 = vadd.xlane.f32.xlu1 %v1712_v49 }
 0x1d5   :  { %7886 = vtanh.f32 %v1452_v11  ;;  %v1453_v48 = vadd.f32 %v9069_v18, %v1318_v1  ;;  %961 = vmatmul.mubr.bf16.gmra.mrb[128].mxu1 %v9134_v36  ;;  %v9146_v11 = vpack.c.bf16 %v288_v10, %v286_v55  ;;  %v9149_v1 = vpack.c.bf16 %v293_v61, %v291_v52  ;;  %v290_v55 = vld [vmem:[#allocation7 + $0x440] sm:$0xff]  ;;  %v292_v10 = vld [vmem:[#allocation7 + $0x450] sm:$0xff]  ;;  %v297_v52 = vld [vmem:[#allocation7 + $0x478] sm:$0xff] }
 0x1d6   :  { %968 = vmatprep.mubr.bf16.mxu1 %v9137_v13 }
 0x1d7   :  { %v7883_v28 = vpop.eup %7882  ;;  %7888 = vtanh.f32 %v1453_v48  ;;  %13140 = vst [vmem:[#allocation79_spill] sm:$0xff] %v9146_v11  ;;  %13141 = vst [vmem:[#allocation80_spill] sm:$0xff] %v9149_v1 }
 0x1d8   :  { %v754_v12 = vpop.f32.mrb[24].mxu1  ;;  %v1713_v37 = vmul.f32 %v7883_v28, %v9093_v53 }
 0x1d9   :  { %v7885_v41 = vpop.eup %7884  ;;  %v1319_v2 = vadd.f32 %v9062_v5, %v754_v12  ;;  %v756_v40 = vpop.f32.mrb[25].mxu1 }
 0x1da   :  { %v757_v19 = vpop.f32.mrb[26].mxu1  ;;  %1849 = vadd.xlane.f32.xlu0 %v1713_v37  ;;  %v1714_v49 = vmul.f32 %v7885_v41, %v9093_v53  ;;  %v295_v37 = vld [vmem:[#allocation7 + $0x468] sm:$0xff] }
 0x1db   :  { %v1454_v13 = vadd.f32 %v9069_v18, %v1319_v2  ;;  %v1320_v48 = vadd.f32 %v9062_v5, %v757_v19  ;;  %v759_v36 = vpop.f32.mrb[27].mxu1 }
 0x1dc   :  { %1851 = vadd.xlane.f32.xlu1 %v1714_v49 }
 0x1dd   :  { %7890 = vtanh.f32 %v1454_v13  ;;  %v1455_v28 = vadd.f32 %v9069_v18, %v1320_v48  ;;  %969 = vmatmul.mubr.bf16.gmra.mrb[132].mxu1 %v9146_v11  ;;  %v9158_v13 = vpack.c.bf16 %v292_v10, %v290_v55  ;;  %v9161_v48 = vpack.c.bf16 %v297_v52, %v295_v37  ;;  %v294_v10 = vld [vmem:[#allocation7 + $0x460] sm:$0xff]  ;;  %v296_v37 = vld [vmem:[#allocation7 + $0x470] sm:$0xff] }
 0x1de   :  { %976 = vmatprep.mubr.bf16.mxu1 %v9149_v1 }
 0x1df   :  { %v7887_v12 = vpop.eup %7886  ;;  %7892 = vtanh.f32 %v1455_v28  ;;  %13142 = vst [vmem:[#allocation81_spill] sm:$0xff] %v9158_v13  ;;  %13143 = vst [vmem:[#allocation82_spill] sm:$0xff] %v9161_v48 }
 0x1e0   :  { %v762_v61 = vpop.f32.mrb[28].mxu1  ;;  %v1715_v41 = vmul.f32 %v7887_v12, %v9093_v53  ;;  %v9167_v12 = vrot.slane %v9039_v30, %v9054_v3 }
 0x1e1   :  { %v7889_v2 = vpop.eup %7888  ;;  %v1321_v36 = vadd.f32 %v9062_v5, %v762_v61  ;;  %v764_v40 = vpop.f32.mrb[29].mxu1  ;;  %v299_v61 = vld [vmem:[#allocation7 + $0x488] sm:$0xff] }
 0x1e2   :  { %v765_v19 = vpop.f32.mrb[30].mxu1  ;;  %1853 = vadd.xlane.f32.xlu0 %v1715_v41  ;;  %v1716_v49 = vmul.f32 %v7889_v2, %v9093_v53  ;;  %v301_v41 = vld [vmem:[#allocation7 + $0x498] sm:$0xff] }
 0x1e3   :  { %v1456_v1 = vadd.f32 %v9069_v18, %v1321_v36  ;;  %v1322_v28 = vadd.f32 %v9062_v5, %v765_v19  ;;  %v767_v11 = vpop.f32.mrb[31].mxu1 }
 0x1e4   :  { %1855 = vadd.xlane.f32.xlu1 %v1716_v49 }
 0x1e5   :  { %7894 = vtanh.f32 %v1456_v1  ;;  %v1457_v55 = vadd.f32 %v9069_v18, %v1322_v28  ;;  %977 = vmatmul.mubr.bf16.gmra.mrb[136].mxu1 %v9158_v13  ;;  %v9174_v1 = vpack.c.bf16 %v296_v37, %v294_v10  ;;  %v9177_v28 = vpack.c.bf16 %v301_v41, %v299_v61  ;;  %v298_v10 = vld [vmem:[#allocation7 + $0x480] sm:$0xff]  ;;  %v300_v37 = vld [vmem:[#allocation7 + $0x490] sm:$0xff]  ;;  %v305_v61 = vld [vmem:[#allocation7 + $0x4b8] sm:$0xff] }
 0x1e6   :  { %984 = vmatprep.mubr.bf16.mxu1 %v9161_v48 }
 0x1e7   :  { %v7891_v52 = vpop.eup %7890  ;;  %7896 = vtanh.f32 %v1457_v55  ;;  %13144 = vst [vmem:[#allocation83_spill] sm:$0xff] %v9174_v1  ;;  %13145 = vst [vmem:[#allocation84_spill] sm:$0xff] %v9177_v28 }
 0x1e8   :  { %v770_v5 = vpop.f32.mrb[32].mxu1  ;;  %v1717_v11 = vmul.f32 %v7891_v52, %v9093_v53 }
 0x1e9   :  { %v7893_v2 = vpop.eup %7892  ;;  %v1323_v36 = vadd.f32 %v9167_v12, %v770_v5  ;;  %v772_v40 = vpop.f32.mrb[33].mxu1 }
 0x1ea   :  { %v773_v19 = vpop.f32.mrb[34].mxu1  ;;  %1857 = vadd.xlane.f32.xlu0 %v1717_v11  ;;  %v1718_v49 = vmul.f32 %v7893_v2, %v9093_v53  ;;  %v303_v11 = vld [vmem:[#allocation7 + $0x4a8] sm:$0xff] }
 0x1eb   :  { %v1458_v48 = vadd.f32 %v9069_v18, %v1323_v36  ;;  %v1324_v55 = vadd.f32 %v9167_v12, %v773_v19  ;;  %v775_v13 = vpop.f32.mrb[35].mxu1 }
 0x1ec   :  { %1859 = vadd.xlane.f32.xlu1 %v1718_v49 }
 0x1ed   :  { %7898 = vtanh.f32 %v1458_v48  ;;  %v1459_v52 = vadd.f32 %v9069_v18, %v1324_v55  ;;  %985 = vmatmul.mubr.bf16.gmra.mrb[140].mxu1 %v9174_v1  ;;  %v9186_v48 = vpack.c.bf16 %v300_v37, %v298_v10  ;;  %v9189_v55 = vpack.c.bf16 %v305_v61, %v303_v11  ;;  %v302_v10 = vld [vmem:[#allocation7 + $0x4a0] sm:$0xff]  ;;  %v304_v37 = vld [vmem:[#allocation7 + $0x4b0] sm:$0xff]  ;;  %v309_v11 = vld [vmem:[#allocation7 + $0x4d8] sm:$0xff] }
 0x1ee   :  { %992 = vmatprep.mubr.bf16.mxu1 %v9177_v28 }
 0x1ef   :  { %v7895_v5 = vpop.eup %7894  ;;  %7900 = vtanh.f32 %v1459_v52  ;;  %13146 = vst [vmem:[#allocation85_spill] sm:$0xff] %v9186_v48  ;;  %13147 = vst [vmem:[#allocation86_spill] sm:$0xff] %v9189_v55 }
 0x1f0   :  { %v778_v41 = vpop.f32.mrb[36].mxu1  ;;  %v1719_v2 = vmul.f32 %v7895_v5, %v9093_v53 }
 0x1f1   :  { %v7897_v36 = vpop.eup %7896  ;;  %v1325_v13 = vadd.f32 %v9167_v12, %v778_v41  ;;  %v780_v40 = vpop.f32.mrb[37].mxu1 }
 0x1f2   :  { %v781_v19 = vpop.f32.mrb[38].mxu1  ;;  %1861 = vadd.xlane.f32.xlu0 %v1719_v2  ;;  %v1720_v49 = vmul.f32 %v7897_v36, %v9093_v53  ;;  %v307_v2 = vld [vmem:[#allocation7 + $0x4c8] sm:$0xff] }
 0x1f3   :  { %v1460_v28 = vadd.f32 %v9069_v18, %v1325_v13  ;;  %v1326_v52 = vadd.f32 %v9167_v12, %v781_v19  ;;  %v783_v1 = vpop.f32.mrb[39].mxu1 }
 0x1f4   :  { %1863 = vadd.xlane.f32.xlu1 %v1720_v49 }
 0x1f5   :  { %7902 = vtanh.f32 %v1460_v28  ;;  %v1461_v5 = vadd.f32 %v9069_v18, %v1326_v52  ;;  %993 = vmatmul.mubr.bf16.gmra.mrb[144].mxu1 %v9186_v48  ;;  %v9198_v28 = vpack.c.bf16 %v304_v37, %v302_v10  ;;  %v9201_v52 = vpack.c.bf16 %v309_v11, %v307_v2  ;;  %v306_v10 = vld [vmem:[#allocation7 + $0x4c0] sm:$0xff]  ;;  %v308_v37 = vld [vmem:[#allocation7 + $0x4d0] sm:$0xff]  ;;  %v313_v2 = vld [vmem:[#allocation7 + $0x4f8] sm:$0xff] }
 0x1f6   :  { %1000 = vmatprep.mubr.bf16.mxu1 %v9189_v55 }
 0x1f7   :  { %v7899_v41 = vpop.eup %7898  ;;  %7904 = vtanh.f32 %v1461_v5  ;;  %13148 = vst [vmem:[#allocation87_spill] sm:$0xff] %v9198_v28  ;;  %13149 = vst [vmem:[#allocation88_spill] sm:$0xff] %v9201_v52 }
 0x1f8   :  { %v786_v61 = vpop.f32.mrb[40].mxu1  ;;  %v1721_v36 = vmul.f32 %v7899_v41, %v9093_v53 }
 0x1f9   :  { %v7901_v13 = vpop.eup %7900  ;;  %v1327_v1 = vadd.f32 %v9167_v12, %v786_v61  ;;  %v788_v40 = vpop.f32.mrb[41].mxu1 }
 0x1fa   :  { %v789_v19 = vpop.f32.mrb[42].mxu1  ;;  %1865 = vadd.xlane.f32.xlu0 %v1721_v36  ;;  %v1722_v49 = vmul.f32 %v7901_v13, %v9093_v53  ;;  %v311_v36 = vld [vmem:[#allocation7 + $0x4e8] sm:$0xff] }
 0x1fb   :  { %v1462_v55 = vadd.f32 %v9069_v18, %v1327_v1  ;;  %v1328_v5 = vadd.f32 %v9167_v12, %v789_v19  ;;  %v791_v48 = vpop.f32.mrb[43].mxu1 }
 0x1fc   :  { %1867 = vadd.xlane.f32.xlu1 %v1722_v49 }
 0x1fd   :  { %7906 = vtanh.f32 %v1462_v55  ;;  %v1463_v41 = vadd.f32 %v9069_v18, %v1328_v5  ;;  %1001 = vmatmul.mubr.bf16.gmra.mrb[148].mxu1 %v9198_v28  ;;  %v9210_v55 = vpack.c.bf16 %v308_v37, %v306_v10  ;;  %v9213_v5 = vpack.c.bf16 %v313_v2, %v311_v36  ;;  %v310_v10 = vld [vmem:[#allocation7 + $0x4e0] sm:$0xff]  ;;  %v312_v37 = vld [vmem:[#allocation7 + $0x4f0] sm:$0xff]  ;;  %v317_v36 = vld [vmem:[#allocation7 + $0x518] sm:$0xff] }
 0x1fe   :  { %1008 = vmatprep.mubr.bf16.mxu1 %v9201_v52 }
 0x1ff   :  { %v7903_v61 = vpop.eup %7902  ;;  %7908 = vtanh.f32 %v1463_v41  ;;  %13150 = vst [vmem:[#allocation89_spill] sm:$0xff] %v9210_v55  ;;  %13151 = vst [vmem:[#allocation90_spill] sm:$0xff] %v9213_v5 }
 0x200   :  { %v794_v11 = vpop.f32.mrb[44].mxu1  ;;  %v1723_v13 = vmul.f32 %v7903_v61, %v9093_v53 }
 0x201   :  { %v7905_v1 = vpop.eup %7904  ;;  %v1329_v48 = vadd.f32 %v9167_v12, %v794_v11  ;;  %v796_v40 = vpop.f32.mrb[45].mxu1 }
 0x202   :  { %v797_v19 = vpop.f32.mrb[46].mxu1  ;;  %1869 = vadd.xlane.f32.xlu0 %v1723_v13  ;;  %v1724_v49 = vmul.f32 %v7905_v1, %v9093_v53  ;;  %v315_v13 = vld [vmem:[#allocation7 + $0x508] sm:$0xff] }
 0x203   :  { %v1464_v52 = vadd.f32 %v9069_v18, %v1329_v48  ;;  %v1330_v41 = vadd.f32 %v9167_v12, %v797_v19  ;;  %v799_v28 = vpop.f32.mrb[47].mxu1 }
 0x204   :  { %1871 = vadd.xlane.f32.xlu1 %v1724_v49 }
 0x205   :  { %7910 = vtanh.f32 %v1464_v52  ;;  %v1465_v61 = vadd.f32 %v9069_v18, %v1330_v41  ;;  %1009 = vmatmul.mubr.bf16.gmra.mrb[152].mxu1 %v9210_v55  ;;  %v9222_v52 = vpack.c.bf16 %v312_v37, %v310_v10  ;;  %v9225_v41 = vpack.c.bf16 %v317_v36, %v315_v13  ;;  %v314_v10 = vld [vmem:[#allocation7 + $0x500] sm:$0xff]  ;;  %v316_v37 = vld [vmem:[#allocation7 + $0x510] sm:$0xff]  ;;  %v321_v13 = vld [vmem:[#allocation7 + $0x538] sm:$0xff] }
 0x206   :  { %1016 = vmatprep.mubr.bf16.mxu1 %v9213_v5 }
 0x207   :  { %v7907_v11 = vpop.eup %7906  ;;  %7912 = vtanh.f32 %v1465_v61  ;;  %13152 = vst [vmem:[#allocation91_spill] sm:$0xff] %v9222_v52  ;;  %13153 = vst [vmem:[#allocation92_spill] sm:$0xff] %v9225_v41 }
 0x208   :  { %v802_v2 = vpop.f32.mrb[48].mxu1  ;;  %v1725_v1 = vmul.f32 %v7907_v11, %v9093_v53 }
 0x209   :  { %v7909_v48 = vpop.eup %7908  ;;  %v1331_v28 = vadd.f32 %v9167_v12, %v802_v2  ;;  %v804_v40 = vpop.f32.mrb[49].mxu1 }
 0x20a   :  { %v805_v19 = vpop.f32.mrb[50].mxu1  ;;  %1873 = vadd.xlane.f32.xlu0 %v1725_v1  ;;  %v1726_v49 = vmul.f32 %v7909_v48, %v9093_v53  ;;  %v319_v1 = vld [vmem:[#allocation7 + $0x528] sm:$0xff] }
 0x20b   :  { %v1466_v5 = vadd.f32 %v9069_v18, %v1331_v28  ;;  %v1332_v61 = vadd.f32 %v9167_v12, %v805_v19  ;;  %v807_v55 = vpop.f32.mrb[51].mxu1 }
 0x20c   :  { %1875 = vadd.xlane.f32.xlu1 %v1726_v49 }
 0x20d   :  { %7914 = vtanh.f32 %v1466_v5  ;;  %v1467_v11 = vadd.f32 %v9069_v18, %v1332_v61  ;;  %1017 = vmatmul.mubr.bf16.gmra.mrb[156].mxu1 %v9222_v52  ;;  %v9234_v5 = vpack.c.bf16 %v316_v37, %v314_v10  ;;  %v9237_v61 = vpack.c.bf16 %v321_v13, %v319_v1  ;;  %v318_v10 = vld [vmem:[#allocation7 + $0x520] sm:$0xff]  ;;  %v320_v37 = vld [vmem:[#allocation7 + $0x530] sm:$0xff]  ;;  %v325_v1 = vld [vmem:[#allocation7 + $0x558] sm:$0xff] }
 0x20e   :  { %1024 = vmatprep.mubr.bf16.mxu1 %v9225_v41 }
 0x20f   :  { %v7911_v2 = vpop.eup %7910  ;;  %7916 = vtanh.f32 %v1467_v11  ;;  %13154 = vst [vmem:[#allocation93_spill] sm:$0xff] %v9234_v5  ;;  %13155 = vst [vmem:[#allocation94_spill] sm:$0xff] %v9237_v61 }
 0x210   :  { %v810_v36 = vpop.f32.mrb[52].mxu1  ;;  %v1727_v48 = vmul.f32 %v7911_v2, %v9093_v53 }
 0x211   :  { %v7913_v28 = vpop.eup %7912  ;;  %v1333_v55 = vadd.f32 %v9167_v12, %v810_v36  ;;  %v812_v40 = vpop.f32.mrb[53].mxu1 }
 0x212   :  { %v813_v19 = vpop.f32.mrb[54].mxu1  ;;  %1877 = vadd.xlane.f32.xlu0 %v1727_v48  ;;  %v1728_v49 = vmul.f32 %v7913_v28, %v9093_v53  ;;  %v323_v48 = vld [vmem:[#allocation7 + $0x548] sm:$0xff] }
 0x213   :  { %v1468_v41 = vadd.f32 %v9069_v18, %v1333_v55  ;;  %v1334_v11 = vadd.f32 %v9167_v12, %v813_v19  ;;  %v815_v52 = vpop.f32.mrb[55].mxu1 }
 0x214   :  { %1879 = vadd.xlane.f32.xlu1 %v1728_v49 }
 0x215   :  { %7918 = vtanh.f32 %v1468_v41  ;;  %v1469_v2 = vadd.f32 %v9069_v18, %v1334_v11  ;;  %1025 = vmatmul.mubr.bf16.gmra.mrb[160].mxu1 %v9234_v5  ;;  %v9246_v41 = vpack.c.bf16 %v320_v37, %v318_v10  ;;  %v9249_v11 = vpack.c.bf16 %v325_v1, %v323_v48  ;;  %v322_v10 = vld [vmem:[#allocation7 + $0x540] sm:$0xff]  ;;  %v324_v37 = vld [vmem:[#allocation7 + $0x550] sm:$0xff]  ;;  %v329_v48 = vld [vmem:[#allocation7 + $0x578] sm:$0xff] }
 0x216   :  { %1032 = vmatprep.mubr.bf16.mxu1 %v9237_v61 }
 0x217   :  { %v7915_v36 = vpop.eup %7914  ;;  %7920 = vtanh.f32 %v1469_v2  ;;  %13156 = vst [vmem:[#allocation95_spill] sm:$0xff] %v9246_v41  ;;  %13157 = vst [vmem:[#allocation96_spill] sm:$0xff] %v9249_v11 }
 0x218   :  { %v818_v13 = vpop.f32.mrb[56].mxu1  ;;  %v1729_v28 = vmul.f32 %v7915_v36, %v9093_v53 }
 0x219   :  { %v7917_v55 = vpop.eup %7916  ;;  %v1335_v52 = vadd.f32 %v9167_v12, %v818_v13  ;;  %v820_v40 = vpop.f32.mrb[57].mxu1 }
 0x21a   :  { %v821_v19 = vpop.f32.mrb[58].mxu1  ;;  %1881 = vadd.xlane.f32.xlu0 %v1729_v28  ;;  %v1730_v49 = vmul.f32 %v7917_v55, %v9093_v53  ;;  %v327_v28 = vld [vmem:[#allocation7 + $0x568] sm:$0xff] }
 0x21b   :  { %v1470_v61 = vadd.f32 %v9069_v18, %v1335_v52  ;;  %v1336_v2 = vadd.f32 %v9167_v12, %v821_v19  ;;  %v823_v5 = vpop.f32.mrb[59].mxu1  ;;  %v9260_v19 = vpack.c.bf16 %v324_v37, %v322_v10  ;;  %v326_v10 = vld [vmem:[#allocation7 + $0x560] sm:$0xff]  ;;  %v328_v37 = vld [vmem:[#allocation7 + $0x570] sm:$0xff] }
 0x21c   :  { %1883 = vadd.xlane.f32.xlu1 %v1730_v49  ;;  %v1263_v5 = vcombine.high %v9051_v58, %v9051_v58 }
 0x21d   :  { %7922 = vtanh.f32 %v1470_v61  ;;  %v1471_v36 = vadd.f32 %v9069_v18, %v1336_v2  ;;  %1033 = vmatmul.mubr.bf16.gmra.mrb[164].mxu1 %v9246_v41  ;;  %13158 = vst [vmem:[#allocation97_spill] sm:$0xff] %v9260_v19 }
 0x21e   :  { %1040 = vmatprep.mubr.bf16.mxu1 %v9249_v11  ;;  %v9263_v11 = vpack.c.bf16 %v329_v48, %v327_v28  ;;  %v9268_v0 = vrot.slane %v1263_v5, %v9054_v3  ;;  %v331_v48 = vld [vmem:[#allocation7 + $0x588] sm:$0xff] }
 0x21f   :  { %v7919_v13 = vpop.eup %7918  ;;  %7924 = vtanh.f32 %v1471_v36 }
 0x220   :  { %v826_v1 = vpop.f32.mrb[60].mxu1  ;;  %v1731_v55 = vmul.f32 %v7919_v13, %v9093_v53  ;;  %13159 = vst [vmem:[#allocation98_spill] sm:$0xff] %v9263_v11 }
 0x221   :  { %v7921_v52 = vpop.eup %7920  ;;  %v1337_v61 = vadd.f32 %v9167_v12, %v826_v1  ;;  %v828_v40 = vpop.f32.mrb[61].mxu1  ;;  %v333_v1 = vld [vmem:[#allocation7 + $0x598] sm:$0xff] }
 0x222   :  { %v829_v49 = vpop.f32.mrb[62].mxu1  ;;  %1885 = vadd.xlane.f32.xlu0 %v1731_v55  ;;  %v1732_v2 = vmul.f32 %v7921_v52, %v9093_v53  ;;  %v9275_v40 = vpack.c.bf16 %v328_v37, %v326_v10  ;;  %v330_v10 = vld [vmem:[#allocation7 + $0x580] sm:$0xff]  ;;  %v332_v37 = vld [vmem:[#allocation7 + $0x590] sm:$0xff] }
 0x223   :  { %v1472_v36 = vadd.f32 %v9069_v18, %v1337_v61  ;;  %v1338_v41 = vadd.f32 %v9167_v12, %v829_v49  ;;  %v831_v13 = vpop.f32.mrb[63].mxu1 }
 0x224   :  { %1887 = vadd.xlane.f32.xlu1 %v1732_v2  ;;  %13160 = vst [vmem:[#allocation99_spill] sm:$0xff] %v9275_v40  ;;  %v9278_v2 = vpack.c.bf16 %v333_v1, %v331_v48  ;;  %v337_v48 = vld [vmem:[#allocation7 + $0x5b8] sm:$0xff] }
 0x225   :  { %7926 = vtanh.f32 %v1472_v36  ;;  %v1473_v58 = vadd.f32 %v9069_v18, %v1338_v41  ;;  %1041 = vmatmul.mubr.bf16.gmra.mrb[168].mxu1 %v9260_v19 }
 0x226   :  { %1048 = vmatprep.mubr.bf16.mxu1 %v9263_v11  ;;  %13161 = vst [vmem:[#allocation100_spill] sm:$0xff] %v9278_v2 }
 0x227   :  { %v7923_v28 = vpop.eup %7922  ;;  %7928 = vtanh.f32 %v1473_v58 }
 0x228   :  { %v834_v55 = vpop.f32.mrb[64].mxu1  ;;  %v1733_v12 = vmul.f32 %v7923_v28, %v9093_v53 }
 0x229   :  { %v7925_v52 = vpop.eup %7924  ;;  %v1339_v5 = vadd.f32 %v9268_v0, %v834_v55  ;;  %v836_v61 = vpop.f32.mrb[65].mxu1 }
 0x22a   :  { %v837_v41 = vpop.f32.mrb[66].mxu1  ;;  %1889 = vadd.xlane.f32.xlu0 %v1733_v12  ;;  %v1734_v49 = vmul.f32 %v7925_v52, %v9093_v53  ;;  %v335_v12 = vld [vmem:[#allocation7 + $0x5a8] sm:$0xff] }
 0x22b   :  { %v1474_v36 = vadd.f32 %v9069_v18, %v1339_v5  ;;  %v1340_v13 = vadd.f32 %v9268_v0, %v837_v41  ;;  %v839_v58 = vpop.f32.mrb[67].mxu1 }
 0x22c   :  { %1891 = vadd.xlane.f32.xlu1 %v1734_v49  ;;  %v9287_v49 = vpack.c.bf16 %v332_v37, %v330_v10  ;;  %v9290_v58 = vpack.c.bf16 %v337_v48, %v335_v12  ;;  %v334_v10 = vld [vmem:[#allocation7 + $0x5a0] sm:$0xff]  ;;  %v336_v37 = vld [vmem:[#allocation7 + $0x5b0] sm:$0xff]  ;;  %v341_v12 = vld [vmem:[#allocation7 + $0x5d8] sm:$0xff] }
 0x22d   :  { %7930 = vtanh.f32 %v1474_v36  ;;  %v1475_v28 = vadd.f32 %v9069_v18, %v1340_v13  ;;  %1049 = vmatmul.mubr.bf16.gmra.mrb[172].mxu1 %v9275_v40 }
 0x22e   :  { %1056 = vmatprep.mubr.bf16.mxu1 %v9278_v2  ;;  %13162 = vst [vmem:[#allocation101_spill] sm:$0xff] %v9287_v49  ;;  %13163 = vst [vmem:[#allocation102_spill] sm:$0xff] %v9290_v58 }
 0x22f   :  { %v7927_v55 = vpop.eup %7926  ;;  %7932 = vtanh.f32 %v1475_v28 }
 0x230   :  { %v842_v1 = vpop.f32.mrb[68].mxu1  ;;  %v1735_v52 = vmul.f32 %v7927_v55, %v9093_v53 }
 0x231   :  { %v7929_v5 = vpop.eup %7928  ;;  %v1341_v61 = vadd.f32 %v9268_v0, %v842_v1  ;;  %v844_v41 = vpop.f32.mrb[69].mxu1 }
 0x232   :  { %v845_v36 = vpop.f32.mrb[70].mxu1  ;;  %1893 = vadd.xlane.f32.xlu1 %v1735_v52  ;;  %v1736_v13 = vmul.f32 %v7929_v5, %v9093_v53  ;;  %v339_v52 = vld [vmem:[#allocation7 + $0x5c8] sm:$0xff] }
 0x233   :  { %v1476_v2 = vadd.f32 %v9069_v18, %v1341_v61  ;;  %v1342_v28 = vadd.f32 %v9268_v0, %v845_v36  ;;  %v847_v40 = vpop.f32.mrb[71].mxu1 }
 0x234   :  { %1895 = vadd.xlane.f32.xlu0 %v1736_v13 }
 0x235   :  { %7934 = vtanh.f32 %v1476_v2  ;;  %v1477_v55 = vadd.f32 %v9069_v18, %v1342_v28  ;;  %1057 = vmatmul.mubr.bf16.gmra.mrb[176].mxu1 %v9287_v49  ;;  %v9299_v2 = vpack.c.bf16 %v336_v37, %v334_v10  ;;  %v9302_v28 = vpack.c.bf16 %v341_v12, %v339_v52  ;;  %v338_v10 = vld [vmem:[#allocation7 + $0x5c0] sm:$0xff]  ;;  %v340_v37 = vld [vmem:[#allocation7 + $0x5d0] sm:$0xff]  ;;  %v345_v52 = vld [vmem:[#allocation7 + $0x5f8] sm:$0xff] }
 0x236   :  { %1064 = vmatprep.mubr.bf16.mxu1 %v9290_v58 }
 0x237   :  { %v7931_v1 = vpop.eup %7930  ;;  %7936 = vtanh.f32 %v1477_v55  ;;  %13164 = vst [vmem:[#allocation103_spill] sm:$0xff] %v9299_v2  ;;  %13165 = vst [vmem:[#allocation104_spill] sm:$0xff] %v9302_v28 }
 0x238   :  { %v850_v48 = vpop.f32.mrb[72].mxu1  ;;  %v1737_v5 = vmul.f32 %v7931_v1, %v9093_v53 }
 0x239   :  { %v7933_v61 = vpop.eup %7932  ;;  %v1343_v40 = vadd.f32 %v9268_v0, %v850_v48  ;;  %v852_v41 = vpop.f32.mrb[73].mxu1 }
 0x23a   :  { %v853_v36 = vpop.f32.mrb[74].mxu1  ;;  %1897 = vadd.xlane.f32.xlu0 %v1737_v5  ;;  %v1738_v13 = vmul.f32 %v7933_v61, %v9093_v53  ;;  %v343_v5 = vld [vmem:[#allocation7 + $0x5e8] sm:$0xff] }
 0x23b   :  { %v1478_v58 = vadd.f32 %v9069_v18, %v1343_v40  ;;  %v1344_v55 = vadd.f32 %v9268_v0, %v853_v36  ;;  %v855_v49 = vpop.f32.mrb[75].mxu1 }
 0x23c   :  { %1899 = vadd.xlane.f32.xlu1 %v1738_v13 }
 0x23d   :  { %7938 = vtanh.f32 %v1478_v58  ;;  %v1479_v1 = vadd.f32 %v9069_v18, %v1344_v55  ;;  %1065 = vmatmul.mubr.bf16.gmra.mrb[180].mxu1 %v9299_v2  ;;  %v9311_v58 = vpack.c.bf16 %v340_v37, %v338_v10  ;;  %v9314_v55 = vpack.c.bf16 %v345_v52, %v343_v5  ;;  %v342_v10 = vld [vmem:[#allocation7 + $0x5e0] sm:$0xff]  ;;  %v344_v37 = vld [vmem:[#allocation7 + $0x5f0] sm:$0xff]  ;;  %v349_v5 = vld [vmem:[#allocation7 + $0x618] sm:$0xff] }
 0x23e   :  { %1072 = vmatprep.mubr.bf16.mxu1 %v9302_v28 }
 0x23f   :  { %v7935_v48 = vpop.eup %7934  ;;  %7940 = vtanh.f32 %v1479_v1  ;;  %13166 = vst [vmem:[#allocation105_spill] sm:$0xff] %v9311_v58  ;;  %13167 = vst [vmem:[#allocation106_spill] sm:$0xff] %v9314_v55 }
 0x240   :  { %v858_v12 = vpop.f32.mrb[76].mxu1  ;;  %v1739_v61 = vmul.f32 %v7935_v48, %v9093_v53 }
 0x241   :  { %v7937_v40 = vpop.eup %7936  ;;  %v1345_v49 = vadd.f32 %v9268_v0, %v858_v12  ;;  %v860_v41 = vpop.f32.mrb[77].mxu1 }
 0x242   :  { %v861_v36 = vpop.f32.mrb[78].mxu1  ;;  %1901 = vadd.xlane.f32.xlu0 %v1739_v61  ;;  %v1740_v13 = vmul.f32 %v7937_v40, %v9093_v53  ;;  %v347_v61 = vld [vmem:[#allocation7 + $0x608] sm:$0xff] }
 0x243   :  { %v1480_v28 = vadd.f32 %v9069_v18, %v1345_v49  ;;  %v1346_v1 = vadd.f32 %v9268_v0, %v861_v36  ;;  %v863_v2 = vpop.f32.mrb[79].mxu1 }
 0x244   :  { %1903 = vadd.xlane.f32.xlu1 %v1740_v13 }
 0x245   :  { %7942 = vtanh.f32 %v1480_v28  ;;  %v1481_v48 = vadd.f32 %v9069_v18, %v1346_v1  ;;  %1073 = vmatmul.mubr.bf16.gmra.mrb[184].mxu1 %v9311_v58  ;;  %v9323_v28 = vpack.c.bf16 %v344_v37, %v342_v10  ;;  %v9326_v1 = vpack.c.bf16 %v349_v5, %v347_v61  ;;  %v346_v10 = vld [vmem:[#allocation7 + $0x600] sm:$0xff]  ;;  %v348_v37 = vld [vmem:[#allocation7 + $0x610] sm:$0xff]  ;;  %v353_v61 = vld [vmem:[#allocation7 + $0x638] sm:$0xff] }
 0x246   :  { %1080 = vmatprep.mubr.bf16.mxu1 %v9314_v55 }
 0x247   :  { %v7939_v12 = vpop.eup %7938  ;;  %7944 = vtanh.f32 %v1481_v48  ;;  %13168 = vst [vmem:[#allocation107_spill] sm:$0xff] %v9323_v28  ;;  %13169 = vst [vmem:[#allocation108_spill] sm:$0xff] %v9326_v1 }
 0x248   :  { %v866_v52 = vpop.f32.mrb[80].mxu1  ;;  %v1741_v40 = vmul.f32 %v7939_v12, %v9093_v53 }
 0x249   :  { %v7941_v49 = vpop.eup %7940  ;;  %v1347_v2 = vadd.f32 %v9268_v0, %v866_v52  ;;  %v868_v41 = vpop.f32.mrb[81].mxu1 }
 0x24a   :  { %v869_v36 = vpop.f32.mrb[82].mxu1  ;;  %1905 = vadd.xlane.f32.xlu1 %v1741_v40  ;;  %v1742_v13 = vmul.f32 %v7941_v49, %v9093_v53  ;;  %v351_v40 = vld [vmem:[#allocation7 + $0x628] sm:$0xff] }
 0x24b   :  { %v1482_v55 = vadd.f32 %v9069_v18, %v1347_v2  ;;  %v1348_v48 = vadd.f32 %v9268_v0, %v869_v36  ;;  %v871_v58 = vpop.f32.mrb[83].mxu1 }
 0x24c   :  { %1907 = vadd.xlane.f32.xlu0 %v1742_v13 }
 0x24d   :  { %7946 = vtanh.f32 %v1482_v55  ;;  %v1483_v12 = vadd.f32 %v9069_v18, %v1348_v48  ;;  %1081 = vmatmul.mubr.bf16.gmra.mrb[188].mxu1 %v9323_v28  ;;  %v9335_v55 = vpack.c.bf16 %v348_v37, %v346_v10  ;;  %v9338_v48 = vpack.c.bf16 %v353_v61, %v351_v40  ;;  %v350_v37 = vld [vmem:[#allocation7 + $0x620] sm:$0xff]  ;;  %v352_v40 = vld [vmem:[#allocation7 + $0x630] sm:$0xff] }
 0x24e   :  { %1088 = vmatprep.mubr.bf16.mxu1 %v9326_v1 }
 0x24f   :  { %v7943_v52 = vpop.eup %7942  ;;  %7948 = vtanh.f32 %v1483_v12  ;;  %13170 = vst [vmem:[#allocation109_spill] sm:$0xff] %v9335_v55  ;;  %13171 = vst [vmem:[#allocation110_spill] sm:$0xff] %v9338_v48 }
 0x250   :  { %v874_v5 = vpop.f32.mrb[84].mxu1  ;;  %v1743_v49 = vmul.f32 %v7943_v52, %v9093_v53  ;;  %v9345_v52 = vld [vmem:[%s12674_s5] ss:$0 sm:$0xff] }
 0x251   :  { %v7945_v2 = vpop.eup %7944  ;;  %v1349_v58 = vadd.f32 %v9268_v0, %v874_v5  ;;  %v876_v41 = vpop.f32.mrb[85].mxu1  ;;  %v357_v5 = vld [vmem:[#allocation7 + $0x658] sm:$0xff] }
 0x252   :  { %v877_v36 = vpop.f32.mrb[86].mxu1  ;;  %1909 = vadd.xlane.f32.xlu0 %v1743_v49  ;;  %v1744_v13 = vmul.f32 %v7945_v2, %v9093_v53  ;;  %v9352_v41 = vpack.c.bf16 %v352_v40, %v350_v37  ;;  %v354_v37 = vld [vmem:[#allocation7 + $0x640] sm:$0xff]  ;;  %v356_v40 = vld [vmem:[#allocation7 + $0x650] sm:$0xff] }
 0x253   :  { %v1484_v1 = vadd.f32 %v9069_v18, %v1349_v58  ;;  %v1350_v12 = vadd.f32 %v9268_v0, %v877_v36  ;;  %v879_v28 = vpop.f32.mrb[87].mxu1  ;;  %v355_v18 = vld [vmem:[#allocation7 + $0x648] sm:$0xff] }
 0x254   :  { %1911 = vadd.xlane.f32.xlu1 %v1744_v13  ;;  %13172 = vst [vmem:[#allocation111_spill] sm:$0xff] %v9352_v41  ;;  %v9354_v13 = vpack.c.bf16 %v357_v5, %v355_v18  ;;  %v359_v18 = vld [vmem:[#allocation7 + $0x668] sm:$0xff]  ;;  %v361_v5 = vld [vmem:[#allocation7 + $0x678] sm:$0xff] }
 0x255   :  { %7950 = vtanh.f32 %v1484_v1  ;;  %v1485_v10 = vadd.f32 %v9345_v52, %v1350_v12  ;;  %1089 = vmatmul.mubr.bf16.gmra.mrb[192].mxu1 %v9335_v55 }
 0x256   :  { %1096 = vmatprep.mubr.bf16.mxu1 %v9338_v48  ;;  %13173 = vst [vmem:[#allocation112_spill] sm:$0xff] %v9354_v13 }
 0x257   :  { %v7947_v61 = vpop.eup %7946  ;;  %7952 = vtanh.f32 %v1485_v10 }
 0x258   :  { %v882_v28 = vpop.f32.mrb[88].mxu1  ;;  %v1745_v1 = vmul.f32 %v7947_v61, %v9093_v53 }
 0x259   :  { %v7949_v49 = vpop.eup %7948  ;;  %v1351_v2 = vadd.f32 %v9268_v0, %v882_v28  ;;  %v884_v58 = vpop.f32.mrb[89].mxu1 }
 0x25a   :  { %v885_v36 = vpop.f32.mrb[90].mxu1  ;;  %1913 = vadd.xlane.f32.xlu1 %v1745_v1  ;;  %v1746_v55 = vmul.f32 %v7949_v49, %v9093_v53 }
 0x25b   :  { %v1486_v12 = vadd.f32 %v9345_v52, %v1351_v2  ;;  %v1352_v48 = vadd.f32 %v9268_v0, %v885_v36  ;;  %v887_v10 = vpop.f32.mrb[91].mxu1  ;;  %v9365_v2 = vld [vmem:[%s12675_s6] ss:$0 sm:$0xff]  ;;  %v9371_v36 = vpack.c.bf16 %v356_v40, %v354_v37  ;;  %v358_v37 = vld [vmem:[#allocation7 + $0x660] sm:$0xff] }
 0x25c   :  { %v9373_v10 = vpack.c.bf16 %v361_v5, %v359_v18  ;;  %v360_v40 = vld [vmem:[#allocation7 + $0x670] sm:$0xff]  ;;  %v363_v5 = vld [vmem:[#allocation7 + $0x688] sm:$0xff] }
 0x25d   :  { %7954 = vtanh.f32 %v1486_v12  ;;  %v1487_v61 = vadd.f32 %v9345_v52, %v1352_v48  ;;  %1097 = vmatmul.mubr.bf16.gmra.mrb[196].mxu1 %v9352_v41  ;;  %13174 = vst [vmem:[#allocation113_spill] sm:$0xff] %v9371_v36 }
 0x25e   :  { %1915 = vadd.xlane.f32.xlu1 %v1746_v55  ;;  %1104 = vmatprep.mubr.bf16.mxu1 %v9354_v13  ;;  %v1265_v55 = vcombine.high %v9039_v30, %v9039_v30  ;;  %13175 = vst [vmem:[#allocation114_spill] sm:$0xff] %v9373_v10 }
 0x25f   :  { %v7951_v28 = vpop.eup %7950  ;;  %7956 = vtanh.f32 %v1487_v61 }
 0x260   :  { %v890_v1 = vpop.f32.mrb[92].mxu1  ;;  %v1747_v53 = vmul.f32 %v9365_v2, %v7951_v28  ;;  %v9379_v11 = vrot.slane %v1265_v55, %v9054_v3 }
 0x261   :  { %v7953_v48 = vpop.eup %7952  ;;  %v1353_v49 = vadd.f32 %v9268_v0, %v890_v1  ;;  %v892_v58 = vpop.f32.mrb[93].mxu1 }
 0x262   :  { %v893_v12 = vpop.f32.mrb[94].mxu1  ;;  %1917 = vadd.xlane.f32.xlu1 %v1747_v53  ;;  %v1748_v28 = vmul.f32 %v9365_v2, %v7953_v48 }
 0x263   :  { %v1488_v61 = vadd.f32 %v9345_v52, %v1353_v49  ;;  %v1354_v13 = vadd.f32 %v9268_v0, %v893_v12  ;;  %v895_v41 = vpop.f32.mrb[95].mxu1  ;;  %v365_v0 = vld [vmem:[#allocation7 + $0x698] sm:$0xff]  ;;  %v9386_v49 = vpack.c.bf16 %v360_v40, %v358_v37  ;;  %v362_v37 = vld [vmem:[#allocation7 + $0x680] sm:$0xff]  ;;  %v364_v40 = vld [vmem:[#allocation7 + $0x690] sm:$0xff] }
 0x264   :  { %v9389_v12 = vpack.c.bf16 %v365_v0, %v363_v5  ;;  %v369_v5 = vld [vmem:[#allocation7 + $0x6b8] sm:$0xff] }
 0x265   :  { %7958 = vtanh.f32 %v1488_v61  ;;  %v1489_v30 = vadd.f32 %v9345_v52, %v1354_v13  ;;  %1105 = vmatmul.mubr.bf16.gmra.mrb[200].mxu1 %v9371_v36  ;;  %13176 = vst [vmem:[#allocation115_spill] sm:$0xff] %v9386_v49 }
 0x266   :  { %1919 = vadd.xlane.f32.xlu1 %v1748_v28  ;;  %1112 = vmatprep.mubr.bf16.mxu1 %v9373_v10  ;;  %13177 = vst [vmem:[#allocation116_spill] sm:$0xff] %v9389_v12 }
 0x267   :  { %v7955_v18 = vpop.eup %7954  ;;  %7960 = vtanh.f32 %v1489_v30 }
 0x268   :  { %v898_v41 = vpop.f32.mrb[96].mxu1  ;;  %v1749_v1 = vmul.f32 %v9365_v2, %v7955_v18 }
 0x269   :  { %v7957_v53 = vpop.eup %7956  ;;  %v1355_v48 = vadd.f32 %v9379_v11, %v898_v41  ;;  %v900_v55 = vpop.f32.mrb[97].mxu1 }
 0x26a   :  { %v901_v13 = vpop.f32.mrb[98].mxu1  ;;  %1921 = vadd.xlane.f32.xlu1 %v1749_v1  ;;  %v1750_v58 = vmul.f32 %v9365_v2, %v7957_v53  ;;  %v367_v1 = vld [vmem:[#allocation7 + $0x6a8] sm:$0xff] }
 0x26b   :  { %v1490_v61 = vadd.f32 %v9345_v52, %v1355_v48  ;;  %v1356_v28 = vadd.f32 %v9379_v11, %v901_v13  ;;  %v903_v30 = vpop.f32.mrb[99].mxu1 }
 0x26c   :  { %1923 = vadd.xlane.f32.xlu0 %v1750_v58  ;;  %v9398_v58 = vpack.c.bf16 %v364_v40, %v362_v37  ;;  %v366_v37 = vld [vmem:[#allocation7 + $0x6a0] sm:$0xff]  ;;  %v368_v40 = vld [vmem:[#allocation7 + $0x6b0] sm:$0xff] }
 0x26d   :  { %7962 = vtanh.f32 %v1490_v61  ;;  %v1491_v18 = vadd.f32 %v9345_v52, %v1356_v28  ;;  %1113 = vmatmul.mubr.bf16.gmra.mrb[204].mxu1 %v9386_v49  ;;  %v9400_v28 = vpack.c.bf16 %v369_v5, %v367_v1  ;;  %v371_v1 = vld [vmem:[#allocation7 + $0x6c8] sm:$0xff]  ;;  %v373_v5 = vld [vmem:[#allocation7 + $0x6d8] sm:$0xff] }
 0x26e   :  { %1120 = vmatprep.mubr.bf16.mxu1 %v9389_v12  ;;  %13178 = vst [vmem:[#allocation117_spill] sm:$0xff] %v9398_v58 }
 0x26f   :  { %v7959_v41 = vpop.eup %7958  ;;  %7964 = vtanh.f32 %v1491_v18  ;;  %13179 = vst [vmem:[#allocation118_spill] sm:$0xff] %v9400_v28 }
 0x270   :  { %v906_v0 = vpop.f32.mrb[100].mxu1  ;;  %v1751_v53 = vmul.f32 %v9365_v2, %v7959_v41 }
 0x271   :  { %v7961_v48 = vpop.eup %7960  ;;  %v1357_v55 = vadd.f32 %v9379_v11, %v906_v0  ;;  %v908_v13 = vpop.f32.mrb[101].mxu1 }
 0x272   :  { %v909_v61 = vpop.f32.mrb[102].mxu1  ;;  %1925 = vadd.xlane.f32.xlu1 %v1751_v53  ;;  %v1752_v49 = vmul.f32 %v9365_v2, %v7961_v48 }
 0x273   :  { %v1492_v30 = vadd.f32 %v9345_v52, %v1357_v55  ;;  %v1358_v12 = vadd.f32 %v9379_v11, %v909_v61  ;;  %v911_v18 = vpop.f32.mrb[103].mxu1 }
 0x274   :  { %v9413_v18 = vpack.c.bf16 %v373_v5, %v371_v1  ;;  %v377_v1 = vld [vmem:[#allocation7 + $0x6f8] sm:$0xff] }
 0x275   :  { %7966 = vtanh.f32 %v1492_v30  ;;  %v1493_v41 = vadd.f32 %v9345_v52, %v1358_v12  ;;  %1121 = vmatmul.mubr.bf16.gmra.mrb[208].mxu1 %v9398_v58  ;;  %v9410_v30 = vpack.c.bf16 %v368_v40, %v366_v37  ;;  %v370_v37 = vld [vmem:[#allocation7 + $0x6c0] sm:$0xff]  ;;  %v372_v40 = vld [vmem:[#allocation7 + $0x6d0] sm:$0xff] }
 0x276   :  { %1927 = vadd.xlane.f32.xlu1 %v1752_v49  ;;  %1128 = vmatprep.mubr.bf16.mxu1 %v9400_v28  ;;  %13181 = vst [vmem:[#allocation120_spill] sm:$0xff] %v9413_v18 }
 0x277   :  { %v7963_v0 = vpop.eup %7962  ;;  %7968 = vtanh.f32 %v1493_v41  ;;  %13180 = vst [vmem:[#allocation119_spill] sm:$0xff] %v9410_v30 }
 0x278   :  { %v914_v53 = vpop.f32.mrb[104].mxu1  ;;  %v1753_v55 = vmul.f32 %v9365_v2, %v7963_v0 }
 0x279   :  { %v7965_v13 = vpop.eup %7964  ;;  %v1359_v48 = vadd.f32 %v9379_v11, %v914_v53  ;;  %v916_v61 = vpop.f32.mrb[105].mxu1 }
 0x27a   :  { %v917_v12 = vpop.f32.mrb[106].mxu1  ;;  %1929 = vadd.xlane.f32.xlu1 %v1753_v55  ;;  %v1754_v49 = vmul.f32 %v9365_v2, %v7965_v13  ;;  %v375_v55 = vld [vmem:[#allocation7 + $0x6e8] sm:$0xff] }
 0x27b   :  { %v1494_v28 = vadd.f32 %v9345_v52, %v1359_v48  ;;  %v1360_v41 = vadd.f32 %v9379_v11, %v917_v12  ;;  %v919_v58 = vpop.f32.mrb[107].mxu1 }
 0x27c   :  { %1931 = vadd.xlane.f32.xlu0 %v1754_v49  ;;  %v9424_v49 = vpack.c.bf16 %v377_v1, %v375_v55  ;;  %v379_v55 = vld [vmem:[#allocation7 + $0x708] sm:$0xff]  ;;  %v381_v1 = vld [vmem:[#allocation7 + $0x718] sm:$0xff] }
 0x27d   :  { %7970 = vtanh.f32 %v1494_v28  ;;  %v1495_v0 = vadd.f32 %v9345_v52, %v1360_v41  ;;  %1129 = vmatmul.mubr.bf16.gmra.mrb[212].mxu1 %v9410_v30  ;;  %v9422_v28 = vpack.c.bf16 %v372_v40, %v370_v37  ;;  %v374_v37 = vld [vmem:[#allocation7 + $0x6e0] sm:$0xff]  ;;  %v376_v40 = vld [vmem:[#allocation7 + $0x6f0] sm:$0xff] }
 0x27e   :  { %1136 = vmatprep.mubr.bf16.mxu1 %v9413_v18  ;;  %13183 = vst [vmem:[#allocation122_spill] sm:$0xff] %v9424_v49 }
 0x27f   :  { %v7967_v53 = vpop.eup %7966  ;;  %7972 = vtanh.f32 %v1495_v0  ;;  %13182 = vst [vmem:[#allocation121_spill] sm:$0xff] %v9422_v28 }
 0x280   :  { %v922_v5 = vpop.f32.mrb[108].mxu1  ;;  %v1755_v13 = vmul.f32 %v9365_v2, %v7967_v53 }
 0x281   :  { %v7969_v48 = vpop.eup %7968  ;;  %v1361_v58 = vadd.f32 %v9379_v11, %v922_v5  ;;  %v924_v61 = vpop.f32.mrb[109].mxu1 }
 0x282   :  { %v925_v12 = vpop.f32.mrb[110].mxu1  ;;  %1933 = vadd.xlane.f32.xlu0 %v1755_v13  ;;  %v1756_v30 = vmul.f32 %v9365_v2, %v7969_v48 }
 0x283   :  { %v1496_v41 = vadd.f32 %v9345_v52, %v1361_v58  ;;  %v1362_v18 = vadd.f32 %v9379_v11, %v925_v12  ;;  %v927_v0 = vpop.f32.mrb[111].mxu1 }
 0x285   :  { %7974 = vtanh.f32 %v1496_v41  ;;  %v1497_v53 = vadd.f32 %v9345_v52, %v1362_v18  ;;  %1137 = vmatmul.mubr.bf16.gmra.mrb[216].mxu1 %v9422_v28  ;;  %v9434_v41 = vpack.c.bf16 %v376_v40, %v374_v37  ;;  %v378_v37 = vld [vmem:[#allocation7 + $0x700] sm:$0xff]  ;;  %v380_v40 = vld [vmem:[#allocation7 + $0x710] sm:$0xff] }
 0x286   :  { %1935 = vadd.xlane.f32.xlu0 %v1756_v30  ;;  %1144 = vmatprep.mubr.bf16.mxu1 %v9424_v49  ;;  %v9436_v30 = vpack.c.bf16 %v381_v1, %v379_v55  ;;  %v383_v55 = vld [vmem:[#allocation7 + $0x728] sm:$0xff]  ;;  %v385_v1 = vld [vmem:[#allocation7 + $0x738] sm:$0xff] }
 0x287   :  { %v7971_v5 = vpop.eup %7970  ;;  %7976 = vtanh.f32 %v1497_v53  ;;  %13184 = vst [vmem:[#allocation123_spill] sm:$0xff] %v9434_v41 }
 0x288   :  { %v930_v13 = vpop.f32.mrb[112].mxu1  ;;  %v1757_v58 = vmul.f32 %v9365_v2, %v7971_v5  ;;  %13185 = vst [vmem:[#allocation124_spill] sm:$0xff] %v9436_v30 }
 0x289   :  { %v7973_v61 = vpop.eup %7972  ;;  %v1363_v48 = vadd.f32 %v9379_v11, %v930_v13  ;;  %v932_v12 = vpop.f32.mrb[113].mxu1 }
 0x28a   :  { %v933_v18 = vpop.f32.mrb[114].mxu1  ;;  %1937 = vadd.xlane.f32.xlu1 %v1757_v58  ;;  %v1758_v28 = vmul.f32 %v9365_v2, %v7973_v61 }
 0x28b   :  { %v1498_v0 = vadd.f32 %v9345_v52, %v1363_v48  ;;  %v1364_v49 = vadd.f32 %v9379_v11, %v933_v18  ;;  %v935_v53 = vpop.f32.mrb[115].mxu1 }
 0x28d   :  { %7978 = vtanh.f32 %v1498_v0  ;;  %v1499_v5 = vadd.f32 %v9345_v52, %v1364_v49  ;;  %1145 = vmatmul.mubr.bf16.gmra.mrb[220].mxu1 %v9434_v41  ;;  %v9446_v0 = vpack.c.bf16 %v380_v40, %v378_v37  ;;  %v382_v37 = vld [vmem:[#allocation7 + $0x720] sm:$0xff]  ;;  %v384_v40 = vld [vmem:[#allocation7 + $0x730] sm:$0xff] }
 0x28e   :  { %1939 = vadd.xlane.f32.xlu1 %v1758_v28  ;;  %1152 = vmatprep.mubr.bf16.mxu1 %v9436_v30  ;;  %v9448_v28 = vpack.c.bf16 %v385_v1, %v383_v55  ;;  %v387_v55 = vld [vmem:[#allocation7 + $0x748] sm:$0xff]  ;;  %v389_v1 = vld [vmem:[#allocation7 + $0x758] sm:$0xff] }
 0x28f   :  { %v7975_v13 = vpop.eup %7974  ;;  %7980 = vtanh.f32 %v1499_v5  ;;  %13186 = vst [vmem:[#allocation125_spill] sm:$0xff] %v9446_v0 }
 0x290   :  { %v938_v58 = vpop.f32.mrb[116].mxu1  ;;  %v1759_v48 = vmul.f32 %v9365_v2, %v7975_v13  ;;  %13187 = vst [vmem:[#allocation126_spill] sm:$0xff] %v9448_v28 }
 0x291   :  { %v7977_v12 = vpop.eup %7976  ;;  %v1365_v61 = vadd.f32 %v9379_v11, %v938_v58  ;;  %v940_v18 = vpop.f32.mrb[117].mxu1 }
 0x292   :  { %v941_v49 = vpop.f32.mrb[118].mxu1  ;;  %1941 = vadd.xlane.f32.xlu0 %v1759_v48  ;;  %v1760_v41 = vmul.f32 %v9365_v2, %v7977_v12 }
 0x293   :  { %v1500_v53 = vadd.f32 %v9345_v52, %v1365_v61  ;;  %v1366_v30 = vadd.f32 %v9379_v11, %v941_v49  ;;  %v943_v5 = vpop.f32.mrb[119].mxu1 }
 0x295   :  { %7982 = vtanh.f32 %v1500_v53  ;;  %v1501_v13 = vadd.f32 %v9345_v52, %v1366_v30  ;;  %1153 = vmatmul.mubr.bf16.gmra.mrb[224].mxu1 %v9446_v0  ;;  %v9458_v53 = vpack.c.bf16 %v384_v40, %v382_v37  ;;  %v386_v37 = vld [vmem:[#allocation7 + $0x740] sm:$0xff]  ;;  %v388_v40 = vld [vmem:[#allocation7 + $0x750] sm:$0xff] }
 0x296   :  { %1943 = vadd.xlane.f32.xlu0 %v1760_v41  ;;  %1160 = vmatprep.mubr.bf16.mxu1 %v9448_v28  ;;  %v9460_v41 = vpack.c.bf16 %v389_v1, %v387_v55  ;;  %v391_v55 = vld [vmem:[#allocation7 + $0x768] sm:$0xff]  ;;  %v393_v1 = vld [vmem:[#allocation7 + $0x778] sm:$0xff] }
 0x297   :  { %v7979_v58 = vpop.eup %7978  ;;  %7984 = vtanh.f32 %v1501_v13  ;;  %13188 = vst [vmem:[#allocation127_spill] sm:$0xff] %v9458_v53 }
 0x298   :  { %v946_v48 = vpop.f32.mrb[120].mxu1  ;;  %v1761_v61 = vmul.f32 %v9365_v2, %v7979_v58  ;;  %13189 = vst [vmem:[#allocation128_spill] sm:$0xff] %v9460_v41 }
 0x299   :  { %v7981_v18 = vpop.eup %7980  ;;  %v1367_v12 = vadd.f32 %v9379_v11, %v946_v48  ;;  %v948_v49 = vpop.f32.mrb[121].mxu1 }
 0x29a   :  { %v949_v30 = vpop.f32.mrb[122].mxu1  ;;  %1945 = vadd.xlane.f32.xlu0 %v1761_v61  ;;  %v1762_v0 = vmul.f32 %v9365_v2, %v7981_v18 }
 0x29b   :  { %v1502_v5 = vadd.f32 %v9345_v52, %v1367_v12  ;;  %v1368_v28 = vadd.f32 %v9379_v11, %v949_v30  ;;  %v951_v13 = vpop.f32.mrb[123].mxu1 }
 0x29d   :  { %7986 = vtanh.f32 %v1502_v5  ;;  %v1503_v58 = vadd.f32 %v9345_v52, %v1368_v28  ;;  %1161 = vmatmul.mubr.bf16.gmra.mrb[228].mxu1 %v9458_v53  ;;  %v9470_v5 = vpack.c.bf16 %v388_v40, %v386_v37  ;;  %v390_v37 = vld [vmem:[#allocation7 + $0x760] sm:$0xff]  ;;  %v392_v40 = vld [vmem:[#allocation7 + $0x770] sm:$0xff] }
 0x29e   :  { %1947 = vadd.xlane.f32.xlu0 %v1762_v0  ;;  %1168 = vmatprep.mubr.bf16.mxu1 %v9460_v41  ;;  %v9472_v0 = vpack.c.bf16 %v393_v1, %v391_v55  ;;  %v397_v1 = vld [vmem:[#allocation7 + $0x798] sm:$0xff] }
 0x29f   :  { %v7983_v48 = vpop.eup %7982  ;;  %7988 = vtanh.f32 %v1503_v58  ;;  %13190 = vst [vmem:[#allocation129_spill] sm:$0xff] %v9470_v5 }
 0x2a0   :  { %v954_v61 = vpop.f32.mrb[124].mxu1  ;;  %v1763_v12 = vmul.f32 %v9365_v2, %v7983_v48  ;;  %13191 = vst [vmem:[#allocation130_spill] sm:$0xff] %v9472_v0  ;;  %v9479_v48 = vrot.slane %v9037_v29, %v9054_v3 }
 0x2a1   :  { %v7985_v49 = vpop.eup %7984  ;;  %v1369_v18 = vadd.f32 %v9379_v11, %v954_v61  ;;  %v956_v30 = vpop.f32.mrb[125].mxu1 }
 0x2a2   :  { %v957_v28 = vpop.f32.mrb[126].mxu1  ;;  %1949 = vadd.xlane.f32.xlu0 %v1763_v12  ;;  %v1764_v53 = vmul.f32 %v9365_v2, %v7985_v49 }
 0x2a3   :  { %v1504_v13 = vadd.f32 %v9345_v52, %v1369_v18  ;;  %v1370_v41 = vadd.f32 %v9379_v11, %v957_v28  ;;  %v959_v58 = vpop.f32.mrb[127].mxu1  ;;  %v395_v11 = vld [vmem:[#allocation7 + $0x788] sm:$0xff] }
 0x2a4   :  { %v9489_v58 = vpack.c.bf16 %v397_v1, %v395_v11  ;;  %v401_v11 = vld [vmem:[#allocation7 + $0x7b8] sm:$0xff] }
 0x2a5   :  { %7990 = vtanh.f32 %v1504_v13  ;;  %v1505_v61 = vadd.f32 %v9345_v52, %v1370_v41  ;;  %1169 = vmatmul.mubr.bf16.gmra.mrb[232].mxu1 %v9470_v5  ;;  %v9486_v13 = vpack.c.bf16 %v392_v40, %v390_v37  ;;  %v394_v37 = vld [vmem:[#allocation7 + $0x780] sm:$0xff]  ;;  %v396_v40 = vld [vmem:[#allocation7 + $0x790] sm:$0xff] }
 0x2a6   :  { %1951 = vadd.xlane.f32.xlu0 %v1764_v53  ;;  %1176 = vmatprep.mubr.bf16.mxu1 %v9472_v0  ;;  %13193 = vst [vmem:[#allocation132_spill] sm:$0xff] %v9489_v58 }
 0x2a7   :  { %v7987_v55 = vpop.eup %7986  ;;  %7992 = vtanh.f32 %v1505_v61  ;;  %13192 = vst [vmem:[#allocation131_spill] sm:$0xff] %v9486_v13 }
 0x2a8   :  { %v962_v12 = vpop.f32.mrb[128].mxu1  ;;  %v1765_v49 = vmul.f32 %v9365_v2, %v7987_v55 }
 0x2a9   :  { %v7989_v18 = vpop.eup %7988  ;;  %v1371_v30 = vadd.f32 %v9479_v48, %v962_v12  ;;  %v964_v28 = vpop.f32.mrb[129].mxu1 }
 0x2aa   :  { %v965_v41 = vpop.f32.mrb[130].mxu1  ;;  %1953 = vadd.xlane.f32.xlu1 %v1765_v49  ;;  %v1766_v53 = vmul.f32 %v9365_v2, %v7989_v18  ;;  %v399_v49 = vld [vmem:[#allocation7 + $0x7a8] sm:$0xff] }
 0x2ab   :  { %v1506_v0 = vadd.f32 %v9345_v52, %v1371_v30  ;;  %v1372_v61 = vadd.f32 %v9479_v48, %v965_v41  ;;  %v967_v5 = vpop.f32.mrb[131].mxu1 }
 0x2ac   :  { %1955 = vadd.xlane.f32.xlu0 %v1766_v53 }
 0x2ad   :  { %7994 = vtanh.f32 %v1506_v0  ;;  %v1507_v55 = vadd.f32 %v9345_v52, %v1372_v61  ;;  %1177 = vmatmul.mubr.bf16.gmra.mrb[236].mxu1 %v9486_v13  ;;  %v9498_v0 = vpack.c.bf16 %v396_v40, %v394_v37  ;;  %v9501_v61 = vpack.c.bf16 %v401_v11, %v399_v49  ;;  %v398_v37 = vld [vmem:[#allocation7 + $0x7a0] sm:$0xff]  ;;  %v400_v40 = vld [vmem:[#allocation7 + $0x7b0] sm:$0xff]  ;;  %v405_v49 = vld [vmem:[#allocation7 + $0x7d8] sm:$0xff] }
 0x2ae   :  { %1184 = vmatprep.mubr.bf16.mxu1 %v9489_v58 }
 0x2af   :  { %v7991_v12 = vpop.eup %7990  ;;  %7996 = vtanh.f32 %v1507_v55  ;;  %13194 = vst [vmem:[#allocation133_spill] sm:$0xff] %v9498_v0  ;;  %13195 = vst [vmem:[#allocation134_spill] sm:$0xff] %v9501_v61 }
 0x2b0   :  { %v970_v1 = vpop.f32.mrb[132].mxu1  ;;  %v1767_v18 = vmul.f32 %v9365_v2, %v7991_v12 }
 0x2b1   :  { %v7993_v30 = vpop.eup %7992  ;;  %v1373_v5 = vadd.f32 %v9479_v48, %v970_v1  ;;  %v972_v28 = vpop.f32.mrb[133].mxu1 }
 0x2b2   :  { %v973_v41 = vpop.f32.mrb[134].mxu1  ;;  %1957 = vadd.xlane.f32.xlu0 %v1767_v18  ;;  %v1768_v53 = vmul.f32 %v9365_v2, %v7993_v30  ;;  %v403_v18 = vld [vmem:[#allocation7 + $0x7c8] sm:$0xff] }
 0x2b3   :  { %v1508_v58 = vadd.f32 %v9345_v52, %v1373_v5  ;;  %v1374_v55 = vadd.f32 %v9479_v48, %v973_v41  ;;  %v975_v13 = vpop.f32.mrb[135].mxu1 }
 0x2b4   :  { %1959 = vadd.xlane.f32.xlu1 %v1768_v53 }
 0x2b5   :  { %7998 = vtanh.f32 %v1508_v58  ;;  %v1509_v12 = vadd.f32 %v9345_v52, %v1374_v55  ;;  %1185 = vmatmul.mubr.bf16.gmra.mrb[240].mxu1 %v9498_v0  ;;  %v9510_v58 = vpack.c.bf16 %v400_v40, %v398_v37  ;;  %v9513_v55 = vpack.c.bf16 %v405_v49, %v403_v18  ;;  %v402_v37 = vld [vmem:[#allocation7 + $0x7c0] sm:$0xff]  ;;  %v404_v40 = vld [vmem:[#allocation7 + $0x7d0] sm:$0xff]  ;;  %v409_v18 = vld [vmem:[#allocation7 + $0x7f8] sm:$0xff] }
 0x2b6   :  { %1192 = vmatprep.mubr.bf16.mxu1 %v9501_v61 }
 0x2b7   :  { %v7995_v1 = vpop.eup %7994  ;;  %8000 = vtanh.f32 %v1509_v12  ;;  %13196 = vst [vmem:[#allocation135_spill] sm:$0xff] %v9510_v58  ;;  %13197 = vst [vmem:[#allocation136_spill] sm:$0xff] %v9513_v55 }
 0x2b8   :  { %v978_v11 = vpop.f32.mrb[136].mxu1  ;;  %v1769_v30 = vmul.f32 %v9365_v2, %v7995_v1 }
 0x2b9   :  { %v7997_v5 = vpop.eup %7996  ;;  %v1375_v13 = vadd.f32 %v9479_v48, %v978_v11  ;;  %v980_v28 = vpop.f32.mrb[137].mxu1 }
 0x2ba   :  { %v981_v41 = vpop.f32.mrb[138].mxu1  ;;  %1961 = vadd.xlane.f32.xlu1 %v1769_v30  ;;  %v1770_v53 = vmul.f32 %v9365_v2, %v7997_v5  ;;  %v407_v30 = vld [vmem:[#allocation7 + $0x7e8] sm:$0xff] }
 0x2bb   :  { %v1510_v61 = vadd.f32 %v9345_v52, %v1375_v13  ;;  %v1376_v12 = vadd.f32 %v9479_v48, %v981_v41  ;;  %v983_v0 = vpop.f32.mrb[139].mxu1 }
 0x2bc   :  { %1963 = vadd.xlane.f32.xlu0 %v1770_v53 }
 0x2bd   :  { %8002 = vtanh.f32 %v1510_v61  ;;  %v1511_v1 = vadd.f32 %v9345_v52, %v1376_v12  ;;  %1193 = vmatmul.mubr.bf16.gmra.mrb[244].mxu1 %v9510_v58  ;;  %v9522_v61 = vpack.c.bf16 %v404_v40, %v402_v37  ;;  %v9525_v12 = vpack.c.bf16 %v409_v18, %v407_v30  ;;  %v406_v37 = vld [vmem:[#allocation7 + $0x7e0] sm:$0xff]  ;;  %v408_v40 = vld [vmem:[#allocation7 + $0x7f0] sm:$0xff] }
 0x2be   :  { %1200 = vmatprep.mubr.bf16.mxu1 %v9513_v55 }
 0x2bf   :  { %v7999_v11 = vpop.eup %7998  ;;  %8004 = vtanh.f32 %v1511_v1  ;;  %13198 = vst [vmem:[#allocation137_spill] sm:$0xff] %v9522_v61  ;;  %13199 = vst [vmem:[#allocation138_spill] sm:$0xff] %v9525_v12 }
 0x2c0   :  { %v986_v49 = vpop.f32.mrb[140].mxu1  ;;  %v1771_v5 = vmul.f32 %v9365_v2, %v7999_v11 }
 0x2c1   :  { %v8001_v13 = vpop.eup %8000  ;;  %v1377_v0 = vadd.f32 %v9479_v48, %v986_v49  ;;  %v988_v28 = vpop.f32.mrb[141].mxu1 }
 0x2c2   :  { %v989_v41 = vpop.f32.mrb[142].mxu1  ;;  %1965 = vadd.xlane.f32.xlu1 %v1771_v5  ;;  %v1772_v53 = vmul.f32 %v9365_v2, %v8001_v13 }
 0x2c3   :  { %v1512_v55 = vadd.f32 %v9345_v52, %v1377_v0  ;;  %v1378_v1 = vadd.f32 %v9479_v48, %v989_v41  ;;  %v991_v58 = vpop.f32.mrb[143].mxu1 }
 0x2c4   :  { %1967 = vadd.xlane.f32.xlu0 %v1772_v53  ;;  %v9534_v58 = vpack.c.bf16 %v408_v40, %v406_v37 }
 0x2c5   :  { %8006 = vtanh.f32 %v1512_v55  ;;  %v1513_v11 = vadd.f32 %v9345_v52, %v1378_v1  ;;  %1201 = vmatmul.mubr.bf16.gmra.mrb[248].mxu1 %v9522_v61 }
 0x2c6   :  { %1208 = vmatprep.mubr.bf16.mxu1 %v9525_v12  ;;  %13200 = vst [vmem:[#allocation139_spill] sm:$0xff] %v9534_v58 }
 0x2c7   :  { %v8003_v49 = vpop.eup %8002  ;;  %8008 = vtanh.f32 %v1513_v11 }
 0x2c8   :  { %v994_v5 = vpop.f32.mrb[144].mxu1  ;;  %v1773_v30 = vmul.f32 %v9365_v2, %v8003_v49 }
 0x2c9   :  { %v8005_v18 = vpop.eup %8004  ;;  %v1379_v13 = vadd.f32 %v9479_v48, %v994_v5  ;;  %v996_v0 = vpop.f32.mrb[145].mxu1 }
 0x2ca   :  { %v997_v55 = vpop.f32.mrb[146].mxu1  ;;  %1969 = vadd.xlane.f32.xlu0 %v1773_v30  ;;  %v1774_v28 = vmul.f32 %v9365_v2, %v8005_v18 }
 0x2cb   :  { %v1514_v41 = vadd.f32 %v9345_v52, %v1379_v13  ;;  %v1380_v53 = vadd.f32 %v9479_v48, %v997_v55  ;;  %v999_v1 = vpop.f32.mrb[147].mxu1 }
 0x2cc   :  { %1971 = vadd.xlane.f32.xlu1 %v1774_v28 }
 0x2cd   :  { %8010 = vtanh.f32 %v1514_v41  ;;  %v1515_v11 = vadd.f32 %v9345_v52, %v1380_v53  ;;  %1209 = vmatmul.mubr.bf16.gmra.mrb[252].mxu1 %v9534_v58 }
 0x2cf   :  { %v8007_v49 = vpop.eup %8006  ;;  %8012 = vtanh.f32 %v1515_v11 }
 0x2d0   :  { %v1002_v5 = vpop.f32.mrb[148].mxu1  ;;  %v1775_v37 = vmul.f32 %v9365_v2, %v8007_v49 }
 0x2d1   :  { %v8009_v40 = vpop.eup %8008  ;;  %v1381_v30 = vadd.f32 %v9479_v48, %v1002_v5  ;;  %v1004_v18 = vpop.f32.mrb[149].mxu1 }
 0x2d2   :  { %v1005_v0 = vpop.f32.mrb[150].mxu1  ;;  %1973 = vadd.xlane.f32.xlu1 %v1775_v37  ;;  %v1776_v41 = vmul.f32 %v9365_v2, %v8009_v40 }
 0x2d3   :  { %v1516_v13 = vadd.f32 %v9345_v52, %v1381_v30  ;;  %v1382_v55 = vadd.f32 %v9479_v48, %v1005_v0  ;;  %v1007_v28 = vpop.f32.mrb[151].mxu1 }
 0x2d5   :  { %8014 = vtanh.f32 %v1516_v13  ;;  %v1517_v53 = vadd.f32 %v9345_v52, %v1382_v55 }
 0x2d6   :  { %1975 = vadd.xlane.f32.xlu1 %v1776_v41 }
 0x2d7   :  { %v8011_v1 = vpop.eup %8010  ;;  %8016 = vtanh.f32 %v1517_v53 }
 0x2d8   :  { %v1010_v11 = vpop.f32.mrb[152].mxu1  ;;  %v1777_v49 = vmul.f32 %v9365_v2, %v8011_v1 }
 0x2d9   :  { %v8013_v5 = vpop.eup %8012  ;;  %v1383_v18 = vadd.f32 %v9479_v48, %v1010_v11  ;;  %v1012_v37 = vpop.f32.mrb[153].mxu1 }
 0x2da   :  { %v1013_v58 = vpop.f32.mrb[154].mxu1  ;;  %1977 = vadd.xlane.f32.xlu1 %v1777_v49  ;;  %v1778_v13 = vmul.f32 %v9365_v2, %v8013_v5 }
 0x2db   :  { %v1518_v30 = vadd.f32 %v9345_v52, %v1383_v18  ;;  %v1384_v0 = vadd.f32 %v9479_v48, %v1013_v58  ;;  %v1015_v40 = vpop.f32.mrb[155].mxu1 }
 0x2dd   :  { %8018 = vtanh.f32 %v1518_v30  ;;  %v1519_v55 = vadd.f32 %v9345_v52, %v1384_v0 }
 0x2de   :  { %1979 = vadd.xlane.f32.xlu1 %v1778_v13  ;;  %v9561_v13 = vrot.slane %v9041_v31, %v9054_v3 }
 0x2df   :  { %v8015_v28 = vpop.eup %8014  ;;  %8020 = vtanh.f32 %v1519_v55 }
 0x2e0   :  { %v1018_v41 = vpop.f32.mrb[156].mxu1  ;;  %v1779_v53 = vmul.f32 %v9365_v2, %v8015_v28 }
 0x2e1   :  { %v8017_v1 = vpop.eup %8016  ;;  %v1385_v11 = vadd.f32 %v9479_v48, %v1018_v41  ;;  %v1020_v49 = vpop.f32.mrb[157].mxu1 }
 0x2e2   :  { %v1021_v37 = vpop.f32.mrb[158].mxu1  ;;  %1981 = vadd.xlane.f32.xlu1 %v1779_v53  ;;  %v1780_v58 = vmul.f32 %v9365_v2, %v8017_v1 }
 0x2e3   :  { %v1520_v18 = vadd.f32 %v9345_v52, %v1385_v11  ;;  %v1386_v5 = vadd.f32 %v9479_v48, %v1021_v37  ;;  %v1023_v30 = vpop.f32.mrb[159].mxu1 }
 0x2e4   :  { %1983 = vadd.xlane.f32.xlu0 %v1780_v58 }
 0x2e5   :  { %8022 = vtanh.f32 %v1520_v18  ;;  %v1521_v0 = vadd.f32 %v9345_v52, %v1386_v5 }
 0x2e7   :  { %v8019_v40 = vpop.eup %8018  ;;  %8024 = vtanh.f32 %v1521_v0 }
 0x2e8   :  { %v1026_v55 = vpop.f32.mrb[160].mxu1  ;;  %v1781_v28 = vmul.f32 %v9365_v2, %v8019_v40 }
 0x2e9   :  { %v8021_v41 = vpop.eup %8020  ;;  %v1387_v53 = vadd.f32 %v9561_v13, %v1026_v55  ;;  %v1028_v1 = vpop.f32.mrb[161].mxu1 }
 0x2ea   :  { %v1029_v11 = vpop.f32.mrb[162].mxu1  ;;  %1985 = vadd.xlane.f32.xlu1 %v1781_v28  ;;  %v1782_v58 = vmul.f32 %v9365_v2, %v8021_v41 }
 0x2eb   :  { %v1522_v48 = vadd.f32 %v9345_v52, %v1387_v53  ;;  %v1388_v49 = vadd.f32 %v9561_v13, %v1029_v11  ;;  %v1031_v37 = vpop.f32.mrb[163].mxu1 }
 0x2ed   :  { %8026 = vtanh.f32 %v1522_v48  ;;  %v1523_v18 = vadd.f32 %v9345_v52, %v1388_v49 }
 0x2ee   :  { %1987 = vadd.xlane.f32.xlu1 %v1782_v58 }
 0x2ef   :  { %v8023_v5 = vpop.eup %8022  ;;  %8028 = vtanh.f32 %v1523_v18 }
 0x2f0   :  { %v1034_v30 = vpop.f32.mrb[164].mxu1  ;;  %v1783_v0 = vmul.f32 %v9365_v2, %v8023_v5 }
 0x2f1   :  { %v8025_v40 = vpop.eup %8024  ;;  %v1389_v55 = vadd.f32 %v9561_v13, %v1034_v30  ;;  %v1036_v28 = vpop.f32.mrb[165].mxu1 }
 0x2f2   :  { %v1037_v1 = vpop.f32.mrb[166].mxu1  ;;  %1989 = vadd.xlane.f32.xlu0 %v1783_v0  ;;  %v1784_v48 = vmul.f32 %v9365_v2, %v8025_v40 }
 0x2f3   :  { %v1524_v53 = vadd.f32 %v9345_v52, %v1389_v55  ;;  %v1390_v11 = vadd.f32 %v9561_v13, %v1037_v1  ;;  %v1039_v41 = vpop.f32.mrb[167].mxu1 }
 0x2f5   :  { %8030 = vtanh.f32 %v1524_v53  ;;  %v1525_v49 = vadd.f32 %v9345_v52, %v1390_v11 }
 0x2f6   :  { %1991 = vadd.xlane.f32.xlu0 %v1784_v48 }
 0x2f7   :  { %v8027_v37 = vpop.eup %8026  ;;  %8032 = vtanh.f32 %v1525_v49 }
 0x2f8   :  { %v1042_v58 = vpop.f32.mrb[168].mxu1  ;;  %v1785_v18 = vmul.f32 %v9365_v2, %v8027_v37 }
 0x2f9   :  { %v8029_v5 = vpop.eup %8028  ;;  %v1391_v30 = vadd.f32 %v9561_v13, %v1042_v58  ;;  %v1044_v0 = vpop.f32.mrb[169].mxu1 }
 0x2fa   :  { %v1045_v28 = vpop.f32.mrb[170].mxu1  ;;  %1993 = vadd.xlane.f32.xlu0 %v1785_v18  ;;  %v1786_v55 = vmul.f32 %v9365_v2, %v8029_v5 }
 0x2fb   :  { %v1526_v1 = vadd.f32 %v9345_v52, %v1391_v30  ;;  %v1392_v40 = vadd.f32 %v9561_v13, %v1045_v28  ;;  %v1047_v53 = vpop.f32.mrb[171].mxu1 }
 0x2fc   :  { %1995 = vadd.xlane.f32.xlu1 %v1786_v55 }
 0x2fd   :  { %8034 = vtanh.f32 %v1526_v1  ;;  %v1527_v11 = vadd.f32 %v9345_v52, %v1392_v40 }
 0x2ff   :  { %v8031_v41 = vpop.eup %8030  ;;  %8036 = vtanh.f32 %v1527_v11 }
 0x300   :  { %v1050_v48 = vpop.f32.mrb[172].mxu1  ;;  %v1787_v49 = vmul.f32 %v9365_v2, %v8031_v41 }
 0x301   :  { %v8033_v37 = vpop.eup %8032  ;;  %v1393_v58 = vadd.f32 %v9561_v13, %v1050_v48  ;;  %v1052_v18 = vpop.f32.mrb[173].mxu1 }
 0x302   :  { %v1053_v0 = vpop.f32.mrb[174].mxu1  ;;  %1997 = vadd.xlane.f32.xlu1 %v1787_v49  ;;  %v1788_v55 = vmul.f32 %v9365_v2, %v8033_v37 }
 0x303   :  { %v1528_v5 = vadd.f32 %v9345_v52, %v1393_v58  ;;  %v1394_v30 = vadd.f32 %v9561_v13, %v1053_v0  ;;  %v1055_v28 = vpop.f32.mrb[175].mxu1 }
 0x305   :  { %8038 = vtanh.f32 %v1528_v5  ;;  %v1529_v1 = vadd.f32 %v9345_v52, %v1394_v30 }
 0x306   :  { %1999 = vadd.xlane.f32.xlu1 %v1788_v55 }
 0x307   :  { %v8035_v40 = vpop.eup %8034  ;;  %8040 = vtanh.f32 %v1529_v1 }
 0x308   :  { %v1058_v53 = vpop.f32.mrb[176].mxu1  ;;  %v1789_v11 = vmul.f32 %v9365_v2, %v8035_v40 }
 0x309   :  { %v8037_v41 = vpop.eup %8036  ;;  %v1395_v48 = vadd.f32 %v9561_v13, %v1058_v53  ;;  %v1060_v49 = vpop.f32.mrb[177].mxu1 }
 0x30a   :  { %v1061_v18 = vpop.f32.mrb[178].mxu1  ;;  %2001 = vadd.xlane.f32.xlu0 %v1789_v11  ;;  %v1790_v5 = vmul.f32 %v9365_v2, %v8037_v41 }
 0x30b   :  { %v1530_v58 = vadd.f32 %v9345_v52, %v1395_v48  ;;  %v1396_v0 = vadd.f32 %v9561_v13, %v1061_v18  ;;  %v1063_v37 = vpop.f32.mrb[179].mxu1 }
 0x30d   :  { %8042 = vtanh.f32 %v1530_v58  ;;  %v1531_v30 = vadd.f32 %v9345_v52, %v1396_v0  ;;  %v9597_v58 = vpop.xlane.xlu1 %1837 }
 0x30e   :  { %2003 = vadd.xlane.f32.xlu0 %v1790_v5  ;;  %13201 = vst [vmem:[#allocation140_spill] sm:$0xff] %v9597_v58 }
 0x30f   :  { %v8039_v28 = vpop.eup %8038  ;;  %8044 = vtanh.f32 %v1531_v30 }
 0x310   :  { %v1066_v55 = vpop.f32.mrb[180].mxu1  ;;  %v1791_v1 = vmul.f32 %v9365_v2, %v8039_v28 }
 0x311   :  { %v8041_v40 = vpop.eup %8040  ;;  %v1397_v53 = vadd.f32 %v9561_v13, %v1066_v55  ;;  %v1068_v11 = vpop.f32.mrb[181].mxu1 }
 0x312   :  { %v1069_v49 = vpop.f32.mrb[182].mxu1  ;;  %2005 = vadd.xlane.f32.xlu0 %v1791_v1  ;;  %v1792_v0 = vmul.f32 %v9365_v2, %v8041_v40  ;;  %v9602_v1 = vpop.xlane.xlu0 %1833 }
 0x313   :  { %v1532_v48 = vadd.f32 %v9345_v52, %v1397_v53  ;;  %v1398_v18 = vadd.f32 %v9561_v13, %v1069_v49  ;;  %v1071_v41 = vpop.f32.mrb[183].mxu1  ;;  %13202 = vst [vmem:[#allocation141_spill] sm:$0xff] %v9602_v1  ;;  %v9605_v49 = vpop.xlane.xlu1 %1839 }
 0x314   :  { %13203 = vst [vmem:[#allocation142_spill] sm:$0xff] %v9605_v49 }
 0x315   :  { %8046 = vtanh.f32 %v1532_v48  ;;  %v1533_v37 = vadd.f32 %v9345_v52, %v1398_v18  ;;  %v9610_v52 = vld [vmem:[%s12674_s5] ss:$0 sm:$0xff] }
 0x316   :  { %2007 = vadd.xlane.f32.xlu0 %v1792_v0 }
 0x317   :  { %v8043_v5 = vpop.eup %8042  ;;  %8048 = vtanh.f32 %v1533_v37 }
 0x318   :  { %v1074_v30 = vpop.f32.mrb[184].mxu1  ;;  %v1793_v28 = vmul.f32 %v9365_v2, %v8043_v5  ;;  %v9616_v5 = vpop.xlane.xlu1 %1843 }
 0x319   :  { %v8045_v55 = vpop.eup %8044  ;;  %v1399_v53 = vadd.f32 %v9561_v13, %v1074_v30  ;;  %v1076_v11 = vpop.f32.mrb[185].mxu1  ;;  %13204 = vst [vmem:[#allocation143_spill] sm:$0xff] %v9616_v5 }
 0x31a   :  { %v1077_v41 = vpop.f32.mrb[186].mxu1  ;;  %2009 = vadd.xlane.f32.xlu0 %v1793_v28  ;;  %v1794_v0 = vmul.f32 %v9365_v2, %v8045_v55  ;;  %v9618_v28 = vpop.xlane.xlu0 %1835 }
 0x31b   :  { %v1534_v40 = vadd.f32 %v9610_v52, %v1399_v53  ;;  %v1400_v48 = vadd.f32 %v9561_v13, %v1077_v41  ;;  %v1079_v18 = vpop.f32.mrb[187].mxu1  ;;  %13205 = vst [vmem:[#allocation144_spill] sm:$0xff] %v9618_v28 }
 0x31c   :  { %v9622_v18 = vpop.xlane.xlu1 %1847 }
 0x31d   :  { %8050 = vtanh.f32 %v1534_v40  ;;  %v1535_v37 = vadd.f32 %v9610_v52, %v1400_v48  ;;  %13206 = vst [vmem:[#allocation145_spill] sm:$0xff] %v9622_v18  ;;  %v1264_v48 = vcombine.high %v9037_v29, %v9037_v29 }
 0x31e   :  { %2011 = vadd.xlane.f32.xlu0 %v1794_v0  ;;  %v9627_v0 = vpop.xlane.xlu0 %1841 }
 0x31f   :  { %v8047_v30 = vpop.eup %8046  ;;  %8052 = vtanh.f32 %v1535_v37  ;;  %13207 = vst [vmem:[#allocation146_spill] sm:$0xff] %v9627_v0 }
 0x320   :  { %v1082_v11 = vpop.f32.mrb[188].mxu1  ;;  %v1795_v12 = vmul.f32 %v9365_v2, %v8047_v30 }
 0x321   :  { %v8049_v61 = vpop.eup %8048  ;;  %v1401_v53 = vadd.f32 %v9561_v13, %v1082_v11  ;;  %v1084_v41 = vpop.f32.mrb[189].mxu1 }
 0x322   :  { %v1085_v55 = vpop.f32.mrb[190].mxu1  ;;  %2013 = vadd.xlane.f32.xlu1 %v1795_v12  ;;  %v1796_v40 = vmul.f32 %v9365_v2, %v8049_v61  ;;  %v9632_v41 = vpop.xlane.xlu1 %1851  ;;  %v9635_v12 = vrot.slane %v1264_v48, %v9054_v3  ;;  %v9642_v61 = vld [vmem:[%s12675_s6] ss:$0 sm:$0xff]  ;;  %s8684_s6 = smov [#allocation17]  }
 0x323   :  { %v1536_v37 = vadd.f32 %v9610_v52, %v1401_v53  ;;  %v1402_v10 = vadd.f32 %v9561_v13, %v1085_v55  ;;  %v1087_v30 = vpop.f32.mrb[191].mxu1  ;;  %13208 = vst [vmem:[#allocation147_spill] sm:$0xff] %v9632_v41  ;;  %v9637_v2 = vpop.xlane.xlu0 %1845  ;;  %s7121_s1 = sshll.u32 %s8684_s6, 4  ;;  %s7122_s1 = int_to_ptr.vmem [resolvable:$true] %s7121_s1 }
 0x324   :  { %2015 = vadd.xlane.f32.xlu0 %v1796_v40  ;;  %13209 = vst [vmem:[#allocation148_spill] sm:$0xff] %v9637_v2  ;;  %s8585_s30 = scalar_lea.vmem %s7122_s1, 128  ;;  %p8590_p9 = scmp.lt.s32.totalorder %s7122_s1, %s7122_s1 }
 0x325   :  { %8054 = vtanh.f32 %v1536_v37  ;;  %v1537_v11 = vadd.f32 %v9610_v52, %v1402_v10  ;;  %p8586_p8 = scmp.ne.s32.totalorder %s7122_s1, %s8585_s30  ;;  %p8591_p10 = scmp.lt.s32.totalorder %s8585_s30, %s8585_s30 }
 0x326   :  { %v9646_v40 = vpop.xlane.xlu1 %1855 }
 0x327   :  { %v8051_v36 = vpop.eup %8050  ;;  %8056 = vtanh.f32 %v1537_v11  ;;  %13210 = vst [vmem:[#allocation149_spill] sm:$0xff] %v9646_v40  ;;  %v9649_v30 = vpop.xlane.xlu0 %1849  ;;  %p8592_p11 = por %p8591_p10, %p8590_p9 }
 0x328   :  { %v1090_v29 = vpop.f32.mrb[192].mxu1  ;;  %v1797_v13 = vmul.f32 %v9642_v61, %v8051_v36  ;;  %13211 = vst [vmem:[#allocation150_spill] sm:$0xff] %v9649_v30 }
 0x329   :  { %v8053_v53 = vpop.eup %8052  ;;  %v1403_v10 = vadd.f32 %v9635_v12, %v1090_v29  ;;  %v1092_v55 = vpop.f32.mrb[193].mxu1  ;;  %p8593_p12 = pnand %p8592_p11, %p8586_p8 }
 0x32a   :  { %v1093_v37 = vpop.f32.mrb[194].mxu1  ;;  %2017 = vadd.xlane.f32.xlu0 %v1797_v13  ;;  %v1798_v48 = vmul.f32 %v9642_v61, %v8053_v53  ;;  %v9654_v47 = vpop.xlane.xlu1 %1859 }
 0x32b   :  { %v1538_v11 = vadd.f32 %v9610_v52, %v1403_v10  ;;  %v1404_v19 = vadd.f32 %v9635_v12, %v1093_v37  ;;  %v1095_v4 = vpop.f32.mrb[195].mxu1  ;;  %13212 = vst [vmem:[#allocation151_spill] sm:$0xff] %v9654_v47  ;;  %v9656_v55 = vpop.xlane.xlu0 %1853 }
 0x32c   :  { %2019 = vadd.xlane.f32.xlu1 %v1798_v48  ;;  %13213 = vst [vmem:[#allocation152_spill] sm:$0xff] %v9656_v55 }
 0x32d   :  { %8058 = vtanh.f32 %v1538_v11  ;;  %v1539_v36 = vadd.f32 %v9610_v52, %v1404_v19 }
 0x32e   :  { %v9660_v22 = vpop.xlane.xlu1 %1863 }
 0x32f   :  { %v8055_v29 = vpop.eup %8054  ;;  %8060 = vtanh.f32 %v1539_v36  ;;  %13214 = vst [vmem:[#allocation153_spill] sm:$0xff] %v9660_v22  ;;  %v9663_v19 = vpop.xlane.xlu0 %1857 }
 0x330   :  { %v1098_v13 = vpop.f32.mrb[196].mxu1  ;;  %v1799_v53 = vmul.f32 %v9642_v61, %v8055_v29  ;;  %13215 = vst [vmem:[#allocation154_spill] sm:$0xff] %v9663_v19 }
 0x331   :  { %v8057_v46 = vpop.eup %8056  ;;  %v1405_v23 = vadd.f32 %v9635_v12, %v1098_v13  ;;  %v1100_v10 = vpop.f32.mrb[197].mxu1 }
 0x332   :  { %v1101_v4 = vpop.f32.mrb[198].mxu1  ;;  %2021 = vadd.xlane.f32.xlu1 %v1799_v53  ;;  %v1800_v37 = vmul.f32 %v9642_v61, %v8057_v46  ;;  %v9668_v60 = vpop.xlane.xlu1 %1867 }
 0x333   :  { %v1540_v48 = vadd.f32 %v9610_v52, %v1405_v23  ;;  %v1406_v11 = vadd.f32 %v9635_v12, %v1101_v4  ;;  %v1103_v36 = vpop.f32.mrb[199].mxu1  ;;  %13216 = vst [vmem:[#allocation155_spill] sm:$0xff] %v9668_v60  ;;  %v9670_v10 = vpop.xlane.xlu0 %1861 }
 0x334   :  { %2023 = vadd.xlane.f32.xlu0 %v1800_v37  ;;  %13217 = vst [vmem:[#allocation156_spill] sm:$0xff] %v9670_v10 }
 0x335   :  { %8062 = vtanh.f32 %v1540_v48  ;;  %v1541_v29 = vadd.f32 %v9610_v52, %v1406_v11 }
 0x336   :  { %v9674_v42 = vpop.xlane.xlu1 %1871 }
 0x337   :  { %v8059_v13 = vpop.eup %8058  ;;  %8064 = vtanh.f32 %v1541_v29  ;;  %13218 = vst [vmem:[#allocation157_spill] sm:$0xff] %v9674_v42  ;;  %v9677_v48 = vpop.xlane.xlu0 %1865 }
 0x338   :  { %v1106_v53 = vpop.f32.mrb[200].mxu1  ;;  %v1801_v46 = vmul.f32 %v9642_v61, %v8059_v13  ;;  %13219 = vst [vmem:[#allocation158_spill] sm:$0xff] %v9677_v48 }
 0x339   :  { %v8061_v59 = vpop.eup %8060  ;;  %v1407_v43 = vadd.f32 %v9635_v12, %v1106_v53  ;;  %v1108_v23 = vpop.f32.mrb[201].mxu1 }
 0x33a   :  { %v1109_v4 = vpop.f32.mrb[202].mxu1  ;;  %2025 = vadd.xlane.f32.xlu0 %v1801_v46  ;;  %v1802_v37 = vmul.f32 %v9642_v61, %v8061_v59  ;;  %v9682_v35 = vpop.xlane.xlu1 %1875 }
 0x33b   :  { %v1542_v11 = vadd.f32 %v9610_v52, %v1407_v43  ;;  %v1408_v36 = vadd.f32 %v9635_v12, %v1109_v4  ;;  %v1111_v29 = vpop.f32.mrb[203].mxu1  ;;  %13220 = vst [vmem:[#allocation159_spill] sm:$0xff] %v9682_v35  ;;  %v9684_v23 = vpop.xlane.xlu0 %1869 }
 0x33c   :  { %2027 = vadd.xlane.f32.xlu1 %v1802_v37  ;;  %13221 = vst [vmem:[#allocation160_spill] sm:$0xff] %v9684_v23 }
 0x33d   :  { %8066 = vtanh.f32 %v1542_v11  ;;  %v1543_v13 = vadd.f32 %v9610_v52, %v1408_v36 }
 0x33e   :  { %v9688_v24 = vpop.xlane.xlu1 %1879 }
 0x33f   :  { %v8063_v53 = vpop.eup %8062  ;;  %8068 = vtanh.f32 %v1543_v13  ;;  %13222 = vst [vmem:[#allocation161_spill] sm:$0xff] %v9688_v24  ;;  %v9691_v11 = vpop.xlane.xlu0 %1873 }
 0x340   :  { %v1114_v46 = vpop.f32.mrb[204].mxu1  ;;  %v1803_v59 = vmul.f32 %v9642_v61, %v8063_v53  ;;  %13223 = vst [vmem:[#allocation162_spill] sm:$0xff] %v9691_v11 }
 0x341   :  { %v8065_v34 = vpop.eup %8064  ;;  %v1409_v25 = vadd.f32 %v9635_v12, %v1114_v46  ;;  %v1116_v43 = vpop.f32.mrb[205].mxu1 }
 0x342   :  { %v1117_v4 = vpop.f32.mrb[206].mxu1  ;;  %2029 = vadd.xlane.f32.xlu0 %v1803_v59  ;;  %v1804_v37 = vmul.f32 %v9642_v61, %v8065_v34  ;;  %v9696_v17 = vpop.xlane.xlu1 %1883 }
 0x343   :  { %v1544_v36 = vadd.f32 %v9610_v52, %v1409_v25  ;;  %v1410_v29 = vadd.f32 %v9635_v12, %v1117_v4  ;;  %v1119_v13 = vpop.f32.mrb[207].mxu1  ;;  %13224 = vst [vmem:[#allocation163_spill] sm:$0xff] %v9696_v17  ;;  %v9698_v43 = vpop.xlane.xlu0 %1877 }
 0x344   :  { %2031 = vadd.xlane.f32.xlu1 %v1804_v37  ;;  %13225 = vst [vmem:[#allocation164_spill] sm:$0xff] %v9698_v43 }
 0x345   :  { %8070 = vtanh.f32 %v1544_v36  ;;  %v1545_v53 = vadd.f32 %v9610_v52, %v1410_v29 }
 0x346   :  { %v9702_v6 = vpop.xlane.xlu1 %1887 }
 0x347   :  { %v8067_v46 = vpop.eup %8066  ;;  %8072 = vtanh.f32 %v1545_v53  ;;  %13226 = vst [vmem:[#allocation165_spill] sm:$0xff] %v9702_v6  ;;  %v9704_v37 = vpop.xlane.xlu0 %1881 }
 0x348   :  { %v1122_v59 = vpop.f32.mrb[208].mxu1  ;;  %v1805_v34 = vmul.f32 %v9642_v61, %v8067_v46  ;;  %13227 = vst [vmem:[#allocation166_spill] sm:$0xff] %v9704_v37 }
 0x349   :  { %v8069_v16 = vpop.eup %8068  ;;  %v1411_v7 = vadd.f32 %v9635_v12, %v1122_v59  ;;  %v1124_v25 = vpop.f32.mrb[209].mxu1 }
 0x34a   :  { %v1125_v4 = vpop.f32.mrb[210].mxu1  ;;  %2033 = vadd.xlane.f32.xlu1 %v1805_v34  ;;  %v1806_v53 = vmul.f32 %v9642_v61, %v8069_v16  ;;  %v9710_v63 = vpop.xlane.xlu1 %1891 }
 0x34b   :  { %v1546_v36 = vadd.f32 %v9610_v52, %v1411_v7  ;;  %v1412_v29 = vadd.f32 %v9635_v12, %v1125_v4  ;;  %v1127_v13 = vpop.f32.mrb[211].mxu1  ;;  %13228 = vst [vmem:[#allocation167_spill] sm:$0xff] %v9710_v63  ;;  %v9712_v25 = vpop.xlane.xlu0 %1885 }
 0x34c   :  { %13229 = vst [vmem:[#allocation168_spill] sm:$0xff] %v9712_v25 }
 0x34d   :  { %8074 = vtanh.f32 %v1546_v36  ;;  %v1547_v46 = vadd.f32 %v9610_v52, %v1412_v29 }
 0x34e   :  { %2035 = vadd.xlane.f32.xlu1 %v1806_v53  ;;  %v9716_v13 = vpop.xlane.xlu1 %1893 }
 0x34f   :  { %v8071_v59 = vpop.eup %8070  ;;  %8076 = vtanh.f32 %v1547_v46  ;;  %13230 = vst [vmem:[#allocation169_spill] sm:$0xff] %v9716_v13  ;;  %v9718_v36 = vpop.xlane.xlu0 %1889 }
 0x350   :  { %v1130_v34 = vpop.f32.mrb[212].mxu1  ;;  %v1807_v62 = vmul.f32 %v9642_v61, %v8071_v59  ;;  %13231 = vst [vmem:[#allocation170_spill] sm:$0xff] %v9718_v36 }
 0x351   :  { %v8073_v57 = vpop.eup %8072  ;;  %v1413_v7 = vadd.f32 %v9635_v12, %v1130_v34  ;;  %v1132_v4 = vpop.f32.mrb[213].mxu1 }
 0x352   :  { %v1133_v16 = vpop.f32.mrb[214].mxu1  ;;  %2037 = vadd.xlane.f32.xlu1 %v1807_v62  ;;  %v1808_v46 = vmul.f32 %v9642_v61, %v8073_v57  ;;  %v9724_v51 = vpop.xlane.xlu1 %1899 }
 0x353   :  { %v1548_v29 = vadd.f32 %v9610_v52, %v1413_v7  ;;  %v1414_v53 = vadd.f32 %v9635_v12, %v1133_v16  ;;  %v1135_v56 = vpop.f32.mrb[215].mxu1  ;;  %13232 = vst [vmem:[#allocation171_spill] sm:$0xff] %v9724_v51  ;;  %v9726_v4 = vpop.xlane.xlu0 %1895 }
 0x354   :  { %13233 = vst [vmem:[#allocation172_spill] sm:$0xff] %v9726_v4 }
 0x355   :  { %8078 = vtanh.f32 %v1548_v29  ;;  %v1549_v59 = vadd.f32 %v9610_v52, %v1414_v53 }
 0x356   :  { %2039 = vadd.xlane.f32.xlu1 %v1808_v46  ;;  %v9730_v56 = vpop.xlane.xlu1 %1903 }
 0x357   :  { %v8075_v34 = vpop.eup %8074  ;;  %8080 = vtanh.f32 %v1549_v59  ;;  %13234 = vst [vmem:[#allocation173_spill] sm:$0xff] %v9730_v56  ;;  %v9733_v53 = vpop.xlane.xlu0 %1897 }
 0x358   :  { %v1138_v62 = vpop.f32.mrb[216].mxu1  ;;  %v1809_v50 = vmul.f32 %v9642_v61, %v8075_v34  ;;  %13235 = vst [vmem:[#allocation174_spill] sm:$0xff] %v9733_v53 }
 0x359   :  { %v8077_v45 = vpop.eup %8076  ;;  %v1415_v7 = vadd.f32 %v9635_v12, %v1138_v62  ;;  %v1140_v16 = vpop.f32.mrb[217].mxu1 }
 0x35a   :  { %v1141_v57 = vpop.f32.mrb[218].mxu1  ;;  %2041 = vadd.xlane.f32.xlu1 %v1809_v50  ;;  %v1810_v29 = vmul.f32 %v9642_v61, %v8077_v45  ;;  %v9738_v39 = vpop.xlane.xlu1 %1905 }
 0x35b   :  { %v1550_v46 = vadd.f32 %v9610_v52, %v1415_v7  ;;  %v1416_v44 = vadd.f32 %v9635_v12, %v1141_v57  ;;  %v1143_v59 = vpop.f32.mrb[219].mxu1  ;;  %13236 = vst [vmem:[#allocation175_spill] sm:$0xff] %v9738_v39  ;;  %v9740_v16 = vpop.xlane.xlu0 %1901 }
 0x35c   :  { %2043 = vadd.xlane.f32.xlu0 %v1810_v29 }
 0x35d   :  { %8082 = vtanh.f32 %v1550_v46  ;;  %v1551_v34 = vadd.f32 %v9610_v52, %v1416_v44  ;;  %v1266_v44 = vcombine.high %v9041_v31, %v9041_v31 }
 0x35e   :  { %v9744_v32 = vpop.xlane.xlu1 %1911 }
 0x35f   :  { %v8079_v62 = vpop.eup %8078  ;;  %8084 = vtanh.f32 %v1551_v34  ;;  %13237 = vst [vmem:[#allocation176_spill] sm:$0xff] %v9744_v32  ;;  %v9748_v29 = vpop.xlane.xlu0 %1907 }
 0x360   :  { %v1146_v50 = vpop.f32.mrb[220].mxu1  ;;  %v1811_v45 = vmul.f32 %v9642_v61, %v8079_v62  ;;  %13238 = vst [vmem:[#allocation177_spill] sm:$0xff] %v9748_v29 }
 0x361   :  { %v8081_v38 = vpop.eup %8080  ;;  %v1417_v33 = vadd.f32 %v9635_v12, %v1146_v50  ;;  %v1148_v7 = vpop.f32.mrb[221].mxu1 }
 0x362   :  { %v1149_v57 = vpop.f32.mrb[222].mxu1  ;;  %2045 = vadd.xlane.f32.xlu1 %v1811_v45  ;;  %v1812_v62 = vmul.f32 %v9642_v61, %v8081_v38  ;;  %v9754_v7 = vpop.xlane.xlu1 %1913  ;;  %v9757_v45 = vrot.slane %v1266_v44, %v9054_v3 }
 0x363   :  { %v1552_v46 = vadd.f32 %v9610_v52, %v1417_v33  ;;  %v1418_v59 = vadd.f32 %v9635_v12, %v1149_v57  ;;  %v1151_v34 = vpop.f32.mrb[223].mxu1  ;;  %13239 = vst [vmem:[#allocation178_spill] sm:$0xff] %v9754_v7  ;;  %v9759_v31 = vpop.xlane.xlu0 %1909 }
 0x364   :  { %13240 = vst [vmem:[#allocation179_spill] sm:$0xff] %v9759_v31 }
 0x365   :  { %8086 = vtanh.f32 %v1552_v46  ;;  %v1553_v50 = vadd.f32 %v9610_v52, %v1418_v59 }
 0x366   :  { %2047 = vadd.xlane.f32.xlu1 %v1812_v62  ;;  %v9767_v21 = vpop.xlane.xlu1 %1915 }
 0x367   :  { %v8083_v27 = vpop.eup %8082  ;;  %8088 = vtanh.f32 %v1553_v50  ;;  %v9763_v59 = vpop.xlane.xlu0 %1923  ;;  %13242 = vst [vmem:[#allocation181_spill] sm:$0xff] %v9767_v21 }
 0x368   :  { %v1154_v26 = vpop.f32.mrb[224].mxu1  ;;  %v1813_v33 = vmul.f32 %v9642_v61, %v8083_v27  ;;  %13241 = vst [vmem:[#allocation180_spill] sm:$0xff] %v9763_v59 }
 0x369   :  { %v8085_v12 = vpop.eup %8084  ;;  %v1419_v57 = vadd.f32 %v9757_v45, %v1154_v26  ;;  %v1156_v38 = vpop.f32.mrb[225].mxu1 }
 0x36a   :  { %v1157_v46 = vpop.f32.mrb[226].mxu1  ;;  %2049 = vadd.xlane.f32.xlu0 %v1813_v33  ;;  %v1814_v50 = vmul.f32 %v9642_v61, %v8085_v12 }
 0x36b   :  { %v1554_v34 = vadd.f32 %v9610_v52, %v1419_v57  ;;  %v1420_v62 = vadd.f32 %v9757_v45, %v1157_v46  ;;  %v1159_v44 = vpop.f32.mrb[227].mxu1  ;;  %v9771_v26 = vpop.xlane.xlu0 %1931 }
 0x36c   :  { %13243 = vst [vmem:[#allocation182_spill] sm:$0xff] %v9771_v26  ;;  %v9775_v44 = vpop.xlane.xlu1 %1917 }
 0x36d   :  { %8090 = vtanh.f32 %v1554_v34  ;;  %v1555_v27 = vadd.f32 %v9610_v52, %v1420_v62  ;;  %13244 = vst [vmem:[#allocation183_spill] sm:$0xff] %v9775_v44 }
 0x36e   :  { %2051 = vadd.xlane.f32.xlu0 %v1814_v50 }
 0x36f   :  { %v8087_v20 = vpop.eup %8086  ;;  %8092 = vtanh.f32 %v1555_v27  ;;  %v9777_v12 = vpop.xlane.xlu0 %1933 }
 0x370   :  { %v1162_v33 = vpop.f32.mrb[228].mxu1  ;;  %v1815_v38 = vmul.f32 %v9642_v61, %v8087_v20  ;;  %13245 = vst [vmem:[#allocation184_spill] sm:$0xff] %v9777_v12 }
 0x371   :  { %v8089_v15 = vpop.eup %8088  ;;  %v1421_v57 = vadd.f32 %v9757_v45, %v1162_v33  ;;  %v1164_v46 = vpop.f32.mrb[229].mxu1 }
 0x372   :  { %v1165_v14 = vpop.f32.mrb[230].mxu1  ;;  %2053 = vadd.xlane.f32.xlu1 %v1815_v38  ;;  %v1816_v27 = vmul.f32 %v9642_v61, %v8089_v15  ;;  %v9783_v33 = vpop.xlane.xlu1 %1919 }
 0x373   :  { %v1556_v34 = vadd.f32 %v9610_v52, %v1421_v57  ;;  %v1422_v62 = vadd.f32 %v9757_v45, %v1165_v14  ;;  %v1167_v50 = vpop.f32.mrb[231].mxu1  ;;  %13246 = vst [vmem:[#allocation185_spill] sm:$0xff] %v9783_v33  ;;  %v9786_v3 = vpop.xlane.xlu0 %1935 }
 0x374   :  { %13247 = vst [vmem:[#allocation186_spill] sm:$0xff] %v9786_v3 }
 0x375   :  { %8094 = vtanh.f32 %v1556_v34  ;;  %v1557_v20 = vadd.f32 %v9610_v52, %v1422_v62 }
 0x376   :  { %2055 = vadd.xlane.f32.xlu1 %v1816_v27  ;;  %v9795_v59 = vpop.xlane.xlu1 %1921 }
 0x377   :  { %v8091_v9 = vpop.eup %8090  ;;  %8096 = vtanh.f32 %v1557_v20  ;;  %v9792_v20 = vpop.xlane.xlu0 %1941  ;;  %13249 = vst [vmem:[#allocation188_spill] sm:$0xff] %v9795_v59 }
 0x378   :  { %v1170_v46 = vpop.f32.mrb[232].mxu1  ;;  %v1817_v38 = vmul.f32 %v9642_v61, %v8091_v9  ;;  %13248 = vst [vmem:[#allocation187_spill] sm:$0xff] %v9792_v20 }
 0x379   :  { %v8093_v8 = vpop.eup %8092  ;;  %v1423_v57 = vadd.f32 %v9757_v45, %v1170_v46  ;;  %v1172_v14 = vpop.f32.mrb[233].mxu1 }
 0x37a   :  { %v1173_v50 = vpop.f32.mrb[234].mxu1  ;;  %2057 = vadd.xlane.f32.xlu1 %v1817_v38  ;;  %v1818_v15 = vmul.f32 %v9642_v61, %v8093_v8  ;;  %v9799_v44 = vpop.xlane.xlu1 %1925 }
 0x37b   :  { %v1558_v34 = vadd.f32 %v9610_v52, %v1423_v57  ;;  %v1424_v62 = vadd.f32 %v9757_v45, %v1173_v50  ;;  %v1175_v27 = vpop.f32.mrb[235].mxu1  ;;  %13250 = vst [vmem:[#allocation189_spill] sm:$0xff] %v9799_v44 }
 0x37c   :  { %2059 = vadd.xlane.f32.xlu0 %v1818_v15  ;;  %v9801_v15 = vpop.xlane.xlu0 %1943 }
 0x37d   :  { %8098 = vtanh.f32 %v1558_v34  ;;  %v1559_v9 = vadd.f32 %v9610_v52, %v1424_v62  ;;  %13251 = vst [vmem:[#allocation190_spill] sm:$0xff] %v9801_v15 }
 0x37f   :  { %v8095_v33 = vpop.eup %8094  ;;  %8100 = vtanh.f32 %v1559_v9 }
 0x380   :  { %v1178_v46 = vpop.f32.mrb[236].mxu1  ;;  %v1819_v38 = vmul.f32 %v9642_v61, %v8095_v33  ;;  %v9810_v15 = vpop.xlane.xlu0 %1945 }
 0x381   :  { %v8097_v14 = vpop.eup %8096  ;;  %v1425_v8 = vadd.f32 %v9757_v45, %v1178_v46  ;;  %v1180_v57 = vpop.f32.mrb[237].mxu1  ;;  %13253 = vst [vmem:[#allocation192_spill] sm:$0xff] %v9810_v15 }
 0x382   :  { %v1181_v50 = vpop.f32.mrb[238].mxu1  ;;  %2061 = vadd.xlane.f32.xlu0 %v1819_v38  ;;  %v1820_v9 = vmul.f32 %v9642_v61, %v8097_v14  ;;  %v9807_v46 = vpop.xlane.xlu1 %1927 }
 0x383   :  { %v1560_v34 = vadd.f32 %v9610_v52, %v1425_v8  ;;  %v1426_v62 = vadd.f32 %v9757_v45, %v1181_v50  ;;  %v1183_v27 = vpop.f32.mrb[239].mxu1  ;;  %13252 = vst [vmem:[#allocation191_spill] sm:$0xff] %v9807_v46 }
 0x384   :  { %v9819_v15 = vpop.xlane.xlu0 %1947 }
 0x385   :  { %8102 = vtanh.f32 %v1560_v34  ;;  %v1561_v33 = vadd.f32 %v9610_v52, %v1426_v62  ;;  %13255 = vst [vmem:[#allocation194_spill] sm:$0xff] %v9819_v15 }
 0x386   :  { %2063 = vadd.xlane.f32.xlu0 %v1820_v9  ;;  %v9817_v46 = vpop.xlane.xlu1 %1929 }
 0x387   :  { %v8099_v59 = vpop.eup %8098  ;;  %8104 = vtanh.f32 %v1561_v33  ;;  %13254 = vst [vmem:[#allocation193_spill] sm:$0xff] %v9817_v46 }
 0x388   :  { %v1186_v57 = vpop.f32.mrb[240].mxu1  ;;  %v1821_v38 = vmul.f32 %v9642_v61, %v8099_v59  ;;  %v9828_v15 = vpop.xlane.xlu0 %1949 }
 0x389   :  { %v8101_v44 = vpop.eup %8100  ;;  %v1427_v8 = vadd.f32 %v9757_v45, %v1186_v57  ;;  %v1188_v50 = vpop.f32.mrb[241].mxu1  ;;  %13257 = vst [vmem:[#allocation196_spill] sm:$0xff] %v9828_v15 }
 0x38a   :  { %v1189_v27 = vpop.f32.mrb[242].mxu1  ;;  %2065 = vadd.xlane.f32.xlu0 %v1821_v38  ;;  %v1822_v9 = vmul.f32 %v9642_v61, %v8101_v44 }
 0x38b   :  { %v1562_v14 = vadd.f32 %v9610_v52, %v1427_v8  ;;  %v1428_v34 = vadd.f32 %v9757_v45, %v1189_v27  ;;  %v1191_v62 = vpop.f32.mrb[243].mxu1 }
 0x38c   :  { %v9823_v62 = vpop.xlane.xlu1 %1937  ;;  %v9836_v15 = vpop.xlane.xlu0 %1951 }
 0x38d   :  { %8106 = vtanh.f32 %v1562_v14  ;;  %v1563_v33 = vadd.f32 %v9610_v52, %v1428_v34  ;;  %13256 = vst [vmem:[#allocation195_spill] sm:$0xff] %v9823_v62  ;;  %13259 = vst [vmem:[#allocation198_spill] sm:$0xff] %v9836_v15 }
 0x38e   :  { %2067 = vadd.xlane.f32.xlu0 %v1822_v9 }
 0x38f   :  { %v8103_v59 = vpop.eup %8102  ;;  %8108 = vtanh.f32 %v1563_v33 }
 0x390   :  { %v1194_v57 = vpop.f32.mrb[244].mxu1  ;;  %v1823_v38 = vmul.f32 %v9642_v61, %v8103_v59 }
 0x391   :  { %v8105_v50 = vpop.eup %8104  ;;  %v1429_v8 = vadd.f32 %v9757_v45, %v1194_v57  ;;  %v1196_v27 = vpop.f32.mrb[245].mxu1 }
 0x392   :  { %v1197_v44 = vpop.f32.mrb[246].mxu1  ;;  %2069 = vadd.xlane.f32.xlu0 %v1823_v38  ;;  %v1824_v20 = vmul.f32 %v9642_v61, %v8105_v50  ;;  %v9831_v57 = vpop.xlane.xlu1 %1939 }
 0x393   :  { %v1564_v14 = vadd.f32 %v9610_v52, %v1429_v8  ;;  %v1430_v34 = vadd.f32 %v9757_v45, %v1197_v44  ;;  %v1199_v9 = vpop.f32.mrb[247].mxu1  ;;  %13258 = vst [vmem:[#allocation197_spill] sm:$0xff] %v9831_v57 }
 0x395   :  { %8110 = vtanh.f32 %v1564_v14  ;;  %v1565_v33 = vadd.f32 %v9610_v52, %v1430_v34 }
 0x396   :  { %2071 = vadd.xlane.f32.xlu0 %v1824_v20 }
 0x397   :  { %v8107_v59 = vpop.eup %8106  ;;  %8112 = vtanh.f32 %v1565_v33  ;;  %v9840_v33 = vpop.xlane.xlu1 %1953 }
 0x398   :  { %v1202_v27 = vpop.f32.mrb[248].mxu1  ;;  %v1825_v38 = vmul.f32 %v9642_v61, %v8107_v59  ;;  %13260 = vst [vmem:[#allocation199_spill] sm:$0xff] %v9840_v33 }
 0x399   :  { %v8109_v62 = vpop.eup %8108  ;;  %v1431_v8 = vadd.f32 %v9757_v45, %v1202_v27  ;;  %v1204_v44 = vpop.f32.mrb[249].mxu1 }
 0x39a   :  { %v1205_v9 = vpop.f32.mrb[250].mxu1  ;;  %2073 = vadd.xlane.f32.xlu1 %v1825_v38  ;;  %v1826_v50 = vmul.f32 %v9642_v61, %v8109_v62  ;;  %v9843_v27 = vpop.xlane.xlu0 %1955 }
 0x39b   :  { %v1566_v14 = vadd.f32 %v9610_v52, %v1431_v8  ;;  %v1432_v20 = vadd.f32 %v9757_v45, %v1205_v9  ;;  %v1207_v34 = vpop.f32.mrb[251].mxu1  ;;  %13261 = vst [vmem:[#allocation200_spill] sm:$0xff] %v9843_v27  ;;  %v9845_v38 = vpop.xlane.xlu1 %1959 }
 0x39c   :  { %2075 = vadd.xlane.f32.xlu0 %v1826_v50  ;;  %13262 = vst [vmem:[#allocation201_spill] sm:$0xff] %v9845_v38 }
 0x39d   :  { %8114 = vtanh.f32 %v1566_v14  ;;  %v1567_v59 = vadd.f32 %v9610_v52, %v1432_v20 }
 0x39e   :  { %v9850_v14 = vpop.xlane.xlu0 %1957 }
 0x39f   :  { %v8111_v57 = vpop.eup %8110  ;;  %8116 = vtanh.f32 %v1567_v59  ;;  %13263 = vst [vmem:[#allocation202_spill] sm:$0xff] %v9850_v14  ;;  %v9854_v33 = vpop.xlane.xlu1 %1961 }
 0x3a0   :  { %v1210_v62 = vpop.f32.mrb[252].mxu1  ;;  %v1827_v44 = vmul.f32 %v9642_v61, %v8111_v57  ;;  %13264 = vst [vmem:[#allocation203_spill] sm:$0xff] %v9854_v33 }
 0x3a1   :  { %v8113_v15 = vpop.eup %8112  ;;  %v1433_v8 = vadd.f32 %v9757_v45, %v1210_v62  ;;  %v1212_v9 = vpop.f32.mrb[253].mxu1 }
 0x3a2   :  { %v1213_v34 = vpop.f32.mrb[254].mxu1  ;;  %2077 = vadd.xlane.f32.xlu0 %v1827_v44  ;;  %v1828_v50 = vmul.f32 %v9642_v61, %v8113_v15  ;;  %v9857_v62 = vpop.xlane.xlu0 %1963 }
 0x3a3   :  { %v1568_v20 = vadd.f32 %v9610_v52, %v1433_v8  ;;  %v1434_v27 = vadd.f32 %v9757_v45, %v1213_v34  ;;  %v1215_v59 = vpop.f32.mrb[255].mxu1  ;;  %13265 = vst [vmem:[#allocation204_spill] sm:$0xff] %v9857_v62  ;;  %v9859_v44 = vpop.xlane.xlu1 %1965 }
 0x3a4   :  { %2079 = vadd.xlane.f32.xlu1 %v1828_v50  ;;  %13266 = vst [vmem:[#allocation205_spill] sm:$0xff] %v9859_v44 }
 0x3a5   :  { %8118 = vtanh.f32 %v1568_v20  ;;  %v1569_v57 = vadd.f32 %v9610_v52, %v1434_v27 }
 0x3a6   :  { %v9863_v45 = vpop.xlane.xlu0 %1967 }
 0x3a7   :  { %v8115_v38 = vpop.eup %8114  ;;  %8120 = vtanh.f32 %v1569_v57  ;;  %13267 = vst [vmem:[#allocation206_spill] sm:$0xff] %v9863_v45  ;;  %v9865_v34 = vpop.xlane.xlu1 %1971 }
 0x3a8   :  { %v1829_v15 = vmul.f32 %v9642_v61, %v8115_v38  ;;  %13268 = vst [vmem:[#allocation207_spill] sm:$0xff] %v9865_v34 }
 0x3a9   :  { %v8117_v9 = vpop.eup %8116 }
 0x3aa   :  { %2081 = vadd.xlane.f32.xlu1 %v1829_v15  ;;  %v1830_v8 = vmul.f32 %v9642_v61, %v8117_v9  ;;  %v9867_v20 = vpop.xlane.xlu0 %1969 }
 0x3ab   :  { %13269 = vst [vmem:[#allocation208_spill] sm:$0xff] %v9867_v20  ;;  %v9869_v52 = vpop.xlane.xlu1 %1973 }
 0x3ac   :  { %2083 = vadd.xlane.f32.xlu0 %v1830_v8  ;;  %13270 = vst [vmem:[#allocation209_spill] sm:$0xff] %v9869_v52 }
 0x3ae   :  { %v9873_v57 = vpop.xlane.xlu0 %1983 }
 0x3af   :  { %v8119_v50 = vpop.eup %8118  ;;  %13271 = vst [vmem:[#allocation210_spill] sm:$0xff] %v9873_v57  ;;  %v9875_v15 = vpop.xlane.xlu1 %1975 }
 0x3b0   :  { %v1831_v27 = vmul.f32 %v9642_v61, %v8119_v50  ;;  %13272 = vst [vmem:[#allocation211_spill] sm:$0xff] %v9875_v15 }
 0x3b1   :  { %v8121_v59 = vpop.eup %8120 }
 0x3b2   :  { %2085 = vadd.xlane.f32.xlu0 %v1831_v27  ;;  %v1832_v38 = vmul.f32 %v9642_v61, %v8121_v59  ;;  %v9877_v9 = vpop.xlane.xlu0 %1989 }
 0x3b3   :  { %13273 = vst [vmem:[#allocation212_spill] sm:$0xff] %v9877_v9  ;;  %v9879_v14 = vpop.xlane.xlu1 %1977 }
 0x3b4   :  { %2087 = vadd.xlane.f32.xlu1 %v1832_v38  ;;  %13274 = vst [vmem:[#allocation213_spill] sm:$0xff] %v9879_v14 }
 0x3b6   :  { %v9881_v8 = vpop.xlane.xlu0 %1991 }
 0x3b7   :  { %13275 = vst [vmem:[#allocation214_spill] sm:$0xff] %v9881_v8  ;;  %v9883_v34 = vpop.xlane.xlu1 %1979 }
 0x3b8   :  { %13276 = vst [vmem:[#allocation215_spill] sm:$0xff] %v9883_v34 }
 0x3ba   :  { %v9885_v52 = vpop.xlane.xlu0 %1993 }
 0x3bb   :  { %13277 = vst [vmem:[#allocation216_spill] sm:$0xff] %v9885_v52  ;;  %v9889_v27 = vpop.xlane.xlu1 %1981 }
 0x3bc   :  { %13279 = vst [vmem:[#allocation218_spill] sm:$0xff] %v9889_v27 }
 0x3be   :  { %v9887_v50 = vpop.xlane.xlu0 %2001 }
 0x3bf   :  { %13278 = vst [vmem:[#allocation217_spill] sm:$0xff] %v9887_v50  ;;  %v9891_v61 = vpop.xlane.xlu1 %1985 }
 0x3c0   :  { %13280 = vst [vmem:[#allocation219_spill] sm:$0xff] %v9891_v61 }
 0x3c2   :  { %v9893_v59 = vpop.xlane.xlu0 %2003 }
 0x3c3   :  { %13281 = vst [vmem:[#allocation220_spill] sm:$0xff] %v9893_v59  ;;  %v9895_v38 = vpop.xlane.xlu1 %1987 }
 0x3c4   :  { %13282 = vst [vmem:[#allocation221_spill] sm:$0xff] %v9895_v38 }
 0x3c6   :  { %v9897_v57 = vpop.xlane.xlu0 %2005 }
 0x3c7   :  { %13283 = vst [vmem:[#allocation222_spill] sm:$0xff] %v9897_v57  ;;  %v9899_v9 = vpop.xlane.xlu1 %1995 }
 0x3c8   :  { %13284 = vst [vmem:[#allocation223_spill] sm:$0xff] %v9899_v9  ;;  %v13295_v9 = vlaneseq }
 0x3ca   :  { %v9901_v14 = vpop.xlane.xlu0 %2007 }
 0x3cb   :  { %13285 = vst [vmem:[#allocation224_spill] sm:$0xff] %v9901_v14  ;;  %v9903_v8 = vpop.xlane.xlu1 %1997  ;;  %v9922_v14 = vand.u32 127, %v13295_v9 }
 0x3cc   :  { %13286 = vst [vmem:[#allocation225_spill] sm:$0xff] %v9903_v8 }
 0x3cd   :  { %v2279_v44 = vadd.s32 4294967224, %v9922_v14 }
 0x3ce   :  { %v9905_v34 = vpop.xlane.xlu0 %2009 }
 0x3cf   :  { %13287 = vst [vmem:[#allocation226_spill] sm:$0xff] %v9905_v34  ;;  %v9907_v52 = vpop.xlane.xlu1 %1999  ;;  %v2223_v34 = vadd.s32 4294967288, %v9922_v14 }
 0x3d0   :  { %13288 = vst [vmem:[#allocation227_spill] sm:$0xff] %v9907_v52 }
 0x3d2   :  { %v9911_v27 = vpop.xlane.xlu0 %2011 }
 0x3d3   :  { %v9909_v50 = vpop.xlane.xlu1 %2013  ;;  %13290 = vst [vmem:[#allocation229_spill] sm:$0xff] %v9911_v27 }
 0x3d4   :  { %13289 = vst [vmem:[#allocation228_spill] sm:$0xff] %v9909_v50  ;;  %v2230_v50 = vadd.s32 4294967280, %v9922_v14 }
 0x3d6   :  { %v9915_v59 = vpop.xlane.xlu0 %2015  ;;  %v9939_v9 = vsub.s32 %v2230_v50, %v9024_v54  ;;  %v2251_v50 = vadd.s32 4294967256, %v9922_v14 }
 0x3d7   :  { %v9913_v61 = vpop.xlane.xlu1 %2019  ;;  %13292 = vst [vmem:[#allocation231_spill] sm:$0xff] %v9915_v59 }
 0x3d8   :  { %13291 = vst [vmem:[#allocation230_spill] sm:$0xff] %v9913_v61  ;;  %v9933_v61 = vsub.s32 %v2223_v34, %v9024_v54  ;;  %13301 = vst [vmem:[#allocation239_spill] sm:$0xff] %v9939_v9  ;;  %v2340_v34 = vrot.slane %v9684_v23, %v9939_v9 }
 0x3da   :  { %v9919_v57 = vpop.xlane.xlu0 %2017  ;;  %13299 = vst [vmem:[#allocation237_spill] sm:$0xff] %v9933_v61  ;;  %v2227_v23 = vrot.slane %v9618_v28, %v9933_v61 }
 0x3db   :  { %v9917_v38 = vpop.xlane.xlu1 %2021  ;;  %13294 = vst [vmem:[#allocation233_spill] sm:$0xff] %v9919_v57  ;;  %v2244_v57 = vadd.s32 4294967264, %v9922_v14 }
 0x3dc   :  { %13293 = vst [vmem:[#allocation232_spill] sm:$0xff] %v9917_v38  ;;  %v2237_v38 = vadd.s32 4294967272, %v9922_v14 }
 0x3dd   :  { %v9961_v45 = vsub.s32 %v2244_v57, %v9024_v54 }
 0x3de   :  { %v9927_v52 = vpop.xlane.xlu0 %2023  ;;  %v9953_v15 = vsub.s32 %v2237_v38, %v9024_v54 }
 0x3df   :  { %v9924_v8 = vpop.xlane.xlu1 %2027  ;;  %13297 = vst [vmem:[#allocation235_spill] sm:$0xff] %v9927_v52  ;;  %v2335_v52 = vrot.slane %v9668_v60, %v9933_v61  ;;  %13306 = vst [vmem:[#allocation244_spill] sm:$0xff] %v9961_v45  ;;  %v2258_v60 = vadd.s32 4294967248, %v9922_v14  ;;  %v2350_v57 = vrot.slane %v9691_v11, %v9961_v45 }
 0x3e0   :  { %13296 = vst [vmem:[#allocation234_spill] sm:$0xff] %v9924_v8  ;;  %v9944_v8 = vsub.s32 %v9922_v14, %v9024_v54  ;;  %13304 = vst [vmem:[#allocation242_spill] sm:$0xff] %v9953_v15  ;;  %v2241_v28 = vrot.slane %v9605_v49, %v9953_v15 }
 0x3e2   :  { %v9936_v59 = vpop.xlane.xlu0 %2025  ;;  %13302 = vst [vmem:[#allocation240_spill] sm:$0xff] %v9944_v8  ;;  %v2222_v33 = vrot.slane %v9602_v1, %v9944_v8 }
 0x3e3   :  { %v9930_v27 = vpop.xlane.xlu1 %2031  ;;  %13300 = vst [vmem:[#allocation238_spill] sm:$0xff] %v9936_v59  ;;  %v2331_v59 = vrot.slane %v9677_v48, %v9944_v8  ;;  %v2234_v48 = vrot.slane %v9597_v58, %v9939_v9  ;;  %v2272_v58 = vadd.s32 4294967232, %v9922_v14 }
 0x3e4   :  { %13298 = vst [vmem:[#allocation236_spill] sm:$0xff] %v9930_v27  ;;  %v2229_v49 = vsel %vm2228_vm1, %v2227_v23, %v2222_v33 }
 0x3e5   :  { %v2336_v38 = vsel %vm2228_vm1, %v2335_v52, %v2331_v59  ;;  %v9979_v52 = vsub.s32 %v2251_v50, %v9024_v54  ;;  %v2265_v59 = vadd.s32 4294967240, %v9922_v14 }
 0x3e6   :  { %v9958_v20 = vpop.xlane.xlu0 %2029 }
 0x3e7   :  { %v9950_v27 = vpop.xlane.xlu1 %2033  ;;  %13305 = vst [vmem:[#allocation243_spill] sm:$0xff] %v9958_v20  ;;  %v2341_v20 = vsel %vm13086_vm2, %v2340_v34, %v2336_v38  ;;  %13307 = vst [vmem:[#allocation245_spill] sm:$0xff] %v9979_v52  ;;  %v2248_v34 = vrot.slane %v9627_v0, %v9961_v45  ;;  %v9987_v38 = vsub.s32 %v2258_v60, %v9024_v54 }
 0x3e8   :  { %13303 = vst [vmem:[#allocation241_spill] sm:$0xff] %v9950_v27  ;;  %v2345_v27 = vrot.slane %v9674_v42, %v9953_v15  ;;  %v2355_v1 = vrot.slane %v9682_v35, %v9979_v52  ;;  %v2255_v23 = vrot.slane %v9616_v5, %v9979_v52  ;;  %v10005_v33 = vsub.s32 %v2265_v59, %v9024_v54 }
 0x3e9   :  { %13309 = vst [vmem:[#allocation247_spill] sm:$0xff] %v9987_v38  ;;  %v2360_v60 = vrot.slane %v9698_v43, %v9987_v38 }
 0x3ea   :  { %v9982_v42 = vpop.xlane.xlu0 %2043  ;;  %v2346_v50 = vsel %vm12923_vm3, %v2345_v27, %v2341_v20  ;;  %13310 = vst [vmem:[#allocation248_spill] sm:$0xff] %v10005_v33  ;;  %v2286_v20 = vadd.s32 4294967216, %v9922_v14  ;;  %v2365_v59 = vrot.slane %v9688_v24, %v10005_v33  ;;  %v2269_v5 = vrot.slane %v9622_v18, %v10005_v33 }
 0x3eb   :  { %13308 = vst [vmem:[#allocation246_spill] sm:$0xff] %v9982_v42  ;;  %v9990_v11 = vpop.xlane.xlu1 %2035  ;;  %v2236_v42 = vsel %vm13086_vm2, %v2234_v48, %v2229_v49  ;;  %v2351_v0 = vsel %vm2249_vm4, %v2350_v57, %v2346_v50  ;;  %v2262_v48 = vrot.slane %v9637_v2, %v9987_v38  ;;  %v10014_v57 = vsub.s32 %v2272_v58, %v9024_v54 }
 0x3ec   :  { %v2243_v62 = vsel %vm12923_vm3, %v2241_v28, %v2236_v42  ;;  %v2293_v42 = vadd.s32 4294967208, %v9922_v14  ;;  %v2356_v28 = vsel %vm2256_vm5, %v2355_v1, %v2351_v0  ;;  %v10021_v50 = vsub.s32 %v2279_v44, %v9024_v54 }
 0x3ed   :  { %v2250_v49 = vsel %vm2249_vm4, %v2248_v34, %v2243_v62  ;;  %13311 = vst [vmem:[#allocation249_spill] sm:$0xff] %v10014_v57  ;;  %v2361_v62 = vsel %vm2263_vm6, %v2360_v60, %v2356_v28  ;;  %v2370_v34 = vrot.slane %v9704_v37, %v10014_v57  ;;  %v10032_v1 = vsub.s32 %v2286_v20, %v9024_v54 }
 0x3ee   :  { %13312 = vst [vmem:[#allocation250_spill] sm:$0xff] %v10021_v50  ;;  %v2257_v58 = vsel %vm2256_vm5, %v2255_v23, %v2250_v49  ;;  %v2276_v44 = vrot.slane %v9649_v30, %v10014_v57  ;;  %v2300_v60 = vadd.s32 4294967200, %v9922_v14  ;;  %v10039_v28 = vsub.s32 %v2293_v42, %v9024_v54 }
 0x3ef   :  { %v10026_v43 = vpop.xlane.xlu1 %2037  ;;  %13313 = vst [vmem:[#allocation251_spill] sm:$0xff] %v10032_v1  ;;  %v2264_v0 = vsel %vm2263_vm6, %v2262_v48, %v2257_v58  ;;  %v2366_v23 = vsel %vm2270_vm7, %v2365_v59, %v2361_v62  ;;  %v2375_v49 = vrot.slane %v9696_v17, %v10021_v50  ;;  %v2414_v20 = vrot.slane %v9724_v51, %v9933_v61 }
 0x3f0   :  { %13314 = vst [vmem:[#allocation252_spill] sm:$0xff] %v10039_v28  ;;  %v2371_v48 = vsel %vm2277_vm8, %v2370_v34, %v2366_v23  ;;  %v2380_v58 = vrot.slane %v9712_v25, %v10032_v1  ;;  %v2419_v42 = vrot.slane %v9740_v16, %v9939_v9  ;;  %v2271_v30 = vsel %vm2270_vm7, %v2269_v5, %v2264_v0 }
 0x3f1   :  { %v2283_v59 = vrot.slane %v9632_v41, %v10021_v50  ;;  %v2307_v62 = vadd.s32 4294967192, %v9922_v14  ;;  %v2410_v17 = vrot.slane %v9733_v53, %v9944_v8  ;;  %v2278_v37 = vsel %vm2277_vm8, %v2276_v44, %v2271_v30  ;;  %v13353_v53 = vld [vmem:[#allocation220_spill] sm:$0xff] }
 0x3f2   :  { %v2290_v34 = vrot.slane %v9656_v55, %v10032_v1  ;;  %v10063_v23 = vsub.s32 %v2300_v60, %v9024_v54  ;;  %v2314_v25 = vadd.s32 4294967184, %v9922_v14  ;;  %v2376_v5 = vsel %vm13087_vm9, %v2375_v49, %v2371_v48 }
 0x3f3   :  { %v10066_v18 = vpop.xlane.xlu1 %2039  ;;  %v2385_v0 = vrot.slane %v9702_v6, %v10039_v28  ;;  %v2415_v41 = vsel %vm2228_vm1, %v2414_v20, %v2410_v17  ;;  %v2424_v30 = vrot.slane %v9730_v56, %v9953_v15  ;;  %v2381_v55 = vsel %vm12938_vm10, %v2380_v58, %v2376_v5  ;;  %v13332_v56 = vld [vmem:[#allocation206_spill] sm:$0xff] }
 0x3f4   :  { %13315 = vst [vmem:[#allocation253_spill] sm:$0xff] %v10063_v23  ;;  %v2390_v60 = vrot.slane %v9718_v36, %v10063_v23  ;;  %v2420_v2 = vsel %vm13086_vm2, %v2419_v42, %v2415_v41  ;;  %v2429_v49 = vrot.slane %v9738_v39, %v9961_v45  ;;  %v2285_v48 = vsel %vm13087_vm9, %v2283_v59, %v2278_v37 }
 0x3f5   :  { %v2297_v17 = vrot.slane %v9646_v40, %v10039_v28  ;;  %v10086_v20 = vsub.s32 %v2307_v62, %v9024_v54  ;;  %v2321_v6 = vadd.s32 4294967176, %v9922_v14  ;;  %v2292_v58 = vsel %vm12938_vm10, %v2290_v34, %v2285_v48 }
 0x3f6   :  { %v2304_v5 = vrot.slane %v9663_v19, %v10063_v23  ;;  %v10093_v41 = vsub.s32 %v2314_v25, %v9024_v54  ;;  %v2386_v42 = vsel %vm12935_vm11, %v2385_v0, %v2381_v55  ;;  %v2425_v59 = vsel %vm12923_vm3, %v2424_v30, %v2420_v2 }
 0x3f7   :  { %v10008_v27 = vpop.xlane.xlu0 %2049  ;;  %13316 = vst [vmem:[#allocation254_spill] sm:$0xff] %v10086_v20  ;;  %v2395_v37 = vrot.slane %v9710_v63, %v10086_v20  ;;  %v2434_v62 = vrot.slane %v9748_v29, %v9979_v52  ;;  %v2391_v34 = vsel %vm12940_vm12, %v2390_v60, %v2386_v42  ;;  %v2430_v25 = vsel %vm2249_vm4, %v2429_v49, %v2425_v59  ;;  %v10109_v0 = vpop.xlane.xlu1 %2041 }
 0x3f8   :  { %13317 = vst [vmem:[#allocation255_spill] sm:$0xff] %v10093_v41  ;;  %v2400_v48 = vrot.slane %v9716_v13, %v10093_v41  ;;  %v2439_v55 = vrot.slane %v9759_v31, %v9987_v38  ;;  %v2299_v19 = vsel %vm12935_vm11, %v2297_v17, %v2292_v58  ;;  %v2311_v2 = vrot.slane %v9654_v47, %v10086_v20 }
 0x3f9   :  { %v10115_v30 = vsub.s32 %v2321_v6, %v9024_v54  ;;  %v2306_v60 = vsel %vm12940_vm12, %v2304_v5, %v2299_v19  ;;  %v2318_v49 = vrot.slane %v9670_v10, %v10093_v41  ;;  %v2396_v42 = vsel %vm2312_vm13, %v2395_v37, %v2391_v34 }
 0x3fa   :  { %v2435_v17 = vsel %vm2256_vm5, %v2434_v62, %v2430_v25  ;;  %v2444_v58 = vrot.slane %v9744_v32, %v10005_v33  ;;  %v2401_v6 = vsel %vm2319_vm14, %v2400_v48, %v2396_v42  ;;  %v2449_v5 = vrot.slane %v9754_v7, %v10014_v57 }
 0x3fb   :  { %v10046_v24 = vpop.xlane.xlu0 %2051  ;;  %13318 = vst [vmem:[#allocation256_spill] sm:$0xff] %v10115_v30  ;;  %v2405_v59 = vrot.slane %v9726_v4, %v10115_v30  ;;  %v2440_v19 = vsel %vm2263_vm6, %v2439_v55, %v2435_v17  ;;  %v2493_v37 = vrot.slane %v9771_v26, %v9933_v61  ;;  %v10134_v34 = vpop.xlane.xlu1 %2045  ;;  %v2313_v10 = vsel %vm2312_vm13, %v2311_v2, %v2306_v60  ;;  %v13319_v4 = vld [vmem:[#allocation195_spill] sm:$0xff] }
 0x3fc   :  { %v2454_v62 = vrot.slane %v9767_v21, %v10021_v50  ;;  %v2498_v25 = vrot.slane %v9777_v12, %v9939_v9  ;;  %v2320_v48 = vsel %vm2319_vm14, %v2318_v49, %v2313_v10  ;;  %v2489_v55 = vrot.slane %v9817_v46, %v9944_v8  ;;  %v13320_v49 = vld [vmem:[#allocation197_spill] sm:$0xff]  ;;  %v13321_v21 = vld [vmem:[#allocation204_spill] sm:$0xff] }
 0x3fd   :  { %v2503_v42 = vrot.slane %v9786_v3, %v9953_v15  ;;  %v2325_v17 = vrot.slane %v9660_v22, %v10115_v30  ;;  %v2406_v2 = vsel %vm2326_vm15, %v2405_v59, %v2401_v6  ;;  %v2445_v60 = vsel %vm2270_vm7, %v2444_v58, %v2440_v19  ;;  %v13322_v59 = vld [vmem:[#allocation187_spill] sm:$0xff]  ;;  %v13323_v6 = vld [vmem:[#allocation205_spill] sm:$0xff]  ;;  %v13333_v46 = vld [vmem:[#allocation196_spill] sm:$0xff] }
 0x3fe   :  { %v2508_v13 = vrot.slane %v13319_v4, %v9961_v45  ;;  %v2450_v63 = vsel %vm2277_vm8, %v2449_v5, %v2445_v60  ;;  %v2494_v10 = vsel %vm2228_vm1, %v2493_v37, %v2489_v55  ;;  %v2513_v40 = vrot.slane %v13320_v49, %v9979_v52  ;;  %v13325_v5 = vld [vmem:[#allocation183_spill] sm:$0xff]  ;;  %v13326_v60 = vld [vmem:[#allocation190_spill] sm:$0xff]  ;;  %v13329_v4 = vld [vmem:[#allocation188_spill] sm:$0xff] }
 0x3ff   :  { %v2572_v36 = vrot.slane %v13321_v21, %v9933_v61  ;;  %v2455_v7 = vsel %vm13087_vm9, %v2454_v62, %v2450_v63  ;;  %v2499_v22 = vsel %vm13086_vm2, %v2498_v25, %v2494_v10  ;;  %v2518_v58 = vrot.slane %v13322_v59, %v9987_v38  ;;  %v13327_v63 = vld [vmem:[#allocation203_spill] sm:$0xff]  ;;  %v10173_v25 = vpop.xlane.xlu1 %2047  ;;  %v13328_v10 = vld [vmem:[#allocation185_spill] sm:$0xff] }
 0x400   :  { %v2577_v19 = vrot.slane %v13323_v6, %v9939_v9  ;;  %v2459_v37 = vrot.slane %v13325_v5, %v10032_v1  ;;  %v2504_v55 = vsel %vm12923_vm3, %v2503_v42, %v2499_v22  ;;  %v2523_v49 = vrot.slane %v13326_v60, %v10005_v33  ;;  %v13330_v5 = vld [vmem:[#allocation192_spill] sm:$0xff]  ;;  %v13331_v42 = vld [vmem:[#allocation194_spill] sm:$0xff] }
 0x401   :  { %v2568_v62 = vrot.slane %v13327_v63, %v9944_v8  ;;  %v2464_v59 = vrot.slane %v13328_v10, %v10039_v28  ;;  %v2469_v6 = vrot.slane %v13329_v4, %v10063_v23  ;;  %v2509_v39 = vsel %vm2249_vm4, %v2508_v13, %v2504_v55  ;;  %v13334_v55 = vld [vmem:[#allocation208_spill] sm:$0xff] }
 0x402   :  { %v2528_v31 = vrot.slane %v13330_v5, %v10014_v57  ;;  %v2514_v22 = vsel %vm2256_vm5, %v2513_v40, %v2509_v39  ;;  %v2533_v60 = vrot.slane %v13331_v42, %v10021_v50  ;;  %v2582_v29 = vrot.slane %v13332_v56, %v9953_v15 }
 0x403   :  { %v2573_v63 = vsel %vm2228_vm1, %v2572_v36, %v2568_v62  ;;  %v2519_v10 = vsel %vm2263_vm6, %v2518_v58, %v2514_v22  ;;  %v2538_v4 = vrot.slane %v13333_v46, %v10032_v1  ;;  %v2587_v5 = vrot.slane %v13334_v55, %v9961_v45  ;;  %v13335_v36 = vld [vmem:[#allocation198_spill] sm:$0xff]  ;;  %v10199_v56 = vpop.xlane.xlu1 %2053 }
 0x404   :  { %v2578_v13 = vsel %vm13086_vm2, %v2577_v19, %v2573_v63  ;;  %v2327_v39 = vsel %vm2326_vm15, %v2325_v17, %v2320_v48  ;;  %v2460_v40 = vsel %vm12938_vm10, %v2459_v37, %v2455_v7  ;;  %v2524_v42 = vsel %vm2270_vm7, %v2523_v49, %v2519_v10  ;;  %v13336_v63 = vld [vmem:[#allocation199_spill] sm:$0xff] }
 0x405   :  { %v2543_v62 = vrot.slane %v13335_v36, %v10039_v28  ;;  %v10202_v58 = vsel %vm12918_vm0, %v2406_v2, %v2327_v39  ;;  %v2465_v22 = vsel %vm12935_vm11, %v2464_v59, %v2460_v40  ;;  %v2529_v19 = vsel %vm2277_vm8, %v2528_v31, %v2524_v42  ;;  %v13337_v37 = vld [vmem:[#allocation207_spill] sm:$0xff]  ;;  %v13338_v2 = vld [vmem:[#allocation180_spill] sm:$0xff]  ;;  %v13339_v42 = vld [vmem:[#allocation209_spill] sm:$0xff] }
 0x406   :  { %v2548_v46 = vrot.slane %v13336_v63, %v10063_v23  ;;  %v2470_v7 = vsel %vm12940_vm12, %v2469_v6, %v2465_v22  ;;  %v2534_v17 = vsel %vm13087_vm9, %v2533_v60, %v2529_v19  ;;  %v2583_v49 = vsel %vm12923_vm3, %v2582_v29, %v2578_v13  ;;  %v13340_v63 = vld [vmem:[#allocation189_spill] sm:$0xff]  ;;  %v13341_v29 = vld [vmem:[#allocation211_spill] sm:$0xff] }
 0x407   :  { %v2592_v10 = vrot.slane %v13337_v37, %v9979_v52  ;;  %v2474_v39 = vrot.slane %v13338_v2, %v10086_v20  ;;  %v2539_v59 = vsel %vm12938_vm10, %v2538_v4, %v2534_v17  ;;  %v2588_v31 = vsel %vm2249_vm4, %v2587_v5, %v2583_v49  ;;  %v13342_v22 = vld [vmem:[#allocation223_spill] sm:$0xff]  ;;  %v13344_v5 = vld [vmem:[#allocation213_spill] sm:$0xff] }
 0x408   :  { %v2597_v40 = vrot.slane %v13339_v42, %v9987_v38  ;;  %v2479_v6 = vrot.slane %v13340_v63, %v10093_v41  ;;  %v2544_v60 = vsel %vm12935_vm11, %v2543_v62, %v2539_v59  ;;  %v2602_v13 = vrot.slane %v13341_v29, %v10005_v33  ;;  %v13343_v2 = vld [vmem:[#allocation191_spill] sm:$0xff]  ;;  %v13345_v49 = vld [vmem:[#allocation225_spill] sm:$0xff]  ;;  %v13347_v29 = vld [vmem:[#allocation216_spill] sm:$0xff] }
 0x409   :  { %v10074_v44 = vpop.xlane.xlu0 %2059  ;;  %v2651_v19 = vrot.slane %v13342_v22, %v9933_v61  ;;  %v2484_v36 = vrot.slane %v13343_v2, %v10115_v30  ;;  %v2549_v4 = vsel %vm12940_vm12, %v2548_v46, %v2544_v60  ;;  %v2607_v17 = vrot.slane %v13344_v5, %v10014_v57  ;;  %v13346_v62 = vld [vmem:[#allocation215_spill] sm:$0xff]  ;;  %v10242_v2 = vpop.xlane.xlu1 %2055  ;;  %v13349_v46 = vld [vmem:[#allocation200_spill] sm:$0xff] }
 0x40a   :  { %v2656_v42 = vrot.slane %v13345_v49, %v9939_v9  ;;  %v2593_v63 = vsel %vm2256_vm5, %v2592_v10, %v2588_v31  ;;  %v2612_v59 = vrot.slane %v13346_v62, %v10021_v50  ;;  %v2647_v37 = vrot.slane %v13347_v29, %v9944_v8  ;;  %v13348_v22 = vld [vmem:[#allocation227_spill] sm:$0xff]  ;;  %v13350_v49 = vld [vmem:[#allocation218_spill] sm:$0xff]  ;;  %v13351_v10 = vld [vmem:[#allocation217_spill] sm:$0xff] }
 0x40b   :  { %v2661_v55 = vrot.slane %v13348_v22, %v9953_v15  ;;  %v2553_v60 = vrot.slane %v13349_v46, %v10086_v20  ;;  %v2598_v5 = vsel %vm2263_vm6, %v2597_v40, %v2593_v63  ;;  %v2617_v3 = vrot.slane %v13350_v49, %v10032_v1  ;;  %v13352_v29 = vld [vmem:[#allocation202_spill] sm:$0xff] }
 0x40c   :  { %v2666_v31 = vrot.slane %v13351_v10, %v9961_v45  ;;  %v2558_v51 = vrot.slane %v13352_v29, %v10093_v41  ;;  %v2603_v22 = vsel %vm2270_vm7, %v2602_v13, %v2598_v5  ;;  %v2652_v35 = vsel %vm2228_vm1, %v2651_v19, %v2647_v37  ;;  %v13354_v10 = vld [vmem:[#allocation222_spill] sm:$0xff]  ;;  %v13356_v37 = vld [vmem:[#allocation224_spill] sm:$0xff] }
 0x40d   :  { %v2671_v46 = vrot.slane %v13353_v53, %v9979_v52  ;;  %v2475_v63 = vsel %vm2312_vm13, %v2474_v39, %v2470_v7  ;;  %v2608_v40 = vsel %vm2277_vm8, %v2607_v17, %v2603_v22  ;;  %v2657_v49 = vsel %vm13086_vm2, %v2656_v42, %v2652_v35  ;;  %v13355_v29 = vld [vmem:[#allocation210_spill] sm:$0xff] }
 0x40e   :  { %v2676_v21 = vrot.slane %v13354_v10, %v9987_v38  ;;  %v2613_v12 = vsel %vm13087_vm9, %v2612_v59, %v2608_v40  ;;  %v2622_v26 = vrot.slane %v13355_v29, %v10039_v28  ;;  %v2662_v13 = vsel %vm12923_vm3, %v2661_v55, %v2657_v49  ;;  %v13357_v55 = vld [vmem:[#allocation226_spill] sm:$0xff]  ;;  %v10283_v59 = vpop.xlane.xlu1 %2057 }
 0x40f   :  { %v10101_v14 = vpop.xlane.xlu0 %2061  ;;  %v2681_v19 = vrot.slane %v13356_v37, %v10005_v33  ;;  %v2480_v5 = vsel %vm2319_vm14, %v2479_v6, %v2475_v63  ;;  %v2554_v7 = vsel %vm2312_vm13, %v2553_v60, %v2549_v4  ;;  %v2618_v39 = vsel %vm12938_vm10, %v2617_v3, %v2613_v12  ;;  %v13358_v6 = vld [vmem:[#allocation201_spill] sm:$0xff]  ;;  %v13359_v12 = vld [vmem:[#allocation234_spill] sm:$0xff]  ;;  %v13360_v63 = vld [vmem:[#allocation243_spill] sm:$0xff] }
 0x410   :  { %v2667_v35 = vsel %vm2249_vm4, %v2666_v31, %v2662_v13  ;;  %v10275_v42 = vsel %vm2326_vm15, %v2484_v36, %v2480_v5  ;;  %v10278_v22 = vsel %vm2319_vm14, %v2558_v51, %v2554_v7  ;;  %v2686_v49 = vrot.slane %v13357_v55, %v10014_v57  ;;  %v13362_v7 = vld [vmem:[#allocation238_spill] sm:$0xff]  ;;  %v13364_v4 = vld [vmem:[#allocation228_spill] sm:$0xff] }
 0x411   :  { %v2672_v17 = vsel %vm2256_vm5, %v2671_v46, %v2667_v35  ;;  %v2730_v60 = vrot.slane %v13359_v12, %v9933_v61  ;;  %v2809_v36 = vrot.slane %v10074_v44, %v9933_v61  ;;  %v2623_v46 = vsel %vm12935_vm11, %v2622_v26, %v2618_v39 }
 0x412   :  { %v2677_v3 = vsel %vm2263_vm6, %v2676_v21, %v2672_v17  ;;  %v2735_v40 = vrot.slane %v13360_v63, %v9939_v9  ;;  %v2814_v13 = vrot.slane %v10101_v14, %v9939_v9  ;;  %v13361_v21 = vld [vmem:[#allocation229_spill] sm:$0xff]  ;;  %v2726_v35 = vrot.slane %v13362_v7, %v9944_v8 }
 0x413   :  { %v10126_v47 = vpop.xlane.xlu0 %2063  ;;  %v2682_v31 = vsel %vm2270_vm7, %v2681_v19, %v2677_v3  ;;  %v2691_v5 = vrot.slane %v13361_v21, %v10021_v50  ;;  %v2805_v17 = vrot.slane %v10283_v59, %v9944_v8  ;;  %v13363_v19 = vld [vmem:[#allocation219_spill] sm:$0xff]  ;;  %v2696_v9 = vrot.slane %v13364_v4, %v10032_v1  ;;  %v13365_v21 = vld [vmem:[#allocation236_spill] sm:$0xff] }
 0x414   :  { %v2819_v26 = vrot.slane %v10126_v47, %v9953_v15  ;;  %v2627_v39 = vrot.slane %v13363_v19, %v10063_v23  ;;  %v2687_v3 = vsel %vm2277_vm8, %v2686_v49, %v2682_v31  ;;  %v2731_v29 = vsel %vm2228_vm1, %v2730_v60, %v2726_v35  ;;  %v13366_v31 = vld [vmem:[#allocation241_spill] sm:$0xff] }
 0x415   :  { %v2740_v55 = vrot.slane %v13365_v21, %v9953_v15  ;;  %v2810_v8 = vsel %vm2228_vm1, %v2809_v36, %v2805_v17  ;;  %v2736_v49 = vsel %vm13086_vm2, %v2735_v40, %v2731_v29  ;;  %v2745_v4 = vrot.slane %v13366_v31, %v9961_v45 }
 0x416   :  { %v2692_v35 = vsel %vm13087_vm9, %v2691_v5, %v2687_v3  ;;  %v2750_v36 = vrot.slane %v9990_v11, %v9979_v52  ;;  %v2755_v40 = vrot.slane %v10026_v43, %v9987_v38  ;;  %v13367_v5 = vld [vmem:[#allocation231_spill] sm:$0xff]  ;;  %vm12939_vm0 = vcmask 1042434  }
 0x417   :  { %v10164_v32 = vpop.xlane.xlu0 %2065  ;;  %v2697_v29 = vsel %vm12938_vm10, %v2696_v9, %v2692_v35  ;;  %v2701_v3 = vrot.slane %v13367_v5, %v10039_v28 }
 0x418   :  { %13324 = vst [vmem:[#allocation257_spill] sm:$0xff] %v10164_v32  ;;  %v2824_v61 = vrot.slane %v10164_v32, %v9961_v45  ;;  %v2815_v32 = vsel %vm13086_vm2, %v2814_v13, %v2810_v8 }
 0x419   :  { %v2820_v17 = vsel %vm12923_vm3, %v2819_v26, %v2815_v32  ;;  %v2760_v32 = vrot.slane %v10066_v18, %v10005_v33 }
 0x41a   :  { %v2825_v8 = vsel %vm2249_vm4, %v2824_v61, %v2820_v17  ;;  %v13368_v61 = vld [vmem:[#allocation233_spill] sm:$0xff] }
 0x41b   :  { %v10208_v48 = vpop.xlane.xlu0 %2067  ;;  %v2706_v35 = vrot.slane %v13368_v61, %v10063_v23  ;;  %v2628_v61 = vsel %vm12940_vm12, %v2627_v39, %v2623_v46  ;;  %v13373_v39 = vld [vmem:[#allocation232_spill] sm:$0xff] }
 0x41c   :  { %v2829_v37 = vrot.slane %v10208_v48, %v9979_v52  ;;  %v2741_v52 = vsel %vm12923_vm3, %v2740_v55, %v2736_v49  ;;  %v13369_v49 = vld [vmem:[#allocation221_spill] sm:$0xff]  ;;  %vm2885_vm3 = vcmask 1043459  }
 0x41d   :  { %v2746_v17 = vsel %vm2249_vm4, %v2745_v4, %v2741_v52 }
 0x41e   :  { %v2830_v26 = vsel %vm2256_vm5, %v2829_v37, %v2825_v8  ;;  %v2751_v37 = vsel %vm2256_vm5, %v2750_v36, %v2746_v17  ;;  %v13371_v17 = vld [vmem:[#allocation246_spill] sm:$0xff] }
 0x41f   :  { %v10251_v62 = vpop.xlane.xlu0 %2069  ;;  %v2756_v52 = vsel %vm2263_vm6, %v2755_v40, %v2751_v37  ;;  %v2716_v40 = vrot.slane %v13373_v39, %v10093_v41  ;;  %v13376_v39 = vld [vmem:[#allocation235_spill] sm:$0xff] }
 0x420   :  { %v2834_v60 = vrot.slane %v10251_v62, %v9987_v38  ;;  %v2765_v38 = vrot.slane %v10109_v0, %v10014_v57 }
 0x422   :  { %v2835_v55 = vsel %vm2263_vm6, %v2834_v60, %v2830_v26  ;;  %v2702_v26 = vsel %vm12935_vm11, %v2701_v3, %v2697_v29  ;;  %v2775_v29 = vrot.slane %v10134_v34, %v10032_v1 }
 0x423   :  { %v10292_v51 = vpop.xlane.xlu0 %2071  ;;  %v2707_v46 = vsel %vm12940_vm12, %v2706_v35, %v2702_v26  ;;  %v13374_v35 = vld [vmem:[#allocation212_spill] sm:$0xff]  ;;  %v2785_v26 = vrot.slane %v10008_v27, %v10063_v23 }
 0x424   :  { %v2839_v15 = vrot.slane %v10292_v51, %v10005_v33  ;;  %v2632_v33 = vrot.slane %v13369_v49, %v10086_v20 }
 0x426   :  { %v2840_v8 = vsel %vm2270_vm7, %v2839_v15, %v2835_v55  ;;  %v2761_v15 = vsel %vm2270_vm7, %v2760_v32, %v2756_v52  ;;  %v2770_v55 = vrot.slane %v13371_v17, %v10021_v50  ;;  %v2633_v3 = vsel %vm2312_vm13, %v2632_v33, %v2628_v61  ;;  %v13375_v61 = vld [vmem:[#allocation214_spill] sm:$0xff] }
 0x427   :  { %v10321_v10 = vpop.xlane.xlu1 %2073  ;;  %v2780_v32 = vrot.slane %v10173_v25, %v10039_v28  ;;  %v2637_v52 = vrot.slane %v13374_v35, %v10093_v41 }
 0x428   :  { %v2844_v13 = vrot.slane %v10321_v10, %v10014_v57  ;;  %v13370_v57 = vld [vmem:[#allocation230_spill] sm:$0xff] }
 0x429   :  { %v10323_v19 = vpop.xlane.xlu0 %2075  ;;  %v2711_v36 = vrot.slane %v13370_v57, %v10086_v20 }
 0x42a   :  { %v2849_v5 = vrot.slane %v10323_v19, %v10021_v50  ;;  %v2845_v4 = vsel %vm2277_vm8, %v2844_v13, %v2840_v8  ;;  %v2766_v13 = vsel %vm2277_vm8, %v2765_v38, %v2761_v15 }
 0x42c   :  { %v2850_v37 = vsel %vm13087_vm9, %v2849_v5, %v2845_v4  ;;  %v2712_v5 = vsel %vm2312_vm13, %v2711_v36, %v2707_v46  ;;  %v2771_v4 = vsel %vm13087_vm9, %v2770_v55, %v2766_v13  ;;  %v2800_v36 = vrot.slane %v10242_v2, %v10115_v30 }
 0x42d   :  { %v2717_v50 = vsel %vm2319_vm14, %v2716_v40, %v2712_v5  ;;  %v13377_v40 = vrot.slane %v13358_v6, %v10115_v30 }
 0x42f   :  { %v10349_v45 = vpop.xlane.xlu0 %2077  ;;  %v2564_v13 = vsel %vm2326_vm15, %v13377_v40, %v10278_v22 }
 0x430   :  { %v2854_v60 = vrot.slane %v10349_v45, %v10032_v1  ;;  %v2642_v1 = vrot.slane %v13375_v61, %v10115_v30 }
 0x431   :  { %v10351_v9 = vpop.xlane.xlu1 %2079 }
 0x432   :  { %v2859_v8 = vrot.slane %v10351_v9, %v10039_v28  ;;  %v2855_v38 = vsel %vm12938_vm10, %v2854_v60, %v2850_v37  ;;  %v2790_v28 = vrot.slane %v10046_v24, %v10086_v20  ;;  %v2721_v60 = vrot.slane %v13376_v39, %v10115_v30 }
 0x433   :  { %v2776_v37 = vsel %vm12938_vm10, %v2775_v29, %v2771_v4  ;;  %v2638_v29 = vsel %vm2319_vm14, %v2637_v52, %v2633_v3  ;;  %v2884_v4 = vsel %vm12939_vm0, %v10275_v42, %v10202_v58  ;;  %vm2889_vm10 = vcmask 1045509  }
 0x434   :  { %v2860_v55 = vsel %vm12935_vm11, %v2859_v8, %v2855_v38  ;;  %v2643_v8 = vsel %vm2326_vm15, %v2642_v1, %v2638_v29  ;;  %v2886_v3 = vsel %vm2885_vm3, %v2564_v13, %v2884_v4  ;;  %vm13085_vm0 = vcmask 1046534   ;;  %v13380_v13 = vld [vmem:[#allocation64_spill] sm:$0xff] }
 0x435   :  { %v13381_v4 = vld [vmem:[#allocation144_spill] sm:$0xff] }
 0x437   :  { %v10376_v49 = vpop.xlane.xlu1 %2081 }
 0x438   :  { %13372 = vst [vmem:[#allocation220_spill] sm:$0xff] %v10376_v49  ;;  %v2864_v15 = vrot.slane %v10376_v49, %v10063_v23  ;;  %v2795_v23 = vrot.slane %v10199_v56, %v10093_v41  ;;  %v2781_v49 = vsel %vm12935_vm11, %v2780_v32, %v2776_v37  ;;  %vm2887_vm11 = vcmask 1044484  }
 0x439   :  { %v10397_v33 = vpop.xlane.xlu0 %2083  ;;  %v2786_v5 = vsel %vm12940_vm12, %v2785_v26, %v2781_v49 }
 0x43a   :  { %v2869_v46 = vrot.slane %v10397_v33, %v10086_v20  ;;  %v2865_v32 = vsel %vm12940_vm12, %v2864_v15, %v2860_v55  ;;  %v2791_v38 = vsel %vm2312_vm13, %v2790_v28, %v2786_v5  ;;  %v2722_v20 = vsel %vm2326_vm15, %v2721_v60, %v2717_v50 }
 0x43b   :  { %v2796_v22 = vsel %vm2319_vm14, %v2795_v23, %v2791_v38  ;;  %v2888_v23 = vsel %vm2887_vm11, %v2643_v8, %v2886_v3  ;;  %vm13084_vm12 = vcmask 1047559   ;;  %v10453_v55 = vsub.s32 2, %v9024_v54  ;;  %v13382_v38 = vld [vmem:[#allocation141_spill] sm:$0xff]  ;;  %v13383_v3 = vld [vmem:[#allocation158_spill] sm:$0xff] }
 0x43c   :  { %v2870_v52 = vsel %vm2312_vm13, %v2869_v46, %v2865_v32  ;;  %v2801_v1 = vsel %vm2326_vm15, %v2800_v36, %v2796_v22  ;;  %v2890_v42 = vsel %vm2889_vm10, %v2722_v20, %v2888_v23  ;;  %v10450_v36 = vsub.s32 1, %v9024_v54  ;;  %v13384_v23 = vld [vmem:[#allocation182_spill] sm:$0xff] }
 0x43d   :  { %v2892_v15 = vsel %vm13085_vm0, %v2801_v1, %v2890_v42  ;;  %13379 = vst [vmem:[#allocation234_spill] sm:$0xff] %v10453_v55  ;;  %v12941_v46 = vsub.s32 3, %v9024_v54 }
 0x43e   :  { %13378 = vst [vmem:[#allocation201_spill] sm:$0xff] %v10450_v36 }
 0x43f   :  { %v10430_v37 = vpop.xlane.xlu0 %2085 }
 0x440   :  { %v2874_v49 = vrot.slane %v10430_v37, %v10093_v41 }
 0x441   :  { %v10438_v58 = vpop.xlane.xlu1 %2087 }
 0x442   :  { %v2879_v28 = vrot.slane %v10438_v58, %v10115_v30  ;;  %v2875_v50 = vsel %vm2319_vm14, %v2874_v49, %v2870_v52 }
 0x444   :  { %v2880_v26 = vsel %vm2326_vm15, %v2879_v28, %v2875_v50 }
 0x445   :  { %v2894_v60 = vsel %vm13084_vm12, %v2880_v26, %v2892_v15  ;;  %v13385_v15 = vld [vmem:[#allocation155_spill] sm:$0xff]  ;;  %vm13655_vm12 = vcmask 261312  }
 0x446   :  { %2896 = vmax.xlane.f32.xlu0 %v2894_v60  ;;  %vm13658_vm0 = vmmov %vm13655_vm12 }
 0x4d3   :  { %v10456_v40 = vpop.xlane.xlu0 %2896 }
 0x4d4   :  { %v10460_v20 = vrot.slane %v10456_v40, %v13380_v13  ;;  %v10464_v29 = vrot.slane %v10456_v40, %v10450_v36  ;;  %v10468_v5 = vrot.slane %v10456_v40, %v10453_v55  ;;  %v10473_v32 = vrot.slane %v10456_v40, %v12941_v46 }
 0x4d6   :  { %v2940_v8 = vsub.f32 %v13381_v4, %v10460_v20  ;;  %v2939_v22 = vsub.f32 %v13382_v38, %v10460_v20  ;;  %v2973_v49 = vsub.f32 %v9740_v16, %v10468_v5  ;;  %v2955_v52 = vsub.f32 %v13383_v3, %v10464_v29  ;;  %v13386_v16 = vld [vmem:[#allocation162_spill] sm:$0xff] }
 0x4d7   :  { %v2988_v42 = vsub.f32 %v13384_v23, %v10473_v32  ;;  %v2956_v60 = vsub.f32 %v13385_v15, %v10464_v29  ;;  %v12942_v4 = vsub.s32 4, %v9024_v54  ;;  %v2959_v46 = vsub.f32 %v13386_v16, %v10464_v29  ;;  %v13389_v23 = vld [vmem:[#allocation160_spill] sm:$0xff] }
 0x4d8   :  { %v3069_v1 = vmul.f32 1.442695, %v2940_v8  ;;  %v3067_v28 = vmul.f32 1.442695, %v2939_v22  ;;  %v3135_v50 = vmul.f32 1.442695, %v2973_v49 }
 0x4d9   :  { %v3099_v26 = vmul.f32 1.442695, %v2955_v52  ;;  %v3165_v38 = vmul.f32 1.442695, %v2988_v42  ;;  %v3101_v8 = vmul.f32 1.442695, %v2956_v60  ;;  %v10495_v3 = vrot.slane %v10456_v40, %v12942_v4 }
 0x4da   :  { %8122 = vpow2.f32 %v3069_v1  ;;  %v13387_v22 = vld [vmem:[#allocation140_spill] sm:$0xff]  ;;  %v3107_v52 = vmul.f32 1.442695, %v2959_v46  ;;  %v2957_v42 = vsub.f32 %v13389_v23, %v10464_v29  ;;  %v12948_v23 = vsub.s32 5, %v9024_v54 }
 0x4db   :  { %8124 = vpow2.f32 %v3067_v28  ;;  %v2941_v49 = vsub.f32 %v13387_v22, %v10460_v20  ;;  %v13388_v1 = vld [vmem:[#allocation184_spill] sm:$0xff] }
 0x4dc   :  { %8126 = vpow2.f32 %v3135_v50  ;;  %v2989_v28 = vsub.f32 %v13388_v1, %v10473_v32  ;;  %v13392_v46 = vld [vmem:[#allocation204_spill] sm:$0xff]  ;;  %v3103_v16 = vmul.f32 1.442695, %v2957_v42  ;;  %v13397_v42 = vld [vmem:[#allocation171_spill] sm:$0xff] }
 0x4dd   :  { %8128 = vpow2.f32 %v3099_v26  ;;  %v3071_v50 = vmul.f32 1.442695, %v2941_v49 }
 0x4de   :  { %8130 = vpow2.f32 %v3165_v38  ;;  %v3167_v60 = vmul.f32 1.442695, %v2989_v28  ;;  %v3004_v38 = vsub.f32 %v13392_v46, %v10495_v3  ;;  %v13396_v28 = vld [vmem:[#allocation159_spill] sm:$0xff] }
 0x4df   :  { %8132 = vpow2.f32 %v3101_v8  ;;  %v13393_v8 = vld [vmem:[#allocation174_spill] sm:$0xff]  ;;  %v2960_v46 = vsub.f32 %v13396_v28, %v10464_v29 }
 0x4e0   :  { %8134 = vpow2.f32 %v3107_v52  ;;  %v2971_v22 = vsub.f32 %v13393_v8, %v10468_v5  ;;  %v3197_v52 = vmul.f32 1.442695, %v3004_v38  ;;  %v2972_v8 = vsub.f32 %v13397_v42, %v10468_v5  ;;  %v13400_v38 = vld [vmem:[#allocation186_spill] sm:$0xff] }
 0x4e1   :  { %8136 = vpow2.f32 %v3071_v50  ;;  %v13401_v28 = vld [vmem:[#allocation142_spill] sm:$0xff] }
 0x4e2   :  { %8138 = vpow2.f32 %v3167_v60  ;;  %v3131_v50 = vmul.f32 1.442695, %v2971_v22  ;;  %v3109_v60 = vmul.f32 1.442695, %v2960_v46  ;;  %v3133_v22 = vmul.f32 1.442695, %v2972_v8 }
 0x4e3   :  { %8140 = vpow2.f32 %v3103_v16  ;;  %v2990_v16 = vsub.f32 %v13400_v38, %v10473_v32  ;;  %v2942_v42 = vsub.f32 %v13401_v28, %v10460_v20 }
 0x4e4   :  { %v10501_v26 = vpop.eup %8122  ;;  %8142 = vpow2.f32 %v3197_v52  ;;  %v13404_v52 = vld [vmem:[#allocation216_spill] sm:$0xff] }
 0x4e5   :  { %13390 = vst [vmem:[#allocation243_spill] sm:$0xff] %v10501_v26  ;;  %v10503_v15 = vpop.eup %8124  ;;  %3455 = vperm.xlu0 %7865, %v10501_v26   ;;  %8144 = vpow2.f32 %v3131_v50  ;;  %v3073_v38 = vmul.f32 1.442695, %v2942_v42  ;;  %v13405_v50 = vld [vmem:[#allocation157_spill] sm:$0xff] }
 0x4e6   :  { %13391 = vst [vmem:[#allocation238_spill] sm:$0xff] %v10503_v15  ;;  %3452 = vperm.xlu1 %7864, %v10503_v15   ;;  %v10511_v49 = vpop.eup %8126  ;;  %8146 = vpow2.f32 %v3109_v60  ;;  %v2958_v8 = vsub.f32 %v13405_v50, %v10464_v29  ;;  %v13408_v60 = vld [vmem:[#allocation148_spill] sm:$0xff] }
 0x4e7   :  { %13394 = vst [vmem:[#allocation236_spill] sm:$0xff] %v10511_v49  ;;  %v10513_v1 = vpop.eup %8128  ;;  %8148 = vpow2.f32 %v3133_v22  ;;  %v13409_v22 = vld [vmem:[#allocation193_spill] sm:$0xff] }
 0x4e8   :  { %13395 = vst [vmem:[#allocation241_spill] sm:$0xff] %v10513_v1  ;;  %v10522_v4 = vpop.eup %8130  ;;  %v2987_v42 = vsub.f32 %v13409_v22, %v10473_v32 }
 0x4e9   :  { %3554 = vperm.xlu0 %7865, %v10511_v49   ;;  %13398 = vst [vmem:[#allocation230_spill] sm:$0xff] %v10522_v4  ;;  %v10524_v55 = vpop.eup %8132  ;;  %v10530_v49 = vrot.slane %v10456_v40, %v12948_v23  ;;  %v3169_v23 = vmul.f32 1.442695, %v2990_v16  ;;  %v2945_v16 = vsub.f32 %v13408_v60, %v10460_v20 }
 0x4ea   :  { %3500 = vperm.xlu1 %7864, %v10513_v1   ;;  %13399 = vst [vmem:[#allocation246_spill] sm:$0xff] %v10524_v55  ;;  %v10537_v1 = vpop.eup %8134 }
 0x4eb   :  { %13402 = vst [vmem:[#allocation212_spill] sm:$0xff] %v10537_v1  ;;  %v3019_v46 = vsub.f32 %v13404_v52, %v10530_v49  ;;  %8150 = vpow2.f32 %v3169_v23  ;;  %v3105_v52 = vmul.f32 1.442695, %v2958_v8  ;;  %v3079_v23 = vmul.f32 1.442695, %v2945_v16  ;;  %v13413_v8 = vld [vmem:[#allocation146_spill] sm:$0xff] }
 0x4ec   :  { %8152 = vpow2.f32 %v3073_v38  ;;  %v3163_v38 = vmul.f32 1.442695, %v2987_v42  ;;  %v2943_v22 = vsub.f32 %v13413_v8, %v10460_v20  ;;  %v13416_v16 = vld [vmem:[#allocation206_spill] sm:$0xff] }
 0x4ed   :  { %3599 = vperm.xlu0 %7865, %v10522_v4   ;;  %v10539_v4 = vpop.eup %8136 }
 0x4ee   :  { %3503 = vperm.xlu1 %7864, %v10524_v55   ;;  %13403 = vst [vmem:[#allocation214_spill] sm:$0xff] %v10539_v4  ;;  %v10547_v55 = vpop.eup %8138  ;;  %v3075_v42 = vmul.f32 1.442695, %v2943_v22 }
 0x4ef   :  { %13406 = vst [vmem:[#allocation235_spill] sm:$0xff] %v10547_v55  ;;  %v10549_v28 = vpop.eup %8140 }
 0x4f0   :  { %13407 = vst [vmem:[#allocation144_spill] sm:$0xff] %v10549_v28 }
 0x4f1   :  { %3512 = vperm.xlu0 %7865, %v10537_v1   ;;  %v3227_v1 = vmul.f32 1.442695, %v3019_v46  ;;  %v13412_v46 = vld [vmem:[#allocation177_spill] sm:$0xff] }
 0x4f2   :  { %3458 = vperm.xlu1 %7864, %v10539_v4   ;;  %v10557_v4 = vpop.eup %8142  ;;  %v2976_v60 = vsub.f32 %v13412_v46, %v10468_v5  ;;  %v13417_v46 = vld [vmem:[#allocation173_spill] sm:$0xff] }
 0x4f3   :  { %13410 = vst [vmem:[#allocation141_spill] sm:$0xff] %v10557_v4  ;;  %v10559_v50 = vpop.eup %8144  ;;  %8154 = vpow2.f32 %v3227_v1  ;;  %v2974_v8 = vsub.f32 %v13417_v46, %v10468_v5 }
 0x4f4   :  { %13411 = vst [vmem:[#allocation158_spill] sm:$0xff] %v10559_v50  ;;  %8156 = vpow2.f32 %v3105_v52  ;;  %v3141_v1 = vmul.f32 1.442695, %v2976_v60  ;;  %v3006_v52 = vsub.f32 %v13416_v16, %v10495_v3 }
 0x4f5   :  { %3602 = vperm.xlu0 %7865, %v10547_v55   ;;  %v12958_v55 = vsub.s32 6, %v9024_v54  ;;  %8158 = vpow2.f32 %v3079_v23  ;;  %v3137_v60 = vmul.f32 1.442695, %v2974_v8 }
 0x4f6   :  { %3506 = vperm.xlu1 %7864, %v10549_v28   ;;  %v10568_v28 = vpop.eup %8146  ;;  %8160 = vpow2.f32 %v3163_v38  ;;  %v13420_v38 = vld [vmem:[#allocation203_spill] sm:$0xff] }
 0x4f7   :  { %13414 = vst [vmem:[#allocation182_spill] sm:$0xff] %v10568_v28  ;;  %v10570_v26 = vpop.eup %8148  ;;  %8162 = vpow2.f32 %v3141_v1  ;;  %v3003_v22 = vsub.f32 %v13420_v38, %v10495_v3  ;;  %v13423_v1 = vld [vmem:[#allocation145_spill] sm:$0xff] }
 0x4f8   :  { %13415 = vst [vmem:[#allocation155_spill] sm:$0xff] %v10570_v26  ;;  %8164 = vpow2.f32 %v3075_v42  ;;  %v13424_v42 = vld [vmem:[#allocation143_spill] sm:$0xff] }
 0x4f9   :  { %3647 = vperm.xlu0 %7865, %v10557_v4   ;;  %v10576_v4 = vrot.slane %v10456_v40, %v12958_v55  ;;  %v3201_v55 = vmul.f32 1.442695, %v3006_v52  ;;  %v2946_v52 = vsub.f32 %v13423_v1, %v10460_v20  ;;  %v2944_v8 = vsub.f32 %v13424_v42, %v10460_v20 }
 0x4fa   :  { %3548 = vperm.xlu1 %7864, %v10559_v50   ;;  %v10583_v50 = vpop.eup %8150 }
 0x4fb   :  { %13418 = vst [vmem:[#allocation162_spill] sm:$0xff] %v10583_v50  ;;  %v3035_v23 = vsub.f32 %v13362_v7, %v10576_v4  ;;  %8166 = vpow2.f32 %v3201_v55  ;;  %v3195_v7 = vmul.f32 1.442695, %v3003_v22  ;;  %v13427_v55 = vld [vmem:[#allocation179_spill] sm:$0xff]  ;;  %v3077_v1 = vmul.f32 1.442695, %v2944_v8 }
 0x4fc   :  { %8168 = vpow2.f32 %v3137_v60  ;;  %v13428_v60 = vld [vmem:[#allocation175_spill] sm:$0xff]  ;;  %v13432_v8 = vld [vmem:[#allocation205_spill] sm:$0xff] }
 0x4fd   :  { %3515 = vperm.xlu0 %7865, %v10568_v28   ;;  %v10585_v28 = vpop.eup %8152  ;;  %v2975_v22 = vsub.f32 %v13428_v60, %v10468_v5  ;;  %v3005_v60 = vsub.f32 %v13432_v8, %v10495_v3 }
 0x4fe   :  { %3551 = vperm.xlu1 %7864, %v10570_v26   ;;  %13419 = vst [vmem:[#allocation140_spill] sm:$0xff] %v10585_v28  ;;  %v10593_v16 = vpop.eup %8154 }
 0x4ff   :  { %13421 = vst [vmem:[#allocation184_spill] sm:$0xff] %v10593_v16  ;;  %v10595_v46 = vpop.eup %8156 }
 0x500   :  { %13422 = vst [vmem:[#allocation160_spill] sm:$0xff] %v10595_v46  ;;  %v10603_v26 = vpop.eup %8158 }
 0x501   :  { %3605 = vperm.xlu0 %7865, %v10583_v50   ;;  %v3259_v50 = vmul.f32 1.442695, %v3035_v23  ;;  %13425 = vst [vmem:[#allocation204_spill] sm:$0xff] %v10603_v26  ;;  %v10605_v38 = vpop.eup %8160  ;;  %v2977_v23 = vsub.f32 %v13427_v55, %v10468_v5 }
 0x502   :  { %3461 = vperm.xlu1 %7864, %v10585_v28   ;;  %13426 = vst [vmem:[#allocation174_spill] sm:$0xff] %v10605_v38 }
 0x503   :  { %8170 = vpow2.f32 %v3259_v50  ;;  %v3143_v50 = vmul.f32 1.442695, %v2977_v23  ;;  %v3037_v23 = vsub.f32 %v13360_v63, %v10576_v4 }
 0x504   :  { %8172 = vpow2.f32 %v3195_v7  ;;  %v3139_v7 = vmul.f32 1.442695, %v2975_v22  ;;  %v13435_v22 = vld [vmem:[#allocation223_spill] sm:$0xff] }
 0x505   :  { %3692 = vperm.xlu0 %7865, %v10593_v16   ;;  %v3081_v16 = vmul.f32 1.442695, %v2946_v52  ;;  %v13431_v52 = vld [vmem:[#allocation208_spill] sm:$0xff] }
 0x506   :  { %3509 = vperm.xlu1 %7864, %v10595_v46   ;;  %v10613_v46 = vpop.eup %8162  ;;  %v3007_v55 = vsub.f32 %v13431_v52, %v10495_v3  ;;  %v3020_v52 = vsub.f32 %v13435_v22, %v10530_v49 }
 0x507   :  { %13429 = vst [vmem:[#allocation159_spill] sm:$0xff] %v10613_v46  ;;  %v10615_v42 = vpop.eup %8164  ;;  %8174 = vpow2.f32 %v3081_v16 }
 0x508   :  { %13430 = vst [vmem:[#allocation171_spill] sm:$0xff] %v10615_v42  ;;  %8176 = vpow2.f32 %v3077_v1  ;;  %v3203_v16 = vmul.f32 1.442695, %v3007_v55  ;;  %v3199_v1 = vmul.f32 1.442695, %v3005_v60  ;;  %v13438_v55 = vld [vmem:[#allocation164_spill] sm:$0xff] }
 0x509   :  { %3470 = vperm.xlu0 %7865, %v10603_v26   ;;  %v12968_v26 = vsub.s32 7, %v9024_v54  ;;  %8178 = vpow2.f32 %v3143_v50  ;;  %v3229_v63 = vmul.f32 1.442695, %v3020_v52 }
 0x50a   :  { %3596 = vperm.xlu1 %7864, %v10605_v38   ;;  %v10624_v38 = vpop.eup %8166  ;;  %8180 = vpow2.f32 %v3139_v7  ;;  %v2961_v7 = vsub.f32 %v13438_v55, %v10464_v29 }
 0x50b   :  { %13433 = vst [vmem:[#allocation186_spill] sm:$0xff] %v10624_v38  ;;  %v10626_v28 = vpop.eup %8168  ;;  %8182 = vpow2.f32 %v3203_v16  ;;  %v13441_v16 = vld [vmem:[#allocation166_spill] sm:$0xff] }
 0x50c   :  { %13434 = vst [vmem:[#allocation142_spill] sm:$0xff] %v10626_v28  ;;  %8184 = vpow2.f32 %v3199_v1  ;;  %v13442_v1 = vld [vmem:[#allocation195_spill] sm:$0xff] }
 0x50d   :  { %3563 = vperm.xlu0 %7865, %v10613_v46   ;;  %v10632_v46 = vrot.slane %v10456_v40, %v12968_v26  ;;  %v10639_v8 = vpop.eup %8170  ;;  %v3263_v40 = vmul.f32 1.442695, %v3037_v23  ;;  %v2963_v23 = vsub.f32 %v13441_v16, %v10464_v29  ;;  %v2991_v52 = vsub.f32 %v13442_v1, %v10473_v32 }
 0x50e   :  { %3464 = vperm.xlu1 %7864, %v10615_v42   ;;  %13436 = vst [vmem:[#allocation216_spill] sm:$0xff] %v10639_v8 }
 0x50f   :  { %v3052_v50 = vsub.f32 %v10074_v44, %v10632_v46  ;;  %8186 = vpow2.f32 %v3263_v40  ;;  %v3111_v44 = vmul.f32 1.442695, %v2961_v7  ;;  %v13445_v40 = vld [vmem:[#allocation187_spill] sm:$0xff]  ;;  %v3171_v16 = vmul.f32 1.442695, %v2991_v52 }
 0x510   :  { %8188 = vpow2.f32 %v3229_v63  ;;  %v13446_v63 = vld [vmem:[#allocation225_spill] sm:$0xff] }
 0x511   :  { %3653 = vperm.xlu0 %7865, %v10624_v38   ;;  %v10641_v38 = vpop.eup %8172  ;;  %v3293_v26 = vmul.f32 1.442695, %v3052_v50  ;;  %v2993_v50 = vsub.f32 %v13445_v40, %v10473_v32  ;;  %v3021_v7 = vsub.f32 %v13446_v63, %v10530_v49 }
 0x512   :  { %3557 = vperm.xlu1 %7864, %v10626_v28   ;;  %13437 = vst [vmem:[#allocation157_spill] sm:$0xff] %v10641_v38  ;;  %v10649_v60 = vpop.eup %8174 }
 0x513   :  { %13439 = vst [vmem:[#allocation148_spill] sm:$0xff] %v10649_v60  ;;  %v10651_v22 = vpop.eup %8176  ;;  %8190 = vpow2.f32 %v3293_v26  ;;  %v3175_v54 = vmul.f32 1.442695, %v2993_v50  ;;  %v13449_v26 = vld [vmem:[#allocation217_spill] sm:$0xff]  ;;  %v3231_v40 = vmul.f32 1.442695, %v3021_v7 }
 0x514   :  { %13440 = vst [vmem:[#allocation193_spill] sm:$0xff] %v10651_v22  ;;  %8192 = vpow2.f32 %v3111_v44  ;;  %v3036_v44 = vsub.f32 %v13359_v12, %v10576_v4 }
 0x515   :  { %3740 = vperm.xlu0 %7865, %v10639_v8   ;;  %v10659_v8 = vpop.eup %8178 }
 0x516   :  { %3644 = vperm.xlu1 %7864, %v10641_v38   ;;  %13443 = vst [vmem:[#allocation177_spill] sm:$0xff] %v10659_v8  ;;  %v10661_v55 = vpop.eup %8180  ;;  %v3115_v38 = vmul.f32 1.442695, %v2963_v23  ;;  %v3023_v23 = vsub.f32 %v13449_v26, %v10530_v49  ;;  %v3261_v50 = vmul.f32 1.442695, %v3036_v44 }
 0x517   :  { %13444 = vst [vmem:[#allocation146_spill] sm:$0xff] %v10661_v55  ;;  %v10669_v28 = vpop.eup %8182 }
 0x518   :  { %13447 = vst [vmem:[#allocation206_spill] sm:$0xff] %v10669_v28  ;;  %v10671_v1 = vpop.eup %8184  ;;  %8194 = vpow2.f32 %v3115_v38  ;;  %v3053_v38 = vsub.f32 %v10101_v14, %v10632_v46 }
 0x519   :  { %3473 = vperm.xlu0 %7865, %v10649_v60   ;;  %13448 = vst [vmem:[#allocation173_spill] sm:$0xff] %v10671_v1  ;;  %8196 = vpow2.f32 %v3171_v16  ;;  %v10679_v52 = vpop.eup %8186  ;;  %v13452_v16 = vld [vmem:[#allocation161_spill] sm:$0xff] }
 0x51a   :  { %3467 = vperm.xlu1 %7864, %v10651_v22   ;;  %13450 = vst [vmem:[#allocation203_spill] sm:$0xff] %v10679_v52  ;;  %v10681_v63 = vpop.eup %8188  ;;  %8198 = vpow2.f32 %v3175_v54  ;;  %v2962_v7 = vsub.f32 %v13452_v16, %v10464_v29  ;;  %v13455_v54 = vld [vmem:[#allocation163_spill] sm:$0xff] }
 0x51b   :  { %13451 = vst [vmem:[#allocation145_spill] sm:$0xff] %v10681_v63  ;;  %8200 = vpow2.f32 %v3231_v40  ;;  %v13456_v40 = vld [vmem:[#allocation197_spill] sm:$0xff] }
 0x51c   :  { %v3113_v14 = vmul.f32 1.442695, %v2962_v7  ;;  %v2992_v44 = vsub.f32 %v13456_v40, %v10473_v32 }
 0x51d   :  { %3566 = vperm.xlu0 %7865, %v10659_v8   ;;  %v10689_v26 = vpop.eup %8190 }
 0x51e   :  { %3560 = vperm.xlu1 %7864, %v10661_v55   ;;  %13453 = vst [vmem:[#allocation143_spill] sm:$0xff] %v10689_v26  ;;  %v10691_v12 = vpop.eup %8192 }
 0x51f   :  { %13454 = vst [vmem:[#allocation179_spill] sm:$0xff] %v10691_v12 }
 0x521   :  { %3656 = vperm.xlu0 %7865, %v10669_v28   ;;  %v3235_v28 = vmul.f32 1.442695, %v3023_v23  ;;  %v2964_v23 = vsub.f32 %v13455_v54, %v10464_v29  ;;  %v3173_v54 = vmul.f32 1.442695, %v2992_v44 }
 0x522   :  { %3650 = vperm.xlu1 %7864, %v10671_v1  }
 0x523   :  { %8202 = vpow2.f32 %v3235_v28  ;;  %v13459_v28 = vld [vmem:[#allocation190_spill] sm:$0xff] }
 0x524   :  { %8204 = vpow2.f32 %v3261_v50  ;;  %v13460_v50 = vld [vmem:[#allocation227_spill] sm:$0xff] }
 0x525   :  { %3746 = vperm.xlu0 %7865, %v10679_v52   ;;  %v10699_v52 = vpop.eup %8194  ;;  %v3022_v7 = vsub.f32 %v13460_v50, %v10530_v49 }
 0x526   :  { %3695 = vperm.xlu1 %7864, %v10681_v63   ;;  %v3295_v63 = vmul.f32 1.442695, %v3053_v38  ;;  %13457 = vst [vmem:[#allocation175_spill] sm:$0xff] %v10699_v52  ;;  %v10701_v16 = vpop.eup %8196  ;;  %v2994_v38 = vsub.f32 %v13459_v28, %v10473_v32 }
 0x527   :  { %13458 = vst [vmem:[#allocation208_spill] sm:$0xff] %v10701_v16  ;;  %v10709_v1 = vpop.eup %8198 }
 0x528   :  { %8206 = vpow2.f32 %v3295_v63  ;;  %13461 = vst [vmem:[#allocation205_spill] sm:$0xff] %v10709_v1  ;;  %v10711_v40 = vpop.eup %8200  ;;  %v3024_v63 = vsub.f32 %v13353_v53, %v10530_v49 }
 0x529   :  { %3791 = vperm.xlu0 %7865, %v10689_v26   ;;  %v3117_v26 = vmul.f32 1.442695, %v2964_v23  ;;  %8208 = vpow2.f32 %v3113_v14  ;;  %13462 = vst [vmem:[#allocation223_spill] sm:$0xff] %v10711_v40  ;;  %v3233_v23 = vmul.f32 1.442695, %v3022_v7  ;;  %v3051_v14 = vsub.f32 %v10283_v59, %v10632_v46 }
 0x52a   :  { %3518 = vperm.xlu1 %7864, %v10691_v12   ;;  %v3237_v50 = vmul.f32 1.442695, %v3024_v63 }
 0x52b   :  { %8210 = vpow2.f32 %v3117_v26  ;;  %v3054_v26 = vsub.f32 %v10126_v47, %v10632_v46  ;;  %v3291_v53 = vmul.f32 1.442695, %v3051_v14 }
 0x52c   :  { %8212 = vpow2.f32 %v3173_v54 }
 0x52d   :  { %3524 = vperm.xlu0 %7865, %v10699_v52   ;;  %v10719_v44 = vpop.eup %8202 }
 0x52e   :  { %3608 = vperm.xlu1 %7864, %v10701_v16   ;;  %v3177_v16 = vmul.f32 1.442695, %v2994_v38  ;;  %13463 = vst [vmem:[#allocation164_spill] sm:$0xff] %v10719_v44  ;;  %v10721_v28 = vpop.eup %8204  ;;  %v13465_v38 = vld [vmem:[#allocation150_spill] sm:$0xff] }
 0x52f   :  { %13464 = vst [vmem:[#allocation166_spill] sm:$0xff] %v10721_v28  ;;  %v2947_v54 = vsub.f32 %v13465_v38, %v10460_v20 }
 0x530   :  { %8214 = vpow2.f32 %v3177_v16  ;;  %v13468_v16 = vld [vmem:[#allocation168_spill] sm:$0xff] }
 0x531   :  { %3614 = vperm.xlu0 %7865, %v10709_v1   ;;  %8216 = vpow2.f32 %v3233_v23  ;;  %v2965_v63 = vsub.f32 %v13468_v16, %v10464_v29  ;;  %v3083_v47 = vmul.f32 1.442695, %v2947_v54  ;;  %v13469_v23 = vld [vmem:[#allocation176_spill] sm:$0xff] }
 0x532   :  { %3698 = vperm.xlu1 %7864, %v10711_v40   ;;  %v10729_v7 = vpop.eup %8206  ;;  %8218 = vpow2.f32 %v3237_v50  ;;  %v2978_v14 = vsub.f32 %v13469_v23, %v10468_v5  ;;  %v13472_v50 = vld [vmem:[#allocation192_spill] sm:$0xff] }
 0x533   :  { %13466 = vst [vmem:[#allocation195_spill] sm:$0xff] %v10729_v7  ;;  %v10731_v59 = vpop.eup %8208  ;;  %8220 = vpow2.f32 %v3291_v53  ;;  %v13473_v53 = vld [vmem:[#allocation207_spill] sm:$0xff] }
 0x534   :  { %13467 = vst [vmem:[#allocation187_spill] sm:$0xff] %v10731_v59  ;;  %v3145_v16 = vmul.f32 1.442695, %v2978_v14  ;;  %v3008_v54 = vsub.f32 %v13473_v53, %v10495_v3 }
 0x535   :  { %3704 = vperm.xlu0 %7865, %v10719_v44   ;;  %v10739_v44 = vpop.eup %8210 }
 0x536   :  { %3743 = vperm.xlu1 %7864, %v10721_v28   ;;  %v3297_v28 = vmul.f32 1.442695, %v3054_v26  ;;  %13470 = vst [vmem:[#allocation225_spill] sm:$0xff] %v10739_v44  ;;  %v10741_v38 = vpop.eup %8212  ;;  %v2995_v26 = vsub.f32 %v13472_v50, %v10473_v32  ;;  %v3205_v50 = vmul.f32 1.442695, %v3008_v54 }
 0x537   :  { %13471 = vst [vmem:[#allocation217_spill] sm:$0xff] %v10741_v38 }
 0x538   :  { %8222 = vpow2.f32 %v3297_v28  ;;  %v13476_v28 = vld [vmem:[#allocation222_spill] sm:$0xff] }
 0x539   :  { %3794 = vperm.xlu0 %7865, %v10729_v7   ;;  %v3119_v7 = vmul.f32 1.442695, %v2965_v63  ;;  %8224 = vpow2.f32 %v3083_v47  ;;  %v3025_v63 = vsub.f32 %v13476_v28, %v10530_v49  ;;  %v3038_v47 = vsub.f32 %v13365_v21, %v10576_v4 }
 0x53a   :  { %3521 = vperm.xlu1 %7864, %v10731_v59   ;;  %v10749_v40 = vpop.eup %8214 }
 0x53b   :  { %13474 = vst [vmem:[#allocation161_spill] sm:$0xff] %v10749_v40  ;;  %v10751_v23 = vpop.eup %8216  ;;  %8226 = vpow2.f32 %v3119_v7  ;;  %v13479_v7 = vld [vmem:[#allocation257_spill] sm:$0xff]  ;;  %v3265_v28 = vmul.f32 1.442695, %v3038_v47 }
 0x53c   :  { %13475 = vst [vmem:[#allocation163_spill] sm:$0xff] %v10751_v23  ;;  %8228 = vpow2.f32 %v3145_v16  ;;  %v10759_v14 = vpop.eup %8218  ;;  %v13480_v16 = vld [vmem:[#allocation147_spill] sm:$0xff] }
 0x53d   :  { %3527 = vperm.xlu0 %7865, %v10739_v44   ;;  %13477 = vst [vmem:[#allocation197_spill] sm:$0xff] %v10759_v14  ;;  %v10761_v53 = vpop.eup %8220  ;;  %v2948_v54 = vsub.f32 %v13480_v16, %v10460_v20 }
 0x53e   :  { %3611 = vperm.xlu1 %7864, %v10741_v38   ;;  %v3179_v38 = vmul.f32 1.442695, %v2995_v26  ;;  %13478 = vst [vmem:[#allocation190_spill] sm:$0xff] %v10761_v53  ;;  %v3055_v26 = vsub.f32 %v13479_v7, %v10632_v46 }
 0x53f   :  { %v3085_v7 = vmul.f32 1.442695, %v2948_v54 }
 0x540   :  { %8230 = vpow2.f32 %v3179_v38  ;;  %v13483_v38 = vld [vmem:[#allocation165_spill] sm:$0xff] }
 0x541   :  { %3617 = vperm.xlu0 %7865, %v10749_v40   ;;  %8232 = vpow2.f32 %v3205_v50  ;;  %v13484_v50 = vld [vmem:[#allocation178_spill] sm:$0xff] }
 0x542   :  { %3701 = vperm.xlu1 %7864, %v10751_v23   ;;  %v3239_v23 = vmul.f32 1.442695, %v3025_v63  ;;  %v10769_v40 = vpop.eup %8222  ;;  %v2966_v63 = vsub.f32 %v13483_v38, %v10464_v29  ;;  %v2979_v47 = vsub.f32 %v13484_v50, %v10468_v5 }
 0x543   :  { %13481 = vst [vmem:[#allocation227_spill] sm:$0xff] %v10769_v40  ;;  %v10771_v21 = vpop.eup %8224 }
 0x544   :  { %13482 = vst [vmem:[#allocation150_spill] sm:$0xff] %v10771_v21  ;;  %8234 = vpow2.f32 %v3239_v23  ;;  %v13487_v23 = vld [vmem:[#allocation194_spill] sm:$0xff]  ;;  %v3147_v38 = vmul.f32 1.442695, %v2979_v47 }
 0x545   :  { %3707 = vperm.xlu0 %7865, %v10759_v14   ;;  %8236 = vpow2.f32 %v3265_v28  ;;  %v10779_v14 = vpop.eup %8226  ;;  %v13488_v28 = vld [vmem:[#allocation209_spill] sm:$0xff] }
 0x546   :  { %3788 = vperm.xlu1 %7864, %v10761_v53   ;;  %v3299_v53 = vmul.f32 1.442695, %v3055_v26  ;;  %13485 = vst [vmem:[#allocation168_spill] sm:$0xff] %v10779_v14  ;;  %v10781_v16 = vpop.eup %8228  ;;  %v2996_v26 = vsub.f32 %v13487_v23, %v10473_v32  ;;  %v3009_v54 = vsub.f32 %v13488_v28, %v10495_v3 }
 0x547   :  { %13486 = vst [vmem:[#allocation176_spill] sm:$0xff] %v10781_v16 }
 0x548   :  { %8238 = vpow2.f32 %v3299_v53  ;;  %v13491_v53 = vld [vmem:[#allocation224_spill] sm:$0xff]  ;;  %v3207_v23 = vmul.f32 1.442695, %v3009_v54 }
 0x549   :  { %3797 = vperm.xlu0 %7865, %v10769_v40   ;;  %v3121_v40 = vmul.f32 1.442695, %v2966_v63  ;;  %8240 = vpow2.f32 %v3085_v7  ;;  %v3026_v63 = vsub.f32 %v13491_v53, %v10530_v49  ;;  %v3039_v7 = vsub.f32 %v13366_v31, %v10576_v4 }
 0x54a   :  { %3476 = vperm.xlu1 %7864, %v10771_v21   ;;  %v10789_v1 = vpop.eup %8230 }
 0x54b   :  { %13489 = vst [vmem:[#allocation192_spill] sm:$0xff] %v10789_v1  ;;  %v10791_v50 = vpop.eup %8232  ;;  %8242 = vpow2.f32 %v3121_v40  ;;  %v3056_v40 = vsub.f32 %v10208_v48, %v10632_v46 }
 0x54c   :  { %13490 = vst [vmem:[#allocation207_spill] sm:$0xff] %v10791_v50  ;;  %8244 = vpow2.f32 %v3147_v38  ;;  %v13494_v38 = vld [vmem:[#allocation152_spill] sm:$0xff] }
 0x54d   :  { %3530 = vperm.xlu0 %7865, %v10779_v14   ;;  %v2949_v54 = vsub.f32 %v13494_v38, %v10460_v20 }
 0x54e   :  { %3569 = vperm.xlu1 %7864, %v10781_v16   ;;  %v3181_v16 = vmul.f32 1.442695, %v2996_v26  ;;  %v10799_v47 = vpop.eup %8234  ;;  %v3267_v26 = vmul.f32 1.442695, %v3039_v7 }
 0x54f   :  { %13492 = vst [vmem:[#allocation222_spill] sm:$0xff] %v10799_v47  ;;  %v10801_v28 = vpop.eup %8236  ;;  %v3087_v48 = vmul.f32 1.442695, %v2949_v54 }
 0x550   :  { %13493 = vst [vmem:[#allocation257_spill] sm:$0xff] %v10801_v28  ;;  %8246 = vpow2.f32 %v3181_v16  ;;  %v13497_v16 = vld [vmem:[#allocation170_spill] sm:$0xff] }
 0x551   :  { %3620 = vperm.xlu0 %7865, %v10789_v1   ;;  %8248 = vpow2.f32 %v3207_v23  ;;  %v13498_v23 = vld [vmem:[#allocation181_spill] sm:$0xff] }
 0x552   :  { %3659 = vperm.xlu1 %7864, %v10791_v50   ;;  %v3241_v50 = vmul.f32 1.442695, %v3026_v63  ;;  %v10809_v53 = vpop.eup %8238  ;;  %v2967_v63 = vsub.f32 %v13497_v16, %v10464_v29  ;;  %v2980_v7 = vsub.f32 %v13498_v23, %v10468_v5 }
 0x553   :  { %13495 = vst [vmem:[#allocation147_spill] sm:$0xff] %v10809_v53  ;;  %v10811_v31 = vpop.eup %8240 }
 0x554   :  { %13496 = vst [vmem:[#allocation165_spill] sm:$0xff] %v10811_v31  ;;  %8250 = vpow2.f32 %v3241_v50  ;;  %v13501_v50 = vld [vmem:[#allocation196_spill] sm:$0xff]  ;;  %v3149_v16 = vmul.f32 1.442695, %v2980_v7 }
 0x555   :  { %3710 = vperm.xlu0 %7865, %v10799_v47   ;;  %8252 = vpow2.f32 %v3267_v26  ;;  %v10819_v47 = vpop.eup %8242  ;;  %v13502_v26 = vld [vmem:[#allocation211_spill] sm:$0xff] }
 0x556   :  { %3749 = vperm.xlu1 %7864, %v10801_v28   ;;  %v3301_v28 = vmul.f32 1.442695, %v3056_v40  ;;  %13499 = vst [vmem:[#allocation178_spill] sm:$0xff] %v10819_v47  ;;  %v10821_v38 = vpop.eup %8244  ;;  %v2997_v40 = vsub.f32 %v13501_v50, %v10473_v32  ;;  %v3010_v54 = vsub.f32 %v13502_v26, %v10495_v3 }
 0x557   :  { %13500 = vst [vmem:[#allocation194_spill] sm:$0xff] %v10821_v38 }
 0x558   :  { %8254 = vpow2.f32 %v3301_v28  ;;  %v13505_v28 = vld [vmem:[#allocation226_spill] sm:$0xff]  ;;  %v3209_v50 = vmul.f32 1.442695, %v3010_v54 }
 0x559   :  { %3800 = vperm.xlu0 %7865, %v10809_v53   ;;  %v3123_v53 = vmul.f32 1.442695, %v2967_v63  ;;  %8256 = vpow2.f32 %v3087_v48  ;;  %v3027_v63 = vsub.f32 %v13505_v28, %v10530_v49  ;;  %v3040_v48 = vsub.f32 %v9990_v11, %v10576_v4  ;;  %v13508_v11 = vld [vmem:[#allocation149_spill] sm:$0xff] }
 0x55a   :  { %3479 = vperm.xlu1 %7864, %v10811_v31   ;;  %v10829_v1 = vpop.eup %8246  ;;  %v2950_v54 = vsub.f32 %v13508_v11, %v10460_v20 }
 0x55b   :  { %13503 = vst [vmem:[#allocation209_spill] sm:$0xff] %v10829_v1  ;;  %v10831_v23 = vpop.eup %8248  ;;  %8258 = vpow2.f32 %v3123_v53  ;;  %v3243_v53 = vmul.f32 1.442695, %v3027_v63 }
 0x55c   :  { %13504 = vst [vmem:[#allocation224_spill] sm:$0xff] %v10831_v23  ;;  %8260 = vpow2.f32 %v3149_v16  ;;  %v3269_v16 = vmul.f32 1.442695, %v3040_v48  ;;  %v13512_v48 = vld [vmem:[#allocation183_spill] sm:$0xff] }
 0x55d   :  { %3533 = vperm.xlu0 %7865, %v10819_v47   ;;  %v3183_v47 = vmul.f32 1.442695, %v2997_v40  ;;  %v3057_v40 = vsub.f32 %v10251_v62, %v10632_v46  ;;  %v13511_v62 = vld [vmem:[#allocation167_spill] sm:$0xff]  ;;  %v2981_v11 = vsub.f32 %v13512_v48, %v10468_v5 }
 0x55e   :  { %3572 = vperm.xlu1 %7864, %v10821_v38   ;;  %v10839_v7 = vpop.eup %8250  ;;  %v2968_v63 = vsub.f32 %v13511_v62, %v10464_v29  ;;  %v13516_v62 = vld [vmem:[#allocation213_spill] sm:$0xff] }
 0x55f   :  { %13506 = vst [vmem:[#allocation152_spill] sm:$0xff] %v10839_v7  ;;  %v10843_v44 = vpop.eup %8252  ;;  %8262 = vpow2.f32 %v3183_v47  ;;  %v3303_v47 = vmul.f32 1.442695, %v3057_v40  ;;  %v13515_v40 = vld [vmem:[#allocation198_spill] sm:$0xff]  ;;  %v3011_v48 = vsub.f32 %v13516_v62, %v10495_v3 }
 0x560   :  { %13507 = vst [vmem:[#allocation170_spill] sm:$0xff] %v10843_v44  ;;  %8264 = vpow2.f32 %v3209_v50  ;;  %v3089_v50 = vmul.f32 1.442695, %v2950_v54  ;;  %v3151_v54 = vmul.f32 1.442695, %v2981_v11 }
 0x561   :  { %3623 = vperm.xlu0 %7865, %v10829_v1   ;;  %8266 = vpow2.f32 %v3243_v53  ;;  %v3125_v53 = vmul.f32 1.442695, %v2968_v63  ;;  %v13519_v63 = vld [vmem:[#allocation229_spill] sm:$0xff]  ;;  %v3211_v11 = vmul.f32 1.442695, %v3011_v48 }
 0x562   :  { %3662 = vperm.xlu1 %7864, %v10831_v23   ;;  %v10853_v28 = vpop.eup %8254  ;;  %8268 = vpow2.f32 %v3269_v16  ;;  %v2998_v16 = vsub.f32 %v13515_v40, %v10473_v32  ;;  %v3041_v40 = vsub.f32 %v10026_v43, %v10576_v4  ;;  %v13522_v43 = vld [vmem:[#allocation154_spill] sm:$0xff] }
 0x563   :  { %13509 = vst [vmem:[#allocation181_spill] sm:$0xff] %v10853_v28  ;;  %v10857_v23 = vpop.eup %8256  ;;  %8270 = vpow2.f32 %v3303_v47  ;;  %v2951_v48 = vsub.f32 %v13522_v43, %v10460_v20 }
 0x564   :  { %v10841_v26 = vpop.permute.xlu0 %3455  ;;  %13510 = vst [vmem:[#allocation196_spill] sm:$0xff] %v10857_v23  ;;  %8272 = vpow2.f32 %v3089_v50  ;;  %v3185_v47 = vmul.f32 1.442695, %v2998_v16  ;;  %v3028_v50 = vsub.f32 %v13519_v63, %v10530_v49  ;;  %v3058_v16 = vsub.f32 %v10292_v51, %v10632_v46  ;;  %v13525_v51 = vld [vmem:[#allocation169_spill] sm:$0xff] }
 0x565   :  { %v10845_v59 = vpop.permute.xlu1 %3452  ;;  %3713 = vperm.xlu0 %7865, %v10839_v7   ;;  %v10867_v7 = vpop.eup %8258  ;;  %8274 = vpow2.f32 %v3125_v53 }
 0x566   :  { %3752 = vperm.xlu1 %7864, %v10843_v44   ;;  %13513 = vst [vmem:[#allocation211_spill] sm:$0xff] %v10867_v7  ;;  %v10871_v8 = vpop.eup %8260  ;;  %8276 = vpow2.f32 %v3151_v54  ;;  %v3245_v53 = vmul.f32 1.442695, %v3028_v50  ;;  %v3271_v54 = vmul.f32 1.442695, %v3041_v40  ;;  %v2969_v50 = vsub.f32 %v13525_v51, %v10464_v29  ;;  %v13526_v40 = vld [vmem:[#allocation185_spill] sm:$0xff] }
 0x567   :  { %13514 = vst [vmem:[#allocation226_spill] sm:$0xff] %v10871_v8  ;;  %8278 = vpow2.f32 %v3185_v47  ;;  %v3305_v47 = vmul.f32 1.442695, %v3058_v16  ;;  %v2982_v43 = vsub.f32 %v13526_v40, %v10468_v5  ;;  %v13529_v16 = vld [vmem:[#allocation199_spill] sm:$0xff] }
 0x568   :  { %v10855_v1 = vpop.permute.xlu0 %3554  ;;  %8280 = vpow2.f32 %v3211_v11  ;;  %v3091_v11 = vmul.f32 1.442695, %v2951_v48  ;;  %v13530_v51 = vld [vmem:[#allocation215_spill] sm:$0xff] }
 0x569   :  { %v10859_v38 = vpop.permute.xlu1 %3500  ;;  %3803 = vperm.xlu0 %7865, %v10853_v28   ;;  %v10881_v28 = vpop.eup %8262  ;;  %8282 = vpow2.f32 %v3245_v53  ;;  %v3127_v53 = vmul.f32 1.442695, %v2969_v50  ;;  %v3153_v48 = vmul.f32 1.442695, %v2982_v43  ;;  %v3012_v40 = vsub.f32 %v13530_v51, %v10495_v3  ;;  %v13533_v50 = vld [vmem:[#allocation228_spill] sm:$0xff] }
 0x56a   :  { %3482 = vperm.xlu1 %7864, %v10857_v23   ;;  %13517 = vst [vmem:[#allocation149_spill] sm:$0xff] %v10881_v28  ;;  %v10885_v31 = vpop.eup %8264  ;;  %8284 = vpow2.f32 %v3271_v54  ;;  %v2999_v54 = vsub.f32 %v13529_v16, %v10473_v32  ;;  %v3042_v16 = vsub.f32 %v10066_v18, %v10576_v4  ;;  %v13537_v18 = vld [vmem:[#allocation151_spill] sm:$0xff] }
 0x56b   :  { %13518 = vst [vmem:[#allocation167_spill] sm:$0xff] %v10885_v31  ;;  %v10895_v62 = vpop.eup %8266  ;;  %8286 = vpow2.f32 %v3305_v47  ;;  %v3213_v43 = vmul.f32 1.442695, %v3012_v40  ;;  %v2952_v40 = vsub.f32 %v13537_v18, %v10460_v20 }
 0x56c   :  { %v10869_v44 = vpop.permute.xlu0 %3599  ;;  %13520 = vst [vmem:[#allocation183_spill] sm:$0xff] %v10895_v62  ;;  %8288 = vpow2.f32 %v3091_v11  ;;  %v3187_v47 = vmul.f32 1.442695, %v2999_v54  ;;  %v3029_v11 = vsub.f32 %v13533_v50, %v10530_v49  ;;  %v3059_v54 = vsub.f32 %v10321_v10, %v10632_v46  ;;  %v13540_v10 = vld [vmem:[#allocation172_spill] sm:$0xff] }
 0x56d   :  { %v10873_v55 = vpop.permute.xlu1 %3503  ;;  %3536 = vperm.xlu0 %7865, %v10867_v7   ;;  %v10899_v7 = vpop.eup %8268  ;;  %8290 = vpow2.f32 %v3127_v53 }
 0x56e   :  { %3575 = vperm.xlu1 %7864, %v10871_v8   ;;  %13521 = vst [vmem:[#allocation198_spill] sm:$0xff] %v10899_v7  ;;  %v10909_v63 = vpop.eup %8270  ;;  %8292 = vpow2.f32 %v3153_v48  ;;  %v3247_v53 = vmul.f32 1.442695, %v3029_v11  ;;  %v3273_v48 = vmul.f32 1.442695, %v3042_v16  ;;  %v2970_v11 = vsub.f32 %v13540_v10, %v10464_v29  ;;  %v13541_v16 = vld [vmem:[#allocation188_spill] sm:$0xff] }
 0x56f   :  { %13523 = vst [vmem:[#allocation213_spill] sm:$0xff] %v10909_v63  ;;  %8294 = vpow2.f32 %v3187_v47  ;;  %v3307_v47 = vmul.f32 1.442695, %v3059_v54  ;;  %v2983_v18 = vsub.f32 %v13541_v16, %v10468_v5  ;;  %v13545_v29 = vld [vmem:[#allocation200_spill] sm:$0xff] }
 0x570   :  { %v10883_v23 = vpop.permute.xlu0 %3512  ;;  %8296 = vpow2.f32 %v3213_v43  ;;  %v3093_v43 = vmul.f32 1.442695, %v2952_v40  ;;  %v3000_v54 = vsub.f32 %v13545_v29, %v10473_v32  ;;  %v13546_v40 = vld [vmem:[#allocation218_spill] sm:$0xff]  ;;  %v3043_v29 = vsub.f32 %v10109_v0, %v10576_v4  ;;  %v13554_v0 = vld [vmem:[#allocation156_spill] sm:$0xff] }
 0x571   :  { %v10887_v60 = vpop.permute.xlu1 %3458  ;;  %3626 = vperm.xlu0 %7865, %v10881_v28   ;;  %v10913_v28 = vpop.eup %8272  ;;  %8298 = vpow2.f32 %v3247_v53  ;;  %v3129_v53 = vmul.f32 1.442695, %v2970_v11  ;;  %v3013_v10 = vsub.f32 %v13546_v40, %v10495_v3  ;;  %v13550_v11 = vld [vmem:[#allocation231_spill] sm:$0xff] }
 0x572   :  { %3665 = vperm.xlu1 %7864, %v10885_v31   ;;  %13524 = vst [vmem:[#allocation229_spill] sm:$0xff] %v10913_v28  ;;  %8300 = vpow2.f32 %v3273_v48  ;;  %v3155_v48 = vmul.f32 1.442695, %v2983_v18 }
 0x573   :  { %8302 = vpow2.f32 %v3307_v47  ;;  %v3189_v47 = vmul.f32 1.442695, %v3000_v54  ;;  %v3215_v18 = vmul.f32 1.442695, %v3013_v10  ;;  %v3060_v54 = vsub.f32 %v10323_v19, %v10632_v46  ;;  %v13558_v19 = vld [vmem:[#allocation202_spill] sm:$0xff] }
 0x574   :  { %v10897_v8 = vpop.permute.xlu0 %3602  ;;  %8304 = vpow2.f32 %v3093_v43  ;;  %v3030_v43 = vsub.f32 %v13550_v11, %v10530_v49  ;;  %v2953_v10 = vsub.f32 %v13554_v0, %v10460_v20 }
 0x575   :  { %v10901_v14 = vpop.permute.xlu1 %3506  ;;  %3716 = vperm.xlu0 %7865, %v10895_v62  }
 0x576   :  { %3755 = vperm.xlu1 %7864, %v10899_v7   ;;  %v10923_v7 = vpop.eup %8274  ;;  %8306 = vpow2.f32 %v3129_v53  ;;  %v3249_v53 = vmul.f32 1.442695, %v3030_v43  ;;  %v3001_v43 = vsub.f32 %v13558_v19, %v10473_v32  ;;  %v13564_v19 = vld [vmem:[#allocation210_spill] sm:$0xff] }
 0x577   :  { %13527 = vst [vmem:[#allocation154_spill] sm:$0xff] %v10923_v7  ;;  %v10927_v22 = vpop.eup %8276  ;;  %8308 = vpow2.f32 %v3155_v48  ;;  %v3275_v48 = vmul.f32 1.442695, %v3043_v29  ;;  %v13559_v29 = vld [vmem:[#allocation180_spill] sm:$0xff] }
 0x578   :  { %v10911_v31 = vpop.permute.xlu0 %3647  ;;  %13528 = vst [vmem:[#allocation169_spill] sm:$0xff] %v10927_v22  ;;  %v2984_v0 = vsub.f32 %v13559_v29, %v10468_v5  ;;  %v3014_v29 = vsub.f32 %v13564_v19, %v10495_v3 }
 0x579   :  { %v10915_v52 = vpop.permute.xlu1 %3548  ;;  %3806 = vperm.xlu0 %7865, %v10909_v63   ;;  %v10937_v63 = vpop.eup %8278  ;;  %8310 = vpow2.f32 %v3189_v47  ;;  %v3309_v47 = vmul.f32 1.442695, %v3060_v54  ;;  %v13563_v54 = vld [vmem:[#allocation233_spill] sm:$0xff] }
 0x57a   :  { %3485 = vperm.xlu1 %7864, %v10913_v28   ;;  %13531 = vst [vmem:[#allocation185_spill] sm:$0xff] %v10937_v63  ;;  %v10941_v42 = vpop.eup %8280  ;;  %8312 = vpow2.f32 %v3215_v18  ;;  %v3095_v18 = vmul.f32 1.442695, %v2953_v10  ;;  %v3157_v10 = vmul.f32 1.442695, %v2984_v0  ;;  %v3044_v0 = vsub.f32 %v13371_v17, %v10576_v4  ;;  %v13570_v17 = vld [vmem:[#allocation153_spill] sm:$0xff] }
 0x57b   :  { %13532 = vst [vmem:[#allocation199_spill] sm:$0xff] %v10941_v42  ;;  %v10951_v51 = vpop.eup %8282  ;;  %8314 = vpow2.f32 %v3249_v53  ;;  %v3191_v53 = vmul.f32 1.442695, %v3001_v43  ;;  %v3061_v43 = vsub.f32 %v10349_v45, %v10632_v46  ;;  %v3017_v45 = vsub.f32 %v13374_v35, %v10495_v3 }
 0x57c   :  { %v10925_v62 = vpop.permute.xlu0 %3515  ;;  %13534 = vst [vmem:[#allocation215_spill] sm:$0xff] %v10951_v51  ;;  %v3047_v35 = vsub.f32 %v10008_v27, %v10576_v4  ;;  %v3018_v27 = vsub.f32 %v13375_v61, %v10495_v3  ;;  %v3048_v61 = vsub.f32 %v10046_v24, %v10576_v4  ;;  %v3034_v24 = vsub.f32 %v13376_v39, %v10530_v49 }
 0x57d   :  { %v10929_v12 = vpop.permute.xlu1 %3551  ;;  %3539 = vperm.xlu0 %7865, %v10923_v7   ;;  %v3064_v39 = vsub.f32 %v10397_v33, %v10632_v46  ;;  %v3065_v33 = vsub.f32 %v10430_v37, %v10632_v46 }
 0x57e   :  { %3578 = vperm.xlu1 %7864, %v10927_v22   ;;  %v10955_v22 = vpop.eup %8284  ;;  %8316 = vpow2.f32 %v3275_v48  ;;  %v3031_v48 = vsub.f32 %v13563_v54, %v10530_v49 }
 0x57f   :  { %13536 = vst [vmem:[#allocation258_spill] sm:$0xff] %v10955_v22  ;;  %v10965_v50 = vpop.eup %8286  ;;  %8318 = vpow2.f32 %v3309_v47 }
 0x580   :  { %v10939_v28 = vpop.permute.xlu0 %3605  ;;  %13538 = vst [vmem:[#allocation151_spill] sm:$0xff] %v10965_v50  ;;  %v3251_v47 = vmul.f32 1.442695, %v3031_v48  ;;  %v3277_v48 = vmul.f32 1.442695, %v3044_v0 }
 0x581   :  { %v10943_v15 = vpop.permute.xlu1 %3461  ;;  %3629 = vperm.xlu0 %7865, %v10937_v63  }
 0x582   :  { %3668 = vperm.xlu1 %7864, %v10941_v42   ;;  %v10969_v42 = vpop.eup %8288  ;;  %8320 = vpow2.f32 %v3095_v18  ;;  %v3217_v18 = vmul.f32 1.442695, %v3014_v29 }
 0x583   :  { %13539 = vst [vmem:[#allocation259_spill] sm:$0xff] %v10969_v42 }
 0x584   :  { %v10953_v7 = vpop.permute.xlu0 %3692 }
 0x585   :  { %13535 = vst [vmem:[#allocation228_spill] sm:$0xff] %v10953_v7  ;;  %v10957_v21 = vpop.permute.xlu1 %3509  ;;  %3719 = vperm.xlu0 %7865, %v10951_v51   ;;  %v10979_v51 = vpop.eup %8290  ;;  %8322 = vpow2.f32 %v3191_v53  ;;  %v3311_v53 = vmul.f32 1.442695, %v3061_v43 }
 0x586   :  { %3758 = vperm.xlu1 %7864, %v10955_v22   ;;  %13542 = vst [vmem:[#allocation172_spill] sm:$0xff] %v10979_v51  ;;  %v10983_v13 = vpop.eup %8292  ;;  %8324 = vpow2.f32 %v3157_v10  ;;  %v2954_v10 = vsub.f32 %v13570_v17, %v10460_v20  ;;  %v13573_v20 = vld [vmem:[#allocation189_spill] sm:$0xff] }
 0x587   :  { %13544 = vst [vmem:[#allocation260_spill] sm:$0xff] %v10983_v13  ;;  %v10993_v16 = vpop.eup %8294  ;;  %8326 = vpow2.f32 %v3251_v47  ;;  %v3223_v47 = vmul.f32 1.442695, %v3017_v45 }
 0x588   :  { %v10967_v63 = vpop.permute.xlu0 %3470  ;;  %13547 = vst [vmem:[#allocation200_spill] sm:$0xff] %v10993_v16  ;;  %v3097_v43 = vmul.f32 1.442695, %v2954_v10 }
 0x589   :  { %v10971_v36 = vpop.permute.xlu1 %3596  ;;  %3809 = vperm.xlu0 %7865, %v10965_v50  }
 0x58a   :  { %3488 = vperm.xlu1 %7864, %v10969_v42   ;;  %v10997_v42 = vpop.eup %8296  ;;  %8328 = vpow2.f32 %v3217_v18  ;;  %v2985_v18 = vsub.f32 %v13573_v20, %v10468_v5 }
 0x58b   :  { %13549 = vst [vmem:[#allocation261_spill] sm:$0xff] %v10997_v42  ;;  %v11007_v40 = vpop.eup %8298  ;;  %8330 = vpow2.f32 %v3311_v53  ;;  %v3283_v53 = vmul.f32 1.442695, %v3047_v35 }
 0x58c   :  { %v10981_v22 = vpop.permute.xlu0 %3563  ;;  %13551 = vst [vmem:[#allocation231_spill] sm:$0xff] %v11007_v40  ;;  %v3159_v45 = vmul.f32 1.442695, %v2985_v18 }
 0x58d   :  { %13543 = vst [vmem:[#allocation188_spill] sm:$0xff] %v10981_v22  ;;  %v10985_v30 = vpop.permute.xlu1 %3464  ;;  %3542 = vperm.xlu0 %7865, %v10979_v51   ;;  %v11011_v51 = vpop.eup %8300  ;;  %8332 = vpow2.f32 %v3277_v48  ;;  %v13577_v48 = vld [vmem:[#allocation219_spill] sm:$0xff] }
 0x58e   :  { %3581 = vperm.xlu1 %7864, %v10983_v13   ;;  %13553 = vst [vmem:[#allocation263_spill] sm:$0xff] %v11011_v51  ;;  %v11021_v11 = vpop.eup %8302  ;;  %8334 = vpow2.f32 %v3223_v47  ;;  %v3015_v10 = vsub.f32 %v13577_v48, %v10495_v3  ;;  %v3225_v47 = vmul.f32 1.442695, %v3018_v27 }
 0x58f   :  { %13555 = vst [vmem:[#allocation156_spill] sm:$0xff] %v11021_v11 }
 0x590   :  { %v10995_v50 = vpop.permute.xlu0 %3653  ;;  %v3219_v35 = vmul.f32 1.442695, %v3015_v10 }
 0x591   :  { %13548 = vst [vmem:[#allocation218_spill] sm:$0xff] %v10995_v50  ;;  %v10999_v41 = vpop.permute.xlu1 %3557  ;;  %3632 = vperm.xlu0 %7865, %v10993_v16   ;;  %v11025_v16 = vpop.eup %8304  ;;  %8336 = vpow2.f32 %v3097_v43  ;;  %v3045_v43 = vsub.f32 %v10134_v34, %v10576_v4  ;;  %v13583_v34 = vld [vmem:[#allocation191_spill] sm:$0xff] }
 0x592   :  { %3671 = vperm.xlu1 %7864, %v10997_v42   ;;  %13557 = vst [vmem:[#allocation265_spill] sm:$0xff] %v11025_v16 }
 0x593   :  { %v3279_v27 = vmul.f32 1.442695, %v3045_v43 }
 0x594   :  { %v11009_v13 = vpop.permute.xlu0 %3740 }
 0x595   :  { %13552 = vst [vmem:[#allocation262_spill] sm:$0xff] %v11009_v13  ;;  %v11013_v50 = vpop.permute.xlu1 %3644  ;;  %3722 = vperm.xlu0 %7865, %v11007_v40  }
 0x596   :  { %3761 = vperm.xlu1 %7864, %v11011_v51   ;;  %v11035_v51 = vpop.eup %8306  ;;  %8338 = vpow2.f32 %v3283_v53  ;;  %v3285_v53 = vmul.f32 1.442695, %v3048_v61 }
 0x597   :  { %13560 = vst [vmem:[#allocation202_spill] sm:$0xff] %v11035_v51 }
 0x598   :  { %v11023_v42 = vpop.permute.xlu0 %3473 }
 0x599   :  { %13556 = vst [vmem:[#allocation264_spill] sm:$0xff] %v11023_v42  ;;  %v11027_v13 = vpop.permute.xlu1 %3467  ;;  %3812 = vperm.xlu0 %7865, %v11021_v11   ;;  %v11039_v42 = vpop.eup %8308  ;;  %8340 = vpow2.f32 %v3159_v45  ;;  %v2986_v45 = vsub.f32 %v13583_v34, %v10468_v5  ;;  %v13586_v5 = vld [vmem:[#allocation221_spill] sm:$0xff] }
 0x59a   :  { %3491 = vperm.xlu1 %7864, %v11025_v16   ;;  %13562 = vst [vmem:[#allocation266_spill] sm:$0xff] %v11039_v42  ;;  %v11049_v11 = vpop.eup %8310  ;;  %8342 = vpow2.f32 %v3225_v47  ;;  %v3257_v47 = vmul.f32 1.442695, %v3034_v24 }
 0x59b   :  { %13565 = vst [vmem:[#allocation233_spill] sm:$0xff] %v11049_v11  ;;  %v3161_v61 = vmul.f32 1.442695, %v2986_v45 }
 0x59c   :  { %v11037_v40 = vpop.permute.xlu0 %3566 }
 0x59d   :  { %13561 = vst [vmem:[#allocation180_spill] sm:$0xff] %v11037_v40  ;;  %v11041_v7 = vpop.permute.xlu1 %3560  ;;  %3545 = vperm.xlu0 %7865, %v11035_v51   ;;  %v11053_v40 = vpop.eup %8312  ;;  %8344 = vpow2.f32 %v3219_v35  ;;  %v3016_v35 = vsub.f32 %v13586_v5, %v10495_v3  ;;  %v3046_v3 = vsub.f32 %v10173_v25, %v10576_v4 }
 0x59e   :  { %3584 = vperm.xlu1 %7864, %v11039_v42   ;;  %13566 = vst [vmem:[#allocation210_spill] sm:$0xff] %v11053_v40  ;;  %v11063_v54 = vpop.eup %8314  ;;  %8346 = vpow2.f32 %v3285_v53  ;;  %v3317_v53 = vmul.f32 1.442695, %v3064_v39  ;;  %v3002_v39 = vsub.f32 %v13358_v6, %v10473_v32 }
 0x59f   :  { %13567 = vst [vmem:[#allocation267_spill] sm:$0xff] %v11063_v54  ;;  %v11067_v51 = vpop.eup %8316  ;;  %8348 = vpow2.f32 %v3279_v27  ;;  %v3221_v24 = vmul.f32 1.442695, %v3016_v35  ;;  %v3281_v37 = vmul.f32 1.442695, %v3046_v3 }
 0x5a0   :  { %v11051_v16 = vpop.permute.xlu0 %3656  ;;  %13569 = vst [vmem:[#allocation269_spill] sm:$0xff] %v11067_v51  ;;  %v11077_v29 = vpop.eup %8318  ;;  %8350 = vpow2.f32 %v3257_v47  ;;  %v3319_v47 = vmul.f32 1.442695, %v3065_v33  ;;  %v3032_v33 = vsub.f32 %v13370_v57, %v10530_v49 }
 0x5a1   :  { %v11055_v22 = vpop.permute.xlu1 %3650  ;;  %3635 = vperm.xlu0 %7865, %v11049_v11   ;;  %13571 = vst [vmem:[#allocation153_spill] sm:$0xff] %v11077_v29 }
 0x5a2   :  { %3674 = vperm.xlu1 %7864, %v11053_v40   ;;  %v11081_v40 = vpop.eup %8320  ;;  %8352 = vpow2.f32 %v3161_v61 }
 0x5a3   :  { %13572 = vst [vmem:[#allocation270_spill] sm:$0xff] %v11081_v40  ;;  %v11091_v0 = vpop.eup %8322  ;;  %8354 = vpow2.f32 %v3317_v53  ;;  %v3193_v53 = vmul.f32 1.442695, %v3002_v39 }
 0x5a4   :  { %v11065_v19 = vpop.permute.xlu0 %3746  ;;  %13574 = vst [vmem:[#allocation189_spill] sm:$0xff] %v11091_v0 }
 0x5a5   :  { %13568 = vst [vmem:[#allocation268_spill] sm:$0xff] %v11065_v19  ;;  %v11069_v42 = vpop.permute.xlu1 %3695  ;;  %3725 = vperm.xlu0 %7865, %v11063_v54   ;;  %v11095_v54 = vpop.eup %8324  ;;  %8356 = vpow2.f32 %v3221_v24 }
 0x5a6   :  { %3764 = vperm.xlu1 %7864, %v11067_v51   ;;  %13576 = vst [vmem:[#allocation272_spill] sm:$0xff] %v11095_v54  ;;  %v11105_v20 = vpop.eup %8326  ;;  %8358 = vpow2.f32 %v3319_v47  ;;  %v3062_v47 = vsub.f32 %v10351_v9, %v10632_v46 }
 0x5a7   :  { %13578 = vst [vmem:[#allocation219_spill] sm:$0xff] %v11105_v20 }
 0x5a8   :  { %v11079_v11 = vpop.permute.xlu0 %3791 }
 0x5a9   :  { %v11083_v19 = vpop.permute.xlu1 %3518  ;;  %3815 = vperm.xlu0 %7865, %v11077_v29  }
 0x5aa   :  { %3494 = vperm.xlu1 %7864, %v11081_v40   ;;  %v11109_v40 = vpop.eup %8328  ;;  %8360 = vpow2.f32 %v3281_v37 }
 0x5ab   :  { %13579 = vst [vmem:[#allocation273_spill] sm:$0xff] %v11109_v40  ;;  %v11119_v18 = vpop.eup %8330  ;;  %8362 = vpow2.f32 %v3193_v53  ;;  %v13597_v53 = vld [vmem:[#allocation232_spill] sm:$0xff] }
 0x5ac   :  { %v11093_v17 = vpop.permute.xlu0 %3524  ;;  %13580 = vst [vmem:[#allocation274_spill] sm:$0xff] %v11119_v18 }
 0x5ad   :  { %13575 = vst [vmem:[#allocation271_spill] sm:$0xff] %v11093_v17  ;;  %v11097_v51 = vpop.permute.xlu1 %3608  ;;  %3638 = vperm.xlu0 %7865, %v11091_v0  }
 0x5ae   :  { %3587 = vperm.xlu1 %7864, %v11095_v54   ;;  %v11123_v54 = vpop.eup %8332 }
 0x5af   :  { %13582 = vst [vmem:[#allocation276_spill] sm:$0xff] %v11123_v54  ;;  %v11133_v10 = vpop.eup %8334 }
 0x5b0   :  { %v11107_v29 = vpop.permute.xlu0 %3614  ;;  %13584 = vst [vmem:[#allocation191_spill] sm:$0xff] %v11133_v10 }
 0x5b1   :  { %v11111_v17 = vpop.permute.xlu1 %3698  ;;  %3728 = vperm.xlu0 %7865, %v11105_v20   ;;  %v11137_v20 = vpop.eup %8336 }
 0x5b2   :  { %3677 = vperm.xlu1 %7864, %v11109_v40   ;;  %13585 = vst [vmem:[#allocation277_spill] sm:$0xff] %v11137_v20  ;;  %v11147_v43 = vpop.eup %8338 }
 0x5b3   :  { %13587 = vst [vmem:[#allocation221_spill] sm:$0xff] %v11147_v43 }
 0x5b4   :  { %v11121_v48 = vpop.permute.xlu0 %3704 }
 0x5b5   :  { %13581 = vst [vmem:[#allocation275_spill] sm:$0xff] %v11121_v48  ;;  %v11125_v0 = vpop.permute.xlu1 %3743  ;;  %3818 = vperm.xlu0 %7865, %v11119_v18  }
 0x5b6   :  { %3767 = vperm.xlu1 %7864, %v11123_v54   ;;  %v11151_v54 = vpop.eup %8340 }
 0x5b7   :  { %13588 = vst [vmem:[#allocation278_spill] sm:$0xff] %v11151_v54  ;;  %v11161_v27 = vpop.eup %8342 }
 0x5b8   :  { %v11135_v40 = vpop.permute.xlu0 %3794  ;;  %13589 = vst [vmem:[#allocation279_spill] sm:$0xff] %v11161_v27  ;;  %v11165_v5 = vpop.eup %8344 }
 0x5b9   :  { %v11139_v48 = vpop.permute.xlu1 %3521  ;;  %3686 = vperm.xlu0 %7865, %v11133_v10   ;;  %13590 = vst [vmem:[#allocation280_spill] sm:$0xff] %v11165_v5  ;;  %v11173_v25 = vpop.eup %8346 }
 0x5ba   :  { %3497 = vperm.xlu1 %7864, %v11137_v20   ;;  %13591 = vst [vmem:[#allocation281_spill] sm:$0xff] %v11173_v25  ;;  %v11177_v35 = vpop.eup %8348 }
 0x5bb   :  { %13592 = vst [vmem:[#allocation282_spill] sm:$0xff] %v11177_v35  ;;  %v11185_v24 = vpop.eup %8350 }
 0x5bc   :  { %v11149_v34 = vpop.permute.xlu0 %3527  ;;  %13593 = vst [vmem:[#allocation283_spill] sm:$0xff] %v11185_v24  ;;  %v11189_v32 = vpop.eup %8352 }
 0x5bd   :  { %v11153_v18 = vpop.permute.xlu1 %3611  ;;  %3776 = vperm.xlu0 %7865, %v11147_v43   ;;  %13594 = vst [vmem:[#allocation284_spill] sm:$0xff] %v11189_v32  ;;  %v11197_v37 = vpop.eup %8354 }
 0x5be   :  { %3590 = vperm.xlu1 %7864, %v11151_v54   ;;  %13595 = vst [vmem:[#allocation285_spill] sm:$0xff] %v11197_v37  ;;  %v11201_v39 = vpop.eup %8356 }
 0x5bf   :  { %13596 = vst [vmem:[#allocation286_spill] sm:$0xff] %v11201_v39 }
 0x5c0   :  { %v11163_v45 = vpop.permute.xlu0 %3617 }
 0x5c1   :  { %v11167_v10 = vpop.permute.xlu1 %3701  ;;  %3689 = vperm.xlu0 %7865, %v11161_v27   ;;  %v11209_v27 = vpop.eup %8358 }
 0x5c2   :  { %3680 = vperm.xlu1 %7864, %v11165_v5   ;;  %13598 = vst [vmem:[#allocation232_spill] sm:$0xff] %v11209_v27  ;;  %v11213_v5 = vpop.eup %8360 }
 0x5c3   :  { %13599 = vst [vmem:[#allocation287_spill] sm:$0xff] %v11213_v5 }
 0x5c4   :  { %v11175_v61 = vpop.permute.xlu0 %3707 }
 0x5c5   :  { %v11179_v43 = vpop.permute.xlu1 %3788  ;;  %3779 = vperm.xlu0 %7865, %v11173_v25   ;;  %v3253_v25 = vmul.f32 1.442695, %v3032_v33  ;;  %v3033_v33 = vsub.f32 %v13597_v53, %v10530_v49  ;;  %v11223_v49 = vpop.eup %8362 }
 0x5c6   :  { %3770 = vperm.xlu1 %7864, %v11177_v35  }
 0x5c7   :  { %8364 = vpow2.f32 %v3253_v25  ;;  %v13600_v25 = vld [vmem:[#allocation220_spill] sm:$0xff] }
 0x5c8   :  { %v11187_v6 = vpop.permute.xlu0 %3797  ;;  %13601 = vst [vmem:[#allocation220_spill] sm:$0xff] %v11223_v49 }
 0x5c9   :  { %v11191_v3 = vpop.permute.xlu1 %3476  ;;  %3737 = vperm.xlu0 %7865, %v11185_v24   ;;  %v3313_v24 = vmul.f32 1.442695, %v3062_v47  ;;  %v3063_v47 = vsub.f32 %v13600_v25, %v10632_v46 }
 0x5ca   :  { %3593 = vperm.xlu1 %7864, %v11189_v32  }
 0x5cb   :  { %8366 = vpow2.f32 %v3313_v24  ;;  %v3315_v54 = vmul.f32 1.442695, %v3063_v47 }
 0x5cc   :  { %v11199_v57 = vpop.permute.xlu0 %3530 }
 0x5cd   :  { %v11203_v35 = vpop.permute.xlu1 %3569  ;;  %3827 = vperm.xlu0 %7865, %v11197_v37   ;;  %v3255_v37 = vmul.f32 1.442695, %v3033_v33 }
 0x5ce   :  { %3683 = vperm.xlu1 %7864, %v11201_v39  }
 0x5cf   :  { %8368 = vpow2.f32 %v3255_v37 }
 0x5d0   :  { %v11211_v9 = vpop.permute.xlu0 %3620  ;;  %8370 = vpow2.f32 %v3315_v54 }
 0x5d1   :  { %v11215_v32 = vpop.permute.xlu1 %3659  ;;  %3830 = vperm.xlu0 %7865, %v11209_v27   ;;  %v3049_v27 = vsub.f32 %v10199_v56, %v10576_v4  ;;  %v11232_v24 = vpop.eup %8364 }
 0x5d2   :  { %3773 = vperm.xlu1 %7864, %v11213_v5   ;;  %13603 = vst [vmem:[#allocation289_spill] sm:$0xff] %v11232_v24  ;;  %v3050_v5 = vsub.f32 %v10242_v2, %v10576_v4 }
 0x5d3   :  { %v3287_v25 = vmul.f32 1.442695, %v3049_v27 }
 0x5d4   :  { %v11221_v39 = vpop.permute.xlu0 %3710  ;;  %v3289_v56 = vmul.f32 1.442695, %v3050_v5 }
 0x5d5   :  { %v11225_v53 = vpop.permute.xlu1 %3749  ;;  %v11241_v37 = vpop.eup %8366  ;;  %8372 = vpow2.f32 %v3287_v25 }
 0x5d6   :  { %13602 = vst [vmem:[#allocation288_spill] sm:$0xff] %v11225_v53  ;;  %3641 = vperm.xlu1 %7864, %v11223_v49   ;;  %13605 = vst [vmem:[#allocation291_spill] sm:$0xff] %v11241_v37  ;;  %v3066_v49 = vsub.f32 %v10438_v58, %v10632_v46  ;;  %8374 = vpow2.f32 %v3289_v56 }
 0x5d8   :  { %v11230_v20 = vpop.permute.xlu0 %3800  ;;  %v3321_v2 = vmul.f32 1.442695, %v3066_v49 }
 0x5d9   :  { %v11234_v33 = vpop.permute.xlu1 %3479  ;;  %v11250_v54 = vpop.eup %8368 }
 0x5da   :  { %13604 = vst [vmem:[#allocation290_spill] sm:$0xff] %v11234_v33  ;;  %3731 = vperm.xlu1 %7864, %v11232_v24   ;;  %13606 = vst [vmem:[#allocation292_spill] sm:$0xff] %v11250_v54  ;;  %v11257_v24 = vpop.eup %8370  ;;  %8376 = vpow2.f32 %v3321_v2 }
 0x5db   :  { %13609 = vst [vmem:[#allocation295_spill] sm:$0xff] %v11257_v24 }
 0x5dc   :  { %v11239_v53 = vpop.permute.xlu0 %3533 }
 0x5dd   :  { %v11243_v47 = vpop.permute.xlu1 %3572 }
 0x5de   :  { %3821 = vperm.xlu1 %7864, %v11241_v37  }
 0x5df   :  { %v11264_v46 = vpop.eup %8372 }
 0x5e0   :  { %v11248_v33 = vpop.permute.xlu0 %3623  ;;  %13612 = vst [vmem:[#allocation298_spill] sm:$0xff] %v11264_v46  ;;  %v11271_v49 = vpop.eup %8374 }
 0x5e1   :  { %v11252_v27 = vpop.permute.xlu1 %3662  ;;  %13615 = vst [vmem:[#allocation301_spill] sm:$0xff] %v11271_v49 }
 0x5e2   :  { %13607 = vst [vmem:[#allocation293_spill] sm:$0xff] %v11252_v27  ;;  %3734 = vperm.xlu1 %7864, %v11250_v54  }
 0x5e4   :  { %v11255_v4 = vpop.permute.xlu0 %3713 }
 0x5e5   :  { %13608 = vst [vmem:[#allocation294_spill] sm:$0xff] %v11255_v4  ;;  %v11259_v37 = vpop.permute.xlu1 %3752 }
 0x5e6   :  { %13610 = vst [vmem:[#allocation296_spill] sm:$0xff] %v11259_v37  ;;  %3824 = vperm.xlu1 %7864, %v11257_v24   ;;  %v11278_v24 = vpop.eup %8376 }
 0x5e7   :  { %13618 = vst [vmem:[#allocation304_spill] sm:$0xff] %v11278_v24 }
 0x5e8   :  { %v11262_v58 = vpop.permute.xlu0 %3803 }
 0x5e9   :  { %13611 = vst [vmem:[#allocation297_spill] sm:$0xff] %v11262_v58  ;;  %v11266_v5 = vpop.permute.xlu1 %3482 }
 0x5ea   :  { %13613 = vst [vmem:[#allocation299_spill] sm:$0xff] %v11266_v5  ;;  %3782 = vperm.xlu1 %7864, %v11264_v46  }
 0x5ec   :  { %v11269_v25 = vpop.permute.xlu0 %3536 }
 0x5ed   :  { %13614 = vst [vmem:[#allocation300_spill] sm:$0xff] %v11269_v25  ;;  %v11273_v56 = vpop.permute.xlu1 %3575 }
 0x5ee   :  { %13616 = vst [vmem:[#allocation302_spill] sm:$0xff] %v11273_v56  ;;  %3785 = vperm.xlu1 %7864, %v11271_v49  }
 0x5f0   :  { %v11276_v54 = vpop.permute.xlu0 %3626 }
 0x5f1   :  { %13617 = vst [vmem:[#allocation303_spill] sm:$0xff] %v11276_v54  ;;  %v11280_v2 = vpop.permute.xlu1 %3665 }
 0x5f2   :  { %13619 = vst [vmem:[#allocation305_spill] sm:$0xff] %v11280_v2  ;;  %3833 = vperm.xlu1 %7864, %v11278_v24  }
 0x5f4   :  { %v11283_v58 = vpop.permute.xlu0 %3716 }
 0x5f5   :  { %13620 = vst [vmem:[#allocation306_spill] sm:$0xff] %v11283_v58  ;;  %v11285_v5 = vpop.permute.xlu1 %3755 }
 0x5f6   :  { %13621 = vst [vmem:[#allocation307_spill] sm:$0xff] %v11285_v5 }
 0x5f8   :  { %v11287_v46 = vpop.permute.xlu0 %3806 }
 0x5f9   :  { %13622 = vst [vmem:[#allocation308_spill] sm:$0xff] %v11287_v46  ;;  %v11289_v25 = vpop.permute.xlu1 %3485 }
 0x5fa   :  { %13623 = vst [vmem:[#allocation309_spill] sm:$0xff] %v11289_v25 }
 0x5fc   :  { %v11291_v37 = vpop.permute.xlu0 %3539 }
 0x5fd   :  { %13624 = vst [vmem:[#allocation310_spill] sm:$0xff] %v11291_v37  ;;  %v11293_v56 = vpop.permute.xlu1 %3578 }
 0x5fe   :  { %13625 = vst [vmem:[#allocation311_spill] sm:$0xff] %v11293_v56 }
 0x600   :  { %v11295_v49 = vpop.permute.xlu0 %3629 }
 0x601   :  { %13626 = vst [vmem:[#allocation312_spill] sm:$0xff] %v11295_v49  ;;  %v11297_v54 = vpop.permute.xlu1 %3668 }
 0x602   :  { %13627 = vst [vmem:[#allocation313_spill] sm:$0xff] %v11297_v54 }
 0x604   :  { %v11299_v4 = vpop.permute.xlu0 %3719 }
 0x605   :  { %13628 = vst [vmem:[#allocation314_spill] sm:$0xff] %v11299_v4  ;;  %v11301_v2 = vpop.permute.xlu1 %3758 }
 0x606   :  { %13629 = vst [vmem:[#allocation315_spill] sm:$0xff] %v11301_v2 }
 0x608   :  { %v11303_v24 = vpop.permute.xlu0 %3809 }
 0x609   :  { %13630 = vst [vmem:[#allocation316_spill] sm:$0xff] %v11303_v24  ;;  %v11305_v58 = vpop.permute.xlu1 %3488 }
 0x60a   :  { %13631 = vst [vmem:[#allocation317_spill] sm:$0xff] %v11305_v58 }
 0x60c   :  { %v11307_v5 = vpop.permute.xlu0 %3542 }
 0x60d   :  { %13632 = vst [vmem:[#allocation318_spill] sm:$0xff] %v11307_v5  ;;  %v11309_v46 = vpop.permute.xlu1 %3581 }
 0x60e   :  { %13633 = vst [vmem:[#allocation319_spill] sm:$0xff] %v11309_v46 }
 0x610   :  { %v11311_v25 = vpop.permute.xlu0 %3632 }
 0x611   :  { %13634 = vst [vmem:[#allocation320_spill] sm:$0xff] %v11311_v25  ;;  %v11313_v37 = vpop.permute.xlu1 %3671 }
 0x612   :  { %13635 = vst [vmem:[#allocation321_spill] sm:$0xff] %v11313_v37 }
 0x614   :  { %v11315_v56 = vpop.permute.xlu0 %3722 }
 0x615   :  { %13636 = vst [vmem:[#allocation322_spill] sm:$0xff] %v11315_v56  ;;  %v11317_v49 = vpop.permute.xlu1 %3761 }
 0x616   :  { %13637 = vst [vmem:[#allocation323_spill] sm:$0xff] %v11317_v49  ;;  %v13648_v49 = vld [vmem:[#allocation237_spill] sm:$0xff] }
 0x618   :  { %v11321_v4 = vpop.permute.xlu0 %3812 }
 0x619   :  { %v11319_v54 = vpop.permute.xlu1 %3491  ;;  %13639 = vst [vmem:[#allocation325_spill] sm:$0xff] %v11321_v4  ;;  %v13649_v4 = vld [vmem:[#allocation240_spill] sm:$0xff] }
 0x61a   :  { %13638 = vst [vmem:[#allocation324_spill] sm:$0xff] %v11319_v54  ;;  %v3842_v54 = vrot.slane %v10841_v26, %v13648_v49  ;;  %v13653_v26 = vld [vmem:[#allocation242_spill] sm:$0xff] }
 0x61c   :  { %v11325_v24 = vpop.permute.xlu0 %3545 }
 0x61d   :  { %v11323_v2 = vpop.permute.xlu1 %3584  ;;  %13641 = vst [vmem:[#allocation327_spill] sm:$0xff] %v11325_v24  ;;  %v3921_v24 = vrot.slane %v10873_v55, %v13648_v49 }
 0x61e   :  { %13640 = vst [vmem:[#allocation326_spill] sm:$0xff] %v11323_v2  ;;  %v3838_v2 = vrot.slane %v10845_v59, %v13649_v4  ;;  %v4075_v59 = vrot.slane %v10971_v36, %v13649_v4 }
 0x620   :  { %v11331_v46 = vpop.permute.xlu0 %3635  ;;  %v3843_v55 = vsel %vm2228_vm1, %v3842_v54, %v3838_v2  ;;  %v3852_v54 = vrot.slane %v10943_v15, %v13653_v26  ;;  %v4010_v2 = vrot.slane %v10999_v41, %v13653_v26 }
 0x621   :  { %v11327_v58 = vpop.permute.xlu1 %3674  ;;  %13644 = vst [vmem:[#allocation330_spill] sm:$0xff] %v11331_v46 }
 0x622   :  { %13642 = vst [vmem:[#allocation328_spill] sm:$0xff] %v11327_v58 }
 0x624   :  { %v11335_v37 = vpop.permute.xlu0 %3725 }
 0x625   :  { %v11329_v5 = vpop.permute.xlu1 %3764  ;;  %13646 = vst [vmem:[#allocation332_spill] sm:$0xff] %v11335_v37  ;;  %v3931_v37 = vrot.slane %v10957_v21, %v13653_v26  ;;  %v4079_v21 = vrot.slane %v10869_v44, %v13648_v49  ;;  %v4154_v44 = vrot.slane %v11013_v50, %v13649_v4 }
 0x626   :  { %13643 = vst [vmem:[#allocation329_spill] sm:$0xff] %v11329_v5  ;;  %v13651_v5 = vld [vmem:[#allocation239_spill] sm:$0xff] }
 0x627   :  { %v3926_v46 = vrot.slane %v10901_v14, %v13651_v5  ;;  %v3847_v14 = vrot.slane %v10887_v60, %v13651_v5  ;;  %v4084_v41 = vrot.slane %v10897_v8, %v13651_v5 }
 0x628   :  { %v11349_v27 = vpop.permute.xlu0 %3815 }
 0x629   :  { %v11333_v25 = vpop.permute.xlu1 %3494  ;;  %13652 = vst [vmem:[#allocation240_spill] sm:$0xff] %v11349_v27  ;;  %v3996_v27 = vrot.slane %v10915_v52, %v13649_v4 }
 0x62a   :  { %13645 = vst [vmem:[#allocation331_spill] sm:$0xff] %v11333_v25  ;;  %v3917_v25 = vrot.slane %v10859_v38, %v13649_v4 }
 0x62d   :  { %v11337_v56 = vpop.permute.xlu1 %3587 }
 0x62e   :  { %13647 = vst [vmem:[#allocation333_spill] sm:$0xff] %v11337_v56  ;;  %v4000_v56 = vrot.slane %v10929_v12, %v13648_v49  ;;  %v4005_v12 = vrot.slane %v10855_v1, %v13651_v5  ;;  %v4080_v1 = vsel %vm2228_vm1, %v4079_v21, %v4075_v59 }
 0x631   :  { %v11345_v58 = vpop.permute.xlu1 %3677 }
 0x632   :  { %13650 = vst [vmem:[#allocation237_spill] sm:$0xff] %v11345_v58  ;;  %v3922_v58 = vsel %vm2228_vm1, %v3921_v24, %v3917_v25  ;;  %v4001_v24 = vsel %vm2228_vm1, %v4000_v56, %v3996_v27  ;;  %v13656_v25 = vld [vmem:[#allocation244_spill] sm:$0xff]  ;;  %v11387_v27 = vpop.permute.xlu0 %3638 }
 0x633   :  { %v3927_v36 = vsel %vm13086_vm2, %v3926_v46, %v3922_v58  ;;  %v3857_v52 = vrot.slane %v10985_v30, %v13656_v25  ;;  %v4015_v15 = vrot.slane %v11041_v7, %v13656_v25  ;;  %v3848_v30 = vsel %vm13086_vm2, %v3847_v14, %v3843_v55 }
 0x634   :  { %v3932_v60 = vsel %vm13655_vm12, %v3931_v37, %v3927_v36  ;;  %v3936_v37 = vrot.slane %v10883_v23, %v13656_v25  ;;  %v4163_v46 = vrot.slane %v11055_v22, %v13651_v5  ;;  %v3853_v56 = vsel %vm13655_vm12, %v3852_v54, %v3848_v30  ;;  %v13659_v36 = vld [vmem:[#allocation247_spill] sm:$0xff]  ;;  %v13660_v54 = vld [vmem:[#allocation188_spill] sm:$0xff]  ;;  %vm13666_vm12 = vmmov %vm13658_vm0 }
 0x635   :  { %v11365_v38 = vpop.permute.xlu1 %3767  ;;  %v4006_v23 = vsel %vm13086_vm2, %v4005_v12, %v4001_v24  ;;  %v4085_v55 = vsel %vm13086_vm2, %v4084_v41, %v4080_v1  ;;  %v3858_v8 = vsel %vm2249_vm4, %v3857_v52, %v3853_v56  ;;  %v4089_v14 = vrot.slane %v10939_v28, %v13653_v26  ;;  %v13662_v28 = vld [vmem:[#allocation218_spill] sm:$0xff]  ;;  %v13664_v30 = vld [vmem:[#allocation264_spill] sm:$0xff] }
 0x636   :  { %13654 = vst [vmem:[#allocation239_spill] sm:$0xff] %v11365_v38  ;;  %v13657_v38 = vld [vmem:[#allocation245_spill] sm:$0xff]  ;;  %v3937_v59 = vsel %vm2249_vm4, %v3936_v37, %v3932_v60  ;;  %v4011_v22 = vsel %vm13658_vm0, %v4010_v2, %v4006_v23  ;;  %v3867_v12 = vrot.slane %v10967_v63, %v13659_v36  ;;  %v13661_v2 = vld [vmem:[#allocation228_spill] sm:$0xff]  ;;  %v11426_v37 = vpop.permute.xlu0 %3728  ;;  %v3946_v56 = vrot.slane %v11083_v19, %v13659_v36 }
 0x637   :  { %v3862_v58 = vrot.slane %v11027_v13, %v13657_v38  ;;  %v4158_v13 = vrot.slane %v10911_v31, %v13648_v49  ;;  %v3941_v7 = vrot.slane %v10925_v62, %v13657_v38  ;;  %v4016_v62 = vsel %vm2249_vm4, %v4015_v15, %v4011_v22  ;;  %v13663_v63 = vld [vmem:[#allocation248_spill] sm:$0xff] }
 0x638   :  { %v4020_v24 = vrot.slane %v13660_v54, %v13657_v38  ;;  %v4233_v1 = vrot.slane %v13661_v2, %v13649_v4  ;;  %v4090_v15 = vsel %vm13658_vm0, %v4089_v14, %v4085_v55  ;;  %v3872_v41 = vrot.slane %v13664_v30, %v13663_v63  ;;  %v13665_v23 = vld [vmem:[#allocation180_spill] sm:$0xff]  ;;  %v13667_v55 = vld [vmem:[#allocation262_spill] sm:$0xff] }
 0x639   :  { %v11396_v50 = vpop.permute.xlu1 %3497  ;;  %v4159_v31 = vsel %vm2228_vm1, %v4158_v13, %v4154_v44  ;;  %v3863_v21 = vsel %vm2256_vm5, %v3862_v58, %v3858_v8  ;;  %v4168_v44 = vrot.slane %v13662_v28, %v13653_v26  ;;  %v3942_v58 = vsel %vm2256_vm5, %v3941_v7, %v3937_v59 }
 0x63a   :  { %v4164_v60 = vsel %vm13086_vm2, %v4163_v46, %v4159_v31  ;;  %v3868_v13 = vsel %vm2263_vm6, %v3867_v12, %v3863_v21  ;;  %v4021_v46 = vsel %vm2256_vm5, %v4020_v24, %v4016_v62  ;;  %v4025_v8 = vrot.slane %v13665_v23, %v13659_v36  ;;  %v13668_v12 = vld [vmem:[#allocation268_spill] sm:$0xff]  ;;  %v11469_v30 = vpop.permute.xlu0 %3818  ;;  %v13672_v23 = vld [vmem:[#allocation250_spill] sm:$0xff] }
 0x63b   :  { %v4169_v22 = vsel %vm13666_vm12, %v4168_v44, %v4164_v60  ;;  %v4237_v7 = vrot.slane %v11069_v42, %v13648_v49  ;;  %v3951_v59 = vrot.slane %v11139_v48, %v13663_v63  ;;  %v4312_v14 = vrot.slane %v13667_v55, %v13649_v4  ;;  %vm13675_vm12 = vmmov %vm13658_vm0 }
 0x63c   :  { %v4173_v31 = vrot.slane %v11051_v16, %v13656_v25  ;;  %v4094_v19 = vrot.slane %v11097_v51, %v13656_v25  ;;  %v4242_v21 = vrot.slane %v11111_v17, %v13651_v5  ;;  %v4321_v42 = vrot.slane %v13668_v12, %v13651_v5 }
 0x63d   :  { %v11418_v52 = vpop.permute.xlu1 %3590  ;;  %v4099_v48 = vrot.slane %v11153_v18, %v13657_v38  ;;  %v3873_v54 = vsel %vm2270_vm7, %v3872_v41, %v3868_v13  ;;  %v4026_v24 = vsel %vm2263_vm6, %v4025_v8, %v4021_v46  ;;  %v3947_v16 = vsel %vm2263_vm6, %v3946_v56, %v3942_v58  ;;  %v13669_v58 = vld [vmem:[#allocation249_spill] sm:$0xff]  ;;  %v13670_v41 = vld [vmem:[#allocation271_spill] sm:$0xff] }
 0x63e   :  { %v4316_v51 = vrot.slane %v11125_v0, %v13648_v49  ;;  %v4247_v17 = vrot.slane %v11167_v10, %v13653_v26  ;;  %v4174_v60 = vsel %vm2249_vm4, %v4173_v31, %v4169_v22  ;;  %v4238_v2 = vsel %vm2228_vm1, %v4237_v7, %v4233_v1 }
 0x63f   :  { %v4395_v28 = vrot.slane %v11079_v11, %v13648_v49  ;;  %v3952_v18 = vsel %vm2270_vm7, %v3951_v59, %v3947_v16  ;;  %v4391_v44 = vrot.slane %v11179_v43, %v13649_v4  ;;  %v3956_v0 = vrot.slane %v13670_v41, %v13669_v58  ;;  %v13671_v11 = vld [vmem:[#allocation275_spill] sm:$0xff] }
 0x640   :  { %v4095_v13 = vsel %vm2249_vm4, %v4094_v19, %v4090_v15  ;;  %v4104_v10 = vrot.slane %v11107_v29, %v13659_v36  ;;  %v4243_v1 = vsel %vm13086_vm2, %v4242_v21, %v4238_v2  ;;  %v4252_v56 = vrot.slane %v13671_v11, %v13656_v25  ;;  %v13673_v19 = vld [vmem:[#allocation251_spill] sm:$0xff]  ;;  %v13678_v11 = vld [vmem:[#allocation252_spill] sm:$0xff] }
 0x641   :  { %v11449_v62 = vpop.permute.xlu1 %3680  ;;  %v3961_v43 = vrot.slane %v11149_v34, %v13672_v23  ;;  %v4100_v8 = vsel %vm2256_vm5, %v4099_v48, %v4095_v13  ;;  %v4109_v22 = vrot.slane %v11163_v45, %v13663_v63  ;;  %v4317_v15 = vsel %vm2228_vm1, %v4316_v51, %v4312_v14  ;;  %v11512_v51 = vpop.permute.xlu0 %3686 }
 0x642   :  { %v4400_v29 = vrot.slane %v11135_v40, %v13651_v5  ;;  %v3957_v7 = vsel %vm2277_vm8, %v3956_v0, %v3952_v18  ;;  %v4248_v59 = vsel %vm13658_vm0, %v4247_v17, %v4243_v1  ;;  %v4257_v55 = vrot.slane %v11175_v61, %v13657_v38  ;;  %v13674_v17 = vld [vmem:[#allocation288_spill] sm:$0xff] }
 0x643   :  { %v4396_v31 = vsel %vm2228_vm1, %v4395_v28, %v4391_v44  ;;  %v4405_v34 = vrot.slane %v11187_v6, %v13653_v26  ;;  %v3877_v45 = vrot.slane %v11191_v3, %v13669_v58  ;;  %v4105_v14 = vsel %vm2263_vm6, %v4104_v10, %v4100_v8  ;;  %v13679_v8 = vld [vmem:[#allocation293_spill] sm:$0xff] }
 0x644   :  { %v3966_v40 = vrot.slane %v11199_v57, %v13673_v19  ;;  %v4030_v21 = vrot.slane %v11203_v35, %v13663_v63  ;;  %v4114_v12 = vrot.slane %v11211_v9, %v13669_v58  ;;  %v3962_v48 = vsel %vm13087_vm9, %v3961_v43, %v3957_v7 }
 0x645   :  { %v11477_v46 = vpop.permute.xlu1 %3770  ;;  %v4110_v6 = vsel %vm2270_vm7, %v4109_v22, %v4105_v14  ;;  %v4178_v3 = vrot.slane %v11215_v32, %v13657_v38  ;;  %v4322_v16 = vsel %vm13086_vm2, %v4321_v42, %v4317_v15  ;;  %v4253_v57 = vsel %vm2249_vm4, %v4252_v56, %v4248_v59  ;;  %v13680_v15 = vld [vmem:[#allocation294_spill] sm:$0xff]  ;;  %v13685_v14 = vld [vmem:[#allocation300_spill] sm:$0xff] }
 0x646   :  { %v4401_v35 = vsel %vm13086_vm2, %v4400_v29, %v4396_v31  ;;  %v4262_v9 = vrot.slane %v11221_v39, %v13659_v36  ;;  %v4326_v2 = vrot.slane %v13674_v17, %v13653_v26  ;;  %v4258_v28 = vsel %vm2256_vm5, %v4257_v55, %v4253_v57  ;;  %v13677_v39 = vld [vmem:[#allocation290_spill] sm:$0xff]  ;;  %v11552_v31 = vpop.permute.xlu0 %3776 }
 0x647   :  { %v4406_v18 = vsel %vm13675_vm12, %v4405_v34, %v4401_v35  ;;  %v3878_v32 = vsel %vm2277_vm8, %v3877_v45, %v3873_v54  ;;  %v4410_v42 = vrot.slane %v11230_v20, %v13656_v25  ;;  %vm13676_vm0 = vcmask 720512   ;;  %v13684_v45 = vld [vmem:[#allocation253_spill] sm:$0xff] }
 0x648   :  { %v3967_v44 = vsel %vm13676_vm0, %v3966_v40, %v3962_v48  ;;  %v4031_v41 = vsel %vm2270_vm7, %v4030_v21, %v4026_v24  ;;  %v4115_v0 = vsel %vm2277_vm8, %v4114_v12, %v4110_v6  ;;  %v3882_v13 = vrot.slane %v13677_v39, %v13672_v23  ;;  %v13686_v21 = vld [vmem:[#allocation302_spill] sm:$0xff]  ;;  %v13687_v48 = vld [vmem:[#allocation303_spill] sm:$0xff] }
 0x649   :  { %v11505_v61 = vpop.permute.xlu1 %3593  ;;  %v4179_v1 = vsel %vm2256_vm5, %v4178_v3, %v4174_v60  ;;  %v3971_v56 = vrot.slane %v11239_v53, %v13678_v11  ;;  %v4035_v54 = vrot.slane %v11243_v47, %v13669_v58  ;;  %v4119_v20 = vrot.slane %v11248_v33, %v13672_v23  ;;  %v13681_v53 = vld [vmem:[#allocation296_spill] sm:$0xff]  ;;  %v13682_v47 = vld [vmem:[#allocation297_spill] sm:$0xff]  ;;  %v13683_v33 = vld [vmem:[#allocation299_spill] sm:$0xff] }
 0x64a   :  { %v4263_v24 = vsel %vm2263_vm6, %v4262_v9, %v4258_v28  ;;  %v4327_v43 = vsel %vm13675_vm12, %v4326_v2, %v4322_v16  ;;  %v4183_v22 = vrot.slane %v13679_v8, %v13659_v36  ;;  %v4267_v29 = vrot.slane %v13680_v15, %v13663_v63  ;;  %v13689_v9 = vld [vmem:[#allocation305_spill] sm:$0xff]  ;;  %v13697_v15 = vld [vmem:[#allocation254_spill] sm:$0xff] }
 0x64b   :  { %v4411_v60 = vsel %vm2249_vm4, %v4410_v42, %v4406_v18  ;;  %v4331_v7 = vrot.slane %v13681_v53, %v13656_v25  ;;  %v4415_v59 = vrot.slane %v13682_v47, %v13657_v38  ;;  %v3887_v55 = vrot.slane %v13683_v33, %v13673_v19  ;;  %v13690_v18 = vld [vmem:[#allocation306_spill] sm:$0xff]  ;;  %v13691_v42 = vld [vmem:[#allocation307_spill] sm:$0xff]  ;;  %v13700_v47 = vld [vmem:[#allocation312_spill] sm:$0xff]  ;;  %v11593_v33 = vpop.permute.xlu0 %3689 }
 0x64c   :  { %v3883_v34 = vsel %vm13087_vm9, %v3882_v13, %v3878_v32  ;;  %v3976_v40 = vrot.slane %v13685_v14, %v13684_v45  ;;  %v4040_v12 = vrot.slane %v13686_v21, %v13672_v23  ;;  %v4124_v6 = vrot.slane %v13687_v48, %v13673_v19  ;;  %v13699_v53 = vld [vmem:[#allocation311_spill] sm:$0xff]  ;;  %v13701_v14 = vld [vmem:[#allocation313_spill] sm:$0xff]  ;;  %v13702_v21 = vld [vmem:[#allocation314_spill] sm:$0xff] }
 0x64d   :  { %v11530_v10 = vpop.permute.xlu1 %3683  ;;  %vm13688_vm0 = vcmask 786112   ;;  %v4036_v57 = vsel %vm2277_vm8, %v4035_v54, %v4031_v41  ;;  %v4120_v35 = vsel %vm13087_vm9, %v4119_v20, %v4115_v0  ;;  %v4188_v17 = vrot.slane %v13689_v9, %v13663_v63  ;;  %v13693_v0 = vld [vmem:[#allocation308_spill] sm:$0xff]  ;;  %v13705_v9 = vld [vmem:[#allocation317_spill] sm:$0xff] }
 0x64e   :  { %v3972_v16 = vsel %vm13688_vm0, %v3971_v56, %v3967_v44  ;;  %v4184_v2 = vsel %vm2263_vm6, %v4183_v22, %v4179_v1  ;;  %v4268_v28 = vsel %vm2270_vm7, %v4267_v29, %v4263_v24  ;;  %v4272_v32 = vrot.slane %v13690_v18, %v13669_v58  ;;  %v13696_v24 = vld [vmem:[#allocation309_spill] sm:$0xff]  ;;  %v13698_v29 = vld [vmem:[#allocation310_spill] sm:$0xff] }
 0x64f   :  { %v4336_v39 = vrot.slane %v13691_v42, %v13657_v38  ;;  %v4332_v13 = vsel %vm2249_vm4, %v4331_v7, %v4327_v43  ;;  %v4416_v44 = vsel %vm2256_vm5, %v4415_v59, %v4411_v60  ;;  %vm13692_vm12 = vcmask 720512   ;;  %v13708_v18 = vld [vmem:[#allocation318_spill] sm:$0xff]  ;;  %v13709_v42 = vld [vmem:[#allocation319_spill] sm:$0xff] }
 0x650   :  { %v3888_v41 = vsel %vm13692_vm12, %v3887_v55, %v3883_v34  ;;  %v4420_v56 = vrot.slane %v13693_v0, %v13659_v36  ;;  %vm13694_vm0 = vcmask 851712   ;;  %v4041_v1 = vsel %vm13087_vm9, %v4040_v12, %v4036_v57  ;;  %vm13695_vm2 = vmmov %vm13692_vm12  ;;  %v13704_v57 = vld [vmem:[#allocation316_spill] sm:$0xff] }
 0x651   :  { %v11561_v3 = vpop.permute.xlu1 %3773  ;;  %v3977_v54 = vsel %vm13694_vm0, %v3976_v40, %v3972_v16  ;;  %v4125_v20 = vsel %vm13695_vm2, %v4124_v6, %v4120_v35  ;;  %v3892_v8 = vrot.slane %v13696_v24, %v13678_v11  ;;  %v4189_v43 = vsel %vm2270_vm7, %v4188_v17, %v4184_v2  ;;  %v13703_v6 = vld [vmem:[#allocation315_spill] sm:$0xff] }
 0x652   :  { %v3981_v60 = vrot.slane %v13698_v29, %v13697_v15  ;;  %v4045_v7 = vrot.slane %v13699_v53, %v13673_v19  ;;  %v4129_v59 = vrot.slane %v13700_v47, %v13678_v11  ;;  %v4273_v55 = vsel %vm2277_vm8, %v4272_v32, %v4268_v28  ;;  %v13707_v28 = vld [vmem:[#allocation255_spill] sm:$0xff]  ;;  %v13712_v53 = vld [vmem:[#allocation321_spill] sm:$0xff] }
 0x653   :  { %v4337_v34 = vsel %vm2256_vm5, %v4336_v39, %v4332_v13  ;;  %v4193_v40 = vrot.slane %v13701_v14, %v13669_v58  ;;  %v4277_v12 = vrot.slane %v13702_v21, %v13672_v23  ;;  %v4421_v48 = vsel %vm2263_vm6, %v4420_v56, %v4416_v44  ;;  %v13710_v13 = vld [vmem:[#allocation320_spill] sm:$0xff]  ;;  %v13713_v14 = vld [vmem:[#allocation322_spill] sm:$0xff] }
 0x654   :  { %v4341_v16 = vrot.slane %v13703_v6, %v13659_v36  ;;  %v4425_v35 = vrot.slane %v13704_v57, %v13663_v63  ;;  %v3897_v17 = vrot.slane %v13705_v9, %v13684_v45  ;;  %vm13706_vm2 = vcmask 786112   ;;  %v13714_v6 = vld [vmem:[#allocation323_spill] sm:$0xff] }
 0x655   :  { %v11584_v22 = vpop.permute.xlu1 %3641  ;;  %v3893_v2 = vsel %vm13706_vm2, %v3892_v8, %v3888_v41  ;;  %v3986_v32 = vrot.slane %v13708_v18, %v13707_v28  ;;  %v4050_v39 = vrot.slane %v13709_v42, %v13678_v11  ;;  %v4134_v44 = vrot.slane %v13710_v13, %v13684_v45  ;;  %vm13711_vm0 = vmmov %vm13706_vm2  ;;  %v13723_v42 = vld [vmem:[#allocation330_spill] sm:$0xff] }
 0x656   :  { %v3982_v56 = vsel %vm2312_vm13, %v3981_v60, %v3977_v54  ;;  %v4046_v24 = vsel %vm13692_vm12, %v4045_v7, %v4041_v1  ;;  %v4130_v29 = vsel %vm13711_vm0, %v4129_v59, %v4125_v20  ;;  %v4198_v41 = vrot.slane %v13712_v53, %v13672_v23  ;;  %v13716_v20 = vld [vmem:[#allocation325_spill] sm:$0xff]  ;;  %v11633_v7 = vpop.permute.xlu0 %3779  ;;  %vm13717_vm12 = vmmov %vm13711_vm0 }
 0x657   :  { %v4194_v8 = vsel %vm2277_vm8, %v4193_v40, %v4189_v43  ;;  %v4278_v47 = vsel %vm13087_vm9, %v4277_v12, %v4273_v55  ;;  %v4282_v21 = vrot.slane %v13713_v14, %v13673_v19  ;;  %v4346_v57 = vrot.slane %v13714_v6, %v13663_v63  ;;  %v13719_v40 = vld [vmem:[#allocation324_spill] sm:$0xff] }
 0x658   :  { %v4342_v9 = vsel %vm2263_vm6, %v4341_v16, %v4337_v34  ;;  %v4426_v54 = vsel %vm2270_vm7, %v4425_v35, %v4421_v48  ;;  %vm13715_vm2 = vcmask 851712   ;;  %v4430_v60 = vrot.slane %v13716_v20, %v13669_v58  ;;  %v13720_v48 = vld [vmem:[#allocation256_spill] sm:$0xff]  ;;  %v13721_v16 = vld [vmem:[#allocation327_spill] sm:$0xff] }
 0x659   :  { %v11615_v0 = vpop.permute.xlu1 %3731  ;;  %v3898_v1 = vsel %vm13715_vm2, %v3897_v17, %v3893_v2  ;;  %v3987_v43 = vsel %vm2319_vm14, %v3986_v32, %v3982_v56  ;;  %v4051_v59 = vsel %vm13717_vm12, %v4050_v39, %v4046_v24  ;;  %vm13718_vm0 = vmmov %vm13715_vm2  ;;  %v3902_v12 = vrot.slane %v13719_v40, %v13697_v15  ;;  %v13722_v17 = vld [vmem:[#allocation326_spill] sm:$0xff]  ;;  %v13726_v24 = vld [vmem:[#allocation332_spill] sm:$0xff] }
 0x65a   :  { %v4135_v55 = vsel %vm13718_vm0, %v4134_v44, %v4130_v29  ;;  %v4199_v34 = vsel %vm13087_vm9, %v4198_v41, %v4194_v8  ;;  %v3991_v35 = vrot.slane %v13721_v16, %v13720_v48  ;;  %v4055_v2 = vrot.slane %v13722_v17, %v13684_v45  ;;  %v13725_v44 = vld [vmem:[#allocation328_spill] sm:$0xff]  ;;  %v13727_v41 = vld [vmem:[#allocation329_spill] sm:$0xff]  ;;  %v13729_v20 = vld [vmem:[#allocation331_spill] sm:$0xff] }
 0x65b   :  { %v4139_v32 = vrot.slane %v13723_v42, %v13697_v15  ;;  %vm13724_vm2 = vcmask 720512   ;;  %v4347_v13 = vsel %vm2270_vm7, %v4346_v57, %v4342_v9  ;;  %v4203_v56 = vrot.slane %v13725_v44, %v13673_v19  ;;  %v13728_v14 = vld [vmem:[#allocation240_spill] sm:$0xff]  ;;  %v13730_v57 = vld [vmem:[#allocation333_spill] sm:$0xff]  ;;  %vm13731_vm12 = vmmov %vm13718_vm0 }
 0x65c   :  { %v4283_v39 = vsel %vm13724_vm2, %v4282_v21, %v4278_v47  ;;  %v4287_v29 = vrot.slane %v13726_v24, %v13678_v11  ;;  %v4431_v53 = vsel %vm2277_vm8, %v4430_v60, %v4426_v54  ;;  %v4351_v8 = vrot.slane %v13727_v41, %v13669_v58  ;;  %v13732_v44 = vld [vmem:[#allocation239_spill] sm:$0xff]  ;;  %vm13733_vm0 = vmmov %vm13724_vm2 }
 0x65d   :  { %v11640_v18 = vpop.permute.xlu1 %3821  ;;  %v4435_v6 = vrot.slane %v13728_v14, %v13672_v23  ;;  %v3907_v40 = vrot.slane %v13729_v20, %v13707_v28  ;;  %v3903_v47 = vsel %vm2312_vm13, %v3902_v12, %v3898_v1  ;;  %v4144_v21 = vrot.slane %v11387_v27, %v13707_v28  ;;  %v3738_v1 = vpop.permute.xlu0 %3737 }
 0x65e   :  { %v4060_v9 = vrot.slane %v13730_v57, %v13697_v15  ;;  %v4292_v54 = vrot.slane %v11426_v37, %v13684_v45  ;;  %v3992_v16 = vsel %vm2326_vm15, %v3991_v35, %v3987_v43  ;;  %v4056_v17 = vsel %vm13731_vm12, %v4055_v2, %v4051_v59 }
 0x65f   :  { %v4140_v42 = vsel %vm2312_vm13, %v4139_v32, %v4135_v55  ;;  %v4356_v24 = vrot.slane %v13732_v44, %v13672_v23  ;;  %v4204_v12 = vsel %vm13733_vm0, %v4203_v56, %v4199_v34  ;;  %vm13734_vm2 = vcmask 786112  }
 0x660   :  { %v4288_v27 = vsel %vm13734_vm2, %v4287_v29, %v4283_v39  ;;  %v3912_v41 = vrot.slane %v11396_v50, %v13720_v48  ;;  %v4361_v37 = vrot.slane %v11477_v46, %v13673_v19  ;;  %v4352_v43 = vsel %vm2277_vm8, %v4351_v8, %v4347_v13  ;;  %v13735_v50 = vld [vmem:[#allocation237_spill] sm:$0xff] }
 0x661   :  { %v3735_v60 = vpop.permute.xlu1 %3734  ;;  %v4436_v59 = vsel %vm13087_vm9, %v4435_v6, %v4431_v53  ;;  %v3908_v55 = vsel %vm2319_vm14, %v3907_v40, %v3903_v47  ;;  %v4366_v35 = vrot.slane %v11561_v3, %v13678_v11  ;;  %v4145_v2 = vsel %vm2319_vm14, %v4144_v21, %v4140_v42  ;;  %v3828_v20 = vpop.permute.xlu0 %3827 }
 0x662   :  { %v4061_v34 = vsel %vm2312_vm13, %v4060_v9, %v4056_v17  ;;  %v4293_v32 = vsel %vm13731_vm12, %v4292_v54, %v4288_v27  ;;  %v4208_v39 = vrot.slane %v13735_v50, %v13678_v11  ;;  %v4440_v46 = vrot.slane %v11469_v30, %v13673_v19  ;;  %vm13736_vm12 = vmmov %vm13734_vm2 }
 0x663   :  { %v4357_v13 = vsel %vm13087_vm9, %v4356_v24, %v4352_v43  ;;  %v4065_v29 = vrot.slane %v11418_v52, %v13707_v28  ;;  %v4213_v3 = vrot.slane %v11449_v62, %v13684_v45  ;;  %v3913_v53 = vsel %vm2326_vm15, %v3912_v41, %v3908_v55 }
 0x664   :  { %v4362_v8 = vsel %vm13733_vm0, %v4361_v37, %v4357_v13  ;;  %v4070_v14 = vrot.slane %v11505_v61, %v13720_v48  ;;  %v4218_v6 = vrot.slane %v11530_v10, %v13697_v15  ;;  %v4149_v40 = vrot.slane %v11584_v22, %v13720_v48 }
 0x665   :  { %v3825_v56 = vpop.permute.xlu1 %3824  ;;  %v4367_v30 = vsel %vm13734_vm2, %v4366_v35, %v4362_v8  ;;  %v4297_v52 = vrot.slane %v11615_v0, %v13697_v15  ;;  %v4445_v62 = vrot.slane %v11640_v18, %v13678_v11  ;;  %v4209_v47 = vsel %vm13736_vm12, %v4208_v39, %v4204_v12  ;;  %v3831_v35 = vpop.permute.xlu0 %3830 }
 0x666   :  { %v4371_v61 = vrot.slane %v11552_v31, %v13684_v45  ;;  %v4302_v21 = vrot.slane %v3735_v60, %v13707_v28  ;;  %v4450_v10 = vrot.slane %v3825_v56, %v13684_v45  ;;  %v4441_v9 = vsel %vm13733_vm0, %v4440_v46, %v4436_v59 }
 0x667   :  { %v4223_v22 = vrot.slane %v11512_v51, %v13707_v28  ;;  %v4066_v0 = vsel %vm2319_vm14, %v4065_v29, %v4061_v34  ;;  %vm13737_vm2 = vcmask 851712   ;;  %vm13738_vm9 = vcmask 1041409  }
 0x668   :  { %v4214_v54 = vsel %vm13737_vm2, %v4213_v3, %v4209_v47  ;;  %v4467_v18 = vsel %vm13738_vm9, %v3992_v16, %v3913_v53  ;;  %v4071_v17 = vsel %vm2326_vm15, %v4070_v14, %v4066_v0  ;;  %vm13739_vm12 = vmmov %vm13737_vm2  ;;  %v4150_v42 = vsel %vm2326_vm15, %v4149_v40, %v4145_v2  ;;  %v13745_v40 = vld [vmem:[#allocation64_spill] sm:$0xff] }
 0x669   :  { %v3783_v57 = vpop.permute.xlu1 %3782  ;;  %v4219_v31 = vsel %vm2312_vm13, %v4218_v6, %v4214_v54  ;;  %v4372_v60 = vsel %vm13739_vm12, %v4371_v61, %v4367_v30  ;;  %v4298_v44 = vsel %vm2312_vm13, %v4297_v52, %v4293_v32  ;;  %vm13740_vm0 = vcmask 786112   ;;  %vm13741_vm9 = vmmov %vm13737_vm2  ;;  %v13750_v54 = vld [vmem:[#allocation243_spill] sm:$0xff] }
 0x66a   :  { %v4446_v24 = vsel %vm13740_vm0, %v4445_v62, %v4441_v9  ;;  %v4381_v51 = vrot.slane %v3783_v57, %v13707_v28  ;;  %v4376_v12 = vrot.slane %v11633_v7, %v13697_v15  ;;  %v4307_v27 = vrot.slane %v3738_v1, %v13720_v48  ;;  %v13746_v62 = vld [vmem:[#allocation201_spill] sm:$0xff]  ;;  %v13748_v57 = vld [vmem:[#allocation238_spill] sm:$0xff] }
 0x66b   :  { %v4303_v16 = vsel %vm2319_vm14, %v4302_v21, %v4298_v44  ;;  %v4451_v41 = vsel %vm13741_vm9, %v4450_v10, %v4446_v24  ;;  %vm13742_vm2 = vcmask 1042434   ;;  %v4455_v59 = vrot.slane %v3828_v20, %v13697_v15  ;;  %v13747_v21 = vld [vmem:[#allocation150_spill] sm:$0xff]  ;;  %v13753_v24 = vld [vmem:[#allocation144_spill] sm:$0xff] }
 0x66c   :  { %v4468_v43 = vsel %vm13742_vm2, %v4071_v17, %v4467_v18  ;;  %v4224_v55 = vsel %vm2319_vm14, %v4223_v22, %v4219_v31  ;;  %v4228_v34 = vrot.slane %v11593_v33, %v13720_v48  ;;  %v4377_v1 = vsel %vm2312_vm13, %v4376_v12, %v4372_v60  ;;  %v13749_v22 = vld [vmem:[#allocation270_spill] sm:$0xff]  ;;  %v13751_v31 = vld [vmem:[#allocation241_spill] sm:$0xff]  ;;  %v13754_v12 = vld [vmem:[#allocation140_spill] sm:$0xff] }
 0x66d   :  { %v3786_v37 = vpop.permute.xlu1 %3785  ;;  %v4469_v7 = vsel %vm2885_vm3, %v4150_v42, %v4468_v43  ;;  %v4382_v32 = vsel %vm2319_vm14, %v4381_v51, %v4377_v1  ;;  %v4308_v50 = vsel %vm2326_vm15, %v4307_v27, %v4303_v16  ;;  %v4456_v39 = vsel %vm2312_vm13, %v4455_v59, %v4451_v41  ;;  %v13752_v42 = vld [vmem:[#allocation214_spill] sm:$0xff]  ;;  %v13755_v16 = vld [vmem:[#allocation212_spill] sm:$0xff]  ;;  %v13757_v59 = vld [vmem:[#allocation179_spill] sm:$0xff] }
 0x66e   :  { %v4386_v2 = vrot.slane %v3786_v37, %v13720_v48  ;;  %v4460_v56 = vrot.slane %v3831_v35, %v13707_v28  ;;  %v4229_v13 = vsel %vm2326_vm15, %v4228_v34, %v4224_v55  ;;  %vm13743_vm12 = vcmask 1046534   ;;  %v13756_v37 = vld [vmem:[#allocation171_spill] sm:$0xff]  ;;  %v13758_v35 = vld [vmem:[#allocation193_spill] sm:$0xff]  ;;  %v13759_v34 = vld [vmem:[#allocation234_spill] sm:$0xff] }
 0x66f   :  { %v4470_v33 = vsel %vm2887_vm11, %v4229_v13, %v4469_v7  ;;  %vm13744_vm0 = vcmask 1047559   ;;  %v13760_v1 = vld [vmem:[#allocation175_spill] sm:$0xff]  ;;  %v13763_v13 = vld [vmem:[#allocation148_spill] sm:$0xff]  ;;  %vm13837_vm9 = vcmask 195712   ;;  %vm13838_vm2 = vcmask 261312  }
 0x670   :  { %v4387_v29 = vsel %vm2326_vm15, %v4386_v2, %v4382_v32  ;;  %v4461_v53 = vsel %vm2319_vm14, %v4460_v56, %v4456_v39  ;;  %v4471_v8 = vsel %vm2889_vm10, %v4308_v50, %v4470_v33  ;;  %v13761_v50 = vld [vmem:[#allocation204_spill] sm:$0xff] }
 0x671   :  { %v3834_v46 = vpop.permute.xlu1 %3833  ;;  %v4472_v6 = vsel %vm13743_vm12, %v4387_v29, %v4471_v8  ;;  %v13762_v56 = vld [vmem:[#allocation168_spill] sm:$0xff]  ;;  %vm13843_vm12 = vcmask 654912  }
 0x672   :  { %v4465_v3 = vrot.slane %v3834_v46, %v13720_v48 }
 0x674   :  { %v4466_v14 = vsel %vm2326_vm15, %v4465_v3, %v4461_v53  ;;  %v13764_v3 = vld [vmem:[#allocation211_spill] sm:$0xff]  ;;  %v13765_v53 = vld [vmem:[#allocation165_spill] sm:$0xff] }
 0x675   :  { %v4473_v20 = vsel %vm13744_vm0, %v4466_v14, %v4472_v6  ;;  %v13766_v14 = vld [vmem:[#allocation172_spill] sm:$0xff]  ;;  %vm13846_vm0 = vcmask 720512  }
 0x676   :  { %4475 = vadd.xlane.f32.xlu0 %v4473_v20  ;;  %v13767_v20 = vld [vmem:[#allocation196_spill] sm:$0xff] }
 0x703   :  { %v11754_v30 = vpop.xlane.xlu0 %4475 }
 0x704   :  { %v4481_v52 = vrot.slane %v11754_v30, %v13745_v40  ;;  %v4485_v47 = vrot.slane %v11754_v30, %v13746_v62  ;;  %v4489_v7 = vrot.slane %v11754_v30, %v13759_v34 }
 0x706   :  { %8378 = vrcp.f32 %v4481_v52 }
 0x707   :  { %8380 = vrcp.f32 %v4485_v47 }
 0x708   :  { %8382 = vrcp.f32 %v4489_v7 }
 0x710   :  { %v8379_v61 = vpop.eup %8378 }
 0x711   :  { %v4527_v10 = vmul.f32 %v8379_v61, %v13747_v21  ;;  %v4519_v9 = vmul.f32 %v8379_v61, %v13748_v57  ;;  %v4533_v0 = vmul.f32 %v8379_v61, %v13749_v22  ;;  %v4520_v18 = vmul.f32 %v8379_v61, %v13750_v54  ;;  %v11764_v17 = vpop.eup %8380  ;;  %v13768_v21 = vld [vmem:[#allocation158_spill] sm:$0xff]  ;;  %v13769_v57 = vld [vmem:[#allocation229_spill] sm:$0xff]  ;;  %v13770_v22 = vld [vmem:[#allocation236_spill] sm:$0xff] }
 0x712   :  { %v4536_v60 = vmul.f32 %v11764_v17, %v13751_v31  ;;  %v4521_v44 = vmul.f32 %v8379_v61, %v13752_v42  ;;  %v4538_v51 = vmul.f32 %v11764_v17, %v13753_v24  ;;  %v4522_v27 = vmul.f32 %v8379_v61, %v13754_v12  ;;  %v11792_v47 = vpop.eup %8382  ;;  %v13771_v54 = vld [vmem:[#allocation259_spill] sm:$0xff]  ;;  %v13772_v31 = vld [vmem:[#allocation146_spill] sm:$0xff]  ;;  %v13773_v42 = vld [vmem:[#allocation265_spill] sm:$0xff] }
 0x713   :  { %4695 = vperm.xlu0 %7865, %v4527_v10   ;;  %4671 = vperm.xlu1 %7864, %v4519_v9   ;;  %v4540_v41 = vmul.f32 %v11764_v17, %v13755_v16  ;;  %v4523_v43 = vmul.f32 %v8379_v61, %v13756_v37  ;;  %v4542_v55 = vmul.f32 %v11764_v17, %v13757_v59  ;;  %v13774_v24 = vld [vmem:[#allocation177_spill] sm:$0xff] }
 0x714   :  { %v4524_v2 = vmul.f32 %v8379_v61, %v13758_v35  ;;  %v4544_v32 = vmul.f32 %v11764_v17, %v13760_v1  ;;  %v4525_v39 = vmul.f32 %v8379_v61, %v13761_v50  ;;  %v4546_v46 = vmul.f32 %v11764_v17, %v13762_v56  ;;  %v13775_v12 = vld [vmem:[#allocation277_spill] sm:$0xff]  ;;  %v13781_v1 = vld [vmem:[#allocation160_spill] sm:$0xff] }
 0x715   :  { %v4526_v29 = vmul.f32 %v8379_v61, %v13763_v13  ;;  %v4548_v33 = vmul.f32 %v11764_v17, %v13764_v3  ;;  %v4528_v8 = vmul.f32 %v8379_v61, %v13765_v53  ;;  %v4550_v6 = vmul.f32 %v11764_v17, %v13766_v14  ;;  %v13776_v16 = vld [vmem:[#allocation57_spill] sm:$0xff]  ;;  %v13786_v53 = vld [vmem:[#allocation174_spill] sm:$0xff] }
 0x716   :  { %v4529_v52 = vmul.f32 %v8379_v61, %v13767_v20  ;;  %v4553_v10 = vmul.f32 %v11792_v47, %v13768_v21  ;;  %v4530_v9 = vmul.f32 %v8379_v61, %v13769_v57  ;;  %v13787_v14 = vld [vmem:[#allocation225_spill] sm:$0xff]  ;;  %v13788_v20 = vld [vmem:[#allocation235_spill] sm:$0xff]  ;;  %v13789_v21 = vld [vmem:[#allocation178_spill] sm:$0xff] }
 0x717   :  { %4713 = vperm.xlu0 %7865, %v4533_v0   ;;  %4674 = vperm.xlu1 %7864, %v4520_v18   ;;  %v4555_v0 = vmul.f32 %v11792_v47, %v13770_v22  ;;  %v4531_v18 = vmul.f32 %v8379_v61, %v13771_v54  ;;  %v13790_v57 = vld [vmem:[#allocation208_spill] sm:$0xff]  ;;  %v13791_v22 = vld [vmem:[#allocation154_spill] sm:$0xff]  ;;  %v13792_v54 = vld [vmem:[#allocation205_spill] sm:$0xff] }
 0x71b   :  { %4886 = vperm.xlu0 %7865, %v4536_v60   ;;  %4677 = vperm.xlu1 %7864, %v4521_v44   ;;  %v4557_v60 = vmul.f32 %v11792_v47, %v13772_v31  ;;  %v4532_v44 = vmul.f32 %v8379_v61, %v13773_v42  ;;  %v13793_v31 = vld [vmem:[#allocation202_spill] sm:$0xff]  ;;  %v13794_v42 = vsub.s32 4, %v13776_v16 }
 0x71f   :  { %4892 = vperm.xlu0 %7865, %v4538_v51   ;;  %4680 = vperm.xlu1 %7864, %v4522_v27   ;;  %v4559_v51 = vmul.f32 %v11792_v47, %v13774_v24  ;;  %v4534_v27 = vmul.f32 %v8379_v61, %v13775_v12  ;;  %v4539_v61 = vmul.f32 %v11764_v17, %v13781_v1  ;;  %v13795_v24 = vld [vmem:[#allocation192_spill] sm:$0xff]  ;;  %v13796_v12 = vld [vmem:[#allocation155_spill] sm:$0xff] }
 0x723   :  { %4898 = vperm.xlu0 %7865, %v4540_v41   ;;  %4683 = vperm.xlu1 %7864, %v4523_v43   ;;  %v13777_v41 = vsub.s32 3, %v13776_v16  ;;  %v13778_v43 = vld [vmem:[#allocation194_spill] sm:$0xff] }
 0x724   :  { %v4561_v59 = vmul.f32 %v11792_v47, %v13778_v43  ;;  %v13798_v43 = vld [vmem:[#allocation142_spill] sm:$0xff] }
 0x725   :  { %v4493_v37 = vrot.slane %v11754_v30, %v13777_v41  ;;  %v13797_v41 = vld [vmem:[#allocation149_spill] sm:$0xff] }
 0x727   :  { %4904 = vperm.xlu0 %7865, %v4542_v55   ;;  %4686 = vperm.xlu1 %7864, %v4524_v2   ;;  %v13779_v55 = vld [vmem:[#allocation246_spill] sm:$0xff]  ;;  %8384 = vrcp.f32 %v4493_v37  ;;  %v13780_v2 = vld [vmem:[#allocation169_spill] sm:$0xff] }
 0x728   :  { %v4537_v35 = vmul.f32 %v11764_v17, %v13779_v55  ;;  %v4563_v7 = vmul.f32 %v11792_v47, %v13780_v2 }
 0x72b   :  { %4910 = vperm.xlu0 %7865, %v4544_v32   ;;  %4689 = vperm.xlu1 %7864, %v4525_v39   ;;  %v13782_v32 = vld [vmem:[#allocation266_spill] sm:$0xff] }
 0x72c   :  { %v4565_v50 = vmul.f32 %v11792_v47, %v13782_v32  ;;  %v13783_v39 = vld [vmem:[#allocation182_spill] sm:$0xff] }
 0x72d   :  { %v4541_v56 = vmul.f32 %v11764_v17, %v13783_v39  ;;  %v13803_v39 = vld [vmem:[#allocation157_spill] sm:$0xff] }
 0x72f   :  { %4916 = vperm.xlu0 %7865, %v4546_v46   ;;  %4692 = vperm.xlu1 %7864, %v4526_v29   ;;  %v13784_v46 = vld [vmem:[#allocation278_spill] sm:$0xff]  ;;  %v13785_v29 = vld [vmem:[#allocation187_spill] sm:$0xff] }
 0x730   :  { %v4567_v13 = vmul.f32 %v11792_v47, %v13784_v46  ;;  %v4543_v3 = vmul.f32 %v11764_v17, %v13785_v29  ;;  %v13804_v46 = vld [vmem:[#allocation226_spill] sm:$0xff]  ;;  %v13805_v29 = vld [vmem:[#allocation173_spill] sm:$0xff] }
 0x733   :  { %4922 = vperm.xlu0 %7865, %v4548_v33   ;;  %4698 = vperm.xlu1 %7864, %v4528_v8   ;;  %v11825_v33 = vpop.eup %8384 }
 0x734   :  { %v4570_v8 = vmul.f32 %v11825_v33, %v13786_v53  ;;  %v4580_v37 = vmul.f32 %v11825_v33, %v13797_v41  ;;  %v13806_v53 = vld [vmem:[#allocation260_spill] sm:$0xff] }
 0x737   :  { %4928 = vperm.xlu0 %7865, %v4550_v6   ;;  %4701 = vperm.xlu1 %7864, %v4529_v52   ;;  %v4545_v6 = vmul.f32 %v11764_v17, %v13787_v14  ;;  %v4572_v52 = vmul.f32 %v11825_v33, %v13788_v20  ;;  %v13807_v14 = vld [vmem:[#allocation206_spill] sm:$0xff]  ;;  %v13808_v20 = vld [vmem:[#allocation272_spill] sm:$0xff] }
 0x73b   :  { %5101 = vperm.xlu0 %7865, %v4553_v10   ;;  %4704 = vperm.xlu1 %7864, %v4530_v9   ;;  %v4547_v10 = vmul.f32 %v11764_v17, %v13789_v21  ;;  %v4574_v9 = vmul.f32 %v11825_v33, %v13790_v57  ;;  %v13809_v21 = vld [vmem:[#allocation224_spill] sm:$0xff] }
 0x73c   :  { %v13810_v57 = vld [vmem:[#allocation284_spill] sm:$0xff] }
 0x73f   :  { %5107 = vperm.xlu0 %7865, %v4555_v0   ;;  %4707 = vperm.xlu1 %7864, %v4531_v18   ;;  %v4549_v0 = vmul.f32 %v11764_v17, %v13791_v22  ;;  %v4576_v18 = vmul.f32 %v11825_v33, %v13792_v54  ;;  %v13811_v22 = vsub.s32 5, %v13776_v16  ;;  %v13812_v54 = vld [vmem:[#allocation199_spill] sm:$0xff] }
 0x743   :  { %5113 = vperm.xlu0 %7865, %v4557_v60   ;;  %4710 = vperm.xlu1 %7864, %v4532_v44   ;;  %v4551_v60 = vmul.f32 %v11764_v17, %v13793_v31  ;;  %v4497_v44 = vrot.slane %v11754_v30, %v13794_v42  ;;  %v4556_v17 = vmul.f32 %v11792_v47, %v13798_v43  ;;  %v13813_v31 = vld [vmem:[#allocation230_spill] sm:$0xff] }
 0x744   :  { %v13814_v42 = vld [vmem:[#allocation210_spill] sm:$0xff] }
 0x745   :  { %8386 = vrcp.f32 %v4497_v44 }
 0x747   :  { %5119 = vperm.xlu0 %7865, %v4559_v51   ;;  %4716 = vperm.xlu1 %7864, %v4534_v27   ;;  %v4578_v51 = vmul.f32 %v11825_v33, %v13795_v24  ;;  %v4554_v27 = vmul.f32 %v11792_v47, %v13796_v12  ;;  %v13815_v24 = vld [vmem:[#allocation162_spill] sm:$0xff] }
 0x74b   :  { %5125 = vperm.xlu0 %7865, %v4561_v59   ;;  %4889 = vperm.xlu1 %7864, %v4537_v35   ;;  %v13799_v59 = vld [vmem:[#allocation200_spill] sm:$0xff]  ;;  %v13800_v35 = vld [vmem:[#allocation159_spill] sm:$0xff] }
 0x74c   :  { %v4582_v55 = vmul.f32 %v11825_v33, %v13799_v59  ;;  %v4558_v2 = vmul.f32 %v11792_v47, %v13800_v35 }
 0x74f   :  { %5131 = vperm.xlu0 %7865, %v4563_v7   ;;  %4895 = vperm.xlu1 %7864, %v4539_v61   ;;  %v13801_v7 = vld [vmem:[#allocation189_spill] sm:$0xff]  ;;  %v13802_v61 = vld [vmem:[#allocation176_spill] sm:$0xff] }
 0x750   :  { %v4584_v1 = vmul.f32 %v11825_v33, %v13801_v7  ;;  %v4560_v32 = vmul.f32 %v11792_v47, %v13802_v61  ;;  %v13820_v61 = vld [vmem:[#allocation184_spill] sm:$0xff] }
 0x753   :  { %5137 = vperm.xlu0 %7865, %v4565_v50   ;;  %4901 = vperm.xlu1 %7864, %v4541_v56   ;;  %v11862_v50 = vpop.eup %8386 }
 0x754   :  { %v4587_v56 = vmul.f32 %v11862_v50, %v13803_v39  ;;  %v4597_v44 = vmul.f32 %v11862_v50, %v13814_v42  ;;  %v13821_v39 = vld [vmem:[#allocation209_spill] sm:$0xff]  ;;  %v13828_v42 = vsub.s32 6, %v13776_v16 }
 0x757   :  { %5143 = vperm.xlu0 %7865, %v4567_v13   ;;  %4907 = vperm.xlu1 %7864, %v4543_v3   ;;  %v4562_v13 = vmul.f32 %v11792_v47, %v13804_v46  ;;  %v4589_v3 = vmul.f32 %v11862_v50, %v13805_v29  ;;  %v13822_v29 = vld [vmem:[#allocation223_spill] sm:$0xff] }
 0x75b   :  { %5316 = vperm.xlu0 %7865, %v4570_v8   ;;  %4913 = vperm.xlu1 %7864, %v4545_v6   ;;  %v4564_v8 = vmul.f32 %v11792_v47, %v13806_v53  ;;  %v4591_v6 = vmul.f32 %v11862_v50, %v13807_v14  ;;  %v13823_v53 = vld [vmem:[#allocation185_spill] sm:$0xff] }
 0x75f   :  { %5322 = vperm.xlu0 %7865, %v4572_v52   ;;  %4919 = vperm.xlu1 %7864, %v4547_v10   ;;  %v4566_v52 = vmul.f32 %v11792_v47, %v13808_v20  ;;  %v4593_v10 = vmul.f32 %v11862_v50, %v13809_v21  ;;  %v13824_v20 = vld [vmem:[#allocation164_spill] sm:$0xff]  ;;  %v13825_v21 = vld [vmem:[#allocation233_spill] sm:$0xff] }
 0x763   :  { %5328 = vperm.xlu0 %7865, %v4574_v9   ;;  %4925 = vperm.xlu1 %7864, %v4549_v0   ;;  %v4568_v9 = vmul.f32 %v11792_v47, %v13810_v57  ;;  %v4501_v0 = vrot.slane %v11754_v30, %v13811_v22  ;;  %v4573_v47 = vmul.f32 %v11825_v33, %v13815_v24  ;;  %v13826_v22 = vld [vmem:[#allocation222_spill] sm:$0xff]  ;;  %v13829_v24 = vld [vmem:[#allocation183_spill] sm:$0xff] }
 0x765   :  { %8388 = vrcp.f32 %v4501_v0 }
 0x767   :  { %5334 = vperm.xlu0 %7865, %v4576_v18   ;;  %4931 = vperm.xlu1 %7864, %v4551_v60   ;;  %v4595_v18 = vmul.f32 %v11862_v50, %v13812_v54  ;;  %v4571_v60 = vmul.f32 %v11825_v33, %v13813_v31  ;;  %v13827_v54 = vld [vmem:[#allocation220_spill] sm:$0xff] }
 0x76b   :  { %5340 = vperm.xlu0 %7865, %v4578_v51   ;;  %5104 = vperm.xlu1 %7864, %v4554_v27   ;;  %v13816_v51 = vld [vmem:[#allocation280_spill] sm:$0xff]  ;;  %v13817_v27 = vld [vmem:[#allocation217_spill] sm:$0xff] }
 0x76c   :  { %v4599_v12 = vmul.f32 %v11862_v50, %v13816_v51  ;;  %v4575_v41 = vmul.f32 %v11825_v33, %v13817_v27  ;;  %v13830_v51 = vld [vmem:[#allocation141_spill] sm:$0xff] }
 0x76f   :  { %5346 = vperm.xlu0 %7865, %v4580_v37   ;;  %5110 = vperm.xlu1 %7864, %v4556_v17   ;;  %v13818_v17 = vld [vmem:[#allocation191_spill] sm:$0xff] }
 0x770   :  { %v4601_v59 = vmul.f32 %v11862_v50, %v13818_v17 }
 0x773   :  { %5352 = vperm.xlu0 %7865, %v4582_v55   ;;  %5116 = vperm.xlu1 %7864, %v4558_v2   ;;  %v13819_v55 = vld [vmem:[#allocation161_spill] sm:$0xff]  ;;  %v11903_v2 = vpop.eup %8388 }
 0x774   :  { %v4577_v35 = vmul.f32 %v11825_v33, %v13819_v55  ;;  %v4610_v0 = vmul.f32 %v11903_v2, %v13826_v22 }
 0x777   :  { %5358 = vperm.xlu0 %7865, %v4584_v1   ;;  %5122 = vperm.xlu1 %7864, %v4560_v32   ;;  %v4604_v32 = vmul.f32 %v11903_v2, %v13820_v61 }
 0x77b   :  { %5531 = vperm.xlu0 %7865, %v4587_v56   ;;  %5128 = vperm.xlu1 %7864, %v4562_v13   ;;  %v4579_v56 = vmul.f32 %v11825_v33, %v13821_v39 }
 0x77f   :  { %5537 = vperm.xlu0 %7865, %v4589_v3   ;;  %5134 = vperm.xlu1 %7864, %v4564_v8   ;;  %v4606_v3 = vmul.f32 %v11903_v2, %v13822_v29  ;;  %v4581_v8 = vmul.f32 %v11825_v33, %v13823_v53 }
 0x783   :  { %5543 = vperm.xlu0 %7865, %v4591_v6   ;;  %5140 = vperm.xlu1 %7864, %v4566_v52   ;;  %v4608_v52 = vmul.f32 %v11903_v2, %v13824_v20 }
 0x787   :  { %5549 = vperm.xlu0 %7865, %v4593_v10   ;;  %5146 = vperm.xlu1 %7864, %v4568_v9   ;;  %v4583_v10 = vmul.f32 %v11825_v33, %v13825_v21 }
 0x78b   :  { %5555 = vperm.xlu0 %7865, %v4595_v18   ;;  %5319 = vperm.xlu1 %7864, %v4571_v60   ;;  %v4585_v18 = vmul.f32 %v11825_v33, %v13827_v54  ;;  %v13831_v33 = vld [vmem:[#allocation231_spill] sm:$0xff] }
 0x78c   :  { %v4614_v17 = vmul.f32 %v11903_v2, %v13831_v33  ;;  %v13840_v33 = vld [vmem:[#allocation261_spill] sm:$0xff] }
 0x78f   :  { %5561 = vperm.xlu0 %7865, %v4597_v44   ;;  %5325 = vperm.xlu1 %7864, %v4573_v47   ;;  %v4505_v44 = vrot.slane %v11754_v30, %v13828_v42  ;;  %v4612_v47 = vmul.f32 %v11903_v2, %v13829_v24 }
 0x791   :  { %8390 = vrcp.f32 %v4505_v44 }
 0x792   :  { %v11895_v37 = vpop.permute.xlu0 %4695  ;;  %v11897_v43 = vpop.permute.xlu1 %4671 }
 0x793   :  { %5567 = vperm.xlu0 %7865, %v4599_v12   ;;  %5331 = vperm.xlu1 %7864, %v4575_v41   ;;  %v4588_v12 = vmul.f32 %v11862_v50, %v13830_v51 }
 0x796   :  { %v11905_v7 = vpop.permute.xlu0 %4713  ;;  %v4675_v1 = vpop.permute.xlu1 %4674 }
 0x797   :  { %5573 = vperm.xlu0 %7865, %v4601_v59   ;;  %5337 = vperm.xlu1 %7864, %v4577_v35   ;;  %v13832_v59 = vld [vmem:[#allocation186_spill] sm:$0xff] }
 0x798   :  { %v4590_v55 = vmul.f32 %v11862_v50, %v13832_v59 }
 0x79a   :  { %v11911_v46 = vpop.permute.xlu0 %4886  ;;  %v4678_v13 = vpop.permute.xlu1 %4677 }
 0x79b   :  { %5746 = vperm.xlu0 %7865, %v4604_v32   ;;  %5343 = vperm.xlu1 %7864, %v4579_v56   ;;  %v13833_v32 = vld [vmem:[#allocation219_spill] sm:$0xff]  ;;  %v4730_v20 = vrot.slane %v4678_v13, %v13651_v5 }
 0x79c   :  { %v4616_v39 = vmul.f32 %v11903_v2, %v13833_v32  ;;  %v13834_v56 = vld [vmem:[#allocation207_spill] sm:$0xff] }
 0x79d   :  { %v4592_v29 = vmul.f32 %v11862_v50, %v13834_v56  ;;  %v13841_v56 = vld [vmem:[#allocation203_spill] sm:$0xff] }
 0x79e   :  { %v11917_v14 = vpop.permute.xlu0 %4892  ;;  %v4681_v6 = vpop.permute.xlu1 %4680 }
 0x79f   :  { %5752 = vperm.xlu0 %7865, %v4606_v3   ;;  %5349 = vperm.xlu1 %7864, %v4581_v8   ;;  %v4725_v8 = vrot.slane %v4675_v1, %v13648_v49  ;;  %v4735_v21 = vrot.slane %v4681_v6, %v13653_v26 }
 0x7a2   :  { %v11923_v57 = vpop.permute.xlu0 %4898  ;;  %v4684_v9 = vpop.permute.xlu1 %4683 }
 0x7a3   :  { %5758 = vperm.xlu0 %7865, %v4608_v52   ;;  %5355 = vperm.xlu1 %7864, %v4583_v10   ;;  %v4721_v52 = vrot.slane %v11897_v43, %v13649_v4  ;;  %v13835_v10 = vld [vmem:[#allocation292_spill] sm:$0xff]  ;;  %v4740_v42 = vrot.slane %v4684_v9, %v13656_v25 }
 0x7a4   :  { %v4618_v22 = vmul.f32 %v11903_v2, %v13835_v10 }
 0x7a5   :  { %v4726_v13 = vsel %vm2228_vm1, %v4725_v8, %v4721_v52  ;;  %v13842_v8 = vld [vmem:[#allocation273_spill] sm:$0xff]  ;;  %v4760_v52 = vrot.slane %v11895_v37, %v13669_v58 }
 0x7a6   :  { %v11929_v31 = vpop.permute.xlu0 %4904  ;;  %v4687_v60 = vpop.permute.xlu1 %4686  ;;  %v4731_v43 = vsel %vm13837_vm9, %v4730_v20, %v4726_v13  ;;  %v4598_v20 = vmul.f32 %v11862_v50, %v13842_v8  ;;  %v13844_v13 = vld [vmem:[#allocation170_spill] sm:$0xff]  ;;  %vm13847_vm9 = vcmask 786112  }
 0x7a7   :  { %5764 = vperm.xlu0 %7865, %v4610_v0   ;;  %5361 = vperm.xlu1 %7864, %v4585_v18   ;;  %v13836_v0 = vld [vmem:[#allocation167_spill] sm:$0xff]  ;;  %v11961_v18 = vpop.eup %8390  ;;  %v4745_v24 = vrot.slane %v4687_v60, %v13657_v38 }
 0x7a8   :  { %v4594_v54 = vmul.f32 %v11862_v50, %v13836_v0 }
 0x7aa   :  { %v11938_v27 = vpop.permute.xlu0 %4910  ;;  %v4690_v41 = vpop.permute.xlu1 %4689 }
 0x7ab   :  { %5770 = vperm.xlu0 %7865, %v4612_v47   ;;  %5534 = vperm.xlu1 %7864, %v4588_v12   ;;  %v4750_v6 = vrot.slane %v4690_v41, %v13659_v36  ;;  %v4736_v47 = vsel %vm13838_vm2, %v4735_v21, %v4731_v43  ;;  %v13839_v12 = vld [vmem:[#allocation216_spill] sm:$0xff]  ;;  %v13845_v43 = vld [vmem:[#allocation286_spill] sm:$0xff]  ;;  %vm13848_vm2 = vcmask 851712  }
 0x7ac   :  { %v4621_v9 = vmul.f32 %v11961_v18, %v13839_v12  ;;  %v4741_v59 = vsel %vm2249_vm4, %v4740_v42, %v4736_v47  ;;  %v4600_v37 = vmul.f32 %v11862_v50, %v13845_v43  ;;  %v13857_v43 = vld [vmem:[#allocation282_spill] sm:$0xff] }
 0x7ad   :  { %v4746_v32 = vsel %vm2256_vm5, %v4745_v24, %v4741_v59  ;;  %v4625_v24 = vmul.f32 %v11961_v18, %v13844_v13 }
 0x7ae   :  { %v11944_v35 = vpop.permute.xlu0 %4916  ;;  %v4693_v61 = vpop.permute.xlu1 %4692  ;;  %v4751_v41 = vsel %vm2263_vm6, %v4750_v6, %v4746_v32 }
 0x7af   :  { %5776 = vperm.xlu0 %7865, %v4614_v17   ;;  %5540 = vperm.xlu1 %7864, %v4590_v55   ;;  %v4755_v51 = vrot.slane %v4693_v61, %v13663_v63  ;;  %v4596_v17 = vmul.f32 %v11862_v50, %v13840_v33 }
 0x7b2   :  { %v11950_v3 = vpop.permute.xlu0 %4922  ;;  %v4699_v53 = vpop.permute.xlu1 %4698 }
 0x7b3   :  { %5782 = vperm.xlu0 %7865, %v4616_v39   ;;  %5546 = vperm.xlu1 %7864, %v4592_v29   ;;  %v4756_v39 = vsel %vm2270_vm7, %v4755_v51, %v4751_v41  ;;  %v4765_v61 = vrot.slane %v4699_v53, %v13672_v23  ;;  %v4623_v29 = vmul.f32 %v11961_v18, %v13841_v56 }
 0x7b4   :  { %v4761_v53 = vsel %vm2277_vm8, %v4760_v52, %v4756_v39  ;;  %v4790_v41 = vrot.slane %v11905_v7, %v13707_v28  ;;  %v13853_v7 = vld [vmem:[#allocation145_spill] sm:$0xff] }
 0x7b5   :  { %v4766_v42 = vsel %vm13843_vm12, %v4765_v61, %v4761_v53  ;;  %vm13859_vm12 = vcmask 195712  }
 0x7b6   :  { %v11964_v1 = vpop.permute.xlu0 %4928  ;;  %v4702_v44 = vpop.permute.xlu1 %4701 }
 0x7b7   :  { %5788 = vperm.xlu0 %7865, %v4618_v22   ;;  %5552 = vperm.xlu1 %7864, %v4594_v54   ;;  %v4770_v21 = vrot.slane %v4702_v44, %v13673_v19 }
 0x7b9   :  { %v4771_v44 = vsel %vm13846_vm0, %v4770_v21, %v4766_v42  ;;  %v13855_v42 = vmov 0.0   ;;  %vm13861_vm0 = vcmask 261312  }
 0x7ba   :  { %v11977_v55 = vpop.permute.xlu0 %5101  ;;  %v4705_v60 = vpop.permute.xlu1 %4704 }
 0x7bb   :  { %5961 = vperm.xlu0 %7865, %v4621_v9   ;;  %5558 = vperm.xlu1 %7864, %v4596_v17   ;;  %v4775_v0 = vrot.slane %v4705_v60, %v13678_v11  ;;  %v13849_v17 = vld [vmem:[#allocation258_spill] sm:$0xff]  ;;  %v13850_v60 = vld [vmem:[#allocation279_spill] sm:$0xff] }
 0x7bc   :  { %v4627_v59 = vmul.f32 %v11961_v18, %v13849_v17  ;;  %v4602_v32 = vmul.f32 %v11862_v50, %v13850_v60  ;;  %v13852_v50 = vld [vmem:[#allocation269_spill] sm:$0xff]  ;;  %v13862_v60 = vld [vmem:[#allocation30_spill] sm:$0xff] }
 0x7bd   :  { %v4776_v51 = vsel %vm13847_vm9, %v4775_v0, %v4771_v44  ;;  %v4629_v21 = vmul.f32 %v11961_v18, %v13852_v50  ;;  %v13858_v44 = vld [vmem:[#allocation163_spill] sm:$0xff]  ;;  %v13860_v17 = vld [vmem:[#allocation29_spill] sm:$0xff]  ;;  %vm13874_vm9 = vcmask 654912  }
 0x7be   :  { %v11990_v10 = vpop.permute.xlu0 %5107  ;;  %v4708_v22 = vpop.permute.xlu1 %4707 }
 0x7bf   :  { %5967 = vperm.xlu0 %7865, %v4623_v29   ;;  %5564 = vperm.xlu1 %7864, %v4598_v20   ;;  %v4780_v54 = vrot.slane %v4708_v22, %v13684_v45  ;;  %v13851_v29 = vsub.s32 7, %v13776_v16  ;;  %v4605_v22 = vmul.f32 %v11903_v2, %v13853_v7  ;;  %v4936_v16 = vrot.slane %v11911_v46, %v13649_v4 }
 0x7c0   :  { %v4945_v46 = vrot.slane %v11917_v14, %v13651_v5 }
 0x7c1   :  { %v4781_v9 = vsel %vm13848_vm2, %v4780_v54, %v4776_v51  ;;  %v4509_v8 = vrot.slane %v11754_v30, %v13851_v29  ;;  %v13854_v54 = vld [vmem:[#allocation27_spill] sm:$0xff]  ;;  %vm13878_vm2 = vcmask 720512  }
 0x7c2   :  { %v12001_v6 = vpop.permute.xlu0 %5113  ;;  %v4711_v47 = vpop.permute.xlu1 %4710 }
 0x7c3   :  { %v4785_v12 = vrot.slane %v4711_v47, %v13697_v15  ;;  %5973 = vperm.xlu0 %7865, %v4625_v24   ;;  %5570 = vperm.xlu1 %7864, %v4600_v37   ;;  %8392 = vrcp.f32 %v4509_v8  ;;  %v13856_v24 = vld [vmem:[#allocation28_spill] sm:$0xff]  ;;  %v4631_v37 = vmul.f32 %v11961_v18, %v13857_v43  ;;  %v4607_v47 = vmul.f32 %v11903_v2, %v13858_v44 }
 0x7c5   :  { %v4786_v33 = vsel %vm2312_vm13, %v4785_v12, %v4781_v9 }
 0x7c6   :  { %v12013_v39 = vpop.permute.xlu0 %5119  ;;  %v4717_v61 = vpop.permute.xlu1 %4716  ;;  %v4791_v20 = vsel %vm2319_vm14, %v4790_v41, %v4786_v33 }
 0x7c7   :  { %v4795_v56 = vrot.slane %v4717_v61, %v13720_v48  ;;  %5979 = vperm.xlu0 %7865, %v4627_v59   ;;  %5576 = vperm.xlu1 %7864, %v4602_v32   ;;  %v13863_v32 = vld [vmem:[#allocation221_spill] sm:$0xff] }
 0x7c8   :  { %v4633_v41 = vmul.f32 %v11961_v18, %v13863_v32  ;;  %v13864_v61 = vld [vmem:[#allocation197_spill] sm:$0xff] }
 0x7c9   :  { %v12021_v52 = vsel %vm2326_vm15, %v4795_v56, %v4791_v20  ;;  %v4609_v14 = vmul.f32 %v11903_v2, %v13864_v61  ;;  %v4955_v56 = vrot.slane %v11923_v57, %v13656_v25 }
 0x7ca   :  { %v12027_v0 = vpop.permute.xlu0 %5125  ;;  %4863 = vmatmul.mubr.f32.vlgmr.msra.gmra.mrb[2].mxu0 %v12021_v52  ;;  %v4890_v53 = vpop.permute.xlu1 %4889 }
 0x7cb   :  { %v4940_v30 = vrot.slane %v4890_v53, %v13648_v49  ;;  %5985 = vperm.xlu0 %7865, %v4629_v21   ;;  %5749 = vperm.xlu1 %7864, %v4605_v22   ;;  %v13865_v21 = vld [vmem:[#allocation31_spill] sm:$0xff]  ;;  %v13866_v22 = vld [vmem:[#allocation32_spill] sm:$0xff]  ;;  %v13867_v53 = vld [vmem:[#allocation298_spill] sm:$0xff] }
 0x7cc   :  { %7405 = vmatpush1.bf16.msra.mxu0 %v13854_v54  ;;  %5077 = vmatprep.mubr.f32.mxu0 %v13855_v42 }
 0x7cd   :  { %v4941_v13 = vsel %vm2228_vm1, %v4940_v30, %v4936_v16  ;;  %7407 = vmatprep.subr.bf16.mxu0 %v13856_v24  ;;  %v4635_v16 = vmul.f32 %v11961_v18, %v13867_v53  ;;  %v13868_v30 = vld [vmem:[#allocation152_spill] sm:$0xff]  ;;  %v12067_v54 = vpop.eup %8392 }
 0x7ce   :  { %v12043_v51 = vpop.permute.xlu0 %5131  ;;  %v4896_v12 = vpop.permute.xlu1 %4895  ;;  %v4946_v33 = vsel %vm13859_vm12, %v4945_v46, %v4941_v13  ;;  %v4611_v57 = vmul.f32 %v11903_v2, %v13868_v30  ;;  %v4965_v13 = vrot.slane %v11929_v31, %v13659_v36  ;;  %vm13880_vm12 = vcmask 786112  }
 0x7cf   :  { %v4950_v9 = vrot.slane %v4896_v12, %v13653_v26  ;;  %5991 = vperm.xlu0 %7865, %v4631_v37   ;;  %5755 = vperm.xlu1 %7864, %v4607_v47   ;;  %v13869_v47 = vld [vmem:[#allocation33_spill] sm:$0xff]  ;;  %v13870_v12 = vld [vmem:[#allocation34_spill] sm:$0xff] }
 0x7d0   :  { %7409 = vmatpush1.bf16.msra.mxu0 %v13860_v17  ;;  %v13872_v17 = vld [vmem:[#allocation215_spill] sm:$0xff] }
 0x7d1   :  { %v4951_v59 = vsel %vm13861_vm0, %v4950_v9, %v4946_v33  ;;  %7411 = vmatprep.subr.bf16.mxu0 %v13862_v60  ;;  %v13871_v9 = vld [vmem:[#allocation190_spill] sm:$0xff]  ;;  %v4613_v31 = vmul.f32 %v11903_v2, %v13872_v17  ;;  %vm13884_vm0 = vcmask 851712  }
 0x7d2   :  { %v12056_v29 = vpop.permute.xlu0 %5137  ;;  %v4902_v8 = vpop.permute.xlu1 %4901  ;;  %v4956_v50 = vsel %vm2249_vm4, %v4955_v56, %v4951_v59  ;;  %v4638_v33 = vmul.f32 %v12067_v54, %v13871_v9  ;;  %v4975_v59 = vrot.slane %v11938_v27, %v13669_v58 }
 0x7d3   :  { %v4960_v20 = vrot.slane %v4902_v8, %v13657_v38  ;;  %5997 = vperm.xlu0 %7865, %v4633_v41   ;;  %5761 = vperm.xlu1 %7864, %v4609_v14   ;;  %v13873_v14 = vld [vmem:[#allocation35_spill] sm:$0xff]  ;;  %v13875_v8 = vld [vmem:[#allocation36_spill] sm:$0xff] }
 0x7d4   :  { %7413 = vmatpush1.bf16.msra.mxu0 %v13865_v21  ;;  %v13877_v21 = vld [vmem:[#allocation267_spill] sm:$0xff] }
 0x7d5   :  { %v4961_v7 = vsel %vm2256_vm5, %v4960_v20, %v4956_v50  ;;  %7415 = vmatprep.subr.bf16.mxu0 %v13866_v22  ;;  %v13876_v20 = vld [vmem:[#allocation195_spill] sm:$0xff]  ;;  %v4615_v27 = vmul.f32 %v11903_v2, %v13877_v21  ;;  %v13889_v21 = vld [vmem:[#allocation41_spill] sm:$0xff] }
 0x7d6   :  { %v12071_v24 = vpop.permute.xlu0 %5143  ;;  %v4908_v43 = vpop.permute.xlu1 %4907  ;;  %v4966_v44 = vsel %vm2263_vm6, %v4965_v13, %v4961_v7  ;;  %v4640_v50 = vmul.f32 %v12067_v54, %v13876_v20  ;;  %v4985_v7 = vrot.slane %v11944_v35, %v13673_v19 }
 0x7d7   :  { %v4970_v37 = vrot.slane %v4908_v43, %v13663_v63  ;;  %6003 = vperm.xlu0 %7865, %v4635_v16   ;;  %5767 = vperm.xlu1 %7864, %v4611_v57   ;;  %v13879_v57 = vld [vmem:[#allocation37_spill] sm:$0xff]  ;;  %v13881_v43 = vld [vmem:[#allocation38_spill] sm:$0xff] }
 0x7d8   :  { %7417 = vmatpush1.bf16.msra.mxu0 %v13869_v47  ;;  %v13883_v47 = vld [vmem:[#allocation289_spill] sm:$0xff] }
 0x7d9   :  { %v4971_v46 = vsel %vm2270_vm7, %v4970_v37, %v4966_v44  ;;  %7419 = vmatprep.subr.bf16.mxu0 %v13870_v12  ;;  %v13882_v37 = vld [vmem:[#allocation147_spill] sm:$0xff]  ;;  %v4617_v35 = vmul.f32 %v11903_v2, %v13883_v47 }
 0x7da   :  { %v12084_v60 = vpop.permute.xlu0 %5316  ;;  %v4914_v32 = vpop.permute.xlu1 %4913  ;;  %v4976_v61 = vsel %vm2277_vm8, %v4975_v59, %v4971_v46  ;;  %v4642_v44 = vmul.f32 %v12067_v54, %v13882_v37  ;;  %v4995_v46 = vrot.slane %v11950_v3, %v13684_v45  ;;  %v5151_v37 = vrot.slane %v11977_v55, %v13649_v4  ;;  %v13894_v47 = vld [vmem:[#allocation43_spill] sm:$0xff] }
 0x7db   :  { %v4980_v41 = vrot.slane %v4914_v32, %v13672_v23  ;;  %6176 = vperm.xlu0 %7865, %v4638_v33   ;;  %5773 = vperm.xlu1 %7864, %v4613_v31   ;;  %v13885_v31 = vld [vmem:[#allocation39_spill] sm:$0xff]  ;;  %v13886_v32 = vld [vmem:[#allocation40_spill] sm:$0xff] }
 0x7dc   :  { %7421 = vmatpush1.bf16.msra.mxu0 %v13873_v14  ;;  %v13888_v14 = vld [vmem:[#allocation283_spill] sm:$0xff] }
 0x7dd   :  { %v4981_v56 = vsel %vm13874_vm9, %v4980_v41, %v4976_v61  ;;  %7423 = vmatprep.subr.bf16.mxu0 %v13875_v8  ;;  %v13887_v41 = vld [vmem:[#allocation213_spill] sm:$0xff]  ;;  %v4619_v3 = vmul.f32 %v11903_v2, %v13888_v14  ;;  %vm13892_vm9 = vcmask 1041409  }
 0x7de   :  { %v12097_v22 = vpop.permute.xlu0 %5322  ;;  %v4920_v53 = vpop.permute.xlu1 %4919  ;;  %v4986_v30 = vsel %vm13878_vm2, %v4985_v7, %v4981_v56  ;;  %v4644_v61 = vmul.f32 %v12067_v54, %v13887_v41  ;;  %v5005_v56 = vrot.slane %v11964_v1, %v13707_v28  ;;  %vm13898_vm2 = vcmask 195712  }
 0x7df   :  { %v4990_v16 = vrot.slane %v4920_v53, %v13678_v11  ;;  %6182 = vperm.xlu0 %7865, %v4640_v50   ;;  %5779 = vperm.xlu1 %7864, %v4615_v27   ;;  %v13890_v53 = vld [vmem:[#allocation42_spill] sm:$0xff] }
 0x7e0   :  { %7425 = vmatpush1.bf16.msra.mxu0 %v13879_v57 }
 0x7e1   :  { %v4991_v13 = vsel %vm13880_vm12, %v4990_v16, %v4986_v30  ;;  %7427 = vmatprep.subr.bf16.mxu0 %v13881_v43  ;;  %v13891_v16 = vld [vmem:[#allocation156_spill] sm:$0xff]  ;;  %vm13900_vm12 = vcmask 261312  }
 0x7e2   :  { %v12110_v12 = vpop.permute.xlu0 %5328  ;;  %v4926_v9 = vpop.permute.xlu1 %4925  ;;  %v4996_v17 = vsel %vm13884_vm0, %v4995_v46, %v4991_v13  ;;  %v4646_v2 = vmul.f32 %v12067_v54, %v13891_v16  ;;  %v13893_v13 = vld [vmem:[#allocation166_spill] sm:$0xff]  ;;  %v13895_v46 = vld [vmem:[#allocation44_spill] sm:$0xff]  ;;  %vm13912_vm0 = vcmask 654912  }
 0x7e3   :  { %v5000_v33 = vrot.slane %v4926_v9, %v13697_v15  ;;  %6188 = vperm.xlu0 %7865, %v4642_v44   ;;  %5785 = vperm.xlu1 %7864, %v4617_v35   ;;  %v4622_v43 = vmul.f32 %v11961_v18, %v13893_v13  ;;  %v13905_v13 = vld [vmem:[#allocation48_spill] sm:$0xff] }
 0x7e4   :  { %7429 = vmatpush1.bf16.msra.mxu0 %v13885_v31  ;;  %v13897_v31 = vld [vmem:[#allocation257_spill] sm:$0xff] }
 0x7e5   :  { %v5001_v59 = vsel %vm2312_vm13, %v5000_v33, %v4996_v17  ;;  %7431 = vmatprep.subr.bf16.mxu0 %v13886_v32  ;;  %v5160_v33 = vrot.slane %v11990_v10, %v13651_v5 }
 0x7e6   :  { %v12123_v8 = vpop.permute.xlu0 %5334  ;;  %v4932_v20 = vpop.permute.xlu1 %4931  ;;  %v5006_v27 = vsel %vm2319_vm14, %v5005_v56, %v5001_v59  ;;  %v4624_v59 = vmul.f32 %v11961_v18, %v13897_v31  ;;  %v13902_v56 = vld [vmem:[#allocation295_spill] sm:$0xff]  ;;  %v13909_v31 = vld [vmem:[#allocation50_spill] sm:$0xff] }
 0x7e7   :  { %v5010_v50 = vrot.slane %v4932_v20, %v13720_v48  ;;  %6194 = vperm.xlu0 %7865, %v4644_v61   ;;  %5791 = vperm.xlu1 %7864, %v4619_v3   ;;  %v13899_v61 = vld [vmem:[#allocation45_spill] sm:$0xff]  ;;  %v13901_v3 = vld [vmem:[#allocation46_spill] sm:$0xff]  ;;  %v4650_v10 = vmul.f32 %v12067_v54, %v13902_v56  ;;  %v5170_v20 = vrot.slane %v12001_v6, %v13656_v25  ;;  %v13911_v56 = vld [vmem:[#allocation51_spill] sm:$0xff] }
 0x7e8   :  { %7433 = vmatpush1.bf16.msra.mxu0 %v13889_v21 }
 0x7e9   :  { %v5011_v7 = vsel %vm2326_vm15, %v5010_v50, %v5006_v27  ;;  %7435 = vmatprep.subr.bf16.mxu0 %v13890_v53  ;;  %v13903_v27 = vld [vmem:[#allocation198_spill] sm:$0xff] }
 0x7ea   :  { %v12132_v30 = vpop.permute.xlu0 %5340  ;;  %v12136_v1 = vsel %vm13892_vm9, %v5011_v7, %v12021_v52  ;;  %v5105_v57 = vpop.permute.xlu1 %5104  ;;  %v13896_v52 = vld [vmem:[#allocation274_spill] sm:$0xff]  ;;  %vm13915_vm9 = vcmask 720512  }
 0x7eb   :  { %5078 = vmatmul.mubr.f32.vlgmr.msra.gmra.mrb[4].mxu0 %v5011_v7  ;;  %v5155_v44 = vrot.slane %v5105_v57, %v13648_v49  ;;  %6200 = vperm.xlu0 %7865, %v4646_v2   ;;  %v4648_v9 = vmul.f32 %v12067_v54, %v13896_v52  ;;  %v4626_v7 = vmul.f32 %v11961_v18, %v13903_v27  ;;  %v13904_v2 = vld [vmem:[#allocation47_spill] sm:$0xff] }
 0x7ec   :  { %5964 = vperm.xlu1 %7864, %v4622_v43   ;;  %7437 = vmatpush1.bf16.msra.mxu0 %v13894_v47  ;;  %v13906_v43 = vld [vmem:[#allocation232_spill] sm:$0xff] }
 0x7ed   :  { %v5156_v35 = vsel %vm2228_vm1, %v5155_v44, %v5151_v37  ;;  %7439 = vmatprep.subr.bf16.mxu0 %v13895_v46  ;;  %5292 = vmatprep.mubr.f32.mxu0 %v13855_v42  ;;  %v4652_v6 = vmul.f32 %v12067_v54, %v13906_v43  ;;  %v5180_v37 = vrot.slane %v12013_v39, %v13659_v36  ;;  %v13918_v43 = vld [vmem:[#allocation54_spill] sm:$0xff] }
 0x7ee   :  { %v12151_v55 = vpop.permute.xlu0 %5346  ;;  %v5111_v17 = vpop.permute.xlu1 %5110  ;;  %v5161_v41 = vsel %vm13898_vm2, %v5160_v33, %v5156_v35  ;;  %v13907_v35 = vld [vmem:[#allocation263_spill] sm:$0xff]  ;;  %v13908_v33 = vld [vmem:[#allocation49_spill] sm:$0xff]  ;;  %v5190_v39 = vrot.slane %v12027_v0, %v13669_v58  ;;  %v5200_v0 = vrot.slane %v12043_v51, %v13673_v19  ;;  %vm13917_vm2 = vcmask 786112  }
 0x7ef   :  { %v5165_v32 = vrot.slane %v5111_v17, %v13653_v26  ;;  %6206 = vperm.xlu0 %7865, %v4648_v9   ;;  %v4628_v46 = vmul.f32 %v11961_v18, %v13907_v35  ;;  %v5210_v51 = vrot.slane %v12056_v29, %v13684_v45  ;;  %v5220_v29 = vrot.slane %v12071_v24, %v13707_v28 }
 0x7f0   :  { %5970 = vperm.xlu1 %7864, %v4624_v59   ;;  %7441 = vmatpush1.bf16.msra.mxu0 %v13899_v61 }
 0x7f1   :  { %v5166_v14 = vsel %vm13900_vm12, %v5165_v32, %v5161_v41  ;;  %7443 = vmatprep.subr.bf16.mxu0 %v13901_v3  ;;  %v13910_v41 = vld [vmem:[#allocation276_spill] sm:$0xff]  ;;  %vm13920_vm12 = vcmask 851712  }
 0x7f2   :  { %v12164_v50 = vpop.permute.xlu0 %5352  ;;  %v5117_v21 = vpop.permute.xlu1 %5116  ;;  %v5171_v16 = vsel %vm2249_vm4, %v5170_v20, %v5166_v14  ;;  %v4630_v61 = vmul.f32 %v11961_v18, %v13910_v41  ;;  %v13913_v20 = vld [vmem:[#allocation52_spill] sm:$0xff] }
 0x7f3   :  { %v5175_v53 = vrot.slane %v5117_v21, %v13657_v38  ;;  %6212 = vperm.xlu0 %7865, %v4650_v10  }
 0x7f4   :  { %5976 = vperm.xlu1 %7864, %v4626_v7   ;;  %7445 = vmatpush1.bf16.msra.mxu0 %v13904_v2  ;;  %v13914_v7 = vld [vmem:[#allocation287_spill] sm:$0xff] }
 0x7f5   :  { %v5176_v57 = vsel %vm2256_vm5, %v5175_v53, %v5171_v16  ;;  %7447 = vmatprep.subr.bf16.mxu0 %v13905_v13  ;;  %v4632_v53 = vmul.f32 %v11961_v18, %v13914_v7  ;;  %v5366_v7 = vrot.slane %v12084_v60, %v13649_v4 }
 0x7f6   :  { %v12177_v44 = vpop.permute.xlu0 %5358  ;;  %v5123_v47 = vpop.permute.xlu1 %5122  ;;  %v5181_v9 = vsel %vm2263_vm6, %v5180_v37, %v5176_v57  ;;  %v13916_v57 = vld [vmem:[#allocation53_spill] sm:$0xff] }
 0x7f7   :  { %v5185_v52 = vrot.slane %v5123_v47, %v13663_v63  ;;  %6218 = vperm.xlu0 %7865, %v4652_v6   ;;  %v13919_v47 = vld [vmem:[#allocation281_spill] sm:$0xff] }
 0x7f8   :  { %5982 = vperm.xlu1 %7864, %v4628_v46   ;;  %7449 = vmatpush1.bf16.msra.mxu0 %v13908_v33  ;;  %v4634_v35 = vmul.f32 %v11961_v18, %v13919_v47 }
 0x7f9   :  { %v5186_v17 = vsel %vm2270_vm7, %v5185_v52, %v5181_v9  ;;  %7451 = vmatprep.subr.bf16.mxu0 %v13909_v31  ;;  %v13921_v9 = vld [vmem:[#allocation55_spill] sm:$0xff] }
 0x7fa   :  { %v12188_v59 = vpop.permute.xlu0 %5531  ;;  %v5129_v32 = vpop.permute.xlu1 %5128  ;;  %v5191_v3 = vsel %vm2277_vm8, %v5190_v39, %v5186_v17  ;;  %v13922_v17 = vld [vmem:[#allocation56_spill] sm:$0xff] }
 0x7fb   :  { %v5195_v14 = vrot.slane %v5129_v32, %v13672_v23  ;;  %v13923_v32 = vld [vmem:[#allocation301_spill] sm:$0xff] }
 0x7fc   :  { %5988 = vperm.xlu1 %7864, %v4630_v61   ;;  %7453 = vmatpush1.bf16.msra.mxu0 %v13911_v56  ;;  %v4636_v41 = vmul.f32 %v11961_v18, %v13923_v32 }
 0x7fd   :  { %v5196_v10 = vsel %vm13912_vm0, %v5195_v14, %v5191_v3  ;;  %7455 = vmatprep.subr.bf16.mxu0 %v13913_v20  ;;  %v13924_v14 = vld [vmem:[#allocation58_spill] sm:$0xff]  ;;  %vm13926_vm0 = vcmask 1042434  }
 0x7fe   :  { %v12199_v21 = vpop.permute.xlu0 %5537  ;;  %v5135_v27 = vpop.permute.xlu1 %5134  ;;  %v5201_v2 = vsel %vm13915_vm9, %v5200_v0, %v5196_v10  ;;  %v13925_v10 = vld [vmem:[#allocation59_spill] sm:$0xff]  ;;  %vm13931_vm9 = vcmask 195712  }
 0x7ff   :  { %v5205_v16 = vrot.slane %v5135_v27, %v13678_v11  ;;  %v13927_v27 = vld [vmem:[#allocation143_spill] sm:$0xff] }
 0x800   :  { %5994 = vperm.xlu1 %7864, %v4632_v53   ;;  %7457 = vmatpush1.bf16.msra.mxu0 %v13916_v57  ;;  %v4639_v18 = vmul.f32 %v12067_v54, %v13927_v27  ;;  %v13929_v57 = vld [vmem:[#allocation61_spill] sm:$0xff] }
 0x801   :  { %v5206_v13 = vsel %vm13917_vm2, %v5205_v16, %v5201_v2  ;;  %7459 = vmatprep.subr.bf16.mxu0 %v13918_v43  ;;  %v13928_v16 = vld [vmem:[#allocation60_spill] sm:$0xff]  ;;  %vm13933_vm2 = vcmask 261312  }
 0x802   :  { %v12210_v6 = vpop.permute.xlu0 %5543  ;;  %v5141_v37 = vpop.permute.xlu1 %5140  ;;  %v5211_v52 = vsel %vm13920_vm12, %v5210_v51, %v5206_v13  ;;  %v13930_v51 = vld [vmem:[#allocation227_spill] sm:$0xff]  ;;  %vm13943_vm12 = vcmask 654912  }
 0x803   :  { %v5215_v46 = vrot.slane %v5141_v37, %v13697_v15  ;;  %v4641_v60 = vmul.f32 %v12067_v54, %v13930_v51 }
 0x804   :  { %6000 = vperm.xlu1 %7864, %v4634_v35   ;;  %7461 = vmatpush1.bf16.msra.mxu0 %v13921_v9  ;;  %v13932_v35 = vld [vmem:[#allocation62_spill] sm:$0xff] }
 0x805   :  { %v5216_v33 = vsel %vm2312_vm13, %v5215_v46, %v5211_v52  ;;  %7463 = vmatprep.subr.bf16.mxu0 %v13922_v17  ;;  %v13934_v52 = vld [vmem:[#allocation63_spill] sm:$0xff]  ;;  %v13935_v17 = vld [vmem:[#allocation181_spill] sm:$0xff] }
 0x806   :  { %v12221_v31 = vpop.permute.xlu0 %5549  ;;  %v5147_v39 = vpop.permute.xlu1 %5146  ;;  %v5221_v3 = vsel %vm2319_vm14, %v5220_v29, %v5216_v33  ;;  %v4643_v29 = vmul.f32 %v12067_v54, %v13935_v17 }
 0x807   :  { %v5225_v61 = vrot.slane %v5147_v39, %v13720_v48 }
 0x808   :  { %6006 = vperm.xlu1 %7864, %v4636_v41   ;;  %7465 = vmatpush1.bf16.msra.mxu0 %v13924_v14  ;;  %v13936_v41 = vld [vmem:[#allocation65_spill] sm:$0xff]  ;;  %v13937_v14 = vld [vmem:[#allocation66_spill] sm:$0xff] }
 0x809   :  { %v5226_v56 = vsel %vm2326_vm15, %v5225_v61, %v5221_v3  ;;  %7467 = vmatprep.subr.bf16.mxu0 %v13925_v10  ;;  %v13938_v10 = vld [vmem:[#allocation151_spill] sm:$0xff] }
 0x80a   :  { %v12230_v20 = vpop.permute.xlu0 %5555  ;;  %v12234_v24 = vsel %vm13926_vm0, %v5226_v56, %v12136_v1  ;;  %v5320_v0 = vpop.permute.xlu1 %5319  ;;  %v5375_v1 = vrot.slane %v12097_v22, %v13651_v5  ;;  %v5385_v22 = vrot.slane %v12110_v12, %v13656_v25  ;;  %v5395_v12 = vrot.slane %v12123_v8, %v13659_v36 }
 0x80b   :  { %5293 = vmatmul.mubr.f32.vlgmr.msra.gmra.mrb[6].mxu0 %v5226_v56  ;;  %v5370_v53 = vrot.slane %v5320_v0, %v13648_v49  ;;  %v4645_v0 = vmul.f32 %v12067_v54, %v13938_v10  ;;  %v5405_v8 = vrot.slane %v12132_v30, %v13669_v58  ;;  %v5415_v30 = vrot.slane %v12151_v55, %v13673_v19 }
 0x80c   :  { %6179 = vperm.xlu1 %7864, %v4639_v18   ;;  %7469 = vmatpush1.bf16.msra.mxu0 %v13928_v16  ;;  %v13940_v16 = vld [vmem:[#allocation68_spill] sm:$0xff]  ;;  %vm13946_vm0 = vcmask 720512   ;;  %v5425_v55 = vrot.slane %v12164_v50, %v13684_v45 }
 0x80d   :  { %v5371_v2 = vsel %vm2228_vm1, %v5370_v53, %v5366_v7  ;;  %7471 = vmatprep.subr.bf16.mxu0 %v13929_v57  ;;  %5507 = vmatprep.mubr.f32.mxu0 %v13855_v42  ;;  %v13939_v7 = vld [vmem:[#allocation67_spill] sm:$0xff] }
 0x80e   :  { %v12247_v13 = vpop.permute.xlu0 %5561  ;;  %v5326_v43 = vpop.permute.xlu1 %5325  ;;  %v5376_v47 = vsel %vm13931_vm9, %v5375_v1, %v5371_v2  ;;  %v13941_v1 = vld [vmem:[#allocation153_spill] sm:$0xff]  ;;  %vm13948_vm9 = vcmask 786112  }
 0x80f   :  { %v5380_v37 = vrot.slane %v5326_v43, %v13653_v26  ;;  %v4647_v43 = vmul.f32 %v12067_v54, %v13941_v1  ;;  %v13955_v1 = vld [vmem:[#allocation75_spill] sm:$0xff] }
 0x810   :  { %6185 = vperm.xlu1 %7864, %v4641_v60   ;;  %7473 = vmatpush1.bf16.msra.mxu0 %v13932_v35  ;;  %v13944_v35 = vld [vmem:[#allocation70_spill] sm:$0xff] }
 0x811   :  { %v5381_v46 = vsel %vm13933_vm2, %v5380_v37, %v5376_v47  ;;  %7475 = vmatprep.subr.bf16.mxu0 %v13934_v52  ;;  %v13942_v37 = vld [vmem:[#allocation69_spill] sm:$0xff]  ;;  %v13945_v52 = vld [vmem:[#allocation291_spill] sm:$0xff]  ;;  %vm13951_vm2 = vcmask 851712  }
 0x812   :  { %v12258_v9 = vpop.permute.xlu0 %5567  ;;  %v5332_v33 = vpop.permute.xlu1 %5331  ;;  %v5386_v32 = vsel %vm2249_vm4, %v5385_v22, %v5381_v46  ;;  %v4649_v22 = vmul.f32 %v12067_v54, %v13945_v52  ;;  %v13958_v52 = vld [vmem:[#allocation78_spill] sm:$0xff] }
 0x813   :  { %v5390_v39 = vrot.slane %v5332_v33, %v13657_v38 }
 0x814   :  { %6191 = vperm.xlu1 %7864, %v4643_v29   ;;  %7477 = vmatpush1.bf16.msra.mxu0 %v13936_v41  ;;  %v13949_v41 = vld [vmem:[#allocation72_spill] sm:$0xff] }
 0x815   :  { %v5391_v61 = vsel %vm2256_vm5, %v5390_v39, %v5386_v32  ;;  %7479 = vmatprep.subr.bf16.mxu0 %v13937_v14  ;;  %v13947_v39 = vld [vmem:[#allocation71_spill] sm:$0xff]  ;;  %v13950_v14 = vld [vmem:[#allocation285_spill] sm:$0xff] }
 0x816   :  { %v12269_v3 = vpop.permute.xlu0 %5573  ;;  %v5338_v56 = vpop.permute.xlu1 %5337  ;;  %v5396_v18 = vsel %vm2263_vm6, %v5395_v12, %v5391_v61  ;;  %v4651_v12 = vmul.f32 %v12067_v54, %v13950_v14 }
 0x817   :  { %v5400_v27 = vrot.slane %v5338_v56, %v13663_v63 }
 0x818   :  { %6197 = vperm.xlu1 %7864, %v4645_v0   ;;  %7481 = vmatpush1.bf16.msra.mxu0 %v13939_v7  ;;  %v13952_v0 = vld [vmem:[#allocation73_spill] sm:$0xff]  ;;  %v5435_v7 = vrot.slane %v12177_v44, %v13707_v28 }
 0x819   :  { %v5401_v53 = vsel %vm2270_vm7, %v5400_v27, %v5396_v18  ;;  %7483 = vmatprep.subr.bf16.mxu0 %v13940_v16  ;;  %v13953_v18 = vld [vmem:[#allocation74_spill] sm:$0xff]  ;;  %v13954_v16 = vld [vmem:[#allocation304_spill] sm:$0xff] }
 0x81a   :  { %v12280_v2 = vpop.permute.xlu0 %5746  ;;  %v5344_v57 = vpop.permute.xlu1 %5343  ;;  %v5406_v60 = vsel %vm2277_vm8, %v5405_v8, %v5401_v53  ;;  %v4653_v8 = vmul.f32 %v12067_v54, %v13954_v16 }
 0x81b   :  { %v5410_v51 = vrot.slane %v5344_v57, %v13672_v23 }
 0x81c   :  { %6203 = vperm.xlu1 %7864, %v4647_v43   ;;  %7485 = vmatpush1.bf16.msra.mxu0 %v13942_v37 }
 0x81d   :  { %v5411_v47 = vsel %vm13943_vm12, %v5410_v51, %v5406_v60  ;;  %7487 = vmatprep.subr.bf16.mxu0 %v13944_v35  ;;  %v13956_v60 = vld [vmem:[#allocation76_spill] sm:$0xff]  ;;  %vm13959_vm12 = vcmask 195712  }
 0x81e   :  { %v5350_v46 = vpop.permute.xlu1 %5349  ;;  %v12294_v17 = vpop.permute.xlu0 %5752  ;;  %v5416_v29 = vsel %vm13946_vm0, %v5415_v30, %v5411_v47  ;;  %v5581_v47 = vrot.slane %v12188_v59, %v13649_v4  ;;  %v13957_v30 = vld [vmem:[#allocation77_spill] sm:$0xff]  ;;  %vm13961_vm0 = vcmask 261312  }
 0x81f   :  { %v5420_v33 = vrot.slane %v5350_v46, %v13678_v11 }
 0x820   :  { %6209 = vperm.xlu1 %7864, %v4649_v22   ;;  %7489 = vmatpush1.bf16.msra.mxu0 %v13947_v39 }
 0x821   :  { %v5421_v32 = vsel %vm13948_vm9, %v5420_v33, %v5416_v29  ;;  %7491 = vmatprep.subr.bf16.mxu0 %v13949_v41  ;;  %v13960_v29 = vld [vmem:[#allocation79_spill] sm:$0xff]  ;;  %v5600_v41 = vrot.slane %v12210_v6, %v13656_v25  ;;  %vm13968_vm9 = vcmask 654912  }
 0x822   :  { %v5356_v61 = vpop.permute.xlu1 %5355  ;;  %v5426_v10 = vsel %vm13951_vm2, %v5425_v55, %v5421_v32  ;;  %v12311_v53 = vpop.permute.xlu0 %5758  ;;  %v13962_v32 = vld [vmem:[#allocation80_spill] sm:$0xff]  ;;  %vm13970_vm2 = vcmask 720512  }
 0x823   :  { %v5430_v56 = vrot.slane %v5356_v61, %v13697_v15 }
 0x824   :  { %6215 = vperm.xlu1 %7864, %v4651_v12   ;;  %7493 = vmatpush1.bf16.msra.mxu0 %v13952_v0  ;;  %v13963_v12 = vld [vmem:[#allocation81_spill] sm:$0xff]  ;;  %v5610_v0 = vrot.slane %v12221_v31, %v13659_v36 }
 0x825   :  { %v5431_v27 = vsel %vm2312_vm13, %v5430_v56, %v5426_v10  ;;  %7495 = vmatprep.subr.bf16.mxu0 %v13953_v18  ;;  %v13964_v10 = vld [vmem:[#allocation82_spill] sm:$0xff] }
 0x826   :  { %v5362_v50 = vpop.permute.xlu1 %5361  ;;  %v5436_v43 = vsel %vm2319_vm14, %v5435_v7, %v5431_v27  ;;  %v12327_v35 = vpop.permute.xlu0 %5764 }
 0x827   :  { %v5440_v57 = vrot.slane %v5362_v50, %v13720_v48  ;;  %v13965_v50 = vld [vmem:[#allocation83_spill] sm:$0xff] }
 0x828   :  { %6221 = vperm.xlu1 %7864, %v4653_v8   ;;  %7497 = vmatpush1.bf16.msra.mxu0 %v13955_v1  ;;  %v13966_v8 = vld [vmem:[#allocation84_spill] sm:$0xff] }
 0x829   :  { %v5441_v51 = vsel %vm2326_vm15, %v5440_v57, %v5436_v43  ;;  %7499 = vmatprep.subr.bf16.mxu0 %v13956_v60  ;;  %v5620_v57 = vrot.slane %v12230_v20, %v13669_v58 }
 0x82a   :  { %v12322_v44 = vsel %vm2885_vm3, %v5441_v51, %v12234_v24  ;;  %v5535_v37 = vpop.permute.xlu1 %5534  ;;  %v5590_v24 = vrot.slane %v12199_v21, %v13651_v5  ;;  %v12342_v55 = vpop.permute.xlu0 %5770 }
 0x82b   :  { %5508 = vmatmul.mubr.f32.vlgmr.msra.gmra.mrb[8].mxu0 %v5441_v51  ;;  %v5585_v54 = vrot.slane %v5535_v37, %v13648_v49  ;;  %v13967_v51 = vld [vmem:[#allocation85_spill] sm:$0xff]  ;;  %v13969_v37 = vld [vmem:[#allocation86_spill] sm:$0xff] }
 0x82c   :  { %7501 = vmatpush1.bf16.msra.mxu0 %v13957_v30  ;;  %5722 = vmatprep.mubr.f32.mxu0 %v13855_v42 }
 0x82d   :  { %v5586_v46 = vsel %vm2228_vm1, %v5585_v54, %v5581_v47  ;;  %7503 = vmatprep.subr.bf16.mxu0 %v13958_v52  ;;  %v5630_v47 = vrot.slane %v12247_v13, %v13673_v19  ;;  %v13971_v52 = vld [vmem:[#allocation87_spill] sm:$0xff] }
 0x82e   :  { %v5541_v22 = vpop.permute.xlu1 %5540  ;;  %v5591_v59 = vsel %vm13959_vm12, %v5590_v24, %v5586_v46  ;;  %v12352_v6 = vpop.permute.xlu0 %5776  ;;  %vm13972_vm12 = vcmask 786112  }
 0x82f   :  { %v5595_v33 = vrot.slane %v5541_v22, %v13653_v26  ;;  %v13973_v22 = vld [vmem:[#allocation88_spill] sm:$0xff] }
 0x830   :  { %7505 = vmatpush1.bf16.msra.mxu0 %v13960_v29 }
 0x831   :  { %v5596_v39 = vsel %vm13961_vm0, %v5595_v33, %v5591_v59  ;;  %7507 = vmatprep.subr.bf16.mxu0 %v13962_v32  ;;  %v5640_v33 = vrot.slane %v12258_v9, %v13684_v45  ;;  %vm13974_vm0 = vcmask 851712   ;;  %v13975_v32 = vld [vmem:[#allocation89_spill] sm:$0xff]  ;;  %v13977_v9 = vld [vmem:[#allocation91_spill] sm:$0xff] }
 0x832   :  { %v5547_v61 = vpop.permute.xlu1 %5546  ;;  %v5601_v21 = vsel %vm2249_vm4, %v5600_v41, %v5596_v39  ;;  %v12367_v54 = vpop.permute.xlu0 %5782 }
 0x833   :  { %v5605_v14 = vrot.slane %v5547_v61, %v13657_v38  ;;  %v13976_v61 = vld [vmem:[#allocation90_spill] sm:$0xff] }
 0x834   :  { %7509 = vmatpush1.bf16.msra.mxu0 %v13963_v12 }
 0x835   :  { %v5606_v56 = vsel %vm2256_vm5, %v5605_v14, %v5601_v21  ;;  %7511 = vmatprep.subr.bf16.mxu0 %v13964_v10  ;;  %v5650_v14 = vrot.slane %v12269_v3, %v13707_v28  ;;  %v5796_v3 = vrot.slane %v12280_v2, %v13649_v4 }
 0x836   :  { %v5553_v27 = vpop.permute.xlu1 %5552  ;;  %v5611_v7 = vsel %vm2263_vm6, %v5610_v0, %v5606_v56  ;;  %v12377_v13 = vpop.permute.xlu0 %5788  ;;  %v13978_v0 = vld [vmem:[#allocation92_spill] sm:$0xff] }
 0x837   :  { %v5615_v18 = vrot.slane %v5553_v27, %v13663_v63 }
 0x838   :  { %7513 = vmatpush1.bf16.msra.mxu0 %v13965_v50 }
 0x839   :  { %v5616_v16 = vsel %vm2270_vm7, %v5615_v18, %v5611_v7  ;;  %7515 = vmatprep.subr.bf16.mxu0 %v13966_v8 }
 0x83a   :  { %v5559_v1 = vpop.permute.xlu1 %5558  ;;  %v5621_v31 = vsel %vm2277_vm8, %v5620_v57, %v5616_v16  ;;  %v12390_v27 = vpop.permute.xlu0 %5961  ;;  %v13979_v16 = vld [vmem:[#allocation93_spill] sm:$0xff]  ;;  %v13980_v57 = vld [vmem:[#allocation94_spill] sm:$0xff] }
 0x83b   :  { %v5625_v43 = vrot.slane %v5559_v1, %v13672_v23  ;;  %v5805_v1 = vrot.slane %v12294_v17, %v13651_v5 }
 0x83c   :  { %7517 = vmatpush1.bf16.msra.mxu0 %v13967_v51  ;;  %v13982_v51 = vld [vmem:[#allocation95_spill] sm:$0xff] }
 0x83d   :  { %v5626_v60 = vsel %vm13968_vm9, %v5625_v43, %v5621_v31  ;;  %7519 = vmatprep.subr.bf16.mxu0 %v13969_v37  ;;  %vm13981_vm9 = vcmask 195712   ;;  %v13984_v37 = vld [vmem:[#allocation96_spill] sm:$0xff] }
 0x83e   :  { %v5565_v30 = vpop.permute.xlu1 %5564  ;;  %v5631_v20 = vsel %vm13970_vm2, %v5630_v47, %v5626_v60  ;;  %v12406_v31 = vpop.permute.xlu0 %5967  ;;  %vm13983_vm2 = vcmask 261312   ;;  %v5815_v47 = vrot.slane %v12311_v53, %v13656_v25 }
 0x83f   :  { %v5635_v46 = vrot.slane %v5565_v30, %v13678_v11 }
 0x840   :  { %7521 = vmatpush1.bf16.msra.mxu0 %v13971_v52 }
 0x841   :  { %v5636_v24 = vsel %vm13972_vm12, %v5635_v46, %v5631_v20  ;;  %7523 = vmatprep.subr.bf16.mxu0 %v13973_v22  ;;  %v13985_v20 = vld [vmem:[#allocation97_spill] sm:$0xff]  ;;  %v5825_v22 = vrot.slane %v12327_v35, %v13659_v36  ;;  %vm13990_vm12 = vcmask 654912  }
 0x842   :  { %v5571_v59 = vpop.permute.xlu1 %5570  ;;  %v5641_v39 = vsel %vm13974_vm0, %v5640_v33, %v5636_v24  ;;  %v13986_v24 = vld [vmem:[#allocation98_spill] sm:$0xff]  ;;  %v5974_v33 = vpop.permute.xlu0 %5973  ;;  %vm13992_vm0 = vcmask 720512  }
 0x843   :  { %v5645_v29 = vrot.slane %v5571_v59, %v13697_v15 }
 0x844   :  { %7525 = vmatpush1.bf16.msra.mxu0 %v13975_v32 }
 0x845   :  { %v5646_v41 = vsel %vm2312_vm13, %v5645_v29, %v5641_v39  ;;  %7527 = vmatprep.subr.bf16.mxu0 %v13976_v61  ;;  %v13987_v39 = vld [vmem:[#allocation99_spill] sm:$0xff]  ;;  %v5835_v61 = vrot.slane %v12342_v55, %v13669_v58 }
 0x846   :  { %v5577_v21 = vpop.permute.xlu1 %5576  ;;  %v5651_v56 = vsel %vm2319_vm14, %v5650_v14, %v5646_v41  ;;  %v13988_v41 = vld [vmem:[#allocation100_spill] sm:$0xff] }
 0x847   :  { %v5655_v12 = vrot.slane %v5577_v21, %v13720_v48 }
 0x848   :  { %7529 = vmatpush1.bf16.msra.mxu0 %v13977_v9  ;;  %v13989_v9 = vld [vmem:[#allocation101_spill] sm:$0xff] }
 0x849   :  { %v5656_v10 = vsel %vm2326_vm15, %v5655_v12, %v5651_v56  ;;  %7531 = vmatprep.subr.bf16.mxu0 %v13978_v0  ;;  %v5980_v12 = vpop.permute.xlu0 %5979  ;;  %v5845_v0 = vrot.slane %v12352_v6, %v13673_v19 }
 0x84a   :  { %v12394_v18 = vsel %vm2887_vm11, %v5656_v10, %v12322_v44  ;;  %v5750_v7 = vpop.permute.xlu1 %5749 }
 0x84b   :  { %5723 = vmatmul.mubr.f32.vlgmr.msra.gmra.mrb[10].mxu0 %v5656_v10  ;;  %v5800_v50 = vrot.slane %v5750_v7, %v13648_v49  ;;  %v13991_v10 = vld [vmem:[#allocation102_spill] sm:$0xff] }
 0x84c   :  { %7533 = vmatpush1.bf16.msra.mxu0 %v13979_v16  ;;  %5937 = vmatprep.mubr.f32.mxu0 %v13855_v42 }
 0x84d   :  { %v5801_v8 = vsel %vm2228_vm1, %v5800_v50, %v5796_v3  ;;  %7535 = vmatprep.subr.bf16.mxu0 %v13980_v57  ;;  %v13993_v50 = vld [vmem:[#allocation103_spill] sm:$0xff]  ;;  %v5855_v57 = vrot.slane %v12367_v54, %v13684_v45 }
 0x84e   :  { %v5756_v44 = vpop.permute.xlu1 %5755  ;;  %v5806_v2 = vsel %vm13981_vm9, %v5805_v1, %v5801_v8  ;;  %vm13994_vm9 = vcmask 786112   ;;  %v13995_v8 = vld [vmem:[#allocation104_spill] sm:$0xff]  ;;  %v5986_v1 = vpop.permute.xlu0 %5985  ;;  %v13999_v54 = vld [vmem:[#allocation107_spill] sm:$0xff] }
 0x84f   :  { %v5810_v43 = vrot.slane %v5756_v44, %v13653_v26 }
 0x850   :  { %7537 = vmatpush1.bf16.msra.mxu0 %v13982_v51 }
 0x851   :  { %v5811_v60 = vsel %vm13983_vm2, %v5810_v43, %v5806_v2  ;;  %7539 = vmatprep.subr.bf16.mxu0 %v13984_v37  ;;  %vm13996_vm2 = vcmask 851712   ;;  %v13997_v2 = vld [vmem:[#allocation105_spill] sm:$0xff]  ;;  %v5865_v37 = vrot.slane %v12377_v13, %v13707_v28 }
 0x852   :  { %v5762_v30 = vpop.permute.xlu1 %5761  ;;  %v5816_v17 = vsel %vm2249_vm4, %v5815_v47, %v5811_v60  ;;  %v13998_v60 = vld [vmem:[#allocation106_spill] sm:$0xff] }
 0x853   :  { %v5820_v46 = vrot.slane %v5762_v30, %v13657_v38 }
 0x854   :  { %7541 = vmatpush1.bf16.msra.mxu0 %v13985_v20 }
 0x855   :  { %v5821_v52 = vsel %vm2256_vm5, %v5820_v46, %v5816_v17  ;;  %7543 = vmatprep.subr.bf16.mxu0 %v13986_v24  ;;  %v5992_v46 = vpop.permute.xlu0 %5991 }
 0x856   :  { %v5768_v59 = vpop.permute.xlu1 %5767  ;;  %v5826_v53 = vsel %vm2263_vm6, %v5825_v22, %v5821_v52  ;;  %v14000_v52 = vld [vmem:[#allocation108_spill] sm:$0xff]  ;;  %v6011_v22 = vrot.slane %v12390_v27, %v13649_v4 }
 0x857   :  { %v5830_v29 = vrot.slane %v5768_v59, %v13663_v63  ;;  %v14001_v59 = vld [vmem:[#allocation109_spill] sm:$0xff] }
 0x858   :  { %7545 = vmatpush1.bf16.msra.mxu0 %v13987_v39 }
 0x859   :  { %v5831_v32 = vsel %vm2270_vm7, %v5830_v29, %v5826_v53  ;;  %7547 = vmatprep.subr.bf16.mxu0 %v13988_v41  ;;  %v14002_v29 = vld [vmem:[#allocation110_spill] sm:$0xff]  ;;  %v5998_v53 = vpop.permute.xlu0 %5997 }
 0x85a   :  { %v5774_v14 = vpop.permute.xlu1 %5773  ;;  %v5836_v35 = vsel %vm2277_vm8, %v5835_v61, %v5831_v32  ;;  %v6020_v32 = vrot.slane %v12406_v31, %v13651_v5 }
 0x85b   :  { %v5840_v21 = vrot.slane %v5774_v14, %v13672_v23  ;;  %v14003_v14 = vld [vmem:[#allocation111_spill] sm:$0xff] }
 0x85c   :  { %7549 = vmatpush1.bf16.msra.mxu0 %v13989_v9  ;;  %v6030_v9 = vrot.slane %v5974_v33, %v13656_v25 }
 0x85d   :  { %v5841_v56 = vsel %vm13990_vm12, %v5840_v21, %v5836_v35  ;;  %7551 = vmatprep.subr.bf16.mxu0 %v13991_v10  ;;  %vm14004_vm12 = vcmask 195712   ;;  %v14005_v21 = vld [vmem:[#allocation112_spill] sm:$0xff]  ;;  %v6004_v10 = vpop.permute.xlu0 %6003 }
 0x85e   :  { %v5780_v7 = vpop.permute.xlu1 %5779  ;;  %v5846_v55 = vsel %vm13992_vm0, %v5845_v0, %v5841_v56  ;;  %vm14006_vm0 = vcmask 261312  }
 0x85f   :  { %v5850_v3 = vrot.slane %v5780_v7, %v13678_v11  ;;  %v14007_v7 = vld [vmem:[#allocation113_spill] sm:$0xff] }
 0x860   :  { %7553 = vmatpush1.bf16.msra.mxu0 %v13993_v50  ;;  %v6040_v50 = vrot.slane %v5980_v12, %v13659_v36 }
 0x861   :  { %v5851_v16 = vsel %vm13994_vm9, %v5850_v3, %v5846_v55  ;;  %7555 = vmatprep.subr.bf16.mxu0 %v13995_v8  ;;  %v14008_v3 = vld [vmem:[#allocation114_spill] sm:$0xff]  ;;  %vm14013_vm9 = vcmask 654912  }
 0x862   :  { %v5786_v44 = vpop.permute.xlu1 %5785  ;;  %v5856_v6 = vsel %vm13996_vm2, %v5855_v57, %v5851_v16  ;;  %v14009_v57 = vld [vmem:[#allocation115_spill] sm:$0xff]  ;;  %vm14015_vm2 = vcmask 720512  }
 0x863   :  { %v5860_v43 = vrot.slane %v5786_v44, %v13697_v15  ;;  %v14010_v44 = vld [vmem:[#allocation116_spill] sm:$0xff] }
 0x864   :  { %7557 = vmatpush1.bf16.msra.mxu0 %v13997_v2  ;;  %v6050_v2 = vrot.slane %v5986_v1, %v13669_v58 }
 0x865   :  { %v5861_v51 = vsel %vm2312_vm13, %v5860_v43, %v5856_v6  ;;  %7559 = vmatprep.subr.bf16.mxu0 %v13998_v60  ;;  %v6177_v43 = vpop.permute.xlu0 %6176 }
 0x866   :  { %v5792_v47 = vpop.permute.xlu1 %5791  ;;  %v5866_v17 = vsel %vm2319_vm14, %v5865_v37, %v5861_v51  ;;  %v14011_v37 = vld [vmem:[#allocation117_spill] sm:$0xff] }
 0x867   :  { %v5870_v30 = vrot.slane %v5792_v47, %v13720_v48  ;;  %v14012_v47 = vld [vmem:[#allocation118_spill] sm:$0xff] }
 0x868   :  { %7561 = vmatpush1.bf16.msra.mxu0 %v13999_v54  ;;  %v6060_v54 = vrot.slane %v5992_v46, %v13673_v19 }
 0x869   :  { %v12453_v20 = vsel %vm2326_vm15, %v5870_v30, %v5866_v17  ;;  %7563 = vmatprep.subr.bf16.mxu0 %v14000_v52  ;;  %v6183_v52 = vpop.permute.xlu0 %6182 }
 0x86b   :  { %5938 = vmatmul.mubr.f32.vlgmr.msra.gmra.mrb[12].mxu0 %v12453_v20  ;;  %v5965_v24 = vpop.permute.xlu1 %5964 }
 0x86c   :  { %v6015_v13 = vrot.slane %v5965_v24, %v13648_v49  ;;  %7565 = vmatpush1.bf16.msra.mxu0 %v14001_v59  ;;  %6152 = vmatprep.mubr.f32.mxu0 %v13855_v42 }
 0x86d   :  { %7567 = vmatprep.subr.bf16.mxu0 %v14002_v29  ;;  %v6070_v29 = vrot.slane %v5998_v53, %v13684_v45 }
 0x86e   :  { %v6016_v39 = vsel %vm2228_vm1, %v6015_v13, %v6011_v22  ;;  %v14014_v22 = vld [vmem:[#allocation119_spill] sm:$0xff]  ;;  %v14016_v13 = vld [vmem:[#allocation120_spill] sm:$0xff] }
 0x86f   :  { %v5971_v41 = vpop.permute.xlu1 %5970  ;;  %v6021_v27 = vsel %vm14004_vm12, %v6020_v32, %v6016_v39  ;;  %vm14017_vm12 = vcmask 786112  }
 0x870   :  { %v6025_v61 = vrot.slane %v5971_v41, %v13653_v26  ;;  %7569 = vmatpush1.bf16.msra.mxu0 %v14003_v14  ;;  %v14018_v41 = vld [vmem:[#allocation121_spill] sm:$0xff]  ;;  %v6189_v14 = vpop.permute.xlu0 %6188 }
 0x871   :  { %7571 = vmatprep.subr.bf16.mxu0 %v14005_v21  ;;  %v6080_v21 = vrot.slane %v6004_v10, %v13707_v28 }
 0x872   :  { %v6026_v35 = vsel %vm14006_vm0, %v6025_v61, %v6021_v27  ;;  %vm14019_vm0 = vcmask 851712   ;;  %v14020_v61 = vld [vmem:[#allocation122_spill] sm:$0xff] }
 0x873   :  { %v5977_v56 = vpop.permute.xlu1 %5976  ;;  %v6031_v31 = vsel %vm2249_vm4, %v6030_v9, %v6026_v35 }
 0x874   :  { %v6035_v0 = vrot.slane %v5977_v56, %v13657_v38  ;;  %7573 = vmatpush1.bf16.msra.mxu0 %v14007_v7  ;;  %v14021_v56 = vld [vmem:[#allocation123_spill] sm:$0xff] }
 0x875   :  { %7575 = vmatprep.subr.bf16.mxu0 %v14008_v3  ;;  %v6226_v3 = vrot.slane %v6177_v43, %v13649_v4  ;;  %v14027_v43 = vld [vmem:[#allocation128_spill] sm:$0xff] }
 0x876   :  { %v6036_v55 = vsel %vm2256_vm5, %v6035_v0, %v6031_v31  ;;  %v14022_v0 = vld [vmem:[#allocation124_spill] sm:$0xff] }
 0x877   :  { %v5983_v16 = vpop.permute.xlu1 %5982  ;;  %v6041_v33 = vsel %vm2263_vm6, %v6040_v50, %v6036_v55  ;;  %v6195_v55 = vpop.permute.xlu0 %6194  ;;  %v14023_v50 = vld [vmem:[#allocation125_spill] sm:$0xff] }
 0x878   :  { %v6045_v8 = vrot.slane %v5983_v16, %v13663_v63  ;;  %7577 = vmatpush1.bf16.msra.mxu0 %v14009_v57  ;;  %v14024_v16 = vld [vmem:[#allocation126_spill] sm:$0xff]  ;;  %v6235_v57 = vrot.slane %v6183_v52, %v13651_v5 }
 0x879   :  { %7579 = vmatprep.subr.bf16.mxu0 %v14010_v44 }
 0x87a   :  { %v6046_v6 = vsel %vm2270_vm7, %v6045_v8, %v6041_v33 }
 0x87b   :  { %v5989_v51 = vpop.permute.xlu1 %5988  ;;  %v6051_v12 = vsel %vm2277_vm8, %v6050_v2, %v6046_v6  ;;  %v14025_v6 = vld [vmem:[#allocation127_spill] sm:$0xff] }
 0x87c   :  { %v6055_v60 = vrot.slane %v5989_v51, %v13672_v23  ;;  %7581 = vmatpush1.bf16.msra.mxu0 %v14011_v37  ;;  %v6245_v51 = vrot.slane %v6189_v14, %v13656_v25 }
 0x87d   :  { %7583 = vmatprep.subr.bf16.mxu0 %v14012_v47  ;;  %v14030_v47 = vld [vmem:[#allocation130_spill] sm:$0xff] }
 0x87e   :  { %v6056_v30 = vsel %vm14013_vm9, %v6055_v60, %v6051_v12  ;;  %vm14026_vm9 = vcmask 195712   ;;  %v14029_v12 = vld [vmem:[#allocation129_spill] sm:$0xff] }
 0x87f   :  { %v5995_v17 = vpop.permute.xlu1 %5994  ;;  %v6061_v1 = vsel %vm14015_vm2, %v6060_v54, %v6056_v30  ;;  %vm14028_vm2 = vcmask 261312   ;;  %v6255_v30 = vrot.slane %v6195_v55, %v13659_v36 }
 0x880   :  { %v6065_v24 = vrot.slane %v5995_v17, %v13678_v11  ;;  %7585 = vmatpush1.bf16.msra.mxu0 %v14014_v22  ;;  %v14032_v22 = vld [vmem:[#allocation132_spill] sm:$0xff] }
 0x881   :  { %7587 = vmatprep.subr.bf16.mxu0 %v14016_v13 }
 0x882   :  { %v6066_v59 = vsel %vm14017_vm12, %v6065_v24, %v6061_v1  ;;  %v14031_v24 = vld [vmem:[#allocation131_spill] sm:$0xff] }
 0x883   :  { %v6001_v39 = vpop.permute.xlu1 %6000  ;;  %v6071_v46 = vsel %vm14019_vm0, %v6070_v29, %v6066_v59  ;;  %v14033_v29 = vld [vmem:[#allocation133_spill] sm:$0xff] }
 0x884   :  { %v6075_v32 = vrot.slane %v6001_v39, %v13697_v15  ;;  %7589 = vmatpush1.bf16.msra.mxu0 %v14018_v41 }
 0x885   :  { %7591 = vmatprep.subr.bf16.mxu0 %v14020_v61 }
 0x886   :  { %v6076_v27 = vsel %vm2312_vm13, %v6075_v32, %v6071_v46  ;;  %v14034_v32 = vld [vmem:[#allocation134_spill] sm:$0xff] }
 0x887   :  { %v6007_v35 = vpop.permute.xlu1 %6006  ;;  %v6081_v53 = vsel %vm2319_vm14, %v6080_v21, %v6076_v27  ;;  %v14038_v21 = vld [vmem:[#allocation136_spill] sm:$0xff] }
 0x888   :  { %v6085_v9 = vrot.slane %v6007_v35, %v13720_v48  ;;  %7593 = vmatpush1.bf16.msra.mxu0 %v14021_v56 }
 0x889   :  { %7595 = vmatprep.subr.bf16.mxu0 %v14022_v0 }
 0x88a   :  { %v12507_v7 = vsel %vm2326_vm15, %v6085_v9, %v6081_v53 }
 0x88b   :  { %6153 = vmatmul.mubr.f32.vlgmr.msra.gmra.mrb[14].mxu0 %v12507_v7  ;;  %v6180_v31 = vpop.permute.xlu1 %6179 }
 0x88c   :  { %v6230_v10 = vrot.slane %v6180_v31, %v13648_v49  ;;  %7597 = vmatpush1.bf16.msra.mxu0 %v14023_v50  ;;  %6367 = vmatprep.mubr.f32.mxu0 %v13855_v42  ;;  %v6201_v49 = vpop.permute.xlu0 %6200  ;;  %v14040_v31 = vld [vmem:[#allocation137_spill] sm:$0xff] }
 0x88d   :  { %7599 = vmatprep.subr.bf16.mxu0 %v14024_v16  ;;  %v6265_v1 = vrot.slane %v6201_v49, %v13669_v58  ;;  %v14036_v58 = vld [vmem:[#allocation135_spill] sm:$0xff] }
 0x88e   :  { %v6231_v8 = vsel %vm2228_vm1, %v6230_v10, %v6226_v3  ;;  %vm14035_vm1 = vcmask 654912   ;;  %v14042_v3 = vld [vmem:[#allocation138_spill] sm:$0xff]  ;;  %v14043_v16 = vld [vmem:[#allocation139_spill] sm:$0xff] }
 0x88f   :  { %v6186_v33 = vpop.permute.xlu1 %6185  ;;  %v6236_v4 = vsel %vm14026_vm9, %v6235_v57, %v6231_v8  ;;  %v6422_v49 = vld [vmem:[#allocation13] sm:$0xff]  ;;  %vm14055_vm9 = vmmov 0  }
 0x890   :  { %v6240_v44 = vrot.slane %v6186_v33, %v13653_v26  ;;  %7601 = vmatpush1.bf16.msra.mxu0 %v14025_v6  ;;  %v6207_v17 = vpop.permute.xlu0 %6206 }
 0x891   :  { %7603 = vmatprep.subr.bf16.mxu0 %v14027_v43  ;;  %v6275_v61 = vrot.slane %v6207_v17, %v13673_v19  ;;  %v6426_v43 = vld [vmem:[#allocation13 + $0x20] sm:$0xff] }
 0x892   :  { %v6241_v2 = vsel %vm14028_vm2, %v6240_v44, %v6236_v4 }
 0x893   :  { %v6192_v60 = vpop.permute.xlu1 %6191  ;;  %v6246_v5 = vsel %vm2249_vm4, %v6245_v51, %v6241_v2  ;;  %vm14037_vm4 = vcmask 720512   ;;  %v6425_v51 = vld [vmem:[#allocation13 + $0x18] sm:$0xff] }
 0x894   :  { %v6250_v37 = vrot.slane %v6192_v60, %v13657_v38  ;;  %7605 = vmatpush1.bf16.msra.mxu0 %v14029_v12  ;;  %v6432_v60 = vld [vmem:[#allocation13 + $0x50] sm:$0xff] }
 0x895   :  { %7607 = vmatprep.subr.bf16.mxu0 %v14030_v47  ;;  %v6431_v47 = vld [vmem:[#allocation13 + $0x48] sm:$0xff] }
 0x896   :  { %v6251_v26 = vsel %vm2256_vm5, %v6250_v37, %v6246_v5  ;;  %vm14039_vm5 = vmmov %vm14017_vm12  ;;  %v7628_v37 = vpack.c.bf16 %v6425_v51, %v6422_v49  ;;  %v6428_v5 = vld [vmem:[#allocation13 + $0x30] sm:$0xff] }
 0x897   :  { %v6198_v54 = vpop.permute.xlu1 %6197  ;;  %v6256_v25 = vsel %vm2263_vm6, %v6255_v30, %v6251_v26  ;;  %vm14041_vm6 = vmmov %vm14019_vm0  ;;  %v6435_v26 = vld [vmem:[#allocation13 + $0x68] sm:$0xff]  ;;  %v6438_v30 = vld [vmem:[#allocation13 + $0x80] sm:$0xff] }
 0x898   :  { %v6260_v52 = vrot.slane %v6198_v54, %v13663_v63  ;;  %7609 = vmatpush1.bf16.msra.mxu0 %v14031_v24  ;;  %v6213_v63 = vpop.permute.xlu0 %6212  ;;  %v7632_v54 = vpack.c.bf16 %v6431_v47, %v6428_v5  ;;  %v7634_v17 = vpack.c.bf16 %v6438_v30, %v6435_v26  ;;  %v6437_v24 = vld [vmem:[#allocation13 + $0x78] sm:$0xff]  ;;  %v6480_v49 = vld [vmem:[#allocation13 + $0x1d0] sm:$0xff]  ;;  %v6482_v5 = vld [vmem:[#allocation13 + $0x1e0] sm:$0xff] }
 0x899   :  { %7611 = vmatprep.subr.bf16.mxu0 %v14032_v22  ;;  %v6285_v9 = vrot.slane %v6213_v63, %v13684_v45  ;;  %v7098_v45 = vsel %vm2889_vm10, %v12453_v20, %v12394_v18  ;;  %v6423_v20 = vld [vmem:[#allocation13 + $0x8] sm:$0xff]  ;;  %v6444_v22 = vld [vmem:[#allocation13 + $0xb0] sm:$0xff]  ;;  %v6446_v63 = vld [vmem:[#allocation13 + $0xc0] sm:$0xff] }
 0x89a   :  { %v6261_v38 = vsel %vm2270_vm7, %v6260_v52, %v6256_v25  ;;  %vm14044_vm7 = vcmask 1046534   ;;  %v7626_v2 = vpack.c.bf16 %v6426_v43, %v6423_v20  ;;  %v6434_v52 = vld [vmem:[#allocation13 + $0x60] sm:$0xff]  ;;  %v6441_v25 = vld [vmem:[#allocation13 + $0x98] sm:$0xff]  ;;  %v6476_v51 = vld [vmem:[#allocation13 + $0x1b0] sm:$0xff] }
 0x89b   :  { %v6204_v13 = vpop.permute.xlu1 %6203  ;;  %v6266_v36 = vsel %vm2277_vm8, %v6265_v1, %v6261_v38  ;;  %v7099_v57 = vsel %vm14044_vm7, %v12507_v7, %v7098_v45  ;;  %vm14045_vm8 = vcmask 1047559   ;;  %v6429_v7 = vld [vmem:[#allocation13 + $0x38] sm:$0xff]  ;;  %v7636_v38 = vpack.c.bf16 %v6437_v24, %v6434_v52  ;;  %v6464_v45 = vld [vmem:[#allocation13 + $0x150] sm:$0xff]  ;;  %v6491_v24 = vld [vmem:[#allocation13 + $0x228] sm:$0xff] }
 0x89c   :  { %v6270_v59 = vrot.slane %v6204_v13, %v13672_v23  ;;  %7613 = vmatpush1.bf16.msra.mxu0 %v14033_v29  ;;  %v6219_v53 = vpop.permute.xlu0 %6218  ;;  %v7630_v12 = vpack.c.bf16 %v6432_v60, %v6429_v7  ;;  %v7638_v1 = vpack.c.bf16 %v6444_v22, %v6441_v25  ;;  %v6440_v13 = vld [vmem:[#allocation13 + $0x90] sm:$0xff]  ;;  %v6447_v29 = vld [vmem:[#allocation13 + $0xc8] sm:$0xff]  ;;  %v6473_v20 = vld [vmem:[#allocation13 + $0x198] sm:$0xff] }
 0x89d   :  { %v4864_v39 = vpop.f32.mrb[2].mxu0  ;;  %7615 = vmatprep.subr.bf16.mxu0 %v14034_v32  ;;  %v6295_v55 = vrot.slane %v6219_v53, %v13707_v28  ;;  %v6458_v53 = vld [vmem:[#allocation13 + $0x120] sm:$0xff]  ;;  %v6477_v43 = vld [vmem:[#allocation13 + $0x1b8] sm:$0xff]  ;;  %v6479_v7 = vld [vmem:[#allocation13 + $0x1c8] sm:$0xff] }
 0x89e   :  { %v6271_v41 = vsel %vm14035_vm1, %v6270_v59, %v6266_v36  ;;  %v4866_v46 = vpop.f32.mrb[3].mxu0  ;;  %v6443_v59 = vld [vmem:[#allocation13 + $0xa8] sm:$0xff]  ;;  %v6450_v36 = vld [vmem:[#allocation13 + $0xe0] sm:$0xff]  ;;  %v6485_v47 = vld [vmem:[#allocation13 + $0x1f8] sm:$0xff] }
 0x89f   :  { %v6210_v14 = vpop.permute.xlu1 %6209  ;;  %v6276_v23 = vsel %vm14037_vm4, %v6275_v61, %v6271_v41  ;;  %v7642_v32 = vpack.c.bf16 %v6450_v36, %v6447_v29  ;;  %v6449_v41 = vld [vmem:[#allocation13 + $0xd8] sm:$0xff]  ;;  %v6456_v61 = vld [vmem:[#allocation13 + $0x110] sm:$0xff]  ;;  %v6483_v60 = vld [vmem:[#allocation13 + $0x1e8] sm:$0xff] }
 0x8a0   :  { %v6280_v27 = vrot.slane %v6210_v14, %v13678_v11  ;;  %7617 = vmatpush1.bf16.msra.mxu0 %v14036_v58  ;;  %v7644_v14 = vpack.c.bf16 %v6449_v41, %v6446_v63  ;;  %v6452_v58 = vld [vmem:[#allocation13 + $0xf0] sm:$0xff]  ;;  %v6489_v26 = vld [vmem:[#allocation13 + $0x218] sm:$0xff]  ;;  %v6495_v25 = vld [vmem:[#allocation13 + $0x248] sm:$0xff] }
 0x8a1   :  { %7619 = vmatprep.subr.bf16.mxu0 %v14038_v21  ;;  %v6459_v21 = vld [vmem:[#allocation13 + $0x128] sm:$0xff]  ;;  %v6492_v30 = vld [vmem:[#allocation13 + $0x230] sm:$0xff]  ;;  %v6498_v22 = vld [vmem:[#allocation13 + $0x260] sm:$0xff] }
 0x8a2   :  { %v6281_v35 = vsel %vm14039_vm5, %v6280_v27, %v6276_v23  ;;  %v6455_v23 = vld [vmem:[#allocation13 + $0x108] sm:$0xff]  ;;  %v6488_v52 = vld [vmem:[#allocation13 + $0x210] sm:$0xff]  ;;  %v6501_v29 = vld [vmem:[#allocation13 + $0x278] sm:$0xff] }
 0x8a3   :  { %v6216_v56 = vpop.permute.xlu1 %6215  ;;  %v6286_v19 = vsel %vm14041_vm6, %v6285_v9, %v6281_v35  ;;  %v6462_v35 = vld [vmem:[#allocation13 + $0x140] sm:$0xff]  ;;  %v7648_v9 = vpack.c.bf16 %v6455_v23, %v6452_v58  ;;  %v6504_v36 = vld [vmem:[#allocation13 + $0x290] sm:$0xff]  ;;  %v6503_v41 = vld [vmem:[#allocation13 + $0x288] sm:$0xff] }
 0x8a4   :  { %v6290_v0 = vrot.slane %v6216_v56, %v13697_v15  ;;  %7621 = vmatpush1.bf16.msra.mxu0 %v14040_v31  ;;  %v7650_v56 = vpack.c.bf16 %v6462_v35, %v6459_v21  ;;  %v6500_v63 = vld [vmem:[#allocation13 + $0x270] sm:$0xff]  ;;  %v6506_v58 = vld [vmem:[#allocation13 + $0x2a0] sm:$0xff]  ;;  %v6509_v23 = vld [vmem:[#allocation13 + $0x2b8] sm:$0xff] }
 0x8a5   :  { %7623 = vmatprep.subr.bf16.mxu0 %v14042_v3  ;;  %v7684_v21 = vpack.c.bf16 %v6509_v23, %v6506_v58  ;;  %v6442_v58 = vld [vmem:[#allocation13 + $0xa0] sm:$0xff]  ;;  %v6445_v23 = vld [vmem:[#allocation13 + $0xb8] sm:$0xff] }
 0x8a6   :  { %v6291_v11 = vsel %vm2312_vm13, %v6290_v0, %v6286_v19  ;;  %vm14046_vm13 = vcmask 1041409   ;;  %v6461_v0 = vld [vmem:[#allocation13 + $0x138] sm:$0xff] }
 0x8a7   :  { %v6222_v10 = vpop.permute.xlu1 %6221  ;;  %v6296_v15 = vsel %vm2319_vm14, %v6295_v55, %v6291_v11  ;;  %vm14047_vm12 = vmmov %vm14046_vm13  ;;  %v7652_v31 = vpack.c.bf16 %v6461_v0, %v6458_v53  ;;  %vm14048_vm14 = vcmask 1042434   ;;  %v6513_v0 = vld [vmem:[#allocation13 + $0x2d8] sm:$0xff] }
 0x8a8   :  { %v6300_v50 = vrot.slane %v6222_v10, %v13720_v48  ;;  %7625 = vmatpush1.bf16.msra.mxu0 %v14043_v16  ;;  %v6468_v16 = vld [vmem:[#allocation13 + $0x170] sm:$0xff] }
 0x8a9   :  { %7627 = vmatprep.subr.bf16.mxu0 %v7626_v2  ;;  %v7662_v2 = vpack.c.bf16 %v6480_v49, %v6477_v43 }
 0x8aa   :  { %v6301_v8 = vsel %vm2326_vm15, %v6300_v50, %v6296_v15  ;;  %v6465_v50 = vld [vmem:[#allocation13 + $0x158] sm:$0xff]  ;;  %vm14049_vm15 = vmmov %vm14048_vm14 }
 0x8ab   :  { %6368 = vmatmul.mubr.f32.vlgmr.msra.gmra.mrb[16].mxu0 %v6301_v8  ;;  %v7100_v33 = vsel %vm14045_vm8, %v6301_v8, %v7099_v57  ;;  %v7654_v8 = vpack.c.bf16 %v6468_v16, %v6465_v50  ;;  %v6467_v57 = vld [vmem:[#allocation13 + $0x168] sm:$0xff] }
 0x8ac   :  { %7102 = vst [vmem:[#allocation17] sm:$0xff] %v7100_v33  ;;  %7629 = vmatpush1.bf16.msra.mxu0 %v7628_v37  ;;  %v6471_v33 = vld [vmem:[#allocation13 + $0x188] sm:$0xff]  ;;  %v7664_v37 = vpack.c.bf16 %v6479_v7, %v6476_v51 }
 0x8ad   :  { %7631 = vmatprep.subr.bf16.mxu0 %v7630_v12 }
 0x8b0   :  { %7633 = vmatpush1.bf16.msra.mxu0 %v7632_v54  ;;  %v7668_v54 = vpack.c.bf16 %v6485_v47, %v6482_v5  ;;  %v6424_v47 = vld [vmem:[#allocation13 + $0x10] sm:$0xff] }
 0x8b1   :  { %7635 = vmatprep.subr.bf16.mxu0 %v7634_v17  ;;  %v7670_v17 = vpack.c.bf16 %v6492_v30, %v6489_v26  ;;  %v6427_v26 = vld [vmem:[#allocation13 + $0x28] sm:$0xff] }
 0x8b4   :  { %7637 = vmatpush1.bf16.msra.mxu0 %v7636_v38  ;;  %v7672_v38 = vpack.c.bf16 %v6491_v24, %v6488_v52  ;;  %v6481_v52 = vld [vmem:[#allocation13 + $0x1d8] sm:$0xff] }
 0x8b5   :  { %7639 = vmatprep.subr.bf16.mxu0 %v7638_v1  ;;  %v7674_v1 = vpack.c.bf16 %v6498_v22, %v6495_v25  ;;  %v7692_v22 = vpack.c.bf16 %v6427_v26, %v6424_v47  ;;  %v6383_v47 = vld [vmem:[#allocation11 + $0x48] sm:$0xff] }
 0x8b6   :  { %v6387_v26 = vld [vmem:[#allocation11 + $0x68] sm:$0xff] }
 0x8be   :  { %v5079_v28 = vpop.f32.mrb[4].mxu0 }
 0x8bf   :  { %v6534_v44 = vrot.slane %v5079_v28, 7  ;;  %v5081_v48 = vpop.f32.mrb[5].mxu0  ;;  %v6474_v28 = vld [vmem:[#allocation13 + $0x1a0] sm:$0xff] }
 0x8c0   :  { %v6548_v6 = vrot.slane %v5081_v48, 7  ;;  %v7658_v48 = vpack.c.bf16 %v6474_v28, %v6471_v33 }
 0x8c1   :  { %v12564_v4 = vsel %vm14046_vm13, %v6534_v44, %v4864_v39  ;;  %v7640_v39 = vpack.c.bf16 %v6443_v59, %v6440_v13  ;;  %v7656_v44 = vpack.c.bf16 %v6467_v57, %v6464_v45  ;;  %v6494_v13 = vld [vmem:[#allocation13 + $0x240] sm:$0xff]  ;;  %v6497_v59 = vld [vmem:[#allocation13 + $0x258] sm:$0xff]  ;;  %v6472_v45 = vld [vmem:[#allocation13 + $0x190] sm:$0xff] }
 0x8c2   :  { %v12567_v18 = vsel %vm14047_vm12, %v6548_v6, %v4866_v46  ;;  %v6453_v46 = vld [vmem:[#allocation13 + $0xf8] sm:$0xff]  ;;  %v6470_v6 = vld [vmem:[#allocation13 + $0x180] sm:$0xff] }
 0x8c3   :  { %7641 = vmatpush1.bf16.msra.mxu0 %v7640_v39  ;;  %v7646_v27 = vpack.c.bf16 %v6456_v61, %v6453_v46  ;;  %v7676_v39 = vpack.c.bf16 %v6497_v59, %v6494_v13  ;;  %v6507_v46 = vld [vmem:[#allocation13 + $0x2a8] sm:$0xff]  ;;  %v6510_v61 = vld [vmem:[#allocation13 + $0x2c0] sm:$0xff]  ;;  %v6433_v59 = vld [vmem:[#allocation13 + $0x58] sm:$0xff] }
 0x8c4   :  { %7643 = vmatprep.subr.bf16.mxu0 %v7642_v32  ;;  %v7678_v32 = vpack.c.bf16 %v6504_v36, %v6501_v29  ;;  %v6430_v13 = vld [vmem:[#allocation13 + $0x40] sm:$0xff]  ;;  %v6484_v29 = vld [vmem:[#allocation13 + $0x1f0] sm:$0xff]  ;;  %v6487_v36 = vld [vmem:[#allocation13 + $0x208] sm:$0xff] }
 0x8c7   :  { %7645 = vmatpush1.bf16.msra.mxu0 %v7644_v14  ;;  %v7680_v14 = vpack.c.bf16 %v6503_v41, %v6500_v63  ;;  %v6436_v63 = vld [vmem:[#allocation13 + $0x70] sm:$0xff]  ;;  %v6439_v41 = vld [vmem:[#allocation13 + $0x88] sm:$0xff] }
 0x8c8   :  { %7647 = vmatprep.subr.bf16.mxu0 %v7646_v27  ;;  %v7682_v27 = vpack.c.bf16 %v6510_v61, %v6507_v46  ;;  %v6490_v46 = vld [vmem:[#allocation13 + $0x220] sm:$0xff]  ;;  %v6493_v61 = vld [vmem:[#allocation13 + $0x238] sm:$0xff] }
 0x8cb   :  { %7649 = vmatpush1.bf16.msra.mxu0 %v7648_v9 }
 0x8cc   :  { %7651 = vmatprep.subr.bf16.mxu0 %v7650_v56 }
 0x8cf   :  { %7653 = vmatpush1.bf16.msra.mxu0 %v7652_v31  ;;  %v6516_v31 = vld [vmem:[#allocation13 + $0x2f0] sm:$0xff] }
 0x8d0   :  { %7655 = vmatprep.subr.bf16.mxu0 %v7654_v8  ;;  %v6475_v8 = vld [vmem:[#allocation13 + $0x1a8] sm:$0xff] }
 0x8d1   :  { %v7690_v57 = vpack.c.bf16 %v6475_v8, %v6472_v45  ;;  %v6511_v45 = vld [vmem:[#allocation13 + $0x2c8] sm:$0xff] }
 0x8d3   :  { %7657 = vmatpush1.bf16.msra.mxu0 %v7656_v44 }
 0x8d4   :  { %7659 = vmatprep.subr.bf16.mxu0 %v7658_v48 }
 0x8de   :  { %v5294_v19 = vpop.f32.mrb[6].mxu0 }
 0x8df   :  { %v6536_v3 = vrot.slane %v5294_v19, 6  ;;  %v5296_v11 = vpop.f32.mrb[7].mxu0  ;;  %v6512_v19 = vld [vmem:[#allocation13 + $0x2d0] sm:$0xff] }
 0x8e0   :  { %v6550_v55 = vrot.slane %v5296_v11, 6  ;;  %v7686_v11 = vpack.c.bf16 %v6516_v31, %v6513_v0  ;;  %v6451_v0 = vld [vmem:[#allocation13 + $0xe8] sm:$0xff]  ;;  %v6502_v31 = vld [vmem:[#allocation13 + $0x280] sm:$0xff] }
 0x8e1   :  { %v12571_v10 = vsel %vm14048_vm14, %v6536_v3, %v12564_v4  ;;  %v7660_v4 = vpack.c.bf16 %v6473_v20, %v6470_v6 }
 0x8e2   :  { %v12575_v15 = vsel %vm14049_vm15, %v6550_v55, %v12567_v18  ;;  %v6486_v18 = vld [vmem:[#allocation13 + $0x200] sm:$0xff]  ;;  %v6515_v55 = vld [vmem:[#allocation13 + $0x2e8] sm:$0xff] }
 0x8e3   :  { %7661 = vmatpush1.bf16.msra.mxu0 %v7660_v4  ;;  %v7666_v12 = vpack.c.bf16 %v6486_v18, %v6483_v60  ;;  %v7688_v16 = vpack.c.bf16 %v6515_v55, %v6512_v19  ;;  %v6505_v19 = vld [vmem:[#allocation13 + $0x298] sm:$0xff]  ;;  %v6454_v55 = vld [vmem:[#allocation13 + $0x100] sm:$0xff] }
 0x8e4   :  { %7663 = vmatprep.subr.bf16.mxu0 %v7662_v2 }
 0x8e7   :  { %7665 = vmatpush1.bf16.msra.mxu0 %v7664_v37 }
 0x8e8   :  { %7667 = vmatprep.subr.bf16.mxu0 %v7666_v12 }
 0x8eb   :  { %7669 = vmatpush1.bf16.msra.mxu0 %v7668_v54 }
 0x8ec   :  { %7671 = vmatprep.subr.bf16.mxu0 %v7670_v17  ;;  %v6478_v17 = vld [vmem:[#allocation13 + $0x1c0] sm:$0xff] }
 0x8ef   :  { %7673 = vmatpush1.bf16.msra.mxu0 %v7672_v38 }
 0x8f0   :  { %7675 = vmatprep.subr.bf16.mxu0 %v7674_v1  ;;  %v7694_v1 = vpack.c.bf16 %v6481_v52, %v6478_v17  ;;  %v6386_v52 = vld [vmem:[#allocation11 + $0x60] sm:$0xff] }
 0x8f3   :  { %7677 = vmatpush1.bf16.msra.mxu0 %v7676_v39  ;;  %v7696_v39 = vpack.c.bf16 %v6433_v59, %v6430_v13  ;;  %v6392_v59 = vld [vmem:[#allocation11 + $0x90] sm:$0xff] }
 0x8f4   :  { %7679 = vmatprep.subr.bf16.mxu0 %v7678_v32  ;;  %v7698_v32 = vpack.c.bf16 %v6487_v36, %v6484_v29  ;;  %v6395_v29 = vld [vmem:[#allocation11 + $0xa8] sm:$0xff] }
 0x8f5   :  { %v6399_v36 = vld [vmem:[#allocation11 + $0xc8] sm:$0xff] }
 0x8f7   :  { %7681 = vmatpush1.bf16.msra.mxu0 %v7680_v14  ;;  %v7700_v14 = vpack.c.bf16 %v6439_v41, %v6436_v63  ;;  %v6398_v63 = vld [vmem:[#allocation11 + $0xc0] sm:$0xff]  ;;  %v6401_v41 = vld [vmem:[#allocation11 + $0xd8] sm:$0xff] }
 0x8f8   :  { %7683 = vmatprep.subr.bf16.mxu0 %v7682_v27  ;;  %v7702_v27 = vpack.c.bf16 %v6493_v61, %v6490_v46  ;;  %v6405_v46 = vld [vmem:[#allocation11 + $0xf8] sm:$0xff]  ;;  %v6408_v61 = vld [vmem:[#allocation11 + $0x110] sm:$0xff] }
 0x8fb   :  { %7685 = vmatpush1.bf16.msra.mxu0 %v7684_v21  ;;  %v6496_v21 = vld [vmem:[#allocation13 + $0x250] sm:$0xff] }
 0x8fc   :  { %7687 = vmatprep.subr.bf16.mxu0 %v7686_v11  ;;  %v7710_v11 = vpack.c.bf16 %v6505_v19, %v6502_v31  ;;  %v6417_v31 = vld [vmem:[#allocation11 + $0x158] sm:$0xff]  ;;  %v6420_v19 = vld [vmem:[#allocation11 + $0x170] sm:$0xff] }
 0x8fe   :  { %v5509_v35 = vpop.f32.mrb[8].mxu0 }
 0x8ff   :  { %v6538_v9 = vrot.slane %v5509_v35, 5  ;;  %v5511_v56 = vpop.f32.mrb[9].mxu0  ;;  %7689 = vmatpush1.bf16.msra.mxu0 %v7688_v16  ;;  %v6499_v35 = vld [vmem:[#allocation13 + $0x268] sm:$0xff]  ;;  %v6508_v16 = vld [vmem:[#allocation13 + $0x2b0] sm:$0xff] }
 0x900   :  { %v6552_v53 = vrot.slane %v5511_v56, 5  ;;  %7691 = vmatprep.subr.bf16.mxu0 %v7690_v57  ;;  %v7706_v56 = vpack.c.bf16 %v6499_v35, %v6496_v21  ;;  %v7714_v57 = vpack.c.bf16 %v6511_v45, %v6508_v16  ;;  %v6411_v21 = vld [vmem:[#allocation11 + $0x128] sm:$0xff]  ;;  %v6414_v35 = vld [vmem:[#allocation11 + $0x140] sm:$0xff]  ;;  %v6376_v45 = vld [vmem:[#allocation11 + $0x10] sm:$0xff] }
 0x901   :  { %v6539_v3 = vsel %vm2885_vm3, %v6538_v9, %v12571_v10  ;;  %v7704_v9 = vpack.c.bf16 %v6445_v23, %v6442_v58  ;;  %v6404_v58 = vld [vmem:[#allocation11 + $0xf0] sm:$0xff]  ;;  %v6407_v23 = vld [vmem:[#allocation11 + $0x108] sm:$0xff] }
 0x902   :  { %v6553_v50 = vsel %vm2885_vm3, %v6552_v53, %v12575_v15  ;;  %vm14050_vm3 = vmmov %vm14044_vm7  ;;  %v6448_v53 = vld [vmem:[#allocation13 + $0xd0] sm:$0xff] }
 0x903   :  { %vm14051_vm0 = vmmov %vm14050_vm3 }
 0x91e   :  { %v5724_v33 = vpop.f32.mrb[10].mxu0 }
 0x91f   :  { %v6540_v28 = vrot.slane %v5724_v33, 4  ;;  %v5726_v44 = vpop.f32.mrb[11].mxu0  ;;  %v6460_v33 = vld [vmem:[#allocation13 + $0x130] sm:$0xff] }
 0x920   :  { %v6554_v48 = vrot.slane %v5726_v44, 4  ;;  %v6514_v44 = vld [vmem:[#allocation13 + $0x2e0] sm:$0xff] }
 0x921   :  { %v6541_v6 = vsel %vm2887_vm11, %v6540_v28, %v6539_v3  ;;  %v7708_v3 = vpack.c.bf16 %v6451_v0, %v6448_v53  ;;  %v6463_v28 = vld [vmem:[#allocation13 + $0x148] sm:$0xff]  ;;  %v6410_v53 = vld [vmem:[#allocation11 + $0x120] sm:$0xff]  ;;  %v6413_v0 = vld [vmem:[#allocation11 + $0x138] sm:$0xff] }
 0x922   :  { %v6555_v10 = vsel %vm2887_vm11, %v6554_v48, %v6553_v50  ;;  %vm14052_vm11 = vmmov %vm14045_vm8  ;;  %v6457_v50 = vld [vmem:[#allocation13 + $0x118] sm:$0xff] }
 0x923   :  { %v7712_v8 = vpack.c.bf16 %v6457_v50, %v6454_v55  ;;  %v6517_v48 = vld [vmem:[#allocation13 + $0x2f8] sm:$0xff]  ;;  %v6416_v55 = vld [vmem:[#allocation11 + $0x150] sm:$0xff]  ;;  %v6419_v50 = vld [vmem:[#allocation11 + $0x168] sm:$0xff] }
 0x924   :  { %v7752_v16 = vpack.c.bf16 %v6419_v50, %v6416_v55 }
 0x93e   :  { %v5939_v20 = vpop.f32.mrb[12].mxu0 }
 0x93f   :  { %v6542_v43 = vrot.slane %v5939_v20, 3  ;;  %v5941_v49 = vpop.f32.mrb[13].mxu0  ;;  %v6466_v20 = vld [vmem:[#allocation13 + $0x160] sm:$0xff] }
 0x940   :  { %v6556_v4 = vrot.slane %v5941_v49, 3  ;;  %v6375_v49 = vld [vmem:[#allocation11 + $0x8] sm:$0xff] }
 0x941   :  { %v6543_v15 = vsel %vm2889_vm10, %v6542_v43, %v6541_v6  ;;  %v7716_v6 = vpack.c.bf16 %v6463_v28, %v6460_v33  ;;  %v6469_v43 = vld [vmem:[#allocation13 + $0x178] sm:$0xff]  ;;  %v14054_v28 = vmov 0.0|0.0  }
 0x942   :  { %v6557_v2 = vsel %vm2889_vm10, %v6556_v4, %v6555_v10  ;;  %vm14053_vm10 = vmmov %vm14045_vm8  ;;  %v7718_v10 = vpack.c.bf16 %v6517_v48, %v6514_v44  ;;  %v6378_v4 = vld [vmem:[#allocation11 + $0x20] sm:$0xff]  ;;  %v6385_v48 = vld [vmem:[#allocation11 + $0x58] sm:$0xff] }
 0x943   :  { %v6382_v44 = vld [vmem:[#allocation11 + $0x40] sm:$0xff] }
 0x95e   :  { %v6154_v51 = vpop.f32.mrb[14].mxu0 }
 0x95f   :  { %v6544_v7 = vrot.slane %v6154_v51, 2  ;;  %v6156_v60 = vpop.f32.mrb[15].mxu0  ;;  %v6374_v51 = vld [vmem:[#allocation11] sm:$0xff] }
 0x960   :  { %v6558_v18 = vrot.slane %v6156_v60, 2  ;;  %v6381_v60 = vld [vmem:[#allocation11 + $0x38] sm:$0xff] }
 0x961   :  { %v6545_v37 = vsel %vm14050_vm3, %v6544_v7, %v6543_v15  ;;  %v7720_v15 = vpack.c.bf16 %v6469_v43, %v6466_v20  ;;  %v6377_v7 = vld [vmem:[#allocation11 + $0x18] sm:$0xff]  ;;  %v6391_v20 = vld [vmem:[#allocation11 + $0x88] sm:$0xff] }
 0x962   :  { %v6559_v12 = vsel %vm14051_vm0, %v6558_v18, %v6557_v2  ;;  %v7722_v2 = vpack.c.bf16 %v6378_v4, %v6375_v49  ;;  %v6384_v18 = vld [vmem:[#allocation11 + $0x50] sm:$0xff]  ;;  %v6394_v49 = vld [vmem:[#allocation11 + $0xa0] sm:$0xff]  ;;  %v6397_v4 = vld [vmem:[#allocation11 + $0xb8] sm:$0xff] }
 0x97e   :  { %v6369_v5 = vpop.f32.mrb[16].mxu0 }
 0x97f   :  { %v6546_v30 = vrot.slane %v6369_v5, 1  ;;  %v6371_v54 = vpop.f32.mrb[17].mxu0  ;;  %v6380_v5 = vld [vmem:[#allocation11 + $0x30] sm:$0xff] }
 0x980   :  { %v6560_v24 = vrot.slane %v6371_v54, 1  ;;  %v7728_v54 = vpack.c.bf16 %v6383_v47, %v6380_v5  ;;  %v6415_v5 = vld [vmem:[#allocation11 + $0x148] sm:$0xff] }
 0x981   :  { %v12588_v25 = vsel %vm14052_vm11, %v6546_v30, %v6545_v37  ;;  %v7724_v37 = vpack.c.bf16 %v6377_v7, %v6374_v51  ;;  %v6390_v30 = vld [vmem:[#allocation11 + $0x80] sm:$0xff]  ;;  %v6403_v51 = vld [vmem:[#allocation11 + $0xe8] sm:$0xff] }
 0x982   :  { %v6561_v38 = vsel %vm14053_vm10, %v6560_v24, %v6559_v12  ;;  %7103 = vst [vmem:[#allocation19] sm:$0xff] %v12588_v25  ;;  %v7726_v12 = vpack.c.bf16 %v6384_v18, %v6381_v60  ;;  %v7730_v17 = vpack.c.bf16 %v6390_v30, %v6387_v26  ;;  %v6389_v24 = vld [vmem:[#allocation11 + $0x78] sm:$0xff]  ;;  %v6406_v60 = vld [vmem:[#allocation11 + $0x100] sm:$0xff] }
 0x983   :  { %6628 = vmatprep.mubr.f32.mxu0 %v6561_v38  ;;  %7104 = vst [vmem:[#allocation19 + $0x8] sm:$0xff] %v6561_v38  ;;  %v6409_v18 = vld [vmem:[#allocation11 + $0x118] sm:$0xff]  ;;  %v6418_v26 = vld [vmem:[#allocation11 + $0x160] sm:$0xff] }
 0x984   :  { %6629 = vmatmul.mubr.f32.vlgmr.msra.gmra.mrb[18].mxu0 %v12588_v25  ;;  %v6421_v30 = vld [vmem:[#allocation11 + $0x178] sm:$0xff] }
 0x985   :  { %7693 = vmatpush3.bf16.msra.mxu0 %v7692_v22  ;;  %6699 = vmatprep.mubr.f32.mxu0 %v6561_v38  ;;  %v6393_v22 = vld [vmem:[#allocation11 + $0x98] sm:$0xff]  ;;  %v6396_v38 = vld [vmem:[#allocation11 + $0xb0] sm:$0xff] }
 0x986   :  { %7695 = vmatprep.subr.bf16.mxu0 %v7694_v1  ;;  %v7732_v1 = vpack.c.bf16 %v6389_v24, %v6386_v52  ;;  %v7734_v13 = vpack.c.bf16 %v6396_v38, %v6393_v22  ;;  %v7776_v52 = vpack.c.bf16 %v6421_v30, %v6418_v26  ;;  %v6866_v22 = vld [vmem:[#allocation14] sm:$0xff]  ;;  %v6869_v38 = vld [vmem:[#allocation14 + $0x18] sm:$0xff]  ;;  %v6883_v26 = vld [vmem:[#allocation14 + $0x88] sm:$0xff] }
 0x989   :  { %7697 = vmatpush3.bf16.msra.mxu0 %v7696_v39  ;;  %v6402_v39 = vld [vmem:[#allocation11 + $0xe0] sm:$0xff] }
 0x98a   :  { %7699 = vmatprep.subr.bf16.mxu0 %v7698_v32  ;;  %v7738_v32 = vpack.c.bf16 %v6402_v39, %v6399_v36  ;;  %v6872_v36 = vld [vmem:[#allocation14 + $0x30] sm:$0xff]  ;;  %v6875_v39 = vld [vmem:[#allocation14 + $0x48] sm:$0xff] }
 0x98d   :  { %7701 = vmatpush3.bf16.msra.mxu0 %v7700_v14  ;;  %v7740_v14 = vpack.c.bf16 %v6401_v41, %v6398_v63  ;;  %v7784_v63 = vpack.c.bf16 %v6875_v39, %v6872_v36  ;;  %v6910_v39 = vld [vmem:[#allocation14 + $0x160] sm:$0xff] }
 0x98e   :  { %7703 = vmatprep.subr.bf16.mxu0 %v7702_v27  ;;  %v7742_v27 = vpack.c.bf16 %v6408_v61, %v6405_v46  ;;  %v6878_v46 = vld [vmem:[#allocation14 + $0x60] sm:$0xff]  ;;  %v6881_v61 = vld [vmem:[#allocation14 + $0x78] sm:$0xff] }
 0x991   :  { %7705 = vmatpush3.bf16.msra.mxu0 %v7704_v9  ;;  %v7744_v9 = vpack.c.bf16 %v6407_v23, %v6404_v58  ;;  %v7788_v58 = vpack.c.bf16 %v6881_v61, %v6878_v46 }
 0x992   :  { %7707 = vmatprep.subr.bf16.mxu0 %v7706_v56  ;;  %v7746_v56 = vpack.c.bf16 %v6414_v35, %v6411_v21  ;;  %v6884_v21 = vld [vmem:[#allocation14 + $0x90] sm:$0xff]  ;;  %v6887_v35 = vld [vmem:[#allocation14 + $0xa8] sm:$0xff] }
 0x995   :  { %7709 = vmatpush3.bf16.msra.mxu0 %v7708_v3  ;;  %v7748_v3 = vpack.c.bf16 %v6413_v0, %v6410_v53  ;;  %v7792_v53 = vpack.c.bf16 %v6887_v35, %v6884_v21 }
 0x996   :  { %7711 = vmatprep.subr.bf16.mxu0 %v7710_v11  ;;  %v7750_v11 = vpack.c.bf16 %v6420_v19, %v6417_v31  ;;  %v6890_v31 = vld [vmem:[#allocation14 + $0xc0] sm:$0xff]  ;;  %v6893_v19 = vld [vmem:[#allocation14 + $0xd8] sm:$0xff] }
 0x997   :  { %v7796_v55 = vpack.c.bf16 %v6893_v19, %v6890_v31 }
 0x999   :  { %7713 = vmatpush3.bf16.msra.mxu0 %v7712_v8  ;;  %v6379_v8 = vld [vmem:[#allocation11 + $0x28] sm:$0xff] }
 0x99a   :  { %7715 = vmatprep.subr.bf16.mxu0 %v7714_v57  ;;  %v152_v57 = vld [vmem:[#allocation2] sm:$0xff]  ;;  %v7755_v33 = vpack.c.bf16 %v6379_v8, %v6376_v45  ;;  %v6899_v45 = vld [vmem:[#allocation14 + $0x108] sm:$0xff] }
 0x99b   :  { %v6903_v8 = vld [vmem:[#allocation14 + $0x128] sm:$0xff] }
 0x99d   :  { %7717 = vmatpush3.bf16.msra.mxu0 %v7716_v6  ;;  %v7758_v6 = vpack.c.bf16 %v6385_v48, %v6382_v44  ;;  %v6902_v48 = vld [vmem:[#allocation14 + $0x120] sm:$0xff] }
 0x99e   :  { %7719 = vmatprep.subr.bf16.mxu0 %v7718_v10  ;;  %v6388_v10 = vld [vmem:[#allocation11 + $0x70] sm:$0xff] }
 0x99f   :  { %v7761_v43 = vpack.c.bf16 %v6391_v20, %v6388_v10  ;;  %v6909_v10 = vld [vmem:[#allocation14 + $0x158] sm:$0xff]  ;;  %v6912_v20 = vld [vmem:[#allocation14 + $0x170] sm:$0xff] }
 0x9a1   :  { %7721 = vmatpush3.bf16.msra.mxu0 %v7720_v15  ;;  %v7764_v15 = vpack.c.bf16 %v6397_v4, %v6394_v49  ;;  %v7806_v49 = vpack.c.bf16 %v6912_v20, %v6909_v10  ;;  %v6908_v4 = vld [vmem:[#allocation14 + $0x150] sm:$0xff] }
 0x9a2   :  { %7723 = vmatprep.subr.bf16.mxu0 %v7722_v2  ;;  %v6400_v2 = vld [vmem:[#allocation11 + $0xd0] sm:$0xff] }
 0x9a3   :  { %v7767_v7 = vpack.c.bf16 %v6403_v51, %v6400_v2  ;;  %v6868_v51 = vld [vmem:[#allocation14 + $0x10] sm:$0xff] }
 0x9a4   :  { %6700 = vmatmul.mubr.f32.vlgmr.msra.gmra.mrb[20].mxu0 %v12588_v25  ;;  %v7736_v25 = vpack.c.bf16 %v6395_v29, %v6392_v59  ;;  %v7780_v59 = vpack.c.bf16 %v6869_v38, %v6866_v22  ;;  %v6895_v22 = vld [vmem:[#allocation14 + $0xe8] sm:$0xff] }
 0x9a5   :  { %7725 = vmatpush1.bf16.msra.mxu0 %v7724_v37  ;;  %6769 = vmatprep.mubr.f32.mxu0 %v13855_v42  ;;  %v7770_v37 = vpack.c.bf16 %v6409_v18, %v6406_v60  ;;  %v6874_v18 = vld [vmem:[#allocation14 + $0x40] sm:$0xff] }
 0x9a6   :  { %7727 = vmatprep.subr.bf16.mxu0 %v7726_v12  ;;  %v6412_v12 = vld [vmem:[#allocation11 + $0x130] sm:$0xff] }
 0x9a7   :  { %v7773_v47 = vpack.c.bf16 %v6415_v5, %v6412_v12  ;;  %v12607_v12 = vld [vmem:[#allocation5] sm:$0xff] }
 0x9a9   :  { %7729 = vmatpush1.bf16.msra.mxu0 %v7728_v54  ;;  %v6867_v54 = vld [vmem:[#allocation14 + $0x8] sm:$0xff] }
 0x9aa   :  { %7731 = vmatprep.subr.bf16.mxu0 %v7730_v17  ;;  %v6870_v17 = vld [vmem:[#allocation14 + $0x20] sm:$0xff] }
 0x9ab   :  { %v7778_v24 = vpack.c.bf16 %v6870_v17, %v6867_v54  ;;  %v6886_v54 = vld [vmem:[#allocation14 + $0xa0] sm:$0xff]  ;;  %v6889_v17 = vld [vmem:[#allocation14 + $0xb8] sm:$0xff] }
 0x9ad   :  { %7733 = vmatpush1.bf16.msra.mxu0 %v7732_v1  ;;  %v6873_v1 = vld [vmem:[#allocation14 + $0x38] sm:$0xff] }
 0x9ae   :  { %7735 = vmatprep.subr.bf16.mxu0 %v7734_v13  ;;  %v6876_v13 = vld [vmem:[#allocation14 + $0x50] sm:$0xff] }
 0x9af   :  { %v7782_v29 = vpack.c.bf16 %v6876_v13, %v6873_v1  ;;  %v6901_v1 = vld [vmem:[#allocation14 + $0x118] sm:$0xff] }
 0x9b1   :  { %7737 = vmatpush1.bf16.msra.mxu0 %v7736_v25  ;;  %v6879_v25 = vld [vmem:[#allocation14 + $0x68] sm:$0xff] }
 0x9b2   :  { %7739 = vmatprep.subr.bf16.mxu0 %v7738_v32  ;;  %v6882_v32 = vld [vmem:[#allocation14 + $0x80] sm:$0xff] }
 0x9b3   :  { %v7786_v41 = vpack.c.bf16 %v6882_v32, %v6879_v25  ;;  %v6913_v25 = vld [vmem:[#allocation14 + $0x178] sm:$0xff] }
 0x9b4   :  { %v7832_v32 = vpack.c.bf16 %v6913_v25, %v6910_v39 }
 0x9b5   :  { %7741 = vmatpush1.bf16.msra.mxu0 %v7740_v14  ;;  %v6885_v14 = vld [vmem:[#allocation14 + $0x98] sm:$0xff] }
 0x9b6   :  { %7743 = vmatprep.subr.bf16.mxu0 %v7742_v27  ;;  %v6888_v27 = vld [vmem:[#allocation14 + $0xb0] sm:$0xff] }
 0x9b7   :  { %v7790_v23 = vpack.c.bf16 %v6888_v27, %v6885_v14 }
 0x9b9   :  { %7745 = vmatpush1.bf16.msra.mxu0 %v7744_v9  ;;  %v6891_v9 = vld [vmem:[#allocation14 + $0xc8] sm:$0xff] }
 0x9ba   :  { %7747 = vmatprep.subr.bf16.mxu0 %v7746_v56  ;;  %v6894_v56 = vld [vmem:[#allocation14 + $0xe0] sm:$0xff] }
 0x9bb   :  { %v7794_v0 = vpack.c.bf16 %v6894_v56, %v6891_v9 }
 0x9bd   :  { %7749 = vmatpush1.bf16.msra.mxu0 %v7748_v3  ;;  %v6897_v3 = vld [vmem:[#allocation14 + $0xf8] sm:$0xff] }
 0x9be   :  { %7751 = vmatprep.subr.bf16.mxu0 %v7750_v11  ;;  %v6900_v11 = vld [vmem:[#allocation14 + $0x110] sm:$0xff] }
 0x9bf   :  { %v7798_v50 = vpack.c.bf16 %v6900_v11, %v6897_v3 }
 0x9c1   :  { %7753 = vmatpush1.bf16.msra.mxu0 %v7752_v16  ;;  %v6896_v16 = vld [vmem:[#allocation14 + $0xf0] sm:$0xff] }
 0x9c2   :  { %7754 = vmatprep.subr.bf16.mxu0 %v14054_v28 }
 0x9c4   :  { %6770 = vmatmul.mubr.f32.vlgmr.msra.gmra.mrb[18].mxu0 %v152_v57 }
 0x9c5   :  { %7756 = vmatpush3.bf16.msra.mxu0 %v7755_v33  ;;  %7308 = vmatprep.mubr.msk.f32.mxu0 %vm14055_vm9, %v13855_v42  ;;  %v7800_v33 = vpack.c.bf16 %v6899_v45, %v6896_v16 }
 0x9c6   :  { %7757 = vmatprep.subr.bf16.mxu0 %v14054_v28 }
 0x9c9   :  { %7759 = vmatpush3.bf16.msra.mxu0 %v7758_v6  ;;  %v6905_v6 = vld [vmem:[#allocation14 + $0x138] sm:$0xff] }
 0x9ca   :  { %7760 = vmatprep.subr.bf16.mxu0 %v14054_v28 }
 0x9cd   :  { %7762 = vmatpush3.bf16.msra.mxu0 %v7761_v43  ;;  %v7804_v43 = vpack.c.bf16 %v6905_v6, %v6902_v48 }
 0x9ce   :  { %7763 = vmatprep.subr.bf16.mxu0 %v14054_v28 }
 0x9d1   :  { %7765 = vmatpush3.bf16.msra.mxu0 %v7764_v15  ;;  %v6911_v15 = vld [vmem:[#allocation14 + $0x168] sm:$0xff] }
 0x9d2   :  { %7766 = vmatprep.subr.bf16.mxu0 %v14054_v28  ;;  %v7808_v2 = vpack.c.bf16 %v6911_v15, %v6908_v4 }
 0x9d5   :  { %7768 = vmatpush3.bf16.msra.mxu0 %v7767_v7  ;;  %v6871_v7 = vld [vmem:[#allocation14 + $0x28] sm:$0xff] }
 0x9d6   :  { %7769 = vmatprep.subr.bf16.mxu0 %v14054_v28  ;;  %v7811_v60 = vpack.c.bf16 %v6871_v7, %v6868_v51 }
 0x9d9   :  { %7771 = vmatpush3.bf16.msra.mxu0 %v7770_v37  ;;  %v6877_v37 = vld [vmem:[#allocation14 + $0x58] sm:$0xff] }
 0x9da   :  { %7772 = vmatprep.subr.bf16.mxu0 %v14054_v28  ;;  %v7814_v5 = vpack.c.bf16 %v6877_v37, %v6874_v18 }
 0x9dd   :  { %7774 = vmatpush3.bf16.msra.mxu0 %v7773_v47  ;;  %v6880_v47 = vld [vmem:[#allocation14 + $0x70] sm:$0xff] }
 0x9de   :  { %7775 = vmatprep.subr.bf16.mxu0 %v14054_v28  ;;  %v7817_v30 = vpack.c.bf16 %v6883_v26, %v6880_v47 }
 0x9e1   :  { %7777 = vmatpush3.bf16.msra.mxu0 %v7776_v52  ;;  %v7820_v52 = vpack.c.bf16 %v6889_v17, %v6886_v54 }
 0x9e2   :  { %7779 = vmatprep.subr.bf16.mxu0 %v7778_v24  ;;  %v6892_v24 = vld [vmem:[#allocation14 + $0xd0] sm:$0xff] }
 0x9e3   :  { %v7823_v38 = vpack.c.bf16 %v6895_v22, %v6892_v24 }
 0x9e4   :  { %7309 = vmatmul.mubr.f32.vlgmr.msra.gmra.mrb[22].mxu0 %v152_v57  ;;  %v6906_v57 = vld [vmem:[#allocation14 + $0x140] sm:$0xff] }
 0x9e5   :  { %7781 = vmatpush1.bf16.msra.mxu0 %v7780_v59  ;;  %6995 = vmatprep.mubr.f32.mxu0 %v13855_v42  ;;  %v7802_v44 = vpack.c.bf16 %v6906_v57, %v6903_v8  ;;  %v6904_v59 = vld [vmem:[#allocation14 + $0x130] sm:$0xff] }
 0x9e6   :  { %7783 = vmatprep.subr.bf16.mxu0 %v7782_v29  ;;  %v6907_v29 = vld [vmem:[#allocation14 + $0x148] sm:$0xff] }
 0x9e7   :  { %v7829_v36 = vpack.c.bf16 %v6907_v29, %v6904_v59 }
 0x9e9   :  { %7785 = vmatpush1.bf16.msra.mxu0 %v7784_v63 }
 0x9ea   :  { %7787 = vmatprep.subr.bf16.mxu0 %v7786_v41 }
 0x9ed   :  { %7789 = vmatpush1.bf16.msra.mxu0 %v7788_v58 }
 0x9ee   :  { %7791 = vmatprep.subr.bf16.mxu0 %v7790_v23 }
 0x9f1   :  { %7793 = vmatpush1.bf16.msra.mxu0 %v7792_v53 }
 0x9f2   :  { %7795 = vmatprep.subr.bf16.mxu0 %v7794_v0 }
 0x9f5   :  { %7797 = vmatpush1.bf16.msra.mxu0 %v7796_v55 }
 0x9f6   :  { %7799 = vmatprep.subr.bf16.mxu0 %v7798_v50 }
 0x9f9   :  { %7801 = vmatpush1.bf16.msra.mxu0 %v7800_v33 }
 0x9fa   :  { %7803 = vmatprep.subr.bf16.mxu0 %v7802_v44 }
 0x9fd   :  { %7805 = vmatpush1.bf16.msra.mxu0 %v7804_v43 }
 0x9fe   :  { %7807 = vmatprep.subr.bf16.mxu0 %v7806_v49 }
 0xa01   :  { %7809 = vmatpush1.bf16.msra.mxu0 %v7808_v2 }
 0xa02   :  { %7810 = vmatprep.subr.bf16.mxu0 %v14054_v28 }
 0xa04   :  { %6996 = vmatmul.mubr.f32.vlgmr.msra.gmra.mrb[18].mxu0 %v12607_v12 }
 0xa05   :  { %7812 = vmatpush3.bf16.msra.mxu0 %v7811_v60  ;;  %7343 = vmatprep.mubr.msk.f32.mxu0 %vm14055_vm9, %v13855_v42  ;;  %v6898_v42 = vld [vmem:[#allocation14 + $0x100] sm:$0xff] }
 0xa06   :  { %7813 = vmatprep.subr.bf16.mxu0 %v14054_v28  ;;  %v7826_v13 = vpack.c.bf16 %v6901_v1, %v6898_v42 }
 0xa09   :  { %7815 = vmatpush3.bf16.msra.mxu0 %v7814_v5 }
 0xa0a   :  { %7816 = vmatprep.subr.bf16.mxu0 %v14054_v28 }
 0xa0d   :  { %7818 = vmatpush3.bf16.msra.mxu0 %v7817_v30 }
 0xa0e   :  { %7819 = vmatprep.subr.bf16.mxu0 %v14054_v28 }
 0xa11   :  { %7821 = vmatpush3.bf16.msra.mxu0 %v7820_v52 }
 0xa12   :  { %7822 = vmatprep.subr.bf16.mxu0 %v14054_v28 }
 0xa15   :  { %7824 = vmatpush3.bf16.msra.mxu0 %v7823_v38 }
 0xa16   :  { %7825 = vmatprep.subr.bf16.mxu0 %v14054_v28 }
 0xa19   :  { %7827 = vmatpush3.bf16.msra.mxu0 %v7826_v13 }
 0xa1a   :  { %7828 = vmatprep.subr.bf16.mxu0 %v14054_v28 }
 0xa1d   :  { %7830 = vmatpush3.bf16.msra.mxu0 %v7829_v36 }
 0xa1e   :  { %7831 = vmatprep.subr.bf16.mxu0 %v14054_v28 }
 0xa21   :  { %7833 = vmatpush3.bf16.msra.mxu0 %v7832_v32 }
 0xa24   :  { %7344 = vmatmul.mubr.f32.vlgmr.msra.gmra.mrb[24].mxu0 %v12607_v12 }
 0xa77   :  { %v7204_v63 = vpop.f32.mrb[20].mxu0 }
 0xa78   :  { %v7205_v41 = vpop.f32.mrb[21].mxu0 }
 0xa79   :  { %v7206_v46 = vadd.f32 %v7205_v41, %v7204_v63 }
 0xa7a   :  { %8596 = shalt.err (!%p8593_p12)
}
 0xa7b   :  { %s8597_s28 = scalar_lea.hbm %s12682_s13, 128 }
 0xa7c   :  { %p8598_p13 = scmp.ne.s32.totalorder %s12682_s13, %s8597_s28  ;;  %p8601_p0 = scmp.lt.u32.totalorder %s8597_s28, %s12682_s13 }
 0xa7e   :  { %p8603_p1 = pnand %p8601_p0, %p8598_p13 }
 0xa80   :  { %8606 = shalt.err (!%p8603_p1)
}
 0xa81   :  { %7124 = dma.vmem_to_hbm [thread:$0]  %s7122_s1, 128, %s12682_s13, [#allocation18]  }
 0xa82   :  { %s8685_s8 = smov [#allocation19]  }
 0xa83   :  { %s7131_s20 = sshll.u32 %s8685_s8, 4  ;;  %s7132_s20 = int_to_ptr.vmem [resolvable:$true] %s7131_s20 }
 0xa84   :  { %s8607_s9 = scalar_lea.vmem %s7132_s20, 256  ;;  %p8612_p3 = scmp.lt.s32.totalorder %s7132_s20, %s7132_s20 }
 0xa85   :  { %p8608_p2 = scmp.ne.s32.totalorder %s7132_s20, %s8607_s9  ;;  %p8613_p4 = scmp.lt.s32.totalorder %s8607_s9, %s8607_s9 }
 0xa87   :  { %p8614_p5 = por %p8613_p4, %p8612_p3 }
 0xa89   :  { %p8615_p6 = pnand %p8614_p5, %p8608_p2 }
 0xa8b   :  { %8618 = shalt.err (!%p8615_p6)
}
 0xa8c   :  { %s8619_s17 = scalar_lea.hbm %s12683_s14, 256 }
 0xa8d   :  { %p8620_p7 = scmp.ne.s32.totalorder %s12683_s14, %s8619_s17  ;;  %p8623_p8 = scmp.lt.u32.totalorder %s8619_s17, %s12683_s14 }
 0xa8f   :  { %p8625_p9 = pnand %p8623_p8, %p8620_p7 }
 0xa91   :  { %8628 = shalt.err (!%p8625_p9)
}
 0xa92   :  { %7134 = dma.vmem_to_hbm [thread:$0]  %s7132_s20, 256, %s12683_s14, [#allocation18]   ;;  %v6914_v27 = vld [vmem:[%s12680_s11] sm:$0x7] }
 0xa93   :  { %v6846_v58 = vld [vmem:[%s12679_s10] sm:$0x7]  ;;  %v6919_v21 = vrot.slane %v6914_v27, %v13745_v40  ;;  %v6923_v31 = vrot.slane %v6914_v27, %v13746_v62  ;;  %s8686_s10 = smov [#allocation16]  }
 0xa94   :  { %v6851_v23 = vrot.slane %v6846_v58, %v13745_v40  ;;  %v6855_v0 = vrot.slane %v6846_v58, %v13746_v62  ;;  %v6927_v40 = vrot.slane %v6914_v27, %v13759_v34  ;;  %v6859_v8 = vrot.slane %v6846_v58, %v13759_v34  ;;  %s7111_s11 = sshll.u32 %s8686_s10, 4  ;;  %s7112_s11 = int_to_ptr.vmem [resolvable:$true] %s7111_s11 }
 0xa95   :  { %s8629_s14 = scalar_lea.vmem %s7112_s11, 128  ;;  %p8634_p11 = scmp.lt.s32.totalorder %s7112_s11, %s7112_s11 }
 0xa96   :  { %v7834_v35 = vadd.f32 %v6919_v21, %v6851_v23  ;;  %v7836_v3 = vadd.f32 %v6923_v31, %v6855_v0  ;;  %p8630_p10 = scmp.ne.s32.totalorder %s7112_s11, %s8629_s14  ;;  %p8635_p12 = scmp.lt.s32.totalorder %s8629_s14, %s8629_s14 }
 0xa98   :  { %p8636_p13 = por %p8635_p12, %p8634_p11 }
 0xa9a   :  { %p8637_p0 = pnand %p8636_p13, %p8630_p10 }
 0xab7   :  { %v6842_v28 = vpop.f32.mrb[22].mxu0 }
 0xab8   :  { %v6843_v61 = vadd.f32 %v7206_v46, %v6842_v28  ;;  %v7310_v14 = vpop.f32.mrb[23].mxu0 }
 0xaba   :  { %v6865_v62 = vadd.f32 %v6859_v8, %v6843_v61 }
 0xad7   :  { %v6997_v9 = vpop.f32.mrb[18].mxu0 }
 0xad8   :  { %v7835_v56 = vadd.f32 %v7834_v35, %v6997_v9  ;;  %v6999_v53 = vpop.f32.mrb[19].mxu0 }
 0xad9   :  { %v7837_v11 = vadd.f32 %v7836_v3, %v6999_v53 }
 0xada   :  { %v7153_v19 = vmul.f32 -1.442695, %v7835_v56 }
 0xadb   :  { %v7154_v55 = vmul.f32 -1.442695, %v7837_v11 }
 0xadc   :  { %8394 = vpow2.f32 %v7153_v19 }
 0xadd   :  { %8396 = vpow2.f32 %v7154_v55 }
 0xae6   :  { %v8395_v50 = vpop.eup %8394 }
 0xae7   :  { %v7076_v16 = vadd.f32 1.0, %v8395_v50  ;;  %v8397_v45 = vpop.eup %8396 }
 0xae8   :  { %v7083_v57 = vadd.f32 1.0, %v8397_v45 }
 0xae9   :  { %8398 = vrcp.f32 %v7076_v16 }
 0xaea   :  { %8400 = vrcp.f32 %v7083_v57 }
 0xaf3   :  { %v8399_v6 = vpop.eup %8398 }
 0xaf4   :  { %v8401_v43 = vpop.eup %8400 }
 0xaf5   :  { %v7089_v49 = vsub.f32 1.0, %v8401_v43  ;;  %v7091_v2 = vmul.f32 %v12607_v12, %v8401_v43 }
 0xaf7   :  { %v7068_v33 = vpop.f32.mrb[24].mxu0 }
 0xaf8   :  { %v7069_v44 = vadd.f32 %v7068_v33, %v6927_v40  ;;  %v7345_v48 = vpop.f32.mrb[25].mxu0 }
 0xafa   :  { %v7086_v10 = vmul.f32 %v8399_v6, %v7069_v44 }
 0xafc   :  { %v7087_v20 = vadd.f32 %v7086_v10, %v6865_v62 }
 0xafe   :  { %8402 = vtanh.f32 %v7087_v20 }
 0xb08   :  { %v8403_v4 = vpop.eup %8402 }
 0xb09   :  { %v7090_v15 = vmul.f32 %v8403_v4, %v7089_v49 }
 0xb0b   :  { %v7092_v51 = vadd.f32 %v7091_v2, %v7090_v15 }
 0xb0d   :  { %7093 = vst [vmem:[#allocation16] sm:$0xff] %v7092_v51 }
 0xb0e   :  { %8640 = shalt.err (!%p8637_p0)
}
 0xb0f   :  { %s8641_s24 = scalar_lea.hbm %s12681_s12, 128 }
 0xb10   :  { %p8642_p1 = scmp.ne.s32.totalorder %s12681_s12, %s8641_s24  ;;  %p8645_p2 = scmp.lt.u32.totalorder %s8641_s24, %s12681_s12 }
 0xb12   :  { %p8647_p3 = pnand %p8645_p2, %p8642_p1 }
 0xb14   :  { %8650 = shalt.err (!%p8647_p3)
}
 0xb15   :  { %7114 = dma.vmem_to_hbm [thread:$0]  %s7112_s11, 128, %s12681_s12, [#allocation4]  }
 0xb16   :  { %8661 = dma.done.wait [#allocation4], 128  }
 0xb17   :  { %8662 = vsyncadd [#allocation4], 4294967168 }
 0xb18   :  { %8663 = dma.done.wait [#allocation18], 384  }
 0xb19   :  { %8664 = vsyncadd [#allocation18], 4294966912 }
 0xb1a   :  { %7144 = vsyncpa [#allocation3], 1 }
 0xb1b   :  { %7145 = vsyncpa [#allocation6], 1 }
 0xb1c   :  { %7146 = vsyncpa [#allocation9], 1 }
 0xb1d   :  { %7147 = vsyncpa [#allocation12], 1 }
 0xb1e   :  { %7148 = vsyncpa [#allocation15], 1 }
 0xb1f   :  { %7149 = vsyncpa [#allocation4], 1 }
 0xb20   :  { %7150 = vsyncpa [#allocation18], 1 }

</bundles_post_ra>
